<compile_context>
chip_gen: v7x
topology: tpu7x:2x2x1
jax: 0.10.0
libtpu: 0.0.40
codegen_flags: <defaults>
</compile_context>

<pallas_src>
import jax
import jax.numpy as jnp
from jax.experimental import pallas as pl
from jax.experimental.pallas import tpu as pltpu

EPS = 1e-5
NEG_SLOPE = 0.01
LATENT_PAD = 128                    # lane width; bottleneck dim padded to this
VMEM_LIMIT_BYTES = 32 * 1024 * 1024  # plenty at toy sizes; see scaling notes


# -----------------------------------------------------------------------------
# Kernel
# -----------------------------------------------------------------------------
def _autoencoder_kernel(x_ref, *rest):
    """Ref order after x:
       inputs : [W1,g1,b1, W2,g2,b2, W3,g3,b3, W4,bias4,
                 W5,g5,b5, W6,g6,b6, W7,g7,b7, W8_hbm, bias8]
       outputs: out_ref
       scratch: w8_vmem (bf16 VMEM), w8_sem (DMA semaphore)
       W1..W7 are bf16 VMEM refs; W8 stays in HBM (pl.ANY) and is DMA'd into
       w8_vmem under the encoder compute.  gammas/betas/biases are f32 (1,F)."""
    out_ref, w8_vmem, w8_sem = rest[-3], rest[-2], rest[-1]
    params = rest[:-3]
    w8_hbm, bias8_ref = params[-2], params[-1]

    # Kick off the decoder-weight DMA immediately; the encoder hides it.
    w8_copy = pltpu.make_async_copy(w8_hbm, w8_vmem, w8_sem)
    w8_copy.start()

    it = iter(params[:-2])
    inv_b = 1.0 / x_ref.shape[0]

    def matmul(h):
        # bf16 MXU matmul with f32 accumulation (no-op cast on the first layer).
        w = next(it)[...]
        return jnp.dot(h.astype(jnp.bfloat16), w,
                       preferred_element_type=jnp.float32)

    def bn_lrelu(h):
        # Train-mode BatchNorm folded into a single per-feature affine.
        # One-pass moments: mean and E[h^2] reduced together; var clamped at 0.
        gamma = next(it)[...]                                   # (1, F)
        beta = next(it)[...]                                    # (1, F)
        mean = jnp.sum(h, axis=0, keepdims=True) * inv_b        # (1, F)
        ex2 = jnp.sum(h * h, axis=0, keepdims=True) * inv_b     # (1, F)
        var = jnp.maximum(ex2 - mean * mean, 0.0)
        s = gamma * jax.lax.rsqrt(var + EPS)                    # EUP rsqrt
        t = beta - mean * s
        h = h * s + t
        return jnp.maximum(h, NEG_SLOPE * h)                    # LeakyReLU

    h = x_ref[...]                     # bf16 (B, n_movies)

    # ---- encoder ----
    h = bn_lrelu(matmul(h))            # n_movies -> 256  (bias cancelled by BN)
    h = bn_lrelu(matmul(h))            # 256 -> 128
    h = bn_lrelu(matmul(h))            # 128 -> 64
    h = matmul(h) + next(it)[...]      # 64 -> n_latent (padded to 128), bias kept

    # ---- decoder ----
    h = bn_lrelu(matmul(h))            # n_latent -> 64
    h = bn_lrelu(matmul(h))            # 64 -> 128
    h = bn_lrelu(matmul(h))            # 128 -> 256

    # Final layer: 256 -> n_movies, bias kept; weight prefetched from HBM.
    w8_copy.wait()
    h = jnp.dot(h.astype(jnp.bfloat16), w8_vmem[...],
                preferred_element_type=jnp.float32) + bias8_ref[...]

    out_ref[...] = h                   # f32


# -----------------------------------------------------------------------------
# Parameter construction (PyTorch-style init) and packing into kernel operands
# -----------------------------------------------------------------------------
def init_params(key, n_movies, n_latent=20):
    """Per-layer dicts with the full PyTorch parameter set (f32, W as (in, out))."""
    dims = [
        (n_movies, 256, True),
        (256, 128, True),
        (128, 64, True),
        (64, n_latent, False),
        (n_latent, 64, True),
        (64, 128, True),
        (128, 256, True),
        (256, n_movies, False),
    ]
    layers = []
    for fan_in, fan_out, has_bn in dims:
        key, kw, kb = jax.random.split(key, 3)
        bound = fan_in ** -0.5
        w = jax.random.uniform(kw, (fan_in, fan_out), jnp.float32, -bound, bound)
        b = jax.random.uniform(kb, (fan_out,), jnp.float32, -bound, bound)
        layers.append(dict(
            w=w, b=b, has_bn=has_bn,
            gamma=jnp.ones((fan_out,), jnp.float32) if has_bn else None,
            beta=jnp.zeros((fan_out,), jnp.float32) if has_bn else None,
        ))
    return layers


def pack_params(layers, latent_pad=LATENT_PAD):
    """Flat operand list in kernel consumption order.
       - bf16 weights, bottleneck zero-padded to `latent_pad` lanes
       - biases dropped for BN-followed layers (exact algebraic cancellation)."""
    n_latent = layers[3]["w"].shape[1]
    flat = []
    for i, layer in enumerate(layers):
        w, b = layer["w"], layer["b"]
        if i == 3:   # 64 -> n_latent : pad output (lane) dim; padded bias stays 0
            w = jnp.pad(w, ((0, 0), (0, latent_pad - n_latent)))
            b = jnp.pad(b, (0, latent_pad - n_latent))
        if i == 4:   # n_latent -> 64 : pad input (reduction) dim with zero rows
            w = jnp.pad(w, ((0, latent_pad - n_latent), (0, 0)))
        flat.append(w.astype(jnp.bfloat16))
        if layer["has_bn"]:
            flat.append(layer["gamma"].reshape(1, -1))
            flat.append(layer["beta"].reshape(1, -1))
        else:
            flat.append(b.reshape(1, -1).astype(jnp.float32))
    return flat


# -----------------------------------------------------------------------------
# pallas_call wrapper
# -----------------------------------------------------------------------------
@jax.jit
def autoencoder_forward(x, *flat_params):
    B, n_movies = x.shape
    x_bf16 = x.astype(jnp.bfloat16)            # quantization point unchanged

    n_p = len(flat_params)
    w8_idx = n_p - 2                           # (256, n_movies) decoder weight
    w8 = flat_params[w8_idx]

    # All operands resident in VMEM except W8, which is prefetched manually.
    vmem_spec = pl.BlockSpec(memory_space=pltpu.MemorySpace.VMEM)
    in_specs = [vmem_spec] + [
        pl.BlockSpec(memory_space=pl.ANY) if i == w8_idx else vmem_spec
        for i in range(n_p)
    ]

    # Advisory cost hint for the XLA scheduler.
    flops = 0
    bytes_accessed = x_bf16.size * 2 + B * n_movies * 4
    for p in flat_params:
        bytes_accessed += int(p.size) * p.dtype.itemsize
        if p.dtype == jnp.bfloat16:
            flops += 2 * B * int(p.shape[0]) * int(p.shape[1])
    transcendentals = sum(
        int(p.shape[-1]) for p in flat_params if p.dtype != jnp.bfloat16) // 2

    return pl.pallas_call(
        _autoencoder_kernel,
        out_shape=jax.ShapeDtypeStruct((B, n_movies), jnp.float32),
        in_specs=in_specs,
        out_specs=pl.BlockSpec(memory_space=pltpu.MemorySpace.VMEM),
        scratch_shapes=[
            pltpu.VMEM(w8.shape, jnp.bfloat16),   # prefetch target for W8
            pltpu.SemaphoreType.DMA,
        ],
        cost_estimate=pl.CostEstimate(
            flops=flops,
            transcendentals=transcendentals,
            bytes_accessed=bytes_accessed),
        compiler_params=pltpu.CompilerParams(
            vmem_limit_bytes=VMEM_LIMIT_BYTES),
    )(x_bf16, *flat_params)


# -----------------------------------------------------------------------------
# Pure-JAX reference (faithful PyTorch semantics: bias on every Linear,
# standard two-pass BN formulation; same bf16 quantization points as the kernel).
# -----------------------------------------------------------------------------
def _reference_forward(x, layers):
    h = x
    for layer in layers:
        w = layer["w"].astype(jnp.bfloat16)
        h = jnp.dot(h.astype(jnp.bfloat16), w,
                    preferred_element_type=jnp.float32) + layer["b"]
        if layer["has_bn"]:
            m = jnp.mean(h, axis=0, keepdims=True)
            v = jnp.mean((h - m) ** 2, axis=0, keepdims=True)
            h = layer["gamma"] * (h - m) / jnp.sqrt(v + EPS) + layer["beta"]
            h = jnp.where(h > 0, h, NEG_SLOPE * h)
    return h


if __name__ == "__main__":
    B = 256          # fills the MXU M dimension on v6e/v7x (2 passes on v5e)
    N_MOVIES = 512
    N_LATENT = 20

    key = jax.random.PRNGKey(0)
    kx, kp = jax.random.split(key)
    x = jax.random.normal(kx, (B, N_MOVIES), jnp.float32)

    layers = init_params(kp, N_MOVIES, N_LATENT)
    flat = pack_params(layers)

    out = autoencoder_forward(x, *flat)
    out = jax.block_until_ready(out)

    ref = _reference_forward(x, layers)
    assert out.shape == (B, N_MOVIES)
    max_err = float(jnp.max(jnp.abs(out - ref)))
    assert jnp.allclose(out, ref, atol=5e-2, rtol=5e-2), (
        f"mismatch vs pure-JAX reference (max abs err = {max_err})")
    print("KERNEL_OK")
</pallas_src>

<mosaic_0001>
module attributes {stable_mosaic.version = 11 : i64} {
  func.func @_autoencoder_kernel(%arg0: memref<256x512xbf16, #tpu.memory_space<vmem>>, %arg1: memref<512x256xbf16, #tpu.memory_space<vmem>>, %arg2: memref<1x256xf32, #tpu.memory_space<vmem>>, %arg3: memref<1x256xf32, #tpu.memory_space<vmem>>, %arg4: memref<256x128xbf16, #tpu.memory_space<vmem>>, %arg5: memref<1x128xf32, #tpu.memory_space<vmem>>, %arg6: memref<1x128xf32, #tpu.memory_space<vmem>>, %arg7: memref<128x64xbf16, #tpu.memory_space<vmem>>, %arg8: memref<1x64xf32, #tpu.memory_space<vmem>>, %arg9: memref<1x64xf32, #tpu.memory_space<vmem>>, %arg10: memref<64x128xbf16, #tpu.memory_space<vmem>>, %arg11: memref<1x128xf32, #tpu.memory_space<vmem>>, %arg12: memref<128x64xbf16, #tpu.memory_space<vmem>>, %arg13: memref<1x64xf32, #tpu.memory_space<vmem>>, %arg14: memref<1x64xf32, #tpu.memory_space<vmem>>, %arg15: memref<64x128xbf16, #tpu.memory_space<vmem>>, %arg16: memref<1x128xf32, #tpu.memory_space<vmem>>, %arg17: memref<1x128xf32, #tpu.memory_space<vmem>>, %arg18: memref<128x256xbf16, #tpu.memory_space<vmem>>, %arg19: memref<1x256xf32, #tpu.memory_space<vmem>>, %arg20: memref<1x256xf32, #tpu.memory_space<vmem>>, %arg21: memref<256x512xbf16, #tpu.memory_space<any>>, %arg22: memref<1x512xf32, #tpu.memory_space<vmem>>, %arg23: memref<256x512xf32, #tpu.memory_space<vmem>>, %arg24: memref<256x512xbf16, #tpu.memory_space<vmem>>, %arg25: memref<!tpu.dma_semaphore, #tpu.memory_space<semaphore_mem>>) attributes {dimension_semantics = [], scalar_prefetch = 0 : i64, scratch_operands = 2 : i64, tpu.core_type = #tpu.core_type<tc>} {
    tpu.enqueue_dma source(%arg21 : memref<256x512xbf16, #tpu.memory_space<any>>) target(%arg24 : memref<256x512xbf16, #tpu.memory_space<vmem>>) target_semaphore(%arg25 : memref<!tpu.dma_semaphore, #tpu.memory_space<semaphore_mem>>)
    %c0 = arith.constant 0 : index
    %c0_0 = arith.constant 0 : index
    %0 = vector.load %arg0[%c0, %c0_0] : memref<256x512xbf16, #tpu.memory_space<vmem>>, vector<256x512xbf16>
    %c0_1 = arith.constant 0 : index
    %c0_2 = arith.constant 0 : index
    %1 = vector.load %arg1[%c0_1, %c0_2] : memref<512x256xbf16, #tpu.memory_space<vmem>>, vector<512x256xbf16>
    %cst = arith.constant dense<0.000000e+00> : vector<256x256xf32>
    %2 = tpu.matmul %0, %1, %cst {dimension_numbers = #tpu.dot_dimension_numbers<[1], [0], [0], [1], [0, 0, 1, 1], [], []>} : vector<256x512xbf16>, vector<512x256xbf16>, vector<256x256xf32> -> vector<256x256xf32>
    %c0_3 = arith.constant 0 : index
    %c0_4 = arith.constant 0 : index
    %3 = vector.load %arg2[%c0_3, %c0_4] : memref<1x256xf32, #tpu.memory_space<vmem>>, vector<1x256xf32>
    %c0_5 = arith.constant 0 : index
    %c0_6 = arith.constant 0 : index
    %4 = vector.load %arg3[%c0_5, %c0_6] : memref<1x256xf32, #tpu.memory_space<vmem>>, vector<1x256xf32>
    %cst_7 = arith.constant dense<0.000000e+00> : vector<256xf32>
    %5 = vector.multi_reduction <add>, %2, %cst_7 [0] : vector<256x256xf32> to vector<256xf32>
    %6 = vector.shape_cast %5 : vector<256xf32> to vector<1x256xf32>
    %cst_8 = arith.constant 3.906250e-03 : f32
    %7 = vector.broadcast %cst_8 : f32 to vector<1x256xf32>
    %8 = arith.mulf %6, %7 : vector<1x256xf32>
    %9 = arith.mulf %2, %2 : vector<256x256xf32>
    %cst_9 = arith.constant dense<0.000000e+00> : vector<256xf32>
    %10 = vector.multi_reduction <add>, %9, %cst_9 [0] : vector<256x256xf32> to vector<256xf32>
    %11 = vector.shape_cast %10 : vector<256xf32> to vector<1x256xf32>
    %cst_10 = arith.constant 3.906250e-03 : f32
    %12 = vector.broadcast %cst_10 : f32 to vector<1x256xf32>
    %13 = arith.mulf %11, %12 : vector<1x256xf32>
    %14 = arith.mulf %8, %8 : vector<1x256xf32>
    %15 = arith.subf %13, %14 : vector<1x256xf32>
    %cst_11 = arith.constant 0.000000e+00 : f32
    %16 = vector.broadcast %cst_11 : f32 to vector<1x256xf32>
    %17 = arith.maximumf %15, %16 : vector<1x256xf32>
    %cst_12 = arith.constant 9.99999974E-6 : f32
    %18 = vector.broadcast %cst_12 : f32 to vector<1x256xf32>
    %19 = arith.addf %17, %18 : vector<1x256xf32>
    %20 = math.rsqrt %19 : vector<1x256xf32>
    %21 = arith.mulf %3, %20 : vector<1x256xf32>
    %22 = arith.mulf %8, %21 : vector<1x256xf32>
    %23 = arith.subf %4, %22 : vector<1x256xf32>
    %24 = vector.broadcast %21 : vector<1x256xf32> to vector<256x256xf32>
    %25 = arith.mulf %2, %24 : vector<256x256xf32>
    %26 = vector.broadcast %23 : vector<1x256xf32> to vector<256x256xf32>
    %27 = arith.addf %25, %26 : vector<256x256xf32>
    %cst_13 = arith.constant 0.00999999977 : f32
    %28 = vector.broadcast %cst_13 : f32 to vector<256x256xf32>
    %29 = arith.mulf %28, %27 : vector<256x256xf32>
    %30 = arith.maximumf %27, %29 : vector<256x256xf32>
    %c0_14 = arith.constant 0 : index
    %c0_15 = arith.constant 0 : index
    %31 = vector.load %arg4[%c0_14, %c0_15] : memref<256x128xbf16, #tpu.memory_space<vmem>>, vector<256x128xbf16>
    %32 = arith.truncf %30 : vector<256x256xf32> to vector<256x256xbf16>
    %cst_16 = arith.constant dense<0.000000e+00> : vector<256x128xf32>
    %33 = tpu.matmul %32, %31, %cst_16 {dimension_numbers = #tpu.dot_dimension_numbers<[1], [0], [0], [1], [0, 0, 1, 1], [], []>} : vector<256x256xbf16>, vector<256x128xbf16>, vector<256x128xf32> -> vector<256x128xf32>
    %c0_17 = arith.constant 0 : index
    %c0_18 = arith.constant 0 : index
    %34 = vector.load %arg5[%c0_17, %c0_18] : memref<1x128xf32, #tpu.memory_space<vmem>>, vector<1x128xf32>
    %c0_19 = arith.constant 0 : index
    %c0_20 = arith.constant 0 : index
    %35 = vector.load %arg6[%c0_19, %c0_20] : memref<1x128xf32, #tpu.memory_space<vmem>>, vector<1x128xf32>
    %cst_21 = arith.constant dense<0.000000e+00> : vector<128xf32>
    %36 = vector.multi_reduction <add>, %33, %cst_21 [0] : vector<256x128xf32> to vector<128xf32>
    %37 = vector.shape_cast %36 : vector<128xf32> to vector<1x128xf32>
    %cst_22 = arith.constant 3.906250e-03 : f32
    %38 = vector.broadcast %cst_22 : f32 to vector<1x128xf32>
    %39 = arith.mulf %37, %38 : vector<1x128xf32>
    %40 = arith.mulf %33, %33 : vector<256x128xf32>
    %cst_23 = arith.constant dense<0.000000e+00> : vector<128xf32>
    %41 = vector.multi_reduction <add>, %40, %cst_23 [0] : vector<256x128xf32> to vector<128xf32>
    %42 = vector.shape_cast %41 : vector<128xf32> to vector<1x128xf32>
    %cst_24 = arith.constant 3.906250e-03 : f32
    %43 = vector.broadcast %cst_24 : f32 to vector<1x128xf32>
    %44 = arith.mulf %42, %43 : vector<1x128xf32>
    %45 = arith.mulf %39, %39 : vector<1x128xf32>
    %46 = arith.subf %44, %45 : vector<1x128xf32>
    %cst_25 = arith.constant 0.000000e+00 : f32
    %47 = vector.broadcast %cst_25 : f32 to vector<1x128xf32>
    %48 = arith.maximumf %46, %47 : vector<1x128xf32>
    %cst_26 = arith.constant 9.99999974E-6 : f32
    %49 = vector.broadcast %cst_26 : f32 to vector<1x128xf32>
    %50 = arith.addf %48, %49 : vector<1x128xf32>
    %51 = math.rsqrt %50 : vector<1x128xf32>
    %52 = arith.mulf %34, %51 : vector<1x128xf32>
    %53 = arith.mulf %39, %52 : vector<1x128xf32>
    %54 = arith.subf %35, %53 : vector<1x128xf32>
    %55 = vector.broadcast %52 : vector<1x128xf32> to vector<256x128xf32>
    %56 = arith.mulf %33, %55 : vector<256x128xf32>
    %57 = vector.broadcast %54 : vector<1x128xf32> to vector<256x128xf32>
    %58 = arith.addf %56, %57 : vector<256x128xf32>
    %cst_27 = arith.constant 0.00999999977 : f32
    %59 = vector.broadcast %cst_27 : f32 to vector<256x128xf32>
    %60 = arith.mulf %59, %58 : vector<256x128xf32>
    %61 = arith.maximumf %58, %60 : vector<256x128xf32>
    %c0_28 = arith.constant 0 : index
    %c0_29 = arith.constant 0 : index
    %62 = vector.load %arg7[%c0_28, %c0_29] : memref<128x64xbf16, #tpu.memory_space<vmem>>, vector<128x64xbf16>
    %63 = arith.truncf %61 : vector<256x128xf32> to vector<256x128xbf16>
    %cst_30 = arith.constant dense<0.000000e+00> : vector<256x64xf32>
    %64 = tpu.matmul %63, %62, %cst_30 {dimension_numbers = #tpu.dot_dimension_numbers<[1], [0], [0], [1], [0, 0, 1, 1], [], []>} : vector<256x128xbf16>, vector<128x64xbf16>, vector<256x64xf32> -> vector<256x64xf32>
    %c0_31 = arith.constant 0 : index
    %c0_32 = arith.constant 0 : index
    %65 = vector.load %arg8[%c0_31, %c0_32] : memref<1x64xf32, #tpu.memory_space<vmem>>, vector<1x64xf32>
    %c0_33 = arith.constant 0 : index
    %c0_34 = arith.constant 0 : index
    %66 = vector.load %arg9[%c0_33, %c0_34] : memref<1x64xf32, #tpu.memory_space<vmem>>, vector<1x64xf32>
    %cst_35 = arith.constant dense<0.000000e+00> : vector<64xf32>
    %67 = vector.multi_reduction <add>, %64, %cst_35 [0] : vector<256x64xf32> to vector<64xf32>
    %68 = vector.shape_cast %67 : vector<64xf32> to vector<1x64xf32>
    %cst_36 = arith.constant 3.906250e-03 : f32
    %69 = vector.broadcast %cst_36 : f32 to vector<1x64xf32>
    %70 = arith.mulf %68, %69 : vector<1x64xf32>
    %71 = arith.mulf %64, %64 : vector<256x64xf32>
    %cst_37 = arith.constant dense<0.000000e+00> : vector<64xf32>
    %72 = vector.multi_reduction <add>, %71, %cst_37 [0] : vector<256x64xf32> to vector<64xf32>
    %73 = vector.shape_cast %72 : vector<64xf32> to vector<1x64xf32>
    %cst_38 = arith.constant 3.906250e-03 : f32
    %74 = vector.broadcast %cst_38 : f32 to vector<1x64xf32>
    %75 = arith.mulf %73, %74 : vector<1x64xf32>
    %76 = arith.mulf %70, %70 : vector<1x64xf32>
    %77 = arith.subf %75, %76 : vector<1x64xf32>
    %cst_39 = arith.constant 0.000000e+00 : f32
    %78 = vector.broadcast %cst_39 : f32 to vector<1x64xf32>
    %79 = arith.maximumf %77, %78 : vector<1x64xf32>
    %cst_40 = arith.constant 9.99999974E-6 : f32
    %80 = vector.broadcast %cst_40 : f32 to vector<1x64xf32>
    %81 = arith.addf %79, %80 : vector<1x64xf32>
    %82 = math.rsqrt %81 : vector<1x64xf32>
    %83 = arith.mulf %65, %82 : vector<1x64xf32>
    %84 = arith.mulf %70, %83 : vector<1x64xf32>
    %85 = arith.subf %66, %84 : vector<1x64xf32>
    %86 = vector.broadcast %83 : vector<1x64xf32> to vector<256x64xf32>
    %87 = arith.mulf %64, %86 : vector<256x64xf32>
    %88 = vector.broadcast %85 : vector<1x64xf32> to vector<256x64xf32>
    %89 = arith.addf %87, %88 : vector<256x64xf32>
    %cst_41 = arith.constant 0.00999999977 : f32
    %90 = vector.broadcast %cst_41 : f32 to vector<256x64xf32>
    %91 = arith.mulf %90, %89 : vector<256x64xf32>
    %92 = arith.maximumf %89, %91 : vector<256x64xf32>
    %c0_42 = arith.constant 0 : index
    %c0_43 = arith.constant 0 : index
    %93 = vector.load %arg10[%c0_42, %c0_43] : memref<64x128xbf16, #tpu.memory_space<vmem>>, vector<64x128xbf16>
    %94 = arith.truncf %92 : vector<256x64xf32> to vector<256x64xbf16>
    %cst_44 = arith.constant dense<0.000000e+00> : vector<256x128xf32>
    %95 = tpu.matmul %94, %93, %cst_44 {dimension_numbers = #tpu.dot_dimension_numbers<[1], [0], [0], [1], [0, 0, 1, 1], [], []>} : vector<256x64xbf16>, vector<64x128xbf16>, vector<256x128xf32> -> vector<256x128xf32>
    %c0_45 = arith.constant 0 : index
    %c0_46 = arith.constant 0 : index
    %96 = vector.load %arg11[%c0_45, %c0_46] : memref<1x128xf32, #tpu.memory_space<vmem>>, vector<1x128xf32>
    %97 = vector.broadcast %96 : vector<1x128xf32> to vector<256x128xf32>
    %98 = arith.addf %95, %97 : vector<256x128xf32>
    %c0_47 = arith.constant 0 : index
    %c0_48 = arith.constant 0 : index
    %99 = vector.load %arg12[%c0_47, %c0_48] : memref<128x64xbf16, #tpu.memory_space<vmem>>, vector<128x64xbf16>
    %100 = arith.truncf %98 : vector<256x128xf32> to vector<256x128xbf16>
    %cst_49 = arith.constant dense<0.000000e+00> : vector<256x64xf32>
    %101 = tpu.matmul %100, %99, %cst_49 {dimension_numbers = #tpu.dot_dimension_numbers<[1], [0], [0], [1], [0, 0, 1, 1], [], []>} : vector<256x128xbf16>, vector<128x64xbf16>, vector<256x64xf32> -> vector<256x64xf32>
    %c0_50 = arith.constant 0 : index
    %c0_51 = arith.constant 0 : index
    %102 = vector.load %arg13[%c0_50, %c0_51] : memref<1x64xf32, #tpu.memory_space<vmem>>, vector<1x64xf32>
    %c0_52 = arith.constant 0 : index
    %c0_53 = arith.constant 0 : index
    %103 = vector.load %arg14[%c0_52, %c0_53] : memref<1x64xf32, #tpu.memory_space<vmem>>, vector<1x64xf32>
    %cst_54 = arith.constant dense<0.000000e+00> : vector<64xf32>
    %104 = vector.multi_reduction <add>, %101, %cst_54 [0] : vector<256x64xf32> to vector<64xf32>
    %105 = vector.shape_cast %104 : vector<64xf32> to vector<1x64xf32>
    %cst_55 = arith.constant 3.906250e-03 : f32
    %106 = vector.broadcast %cst_55 : f32 to vector<1x64xf32>
    %107 = arith.mulf %105, %106 : vector<1x64xf32>
    %108 = arith.mulf %101, %101 : vector<256x64xf32>
    %cst_56 = arith.constant dense<0.000000e+00> : vector<64xf32>
    %109 = vector.multi_reduction <add>, %108, %cst_56 [0] : vector<256x64xf32> to vector<64xf32>
    %110 = vector.shape_cast %109 : vector<64xf32> to vector<1x64xf32>
    %cst_57 = arith.constant 3.906250e-03 : f32
    %111 = vector.broadcast %cst_57 : f32 to vector<1x64xf32>
    %112 = arith.mulf %110, %111 : vector<1x64xf32>
    %113 = arith.mulf %107, %107 : vector<1x64xf32>
    %114 = arith.subf %112, %113 : vector<1x64xf32>
    %cst_58 = arith.constant 0.000000e+00 : f32
    %115 = vector.broadcast %cst_58 : f32 to vector<1x64xf32>
    %116 = arith.maximumf %114, %115 : vector<1x64xf32>
    %cst_59 = arith.constant 9.99999974E-6 : f32
    %117 = vector.broadcast %cst_59 : f32 to vector<1x64xf32>
    %118 = arith.addf %116, %117 : vector<1x64xf32>
    %119 = math.rsqrt %118 : vector<1x64xf32>
    %120 = arith.mulf %102, %119 : vector<1x64xf32>
    %121 = arith.mulf %107, %120 : vector<1x64xf32>
    %122 = arith.subf %103, %121 : vector<1x64xf32>
    %123 = vector.broadcast %120 : vector<1x64xf32> to vector<256x64xf32>
    %124 = arith.mulf %101, %123 : vector<256x64xf32>
    %125 = vector.broadcast %122 : vector<1x64xf32> to vector<256x64xf32>
    %126 = arith.addf %124, %125 : vector<256x64xf32>
    %cst_60 = arith.constant 0.00999999977 : f32
    %127 = vector.broadcast %cst_60 : f32 to vector<256x64xf32>
    %128 = arith.mulf %127, %126 : vector<256x64xf32>
    %129 = arith.maximumf %126, %128 : vector<256x64xf32>
    %c0_61 = arith.constant 0 : index
    %c0_62 = arith.constant 0 : index
    %130 = vector.load %arg15[%c0_61, %c0_62] : memref<64x128xbf16, #tpu.memory_space<vmem>>, vector<64x128xbf16>
    %131 = arith.truncf %129 : vector<256x64xf32> to vector<256x64xbf16>
    %cst_63 = arith.constant dense<0.000000e+00> : vector<256x128xf32>
    %132 = tpu.matmul %131, %130, %cst_63 {dimension_numbers = #tpu.dot_dimension_numbers<[1], [0], [0], [1], [0, 0, 1, 1], [], []>} : vector<256x64xbf16>, vector<64x128xbf16>, vector<256x128xf32> -> vector<256x128xf32>
    %c0_64 = arith.constant 0 : index
    %c0_65 = arith.constant 0 : index
    %133 = vector.load %arg16[%c0_64, %c0_65] : memref<1x128xf32, #tpu.memory_space<vmem>>, vector<1x128xf32>
    %c0_66 = arith.constant 0 : index
    %c0_67 = arith.constant 0 : index
    %134 = vector.load %arg17[%c0_66, %c0_67] : memref<1x128xf32, #tpu.memory_space<vmem>>, vector<1x128xf32>
    %cst_68 = arith.constant dense<0.000000e+00> : vector<128xf32>
    %135 = vector.multi_reduction <add>, %132, %cst_68 [0] : vector<256x128xf32> to vector<128xf32>
    %136 = vector.shape_cast %135 : vector<128xf32> to vector<1x128xf32>
    %cst_69 = arith.constant 3.906250e-03 : f32
    %137 = vector.broadcast %cst_69 : f32 to vector<1x128xf32>
    %138 = arith.mulf %136, %137 : vector<1x128xf32>
    %139 = arith.mulf %132, %132 : vector<256x128xf32>
    %cst_70 = arith.constant dense<0.000000e+00> : vector<128xf32>
    %140 = vector.multi_reduction <add>, %139, %cst_70 [0] : vector<256x128xf32> to vector<128xf32>
    %141 = vector.shape_cast %140 : vector<128xf32> to vector<1x128xf32>
    %cst_71 = arith.constant 3.906250e-03 : f32
    %142 = vector.broadcast %cst_71 : f32 to vector<1x128xf32>
    %143 = arith.mulf %141, %142 : vector<1x128xf32>
    %144 = arith.mulf %138, %138 : vector<1x128xf32>
    %145 = arith.subf %143, %144 : vector<1x128xf32>
    %cst_72 = arith.constant 0.000000e+00 : f32
    %146 = vector.broadcast %cst_72 : f32 to vector<1x128xf32>
    %147 = arith.maximumf %145, %146 : vector<1x128xf32>
    %cst_73 = arith.constant 9.99999974E-6 : f32
    %148 = vector.broadcast %cst_73 : f32 to vector<1x128xf32>
    %149 = arith.addf %147, %148 : vector<1x128xf32>
    %150 = math.rsqrt %149 : vector<1x128xf32>
    %151 = arith.mulf %133, %150 : vector<1x128xf32>
    %152 = arith.mulf %138, %151 : vector<1x128xf32>
    %153 = arith.subf %134, %152 : vector<1x128xf32>
    %154 = vector.broadcast %151 : vector<1x128xf32> to vector<256x128xf32>
    %155 = arith.mulf %132, %154 : vector<256x128xf32>
    %156 = vector.broadcast %153 : vector<1x128xf32> to vector<256x128xf32>
    %157 = arith.addf %155, %156 : vector<256x128xf32>
    %cst_74 = arith.constant 0.00999999977 : f32
    %158 = vector.broadcast %cst_74 : f32 to vector<256x128xf32>
    %159 = arith.mulf %158, %157 : vector<256x128xf32>
    %160 = arith.maximumf %157, %159 : vector<256x128xf32>
    %c0_75 = arith.constant 0 : index
    %c0_76 = arith.constant 0 : index
    %161 = vector.load %arg18[%c0_75, %c0_76] : memref<128x256xbf16, #tpu.memory_space<vmem>>, vector<128x256xbf16>
    %162 = arith.truncf %160 : vector<256x128xf32> to vector<256x128xbf16>
    %cst_77 = arith.constant dense<0.000000e+00> : vector<256x256xf32>
    %163 = tpu.matmul %162, %161, %cst_77 {dimension_numbers = #tpu.dot_dimension_numbers<[1], [0], [0], [1], [0, 0, 1, 1], [], []>} : vector<256x128xbf16>, vector<128x256xbf16>, vector<256x256xf32> -> vector<256x256xf32>
    %c0_78 = arith.constant 0 : index
    %c0_79 = arith.constant 0 : index
    %164 = vector.load %arg19[%c0_78, %c0_79] : memref<1x256xf32, #tpu.memory_space<vmem>>, vector<1x256xf32>
    %c0_80 = arith.constant 0 : index
    %c0_81 = arith.constant 0 : index
    %165 = vector.load %arg20[%c0_80, %c0_81] : memref<1x256xf32, #tpu.memory_space<vmem>>, vector<1x256xf32>
    %cst_82 = arith.constant dense<0.000000e+00> : vector<256xf32>
    %166 = vector.multi_reduction <add>, %163, %cst_82 [0] : vector<256x256xf32> to vector<256xf32>
    %167 = vector.shape_cast %166 : vector<256xf32> to vector<1x256xf32>
    %cst_83 = arith.constant 3.906250e-03 : f32
    %168 = vector.broadcast %cst_83 : f32 to vector<1x256xf32>
    %169 = arith.mulf %167, %168 : vector<1x256xf32>
    %170 = arith.mulf %163, %163 : vector<256x256xf32>
    %cst_84 = arith.constant dense<0.000000e+00> : vector<256xf32>
    %171 = vector.multi_reduction <add>, %170, %cst_84 [0] : vector<256x256xf32> to vector<256xf32>
    %172 = vector.shape_cast %171 : vector<256xf32> to vector<1x256xf32>
    %cst_85 = arith.constant 3.906250e-03 : f32
    %173 = vector.broadcast %cst_85 : f32 to vector<1x256xf32>
    %174 = arith.mulf %172, %173 : vector<1x256xf32>
    %175 = arith.mulf %169, %169 : vector<1x256xf32>
    %176 = arith.subf %174, %175 : vector<1x256xf32>
    %cst_86 = arith.constant 0.000000e+00 : f32
    %177 = vector.broadcast %cst_86 : f32 to vector<1x256xf32>
    %178 = arith.maximumf %176, %177 : vector<1x256xf32>
    %cst_87 = arith.constant 9.99999974E-6 : f32
    %179 = vector.broadcast %cst_87 : f32 to vector<1x256xf32>
    %180 = arith.addf %178, %179 : vector<1x256xf32>
    %181 = math.rsqrt %180 : vector<1x256xf32>
    %182 = arith.mulf %164, %181 : vector<1x256xf32>
    %183 = arith.mulf %169, %182 : vector<1x256xf32>
    %184 = arith.subf %165, %183 : vector<1x256xf32>
    %185 = vector.broadcast %182 : vector<1x256xf32> to vector<256x256xf32>
    %186 = arith.mulf %163, %185 : vector<256x256xf32>
    %187 = vector.broadcast %184 : vector<1x256xf32> to vector<256x256xf32>
    %188 = arith.addf %186, %187 : vector<256x256xf32>
    %cst_88 = arith.constant 0.00999999977 : f32
    %189 = vector.broadcast %cst_88 : f32 to vector<256x256xf32>
    %190 = arith.mulf %189, %188 : vector<256x256xf32>
    %191 = arith.maximumf %188, %190 : vector<256x256xf32>
    tpu.wait_dma2 semaphore(%arg25 : memref<!tpu.dma_semaphore, #tpu.memory_space<semaphore_mem>>) src(%arg21 : memref<256x512xbf16, #tpu.memory_space<any>>) dst(%arg24 : memref<256x512xbf16, #tpu.memory_space<vmem>>)
    %192 = arith.truncf %191 : vector<256x256xf32> to vector<256x256xbf16>
    %c0_89 = arith.constant 0 : index
    %c0_90 = arith.constant 0 : index
    %193 = vector.load %arg24[%c0_89, %c0_90] : memref<256x512xbf16, #tpu.memory_space<vmem>>, vector<256x512xbf16>
    %cst_91 = arith.constant dense<0.000000e+00> : vector<256x512xf32>
    %194 = tpu.matmul %192, %193, %cst_91 {dimension_numbers = #tpu.dot_dimension_numbers<[1], [0], [0], [1], [0, 0, 1, 1], [], []>} : vector<256x256xbf16>, vector<256x512xbf16>, vector<256x512xf32> -> vector<256x512xf32>
    %c0_92 = arith.constant 0 : index
    %c0_93 = arith.constant 0 : index
    %195 = vector.load %arg22[%c0_92, %c0_93] : memref<1x512xf32, #tpu.memory_space<vmem>>, vector<1x512xf32>
    %196 = vector.broadcast %195 : vector<1x512xf32> to vector<256x512xf32>
    %197 = arith.addf %194, %196 : vector<256x512xf32>
    %c0_94 = arith.constant 0 : index
    %c0_95 = arith.constant 0 : index
    %198 = vector.load %arg23[%c0_94, %c0_95] : memref<256x512xf32, #tpu.memory_space<vmem>>, vector<256x512xf32>
    tpu.vector_store %arg23[%c0_94, %c0_95], %197 {strides = array<i32>} : memref<256x512xf32, #tpu.memory_space<vmem>>, vector<256x512xf32>,
    return
  }
}

</mosaic_0001>

<bundles_post_ra>
// kernel: autoencoder_forward.1
= control target key start
LH: loop header
LB: loop body
LE: loop exit
PB: predicated region body
PF: predicated region fallthrough
CT: control target
= control target key end

     0   :  { %s12404_s0 = inlined_call_operand.vmem [shape: bf16[256,512], index: 0, kind: input, shape index: {}]   ;;  %s12405_s1 = inlined_call_operand.vmem [shape: bf16[512,256], index: 1, kind: input, shape index: {}]   ;;  %s12406_s2 = inlined_call_operand.vmem [shape: f32[1,256], index: 2, kind: input, shape index: {}]   ;;  %s12407_s3 = inlined_call_operand.vmem [shape: f32[1,256], index: 3, kind: input, shape index: {}]   ;;  %s12408_s4 = inlined_call_operand.vmem [shape: bf16[256,128], index: 4, kind: input, shape index: {}]   ;;  %s12409_s5 = inlined_call_operand.vmem [shape: f32[1,128], index: 5, kind: input, shape index: {}]   ;;  %s12410_s6 = inlined_call_operand.vmem [shape: f32[1,128], index: 6, kind: input, shape index: {}]   ;;  %s12411_s7 = inlined_call_operand.vmem [shape: bf16[128,64], index: 7, kind: input, shape index: {}]   ;;  %s12412_s8 = inlined_call_operand.vmem [shape: f32[1,64], index: 8, kind: input, shape index: {}]   ;;  %s12413_s9 = inlined_call_operand.vmem [shape: f32[1,64], index: 9, kind: input, shape index: {}]   ;;  %s12414_s10 = inlined_call_operand.vmem [shape: bf16[64,128], index: 10, kind: input, shape index: {}]   ;;  %s12415_s11 = inlined_call_operand.vmem [shape: f32[1,128], index: 11, kind: input, shape index: {}]   ;;  %s12416_s12 = inlined_call_operand.vmem [shape: bf16[128,64], index: 12, kind: input, shape index: {}]   ;;  %s12417_s13 = inlined_call_operand.vmem [shape: f32[1,64], index: 13, kind: input, shape index: {}]   ;;  %s12418_s14 = inlined_call_operand.vmem [shape: f32[1,64], index: 14, kind: input, shape index: {}]   ;;  %s12419_s15 = inlined_call_operand.vmem [shape: bf16[64,128], index: 15, kind: input, shape index: {}]   ;;  %s12420_s16 = inlined_call_operand.vmem [shape: f32[1,128], index: 16, kind: input, shape index: {}]   ;;  %s12421_s17 = inlined_call_operand.vmem [shape: f32[1,128], index: 17, kind: input, shape index: {}]   ;;  %s12422_s18 = inlined_call_operand.vmem [shape: bf16[128,256], index: 18, kind: input, shape index: {}]   ;;  %s12423_s19 = inlined_call_operand.vmem [shape: f32[1,256], index: 19, kind: input, shape index: {}]   ;;  %s12424_s20 = inlined_call_operand.vmem [shape: f32[1,256], index: 20, kind: input, shape index: {}]   ;;  %s12425_s21 = inlined_call_operand.vmem [shape: bf16[256,512], index: 21, kind: input, shape index: {}]   ;;  %s12426_s22 = inlined_call_operand.vmem [shape: f32[1,512], index: 22, kind: input, shape index: {}]   ;;  %s12427_s23 = inlined_call_operand.hbm [shape: f32[256,512], index: 23, kind: output, shape index: {}]  }
   0x1   :  { %12665 = sst [smem:[#allocation112_spill]] %s12404_s0 }
   0x2   :  { %12666 = sst [smem:[#allocation113_spill]] %s12405_s1 }
   0x3   :  { %12667 = sst [smem:[#allocation114_spill]] %s12406_s2 }
   0x4   :  { %12668 = sst [smem:[#allocation115_spill]] %s12407_s3 }
   0x5   :  { %12669 = sst [smem:[#allocation116_spill]] %s12408_s4 }
   0x6   :  { %12670 = sst [smem:[#allocation117_spill]] %s12409_s5 }
   0x7   :  { %12671 = sst [smem:[#allocation118_spill]] %s12410_s6 }
   0x8   :  { %12672 = sst [smem:[#allocation119_spill]] %s12411_s7 }
   0x9   :  { %28 = vsyncpa [#allocation5], 0  ;;  %v91_v0 = vld [vmem:[%s12425_s21] sm:$0xf]  ;;  %v93_v1 = vld [vmem:[%s12425_s21 + $0x10] sm:$0xf] }
   0xa   :  { %92 = vst [vmem:[#allocation2] sm:$0xf] %v91_v0  ;;  %94 = vst [vmem:[#allocation2 + $0x4] sm:$0xf] %v93_v1  ;;  %v95_v2 = vld [vmem:[%s12425_s21 + $0x4] sm:$0xf] }
   0xb   :  { %v97_v3 = vld [vmem:[%s12425_s21 + $0x14] sm:$0xf]  ;;  %v99_v4 = vld [vmem:[%s12425_s21 + $0x8] sm:$0xf]  ;;  %96 = vst [vmem:[#allocation2 + $0x8] sm:$0xf] %v95_v2 }
   0xc   :  { %98 = vst [vmem:[#allocation2 + $0xc] sm:$0xf] %v97_v3  ;;  %100 = vst [vmem:[#allocation2 + $0x10] sm:$0xf] %v99_v4  ;;  %v101_v5 = vld [vmem:[%s12425_s21 + $0x18] sm:$0xf] }
   0xd   :  { %v103_v6 = vld [vmem:[%s12425_s21 + $0xc] sm:$0xf]  ;;  %v105_v7 = vld [vmem:[%s12425_s21 + $0x1c] sm:$0xff]   ;;  %102 = vst [vmem:[#allocation2 + $0x14] sm:$0xf] %v101_v5 }
   0xe   :  { %104 = vst [vmem:[#allocation2 + $0x18] sm:$0xf] %v103_v6  ;;  %106 = vst [vmem:[#allocation2 + $0x1c] sm:$0xff] %v105_v7   ;;  %v109_v8 = vld [vmem:[%s12425_s21 + $0x30] sm:$0xf]  ;;  %v121_v14 = vld [vmem:[%s12425_s21 + $0x3c] sm:$0xff]  }
   0xf   :  { %v111_v9 = vld [vmem:[%s12425_s21 + $0x24] sm:$0xf]  ;;  %v113_v10 = vld [vmem:[%s12425_s21 + $0x34] sm:$0xf]  ;;  %110 = vst [vmem:[#allocation2 + $0x24] sm:$0xf] %v109_v8 }
  0x10   :  { %112 = vst [vmem:[#allocation2 + $0x28] sm:$0xf] %v111_v9  ;;  %114 = vst [vmem:[#allocation2 + $0x2c] sm:$0xf] %v113_v10  ;;  %v115_v11 = vld [vmem:[%s12425_s21 + $0x28] sm:$0xf] }
  0x11   :  { %v117_v12 = vld [vmem:[%s12425_s21 + $0x38] sm:$0xf]  ;;  %v119_v13 = vld [vmem:[%s12425_s21 + $0x2c] sm:$0xf]  ;;  %116 = vst [vmem:[#allocation2 + $0x30] sm:$0xf] %v115_v11 }
  0x12   :  { %118 = vst [vmem:[#allocation2 + $0x34] sm:$0xf] %v117_v12  ;;  %120 = vst [vmem:[#allocation2 + $0x38] sm:$0xf] %v119_v13  ;;  %v125_v15 = vld [vmem:[%s12425_s21 + $0x50] sm:$0xf] }
  0x13   :  { %v127_v16 = vld [vmem:[%s12425_s21 + $0x44] sm:$0xf]  ;;  %122 = vst [vmem:[#allocation2 + $0x3c] sm:$0xff] %v121_v14   ;;  %126 = vst [vmem:[#allocation2 + $0x44] sm:$0xf] %v125_v15  ;;  %v137_v21 = vld [vmem:[%s12425_s21 + $0x5c] sm:$0xff]  }
  0x14   :  { %128 = vst [vmem:[#allocation2 + $0x48] sm:$0xf] %v127_v16  ;;  %v129_v17 = vld [vmem:[%s12425_s21 + $0x54] sm:$0xf]  ;;  %v131_v18 = vld [vmem:[%s12425_s21 + $0x48] sm:$0xf] }
  0x15   :  { %v133_v19 = vld [vmem:[%s12425_s21 + $0x58] sm:$0xf]  ;;  %130 = vst [vmem:[#allocation2 + $0x4c] sm:$0xf] %v129_v17  ;;  %132 = vst [vmem:[#allocation2 + $0x50] sm:$0xf] %v131_v18 }
  0x16   :  { %134 = vst [vmem:[#allocation2 + $0x54] sm:$0xf] %v133_v19  ;;  %v135_v20 = vld [vmem:[%s12425_s21 + $0x4c] sm:$0xf]  ;;  %v141_v22 = vld [vmem:[%s12425_s21 + $0x70] sm:$0xf] }
  0x17   :  { %136 = vst [vmem:[#allocation2 + $0x58] sm:$0xf] %v135_v20  ;;  %138 = vst [vmem:[#allocation2 + $0x5c] sm:$0xff] %v137_v21   ;;  %v143_v23 = vld [vmem:[%s12425_s21 + $0x64] sm:$0xf]  ;;  %v153_v28 = vld [vmem:[%s12425_s21 + $0x7c] sm:$0xff]  }
  0x18   :  { %142 = vst [vmem:[#allocation2 + $0x64] sm:$0xf] %v141_v22  ;;  %v145_v24 = vld [vmem:[%s12425_s21 + $0x74] sm:$0xf]  ;;  %v147_v25 = vld [vmem:[%s12425_s21 + $0x68] sm:$0xf] }
  0x19   :  { %144 = vst [vmem:[#allocation2 + $0x68] sm:$0xf] %v143_v23  ;;  %146 = vst [vmem:[#allocation2 + $0x6c] sm:$0xf] %v145_v24  ;;  %v149_v26 = vld [vmem:[%s12425_s21 + $0x78] sm:$0xf] }
  0x1a   :  { %148 = vst [vmem:[#allocation2 + $0x70] sm:$0xf] %v147_v25  ;;  %v151_v27 = vld [vmem:[%s12425_s21 + $0x6c] sm:$0xf]  ;;  %150 = vst [vmem:[#allocation2 + $0x74] sm:$0xf] %v149_v26 }
  0x1b   :  { %152 = vst [vmem:[#allocation2 + $0x78] sm:$0xf] %v151_v27  ;;  %154 = vst [vmem:[#allocation2 + $0x7c] sm:$0xff] %v153_v28   ;;  %v157_v29 = vld [vmem:[%s12425_s21 + $0x90] sm:$0xf]  ;;  %v169_v35 = vld [vmem:[%s12425_s21 + $0x9c] sm:$0xff]  }
  0x1c   :  { %v159_v30 = vld [vmem:[%s12425_s21 + $0x84] sm:$0xf]  ;;  %v161_v31 = vld [vmem:[%s12425_s21 + $0x94] sm:$0xf]  ;;  %158 = vst [vmem:[#allocation2 + $0x84] sm:$0xf] %v157_v29 }
  0x1d   :  { %160 = vst [vmem:[#allocation2 + $0x88] sm:$0xf] %v159_v30  ;;  %162 = vst [vmem:[#allocation2 + $0x8c] sm:$0xf] %v161_v31  ;;  %v163_v32 = vld [vmem:[%s12425_s21 + $0x88] sm:$0xf] }
  0x1e   :  { %v165_v33 = vld [vmem:[%s12425_s21 + $0x98] sm:$0xf]  ;;  %v167_v34 = vld [vmem:[%s12425_s21 + $0x8c] sm:$0xf]  ;;  %164 = vst [vmem:[#allocation2 + $0x90] sm:$0xf] %v163_v32 }
  0x1f   :  { %166 = vst [vmem:[#allocation2 + $0x94] sm:$0xf] %v165_v33  ;;  %168 = vst [vmem:[#allocation2 + $0x98] sm:$0xf] %v167_v34  ;;  %v173_v36 = vld [vmem:[%s12425_s21 + $0xb0] sm:$0xf] }
  0x20   :  { %v175_v37 = vld [vmem:[%s12425_s21 + $0xa4] sm:$0xf]  ;;  %170 = vst [vmem:[#allocation2 + $0x9c] sm:$0xff] %v169_v35   ;;  %174 = vst [vmem:[#allocation2 + $0xa4] sm:$0xf] %v173_v36  ;;  %v185_v42 = vld [vmem:[%s12425_s21 + $0xbc] sm:$0xff]  }
  0x21   :  { %176 = vst [vmem:[#allocation2 + $0xa8] sm:$0xf] %v175_v37  ;;  %v177_v38 = vld [vmem:[%s12425_s21 + $0xb4] sm:$0xf]  ;;  %v179_v39 = vld [vmem:[%s12425_s21 + $0xa8] sm:$0xf] }
  0x22   :  { %v181_v40 = vld [vmem:[%s12425_s21 + $0xb8] sm:$0xf]  ;;  %178 = vst [vmem:[#allocation2 + $0xac] sm:$0xf] %v177_v38  ;;  %180 = vst [vmem:[#allocation2 + $0xb0] sm:$0xf] %v179_v39 }
  0x23   :  { %182 = vst [vmem:[#allocation2 + $0xb4] sm:$0xf] %v181_v40  ;;  %v183_v41 = vld [vmem:[%s12425_s21 + $0xac] sm:$0xf]  ;;  %v189_v43 = vld [vmem:[%s12425_s21 + $0xd0] sm:$0xf] }
  0x24   :  { %184 = vst [vmem:[#allocation2 + $0xb8] sm:$0xf] %v183_v41  ;;  %186 = vst [vmem:[#allocation2 + $0xbc] sm:$0xff] %v185_v42   ;;  %v191_v44 = vld [vmem:[%s12425_s21 + $0xc4] sm:$0xf]  ;;  %v201_v49 = vld [vmem:[%s12425_s21 + $0xdc] sm:$0xff]  }
  0x25   :  { %190 = vst [vmem:[#allocation2 + $0xc4] sm:$0xf] %v189_v43  ;;  %v193_v45 = vld [vmem:[%s12425_s21 + $0xd4] sm:$0xf]  ;;  %v195_v46 = vld [vmem:[%s12425_s21 + $0xc8] sm:$0xf] }
  0x26   :  { %192 = vst [vmem:[#allocation2 + $0xc8] sm:$0xf] %v191_v44  ;;  %194 = vst [vmem:[#allocation2 + $0xcc] sm:$0xf] %v193_v45  ;;  %v197_v47 = vld [vmem:[%s12425_s21 + $0xd8] sm:$0xf] }
  0x27   :  { %196 = vst [vmem:[#allocation2 + $0xd0] sm:$0xf] %v195_v46  ;;  %v199_v48 = vld [vmem:[%s12425_s21 + $0xcc] sm:$0xf]  ;;  %198 = vst [vmem:[#allocation2 + $0xd4] sm:$0xf] %v197_v47 }
  0x28   :  { %200 = vst [vmem:[#allocation2 + $0xd8] sm:$0xf] %v199_v48  ;;  %202 = vst [vmem:[#allocation2 + $0xdc] sm:$0xff] %v201_v49   ;;  %v205_v50 = vld [vmem:[%s12425_s21 + $0xf0] sm:$0xf]  ;;  %v217_v56 = vld [vmem:[%s12425_s21 + $0xfc] sm:$0xff]  }
  0x29   :  { %v207_v51 = vld [vmem:[%s12425_s21 + $0xe4] sm:$0xf]  ;;  %v209_v52 = vld [vmem:[%s12425_s21 + $0xf4] sm:$0xf]  ;;  %206 = vst [vmem:[#allocation2 + $0xe4] sm:$0xf] %v205_v50 }
  0x2a   :  { %208 = vst [vmem:[#allocation2 + $0xe8] sm:$0xf] %v207_v51  ;;  %210 = vst [vmem:[#allocation2 + $0xec] sm:$0xf] %v209_v52  ;;  %v211_v53 = vld [vmem:[%s12425_s21 + $0xe8] sm:$0xf] }
  0x2b   :  { %v213_v54 = vld [vmem:[%s12425_s21 + $0xf8] sm:$0xf]  ;;  %v215_v55 = vld [vmem:[%s12425_s21 + $0xec] sm:$0xf]  ;;  %212 = vst [vmem:[#allocation2 + $0xf0] sm:$0xf] %v211_v53 }
  0x2c   :  { %214 = vst [vmem:[#allocation2 + $0xf4] sm:$0xf] %v213_v54  ;;  %216 = vst [vmem:[#allocation2 + $0xf8] sm:$0xf] %v215_v55  ;;  %v221_v57 = vld [vmem:[%s12425_s21 + $0x110] sm:$0xf] }
  0x2d   :  { %v223_v58 = vld [vmem:[%s12425_s21 + $0x104] sm:$0xf]  ;;  %218 = vst [vmem:[#allocation2 + $0xfc] sm:$0xff] %v217_v56   ;;  %222 = vst [vmem:[#allocation2 + $0x104] sm:$0xf] %v221_v57  ;;  %v233_v63 = vld [vmem:[%s12425_s21 + $0x11c] sm:$0xff]  }
  0x2e   :  { %224 = vst [vmem:[#allocation2 + $0x108] sm:$0xf] %v223_v58  ;;  %v225_v59 = vld [vmem:[%s12425_s21 + $0x114] sm:$0xf]  ;;  %v227_v60 = vld [vmem:[%s12425_s21 + $0x108] sm:$0xf] }
  0x2f   :  { %v229_v61 = vld [vmem:[%s12425_s21 + $0x118] sm:$0xf]  ;;  %226 = vst [vmem:[#allocation2 + $0x10c] sm:$0xf] %v225_v59  ;;  %228 = vst [vmem:[#allocation2 + $0x110] sm:$0xf] %v227_v60 }
  0x30   :  { %230 = vst [vmem:[#allocation2 + $0x114] sm:$0xf] %v229_v61  ;;  %v231_v62 = vld [vmem:[%s12425_s21 + $0x10c] sm:$0xf]  ;;  %v237_v0 = vld [vmem:[%s12425_s21 + $0x130] sm:$0xf] }
  0x31   :  { %232 = vst [vmem:[#allocation2 + $0x118] sm:$0xf] %v231_v62  ;;  %234 = vst [vmem:[#allocation2 + $0x11c] sm:$0xff] %v233_v63   ;;  %v239_v1 = vld [vmem:[%s12425_s21 + $0x124] sm:$0xf]  ;;  %v249_v6 = vld [vmem:[%s12425_s21 + $0x13c] sm:$0xff]  }
  0x32   :  { %238 = vst [vmem:[#allocation2 + $0x124] sm:$0xf] %v237_v0  ;;  %v241_v2 = vld [vmem:[%s12425_s21 + $0x134] sm:$0xf]  ;;  %v243_v3 = vld [vmem:[%s12425_s21 + $0x128] sm:$0xf] }
  0x33   :  { %240 = vst [vmem:[#allocation2 + $0x128] sm:$0xf] %v239_v1  ;;  %242 = vst [vmem:[#allocation2 + $0x12c] sm:$0xf] %v241_v2  ;;  %v245_v4 = vld [vmem:[%s12425_s21 + $0x138] sm:$0xf] }
  0x34   :  { %244 = vst [vmem:[#allocation2 + $0x130] sm:$0xf] %v243_v3  ;;  %v247_v5 = vld [vmem:[%s12425_s21 + $0x12c] sm:$0xf]  ;;  %246 = vst [vmem:[#allocation2 + $0x134] sm:$0xf] %v245_v4 }
  0x35   :  { %248 = vst [vmem:[#allocation2 + $0x138] sm:$0xf] %v247_v5  ;;  %250 = vst [vmem:[#allocation2 + $0x13c] sm:$0xff] %v249_v6   ;;  %v253_v7 = vld [vmem:[%s12425_s21 + $0x150] sm:$0xf]  ;;  %v265_v13 = vld [vmem:[%s12425_s21 + $0x15c] sm:$0xff]  }
  0x36   :  { %v255_v8 = vld [vmem:[%s12425_s21 + $0x144] sm:$0xf]  ;;  %v257_v9 = vld [vmem:[%s12425_s21 + $0x154] sm:$0xf]  ;;  %254 = vst [vmem:[#allocation2 + $0x144] sm:$0xf] %v253_v7 }
  0x37   :  { %256 = vst [vmem:[#allocation2 + $0x148] sm:$0xf] %v255_v8  ;;  %258 = vst [vmem:[#allocation2 + $0x14c] sm:$0xf] %v257_v9  ;;  %v259_v10 = vld [vmem:[%s12425_s21 + $0x148] sm:$0xf] }
  0x38   :  { %v261_v11 = vld [vmem:[%s12425_s21 + $0x158] sm:$0xf]  ;;  %v263_v12 = vld [vmem:[%s12425_s21 + $0x14c] sm:$0xf]  ;;  %260 = vst [vmem:[#allocation2 + $0x150] sm:$0xf] %v259_v10 }
  0x39   :  { %262 = vst [vmem:[#allocation2 + $0x154] sm:$0xf] %v261_v11  ;;  %264 = vst [vmem:[#allocation2 + $0x158] sm:$0xf] %v263_v12  ;;  %v269_v14 = vld [vmem:[%s12425_s21 + $0x170] sm:$0xf] }
  0x3a   :  { %v271_v15 = vld [vmem:[%s12425_s21 + $0x164] sm:$0xf]  ;;  %266 = vst [vmem:[#allocation2 + $0x15c] sm:$0xff] %v265_v13   ;;  %270 = vst [vmem:[#allocation2 + $0x164] sm:$0xf] %v269_v14  ;;  %v281_v20 = vld [vmem:[%s12425_s21 + $0x17c] sm:$0xff]  }
  0x3b   :  { %272 = vst [vmem:[#allocation2 + $0x168] sm:$0xf] %v271_v15  ;;  %v273_v16 = vld [vmem:[%s12425_s21 + $0x174] sm:$0xf]  ;;  %v275_v17 = vld [vmem:[%s12425_s21 + $0x168] sm:$0xf] }
  0x3c   :  { %v277_v18 = vld [vmem:[%s12425_s21 + $0x178] sm:$0xf]  ;;  %274 = vst [vmem:[#allocation2 + $0x16c] sm:$0xf] %v273_v16  ;;  %276 = vst [vmem:[#allocation2 + $0x170] sm:$0xf] %v275_v17 }
  0x3d   :  { %278 = vst [vmem:[#allocation2 + $0x174] sm:$0xf] %v277_v18  ;;  %v279_v19 = vld [vmem:[%s12425_s21 + $0x16c] sm:$0xf]  ;;  %v285_v21 = vld [vmem:[%s12425_s21 + $0x190] sm:$0xf] }
  0x3e   :  { %280 = vst [vmem:[#allocation2 + $0x178] sm:$0xf] %v279_v19  ;;  %282 = vst [vmem:[#allocation2 + $0x17c] sm:$0xff] %v281_v20   ;;  %v287_v22 = vld [vmem:[%s12425_s21 + $0x184] sm:$0xf]  ;;  %v297_v27 = vld [vmem:[%s12425_s21 + $0x19c] sm:$0xff]  }
  0x3f   :  { %286 = vst [vmem:[#allocation2 + $0x184] sm:$0xf] %v285_v21  ;;  %v289_v23 = vld [vmem:[%s12425_s21 + $0x194] sm:$0xf]  ;;  %v291_v24 = vld [vmem:[%s12425_s21 + $0x188] sm:$0xf] }
  0x40   :  { %288 = vst [vmem:[#allocation2 + $0x188] sm:$0xf] %v287_v22  ;;  %290 = vst [vmem:[#allocation2 + $0x18c] sm:$0xf] %v289_v23  ;;  %v293_v25 = vld [vmem:[%s12425_s21 + $0x198] sm:$0xf] }
  0x41   :  { %292 = vst [vmem:[#allocation2 + $0x190] sm:$0xf] %v291_v24  ;;  %v295_v26 = vld [vmem:[%s12425_s21 + $0x18c] sm:$0xf]  ;;  %294 = vst [vmem:[#allocation2 + $0x194] sm:$0xf] %v293_v25 }
  0x42   :  { %296 = vst [vmem:[#allocation2 + $0x198] sm:$0xf] %v295_v26  ;;  %298 = vst [vmem:[#allocation2 + $0x19c] sm:$0xff] %v297_v27   ;;  %v301_v28 = vld [vmem:[%s12425_s21 + $0x1b0] sm:$0xf]  ;;  %v313_v34 = vld [vmem:[%s12425_s21 + $0x1bc] sm:$0xff]  }
  0x43   :  { %v303_v29 = vld [vmem:[%s12425_s21 + $0x1a4] sm:$0xf]  ;;  %v305_v30 = vld [vmem:[%s12425_s21 + $0x1b4] sm:$0xf]  ;;  %302 = vst [vmem:[#allocation2 + $0x1a4] sm:$0xf] %v301_v28 }
  0x44   :  { %304 = vst [vmem:[#allocation2 + $0x1a8] sm:$0xf] %v303_v29  ;;  %306 = vst [vmem:[#allocation2 + $0x1ac] sm:$0xf] %v305_v30  ;;  %v307_v31 = vld [vmem:[%s12425_s21 + $0x1a8] sm:$0xf] }
  0x45   :  { %v309_v32 = vld [vmem:[%s12425_s21 + $0x1b8] sm:$0xf]  ;;  %v311_v33 = vld [vmem:[%s12425_s21 + $0x1ac] sm:$0xf]  ;;  %308 = vst [vmem:[#allocation2 + $0x1b0] sm:$0xf] %v307_v31 }
  0x46   :  { %310 = vst [vmem:[#allocation2 + $0x1b4] sm:$0xf] %v309_v32  ;;  %312 = vst [vmem:[#allocation2 + $0x1b8] sm:$0xf] %v311_v33  ;;  %v317_v35 = vld [vmem:[%s12425_s21 + $0x1d0] sm:$0xf] }
  0x47   :  { %v319_v36 = vld [vmem:[%s12425_s21 + $0x1c4] sm:$0xf]  ;;  %314 = vst [vmem:[#allocation2 + $0x1bc] sm:$0xff] %v313_v34   ;;  %318 = vst [vmem:[#allocation2 + $0x1c4] sm:$0xf] %v317_v35  ;;  %v329_v41 = vld [vmem:[%s12425_s21 + $0x1dc] sm:$0xff]  }
  0x48   :  { %320 = vst [vmem:[#allocation2 + $0x1c8] sm:$0xf] %v319_v36  ;;  %v321_v37 = vld [vmem:[%s12425_s21 + $0x1d4] sm:$0xf]  ;;  %v323_v38 = vld [vmem:[%s12425_s21 + $0x1c8] sm:$0xf] }
  0x49   :  { %v325_v39 = vld [vmem:[%s12425_s21 + $0x1d8] sm:$0xf]  ;;  %322 = vst [vmem:[#allocation2 + $0x1cc] sm:$0xf] %v321_v37  ;;  %324 = vst [vmem:[#allocation2 + $0x1d0] sm:$0xf] %v323_v38 }
  0x4a   :  { %326 = vst [vmem:[#allocation2 + $0x1d4] sm:$0xf] %v325_v39  ;;  %v327_v40 = vld [vmem:[%s12425_s21 + $0x1cc] sm:$0xf]  ;;  %v333_v42 = vld [vmem:[%s12425_s21 + $0x1f0] sm:$0xf] }
  0x4b   :  { %328 = vst [vmem:[#allocation2 + $0x1d8] sm:$0xf] %v327_v40  ;;  %330 = vst [vmem:[#allocation2 + $0x1dc] sm:$0xff] %v329_v41   ;;  %v335_v43 = vld [vmem:[%s12425_s21 + $0x1e4] sm:$0xf] }
  0x4c   :  { %334 = vst [vmem:[#allocation2 + $0x1e4] sm:$0xf] %v333_v42  ;;  %v337_v44 = vld [vmem:[%s12425_s21 + $0x1f4] sm:$0xf]  ;;  %v339_v45 = vld [vmem:[%s12425_s21 + $0x1e8] sm:$0xf] }
  0x4d   :  { %336 = vst [vmem:[#allocation2 + $0x1e8] sm:$0xf] %v335_v43  ;;  %338 = vst [vmem:[#allocation2 + $0x1ec] sm:$0xf] %v337_v44  ;;  %v341_v46 = vld [vmem:[%s12425_s21 + $0x1f8] sm:$0xf] }
  0x4e   :  { %340 = vst [vmem:[#allocation2 + $0x1f0] sm:$0xf] %v339_v45  ;;  %v343_v47 = vld [vmem:[%s12425_s21 + $0x1ec] sm:$0xf]  ;;  %v345_v48 = vld [vmem:[%s12425_s21 + $0x1fc] sm:$0xf] }
  0x4f   :  { %342 = vst [vmem:[#allocation2 + $0x1f4] sm:$0xf] %v341_v46  ;;  %344 = vst [vmem:[#allocation2 + $0x1f8] sm:$0xf] %v343_v47 }
  0x50   :  { %346 = vst [vmem:[#allocation2 + $0x1fc] sm:$0xf] %v345_v48 }
  0x51   :  { %633 = vsyncadd [#allocation3], 8192  ;;  %s12673_s25 = sld [smem:[#allocation113_spill]]  ;;  %s12674_s0 = sld [smem:[#allocation112_spill]]  ;;  %vm3156_vm0 = vcmask 523264  }
  0x52   :  { %s12675_s4 = sld [smem:[#allocation116_spill]]  ;;  %s12708_s1 = sld [smem:[#allocation115_spill]] }
  0x53   :  { %s12885_s2 = sld [smem:[#allocation119_spill]]  ;;  %s12886_s6 = sld [smem:[#allocation117_spill]] }
  0x54   :  { %s12887_s7 = sld [smem:[#allocation118_spill]] }
  0x57   :  { %v7021_v49 = vld [vmem:[%s12673_s25 + $0x4] ss:$8 sps:$4 sm:$0xff]   ;;  %v7023_v50 = vld [vmem:[%s12673_s25] ss:$8 sps:$4 sm:$0xff]   ;;  %v7024_v51 = vld [vmem:[%s12673_s25 + $0x14] ss:$8 sps:$4 sm:$0xff]  }
  0x58   :  { %1402 = vmatprep.subr.bf16.mxu0 %v7021_v49  ;;  %v7026_v52 = vld [vmem:[%s12673_s25 + $0x10] ss:$8 sps:$4 sm:$0xff]   ;;  %v7027_v53 = vld [vmem:[%s12673_s25 + $0x24] ss:$8 sps:$4 sm:$0xff]   ;;  %v7029_v54 = vld [vmem:[%s12673_s25 + $0x20] ss:$8 sps:$4 sm:$0xff]  }
  0x59   :  { %1403 = vmatpush1.bf16.msra.mxu0 %v7023_v50  ;;  %v7030_v55 = vld [vmem:[%s12673_s25 + $0x34] ss:$8 sps:$4 sm:$0xff]   ;;  %v7032_v56 = vld [vmem:[%s12673_s25 + $0x30] ss:$8 sps:$4 sm:$0xff]   ;;  %v7033_v57 = vld [vmem:[%s12673_s25 + $0x44] ss:$8 sps:$4 sm:$0xff]  }
  0x5a   :  { %1404 = vmatprep.subr.bf16.mxu0 %v7024_v51  ;;  %v7035_v58 = vld [vmem:[%s12673_s25 + $0x40] ss:$8 sps:$4 sm:$0xff]   ;;  %v7036_v59 = vld [vmem:[%s12673_s25 + $0x54] ss:$8 sps:$4 sm:$0xff]   ;;  %v7038_v60 = vld [vmem:[%s12673_s25 + $0x50] ss:$8 sps:$4 sm:$0xff]  }
  0x5b   :  { %v7039_v61 = vld [vmem:[%s12673_s25 + $0x64] ss:$8 sps:$4 sm:$0xff]   ;;  %v7041_v63 = vld [vmem:[%s12673_s25 + $0x60] ss:$8 sps:$4 sm:$0xff]   ;;  %v7042_v0 = vld [vmem:[%s12673_s25 + $0x74] ss:$8 sps:$4 sm:$0xff]  }
  0x5c   :  { %v7071_v62 = vld [vmem:[%s12674_s0 + $0x4] ss:$16 sps:$4 sm:$0xff]   ;;  %v7044_v1 = vld [vmem:[%s12673_s25 + $0x70] ss:$8 sps:$4 sm:$0xff]   ;;  %v7047_v3 = vld [vmem:[%s12673_s25 + $0x80] ss:$8 sps:$4 sm:$0xff]  }
  0x5d   :  { %1405 = vmatpush1.bf16.msra.mxu0 %v7026_v52  ;;  %1434 = vmatprep.mubr.bf16.mxu0 %v7071_v62  ;;  %v7045_v2 = vld [vmem:[%s12673_s25 + $0x84] ss:$8 sps:$4 sm:$0xff]   ;;  %v7048_v4 = vld [vmem:[%s12673_s25 + $0x94] ss:$8 sps:$4 sm:$0xff]   ;;  %v7050_v5 = vld [vmem:[%s12673_s25 + $0x90] ss:$8 sps:$4 sm:$0xff]  }
  0x5e   :  { %1406 = vmatprep.subr.bf16.mxu0 %v7027_v53  ;;  %v7051_v6 = vld [vmem:[%s12673_s25 + $0xa4] ss:$8 sps:$4 sm:$0xff]   ;;  %v7053_v7 = vld [vmem:[%s12673_s25 + $0xa0] ss:$8 sps:$4 sm:$0xff]   ;;  %v7054_v8 = vld [vmem:[%s12673_s25 + $0xb4] ss:$8 sps:$4 sm:$0xff]  }
  0x5f   :  { %v7056_v9 = vld [vmem:[%s12673_s25 + $0xb0] ss:$8 sps:$4 sm:$0xff]   ;;  %v7057_v10 = vld [vmem:[%s12673_s25 + $0xc4] ss:$8 sps:$4 sm:$0xff]   ;;  %v7059_v11 = vld [vmem:[%s12673_s25 + $0xc0] ss:$8 sps:$4 sm:$0xff]  }
  0x60   :  { %v7060_v12 = vld [vmem:[%s12673_s25 + $0xd4] ss:$8 sps:$4 sm:$0xff]   ;;  %v7062_v13 = vld [vmem:[%s12673_s25 + $0xd0] ss:$8 sps:$4 sm:$0xff]   ;;  %v7063_v14 = vld [vmem:[%s12673_s25 + $0xe4] ss:$8 sps:$4 sm:$0xff]  }
  0x61   :  { %1407 = vmatpush1.bf16.msra.mxu0 %v7029_v54  ;;  %v7065_v15 = vld [vmem:[%s12673_s25 + $0xe0] ss:$8 sps:$4 sm:$0xff]   ;;  %v7066_v16 = vld [vmem:[%s12673_s25 + $0xf4] ss:$8 sps:$4 sm:$0xff]   ;;  %v7068_v17 = vld [vmem:[%s12673_s25 + $0xf0] ss:$8 sps:$4 sm:$0xff]  }
  0x62   :  { %1408 = vmatprep.subr.bf16.mxu0 %v7030_v55  ;;  %v7074_v18 = vld [vmem:[%s12673_s25 + $0x104] ss:$8 sps:$4 sm:$0xff]   ;;  %v7069_v19 = vld [vmem:[%s12674_s0] ss:$16 sps:$4 sm:$0xff]   ;;  %v7080_v22 = vld [vmem:[%s12673_s25 + $0x114] ss:$8 sps:$4 sm:$0xff]  }
  0x63   :  { %v7072_v20 = vld [vmem:[%s12673_s25 + $0x100] ss:$8 sps:$4 sm:$0xff]   ;;  %v7075_v21 = vld [vmem:[%s12674_s0 + $0x24] ss:$16 sps:$4 sm:$0xff]   ;;  %v7078_v23 = vld [vmem:[%s12673_s25 + $0x110] ss:$8 sps:$4 sm:$0xff]  }
  0x64   :  { %v7086_v24 = vld [vmem:[%s12673_s25 + $0x124] ss:$8 sps:$4 sm:$0xff]   ;;  %v7077_v25 = vld [vmem:[%s12674_s0 + $0x20] ss:$16 sps:$4 sm:$0xff]   ;;  %v7092_v28 = vld [vmem:[%s12673_s25 + $0x134] ss:$8 sps:$4 sm:$0xff]  }
  0x65   :  { %1409 = vmatpush1.bf16.msra.mxu0 %v7032_v56  ;;  %v7081_v26 = vld [vmem:[%s12674_s0 + $0x44] ss:$16 sps:$4 sm:$0xff]   ;;  %v7084_v27 = vld [vmem:[%s12673_s25 + $0x120] ss:$8 sps:$4 sm:$0xff]   ;;  %v7090_v29 = vld [vmem:[%s12673_s25 + $0x130] ss:$8 sps:$4 sm:$0xff]  }
  0x66   :  { %1410 = vmatprep.subr.bf16.mxu0 %v7033_v57  ;;  %v7098_v30 = vld [vmem:[%s12673_s25 + $0x144] ss:$8 sps:$4 sm:$0xff]   ;;  %v7083_v31 = vld [vmem:[%s12674_s0 + $0x40] ss:$16 sps:$4 sm:$0xff]   ;;  %v7104_v34 = vld [vmem:[%s12673_s25 + $0x154] ss:$8 sps:$4 sm:$0xff]  }
  0x67   :  { %v7087_v32 = vld [vmem:[%s12674_s0 + $0x64] ss:$16 sps:$4 sm:$0xff]   ;;  %v7096_v33 = vld [vmem:[%s12673_s25 + $0x140] ss:$8 sps:$4 sm:$0xff]   ;;  %v7102_v35 = vld [vmem:[%s12673_s25 + $0x150] ss:$8 sps:$4 sm:$0xff]  }
  0x68   :  { %v7110_v36 = vld [vmem:[%s12673_s25 + $0x164] ss:$8 sps:$4 sm:$0xff]   ;;  %v7089_v37 = vld [vmem:[%s12674_s0 + $0x60] ss:$16 sps:$4 sm:$0xff]   ;;  %v7116_v40 = vld [vmem:[%s12673_s25 + $0x174] ss:$8 sps:$4 sm:$0xff]  }
  0x69   :  { %1411 = vmatpush1.bf16.msra.mxu0 %v7035_v58  ;;  %v7093_v38 = vld [vmem:[%s12674_s0 + $0x84] ss:$16 sps:$4 sm:$0xff]   ;;  %v7108_v39 = vld [vmem:[%s12673_s25 + $0x160] ss:$8 sps:$4 sm:$0xff]   ;;  %v7114_v41 = vld [vmem:[%s12673_s25 + $0x170] ss:$8 sps:$4 sm:$0xff]  }
  0x6a   :  { %1412 = vmatprep.subr.bf16.mxu0 %v7036_v59  ;;  %v7122_v42 = vld [vmem:[%s12673_s25 + $0x184] ss:$8 sps:$4 sm:$0xff]   ;;  %v7095_v43 = vld [vmem:[%s12674_s0 + $0x80] ss:$16 sps:$4 sm:$0xff]   ;;  %v7128_v46 = vld [vmem:[%s12673_s25 + $0x194] ss:$8 sps:$4 sm:$0xff]  }
  0x6b   :  { %v7099_v44 = vld [vmem:[%s12674_s0 + $0xa4] ss:$16 sps:$4 sm:$0xff]   ;;  %v7120_v45 = vld [vmem:[%s12673_s25 + $0x180] ss:$8 sps:$4 sm:$0xff]   ;;  %v7126_v47 = vld [vmem:[%s12673_s25 + $0x190] ss:$8 sps:$4 sm:$0xff]  }
  0x6c   :  { %v7134_v48 = vld [vmem:[%s12673_s25 + $0x1a4] ss:$8 sps:$4 sm:$0xff]   ;;  %v7101_v49 = vld [vmem:[%s12674_s0 + $0xa0] ss:$16 sps:$4 sm:$0xff]   ;;  %v7140_v52 = vld [vmem:[%s12673_s25 + $0x1b4] ss:$8 sps:$4 sm:$0xff]  }
  0x6d   :  { %1413 = vmatpush1.bf16.msra.mxu0 %v7038_v60  ;;  %v7105_v50 = vld [vmem:[%s12674_s0 + $0xc4] ss:$16 sps:$4 sm:$0xff]   ;;  %v7132_v51 = vld [vmem:[%s12673_s25 + $0x1a0] ss:$8 sps:$4 sm:$0xff]   ;;  %v7138_v53 = vld [vmem:[%s12673_s25 + $0x1b0] ss:$8 sps:$4 sm:$0xff]  }
  0x6e   :  { %1414 = vmatprep.subr.bf16.mxu0 %v7039_v61  ;;  %v7146_v54 = vld [vmem:[%s12673_s25 + $0x1c4] ss:$8 sps:$4 sm:$0xff]   ;;  %v7107_v55 = vld [vmem:[%s12674_s0 + $0xc0] ss:$16 sps:$4 sm:$0xff]   ;;  %v7152_v58 = vld [vmem:[%s12673_s25 + $0x1d4] ss:$8 sps:$4 sm:$0xff]  }
  0x6f   :  { %v7111_v56 = vld [vmem:[%s12674_s0 + $0xe4] ss:$16 sps:$4 sm:$0xff]   ;;  %v7144_v57 = vld [vmem:[%s12673_s25 + $0x1c0] ss:$8 sps:$4 sm:$0xff]   ;;  %v7150_v59 = vld [vmem:[%s12673_s25 + $0x1d0] ss:$8 sps:$4 sm:$0xff]  }
  0x70   :  { %v7158_v60 = vld [vmem:[%s12673_s25 + $0x1e4] ss:$8 sps:$4 sm:$0xff]   ;;  %v7113_v61 = vld [vmem:[%s12674_s0 + $0xe0] ss:$16 sps:$4 sm:$0xff]  }
  0x71   :  { %1415 = vmatpush1.bf16.msra.mxu0 %v7041_v63  ;;  %v7117_v62 = vld [vmem:[%s12674_s0 + $0x104] ss:$16 sps:$4 sm:$0xff]   ;;  %v7156_v63 = vld [vmem:[%s12673_s25 + $0x1e0] ss:$8 sps:$4 sm:$0xff]  }
  0x72   :  { %1416 = vmatprep.subr.bf16.mxu0 %v7042_v0  ;;  %v7164_v0 = vld [vmem:[%s12673_s25 + $0x1f4] ss:$8 sps:$4 sm:$0xff]  }
  0x75   :  { %1417 = vmatpush1.bf16.msra.mxu0 %v7044_v1  ;;  %v7162_v1 = vld [vmem:[%s12673_s25 + $0x1f0] ss:$8 sps:$4 sm:$0xff]   ;;  %s12705_s25 = sld [smem:[#allocation114_spill]] }
  0x76   :  { %1418 = vmatprep.subr.bf16.mxu0 %v7045_v2  ;;  %v7119_v2 = vld [vmem:[%s12674_s0 + $0x100] ss:$16 sps:$4 sm:$0xff]  }
  0x79   :  { %1419 = vmatpush1.bf16.msra.mxu0 %v7047_v3  ;;  %v7123_v3 = vld [vmem:[%s12674_s0 + $0x124] ss:$16 sps:$4 sm:$0xff]  }
  0x7a   :  { %1420 = vmatprep.subr.bf16.mxu0 %v7048_v4  ;;  %v7125_v4 = vld [vmem:[%s12674_s0 + $0x120] ss:$16 sps:$4 sm:$0xff]  }
  0x7d   :  { %1421 = vmatpush1.bf16.msra.mxu0 %v7050_v5  ;;  %v7129_v5 = vld [vmem:[%s12674_s0 + $0x144] ss:$16 sps:$4 sm:$0xff]  }
  0x7e   :  { %1422 = vmatprep.subr.bf16.mxu0 %v7051_v6  ;;  %v7131_v6 = vld [vmem:[%s12674_s0 + $0x140] ss:$16 sps:$4 sm:$0xff]  }
  0x81   :  { %1423 = vmatpush1.bf16.msra.mxu0 %v7053_v7  ;;  %v7135_v7 = vld [vmem:[%s12674_s0 + $0x164] ss:$16 sps:$4 sm:$0xff]  }
  0x82   :  { %1424 = vmatprep.subr.bf16.mxu0 %v7054_v8  ;;  %v7137_v8 = vld [vmem:[%s12674_s0 + $0x160] ss:$16 sps:$4 sm:$0xff]  }
  0x85   :  { %1425 = vmatpush1.bf16.msra.mxu0 %v7056_v9  ;;  %v7141_v9 = vld [vmem:[%s12674_s0 + $0x184] ss:$16 sps:$4 sm:$0xff]  }
  0x86   :  { %1426 = vmatprep.subr.bf16.mxu0 %v7057_v10  ;;  %v7143_v10 = vld [vmem:[%s12674_s0 + $0x180] ss:$16 sps:$4 sm:$0xff]  }
  0x89   :  { %1427 = vmatpush1.bf16.msra.mxu0 %v7059_v11  ;;  %v7147_v11 = vld [vmem:[%s12674_s0 + $0x1a4] ss:$16 sps:$4 sm:$0xff]  }
  0x8a   :  { %1428 = vmatprep.subr.bf16.mxu0 %v7060_v12  ;;  %v7149_v12 = vld [vmem:[%s12674_s0 + $0x1a0] ss:$16 sps:$4 sm:$0xff]  }
  0x8d   :  { %1429 = vmatpush1.bf16.msra.mxu0 %v7062_v13  ;;  %v7153_v13 = vld [vmem:[%s12674_s0 + $0x1c4] ss:$16 sps:$4 sm:$0xff]  }
  0x8e   :  { %1430 = vmatprep.subr.bf16.mxu0 %v7063_v14  ;;  %v7155_v14 = vld [vmem:[%s12674_s0 + $0x1c0] ss:$16 sps:$4 sm:$0xff]  }
  0x91   :  { %1431 = vmatpush1.bf16.msra.mxu0 %v7065_v15  ;;  %v7159_v15 = vld [vmem:[%s12674_s0 + $0x1e4] ss:$16 sps:$4 sm:$0xff]  }
  0x92   :  { %1432 = vmatprep.subr.bf16.mxu0 %v7066_v16  ;;  %v7161_v16 = vld [vmem:[%s12674_s0 + $0x1e0] ss:$16 sps:$4 sm:$0xff]  }
  0x95   :  { %1433 = vmatpush1.bf16.msra.mxu0 %v7068_v17  ;;  %v7167_v17 = vld [vmem:[%s12674_s0 + $0xc] ss:$16 sps:$4 sm:$0xff]  }
  0x96   :  { %1595 = vmatprep.subr.bf16.mxu0 %v7074_v18  ;;  %v7165_v18 = vld [vmem:[%s12674_s0 + $0x8] ss:$16 sps:$4 sm:$0xff]  }
  0x98   :  { %1435 = vmatmul.mubr.bf16.vlgmr.msra.gmra.mrb[0].mxu0 %v7069_v19  ;;  %v7168_v19 = vld [vmem:[%s12674_s0 + $0x2c] ss:$16 sps:$4 sm:$0xff]  }
  0x99   :  { %1596 = vmatpush1.bf16.msra.mxu0 %v7072_v20  ;;  %1444 = vmatprep.mubr.bf16.mxu0 %v7075_v21  ;;  %v7170_v20 = vld [vmem:[%s12674_s0 + $0x28] ss:$16 sps:$4 sm:$0xff]   ;;  %v7171_v21 = vld [vmem:[%s12674_s0 + $0x4c] ss:$16 sps:$4 sm:$0xff]  }
  0x9a   :  { %1597 = vmatprep.subr.bf16.mxu0 %v7080_v22  ;;  %v7173_v22 = vld [vmem:[%s12674_s0 + $0x48] ss:$16 sps:$4 sm:$0xff]  }
  0x9d   :  { %1598 = vmatpush1.bf16.msra.mxu0 %v7078_v23  ;;  %v7174_v23 = vld [vmem:[%s12674_s0 + $0x6c] ss:$16 sps:$4 sm:$0xff]  }
  0x9e   :  { %1599 = vmatprep.subr.bf16.mxu0 %v7086_v24  ;;  %v7176_v24 = vld [vmem:[%s12674_s0 + $0x68] ss:$16 sps:$4 sm:$0xff]  }
  0xa0   :  { %1445 = vmatmul.mubr.bf16.gmra.mrb[4].mxu0 %v7077_v25  ;;  %v7177_v25 = vld [vmem:[%s12674_s0 + $0x8c] ss:$16 sps:$4 sm:$0xff]  }
  0xa1   :  { %1454 = vmatprep.mubr.bf16.mxu0 %v7081_v26  ;;  %1600 = vmatpush1.bf16.msra.mxu0 %v7084_v27  ;;  %v7179_v26 = vld [vmem:[%s12674_s0 + $0x88] ss:$16 sps:$4 sm:$0xff]   ;;  %v7180_v27 = vld [vmem:[%s12674_s0 + $0xac] ss:$16 sps:$4 sm:$0xff]  }
  0xa2   :  { %1601 = vmatprep.subr.bf16.mxu0 %v7092_v28  ;;  %v7182_v28 = vld [vmem:[%s12674_s0 + $0xa8] ss:$16 sps:$4 sm:$0xff]  }
  0xa5   :  { %1602 = vmatpush1.bf16.msra.mxu0 %v7090_v29  ;;  %v7183_v29 = vld [vmem:[%s12674_s0 + $0xcc] ss:$16 sps:$4 sm:$0xff]  }
  0xa6   :  { %1603 = vmatprep.subr.bf16.mxu0 %v7098_v30  ;;  %v7185_v30 = vld [vmem:[%s12674_s0 + $0xc8] ss:$16 sps:$4 sm:$0xff]  }
  0xa8   :  { %1455 = vmatmul.mubr.bf16.gmra.mrb[8].mxu0 %v7083_v31  ;;  %v7186_v31 = vld [vmem:[%s12674_s0 + $0xec] ss:$16 sps:$4 sm:$0xff]  }
  0xa9   :  { %1464 = vmatprep.mubr.bf16.mxu0 %v7087_v32  ;;  %1604 = vmatpush1.bf16.msra.mxu0 %v7096_v33  ;;  %v7188_v32 = vld [vmem:[%s12674_s0 + $0xe8] ss:$16 sps:$4 sm:$0xff]   ;;  %v7189_v33 = vld [vmem:[%s12674_s0 + $0x10c] ss:$16 sps:$4 sm:$0xff]  }
  0xaa   :  { %1605 = vmatprep.subr.bf16.mxu0 %v7104_v34  ;;  %v7191_v34 = vld [vmem:[%s12674_s0 + $0x108] ss:$16 sps:$4 sm:$0xff]  }
  0xad   :  { %1606 = vmatpush1.bf16.msra.mxu0 %v7102_v35  ;;  %v7192_v35 = vld [vmem:[%s12674_s0 + $0x12c] ss:$16 sps:$4 sm:$0xff]  }
  0xae   :  { %1607 = vmatprep.subr.bf16.mxu0 %v7110_v36  ;;  %v7194_v36 = vld [vmem:[%s12674_s0 + $0x128] ss:$16 sps:$4 sm:$0xff]  }
  0xb0   :  { %1465 = vmatmul.mubr.bf16.gmra.mrb[12].mxu0 %v7089_v37  ;;  %v7195_v37 = vld [vmem:[%s12674_s0 + $0x14c] ss:$16 sps:$4 sm:$0xff]  }
  0xb1   :  { %1474 = vmatprep.mubr.bf16.mxu0 %v7093_v38  ;;  %1608 = vmatpush1.bf16.msra.mxu0 %v7108_v39  ;;  %v7197_v38 = vld [vmem:[%s12674_s0 + $0x148] ss:$16 sps:$4 sm:$0xff]   ;;  %v7198_v39 = vld [vmem:[%s12674_s0 + $0x16c] ss:$16 sps:$4 sm:$0xff]  }
  0xb2   :  { %1609 = vmatprep.subr.bf16.mxu0 %v7116_v40  ;;  %v7200_v40 = vld [vmem:[%s12674_s0 + $0x168] ss:$16 sps:$4 sm:$0xff]  }
  0xb5   :  { %1610 = vmatpush1.bf16.msra.mxu0 %v7114_v41  ;;  %v7201_v41 = vld [vmem:[%s12674_s0 + $0x18c] ss:$16 sps:$4 sm:$0xff]  }
  0xb6   :  { %1611 = vmatprep.subr.bf16.mxu0 %v7122_v42  ;;  %v7203_v42 = vld [vmem:[%s12674_s0 + $0x188] ss:$16 sps:$4 sm:$0xff]  }
  0xb8   :  { %1475 = vmatmul.mubr.bf16.gmra.mrb[16].mxu0 %v7095_v43  ;;  %v7204_v43 = vld [vmem:[%s12674_s0 + $0x1ac] ss:$16 sps:$4 sm:$0xff]  }
  0xb9   :  { %1484 = vmatprep.mubr.bf16.mxu0 %v7099_v44  ;;  %1612 = vmatpush1.bf16.msra.mxu0 %v7120_v45  ;;  %v7206_v44 = vld [vmem:[%s12674_s0 + $0x1a8] ss:$16 sps:$4 sm:$0xff]   ;;  %v7207_v45 = vld [vmem:[%s12674_s0 + $0x1cc] ss:$16 sps:$4 sm:$0xff]  }
  0xba   :  { %1613 = vmatprep.subr.bf16.mxu0 %v7128_v46  ;;  %v7209_v46 = vld [vmem:[%s12674_s0 + $0x1c8] ss:$16 sps:$4 sm:$0xff]  }
  0xbd   :  { %1614 = vmatpush1.bf16.msra.mxu0 %v7126_v47  ;;  %v7210_v47 = vld [vmem:[%s12674_s0 + $0x1ec] ss:$16 sps:$4 sm:$0xff]  }
  0xbe   :  { %1615 = vmatprep.subr.bf16.mxu0 %v7134_v48  ;;  %v7212_v48 = vld [vmem:[%s12674_s0 + $0x1e8] ss:$16 sps:$4 sm:$0xff]  }
  0xc0   :  { %1485 = vmatmul.mubr.bf16.gmra.mrb[20].mxu0 %v7101_v49  ;;  %v7213_v49 = vld [vmem:[%s12675_s4 + $0x40] sm:$0xff]  }
  0xc1   :  { %1494 = vmatprep.mubr.bf16.mxu0 %v7105_v50  ;;  %1616 = vmatpush1.bf16.msra.mxu0 %v7132_v51  ;;  %v7214_v50 = vld [vmem:[%s12675_s4] sm:$0xff]   ;;  %v7215_v51 = vld [vmem:[%s12675_s4 + $0x48] sm:$0xff]  }
  0xc2   :  { %1617 = vmatprep.subr.bf16.mxu0 %v7140_v52  ;;  %6936 = vmatprep.subr.bf16.mxu1 %v7213_v49  ;;  %v7216_v52 = vld [vmem:[%s12675_s4 + $0x8] sm:$0xff]  }
  0xc3   :  { %6944 = vmatpush3.bf16.msra.mxu1 %v7214_v50 }
  0xc4   :  { %6937 = vmatprep.subr.bf16.mxu1 %v7215_v51 }
  0xc5   :  { %1618 = vmatpush1.bf16.msra.mxu0 %v7138_v53  ;;  %v7217_v53 = vld [vmem:[%s12675_s4 + $0x50] sm:$0xff]  }
  0xc6   :  { %1619 = vmatprep.subr.bf16.mxu0 %v7146_v54  ;;  %v7218_v54 = vld [vmem:[%s12675_s4 + $0x10] sm:$0xff]  }
  0xc7   :  { %6945 = vmatpush3.bf16.msra.mxu1 %v7216_v52 }
  0xc8   :  { %1495 = vmatmul.mubr.bf16.gmra.mrb[24].mxu0 %v7107_v55  ;;  %6938 = vmatprep.subr.bf16.mxu1 %v7217_v53  ;;  %v7219_v55 = vld [vmem:[%s12675_s4 + $0x58] sm:$0xff]  }
  0xc9   :  { %1504 = vmatprep.mubr.bf16.mxu0 %v7111_v56  ;;  %1620 = vmatpush1.bf16.msra.mxu0 %v7144_v57  ;;  %v7220_v56 = vld [vmem:[%s12675_s4 + $0x18] sm:$0xff]  }
  0xca   :  { %1621 = vmatprep.subr.bf16.mxu0 %v7152_v58 }
  0xcb   :  { %6946 = vmatpush3.bf16.msra.mxu1 %v7218_v54 }
  0xcc   :  { %6939 = vmatprep.subr.bf16.mxu1 %v7219_v55 }
  0xcd   :  { %1622 = vmatpush1.bf16.msra.mxu0 %v7150_v59 }
  0xce   :  { %1623 = vmatprep.subr.bf16.mxu0 %v7158_v60 }
  0xcf   :  { %6947 = vmatpush3.bf16.msra.mxu1 %v7220_v56 }
  0xd0   :  { %1505 = vmatmul.mubr.bf16.gmra.mrb[28].mxu0 %v7113_v61 }
  0xd1   :  { %1514 = vmatprep.mubr.bf16.mxu0 %v7117_v62  ;;  %1624 = vmatpush1.bf16.msra.mxu0 %v7156_v63 }
  0xd2   :  { %1625 = vmatprep.subr.bf16.mxu0 %v7164_v0 }
  0xd5   :  { %1626 = vmatpush1.bf16.msra.mxu0 %v7162_v1 }
  0xd6   :  { %6560 = vmatprep.subr.bf16.mxu0 %v7213_v49 }
  0xd8   :  { %1515 = vmatmul.mubr.bf16.gmra.mrb[32].mxu0 %v7119_v2 }
  0xd9   :  { %1524 = vmatprep.mubr.bf16.mxu0 %v7123_v3 }
  0xe0   :  { %1525 = vmatmul.mubr.bf16.gmra.mrb[36].mxu0 %v7125_v4 }
  0xe1   :  { %1534 = vmatprep.mubr.bf16.mxu0 %v7129_v5 }
  0xe8   :  { %1535 = vmatmul.mubr.bf16.gmra.mrb[40].mxu0 %v7131_v6 }
  0xe9   :  { %1544 = vmatprep.mubr.bf16.mxu0 %v7135_v7 }
  0xf0   :  { %1545 = vmatmul.mubr.bf16.gmra.mrb[44].mxu0 %v7137_v8 }
  0xf1   :  { %1554 = vmatprep.mubr.bf16.mxu0 %v7141_v9 }
  0xf8   :  { %1555 = vmatmul.mubr.bf16.gmra.mrb[48].mxu0 %v7143_v10 }
  0xf9   :  { %1564 = vmatprep.mubr.bf16.mxu0 %v7147_v11 }
 0x100   :  { %1565 = vmatmul.mubr.bf16.gmra.mrb[52].mxu0 %v7149_v12 }
 0x101   :  { %1574 = vmatprep.mubr.bf16.mxu0 %v7153_v13 }
 0x108   :  { %1575 = vmatmul.mubr.bf16.gmra.mrb[56].mxu0 %v7155_v14 }
 0x109   :  { %1584 = vmatprep.mubr.bf16.mxu0 %v7159_v15 }
 0x110   :  { %1585 = vmatmul.mubr.bf16.gmra.mrb[60].mxu0 %v7161_v16 }
 0x111   :  { %1627 = vmatprep.mubr.bf16.mxu0 %v7167_v17 }
 0x118   :  { %1628 = vmatmul.mubr.bf16.vlgmr.msra.gmra.mrb[0].mxu0 %v7165_v18 }
 0x119   :  { %1637 = vmatprep.mubr.bf16.mxu0 %v7168_v19  ;;  %6561 = vmatpush3.bf16.msra.mxu0 %v7214_v50 }
 0x11a   :  { %6562 = vmatprep.subr.bf16.mxu0 %v7215_v51 }
 0x11d   :  { %6563 = vmatpush3.bf16.msra.mxu0 %v7216_v52 }
 0x11e   :  { %6564 = vmatprep.subr.bf16.mxu0 %v7217_v53 }
 0x120   :  { %1638 = vmatmul.mubr.bf16.gmra.mrb[4].mxu0 %v7170_v20 }
 0x121   :  { %1647 = vmatprep.mubr.bf16.mxu0 %v7171_v21  ;;  %6565 = vmatpush3.bf16.msra.mxu0 %v7218_v54 }
 0x122   :  { %6566 = vmatprep.subr.bf16.mxu0 %v7219_v55 }
 0x125   :  { %6567 = vmatpush3.bf16.msra.mxu0 %v7220_v56 }
 0x128   :  { %1648 = vmatmul.mubr.bf16.gmra.mrb[8].mxu0 %v7173_v22 }
 0x129   :  { %1657 = vmatprep.mubr.bf16.mxu0 %v7174_v23 }
 0x130   :  { %1658 = vmatmul.mubr.bf16.gmra.mrb[12].mxu0 %v7176_v24 }
 0x131   :  { %1667 = vmatprep.mubr.bf16.mxu0 %v7177_v25 }
 0x138   :  { %1668 = vmatmul.mubr.bf16.gmra.mrb[16].mxu0 %v7179_v26 }
 0x139   :  { %1677 = vmatprep.mubr.bf16.mxu0 %v7180_v27 }
 0x140   :  { %1678 = vmatmul.mubr.bf16.gmra.mrb[20].mxu0 %v7182_v28 }
 0x141   :  { %1687 = vmatprep.mubr.bf16.mxu0 %v7183_v29 }
 0x148   :  { %1688 = vmatmul.mubr.bf16.gmra.mrb[24].mxu0 %v7185_v30 }
 0x149   :  { %1697 = vmatprep.mubr.bf16.mxu0 %v7186_v31 }
 0x150   :  { %1698 = vmatmul.mubr.bf16.gmra.mrb[28].mxu0 %v7188_v32 }
 0x151   :  { %1707 = vmatprep.mubr.bf16.mxu0 %v7189_v33 }
 0x158   :  { %1708 = vmatmul.mubr.bf16.gmra.mrb[32].mxu0 %v7191_v34 }
 0x159   :  { %1717 = vmatprep.mubr.bf16.mxu0 %v7192_v35 }
 0x160   :  { %1718 = vmatmul.mubr.bf16.gmra.mrb[36].mxu0 %v7194_v36 }
 0x161   :  { %1727 = vmatprep.mubr.bf16.mxu0 %v7195_v37 }
 0x168   :  { %1728 = vmatmul.mubr.bf16.gmra.mrb[40].mxu0 %v7197_v38 }
 0x169   :  { %1737 = vmatprep.mubr.bf16.mxu0 %v7198_v39 }
 0x170   :  { %1738 = vmatmul.mubr.bf16.gmra.mrb[44].mxu0 %v7200_v40 }
 0x171   :  { %1747 = vmatprep.mubr.bf16.mxu0 %v7201_v41 }
 0x178   :  { %1748 = vmatmul.mubr.bf16.gmra.mrb[48].mxu0 %v7203_v42 }
 0x179   :  { %1757 = vmatprep.mubr.bf16.mxu0 %v7204_v43 }
 0x180   :  { %1758 = vmatmul.mubr.bf16.gmra.mrb[52].mxu0 %v7206_v44 }
 0x181   :  { %1767 = vmatprep.mubr.bf16.mxu0 %v7207_v45 }
 0x188   :  { %1768 = vmatmul.mubr.bf16.gmra.mrb[56].mxu0 %v7209_v46 }
 0x189   :  { %1777 = vmatprep.mubr.bf16.mxu0 %v7210_v47 }
 0x190   :  { %1778 = vmatmul.mubr.bf16.gmra.mrb[60].mxu0 %v7212_v48 }
 0x1eb   :  { %v8191_v57 = vpop.f32.mrb[0].mxu0 }
 0x1ec   :  { %v8193_v58 = vpop.f32.mrb[1].mxu0  ;;  %v1866_v60 = vmul.f32 %v8191_v57, %v8191_v57 }
 0x1ed   :  { %v8195_v59 = vpop.f32.mrb[2].mxu0  ;;  %v1867_v0 = vmul.f32 %v8193_v58, %v8193_v58 }
 0x1ee   :  { %v1790_v61 = vadd.f32 %v8195_v59, %v8191_v57  ;;  %v1868_v62 = vmul.f32 %v8195_v59, %v8195_v59  ;;  %v8203_v63 = vpop.f32.mrb[3].mxu0 }
 0x1ef   :  { %v1827_v1 = vadd.f32 %v8203_v63, %v8193_v58  ;;  %v1869_v2 = vmul.f32 %v8203_v63, %v8203_v63 }
 0x1f0   :  { %v1930_v3 = vadd.f32 %v1868_v62, %v1866_v60 }
 0x1f1   :  { %v1967_v4 = vadd.f32 %v1869_v2, %v1867_v0 }
 0x1f3   :  { %v8211_v5 = vpop.f32.mrb[4].mxu0 }
 0x1f4   :  { %v1791_v6 = vadd.f32 %v1790_v61, %v8211_v5  ;;  %v1870_v7 = vmul.f32 %v8211_v5, %v8211_v5  ;;  %v8216_v8 = vpop.f32.mrb[5].mxu0 }
 0x1f5   :  { %v1828_v9 = vadd.f32 %v1827_v1, %v8216_v8  ;;  %v1871_v10 = vmul.f32 %v8216_v8, %v8216_v8  ;;  %v8221_v11 = vpop.f32.mrb[6].mxu0 }
 0x1f6   :  { %v1931_v12 = vadd.f32 %v1930_v3, %v1870_v7  ;;  %v1792_v13 = vadd.f32 %v1791_v6, %v8221_v11  ;;  %v1872_v14 = vmul.f32 %v8221_v11, %v8221_v11  ;;  %v8226_v15 = vpop.f32.mrb[7].mxu0 }
 0x1f7   :  { %v1968_v16 = vadd.f32 %v1967_v4, %v1871_v10  ;;  %v1829_v17 = vadd.f32 %v1828_v9, %v8226_v15  ;;  %v1873_v18 = vmul.f32 %v8226_v15, %v8226_v15 }
 0x1f8   :  { %v1932_v19 = vadd.f32 %v1931_v12, %v1872_v14 }
 0x1f9   :  { %v1969_v20 = vadd.f32 %v1968_v16, %v1873_v18 }
 0x1fb   :  { %v8231_v21 = vpop.f32.mrb[8].mxu0 }
 0x1fc   :  { %v1793_v22 = vadd.f32 %v1792_v13, %v8231_v21  ;;  %v1874_v23 = vmul.f32 %v8231_v21, %v8231_v21  ;;  %v8236_v24 = vpop.f32.mrb[9].mxu0 }
 0x1fd   :  { %v1830_v25 = vadd.f32 %v1829_v17, %v8236_v24  ;;  %v1875_v26 = vmul.f32 %v8236_v24, %v8236_v24  ;;  %v8241_v27 = vpop.f32.mrb[10].mxu0 }
 0x1fe   :  { %v1933_v28 = vadd.f32 %v1932_v19, %v1874_v23  ;;  %v1794_v29 = vadd.f32 %v1793_v22, %v8241_v27  ;;  %v1876_v30 = vmul.f32 %v8241_v27, %v8241_v27  ;;  %v8246_v31 = vpop.f32.mrb[11].mxu0 }
 0x1ff   :  { %v1970_v32 = vadd.f32 %v1969_v20, %v1875_v26  ;;  %v1831_v33 = vadd.f32 %v1830_v25, %v8246_v31  ;;  %v1877_v34 = vmul.f32 %v8246_v31, %v8246_v31 }
 0x200   :  { %v1934_v35 = vadd.f32 %v1933_v28, %v1876_v30 }
 0x201   :  { %v1971_v36 = vadd.f32 %v1970_v32, %v1877_v34 }
 0x203   :  { %v8251_v37 = vpop.f32.mrb[12].mxu0 }
 0x204   :  { %v1795_v38 = vadd.f32 %v1794_v29, %v8251_v37  ;;  %v1878_v39 = vmul.f32 %v8251_v37, %v8251_v37  ;;  %v8256_v40 = vpop.f32.mrb[13].mxu0 }
 0x205   :  { %v1832_v41 = vadd.f32 %v1831_v33, %v8256_v40  ;;  %v1879_v42 = vmul.f32 %v8256_v40, %v8256_v40  ;;  %v8261_v43 = vpop.f32.mrb[14].mxu0 }
 0x206   :  { %v1935_v44 = vadd.f32 %v1934_v35, %v1878_v39  ;;  %v1796_v45 = vadd.f32 %v1795_v38, %v8261_v43  ;;  %v1880_v46 = vmul.f32 %v8261_v43, %v8261_v43  ;;  %v8266_v47 = vpop.f32.mrb[15].mxu0 }
 0x207   :  { %v1972_v48 = vadd.f32 %v1971_v36, %v1879_v42  ;;  %v1833_v49 = vadd.f32 %v1832_v41, %v8266_v47  ;;  %v1881_v50 = vmul.f32 %v8266_v47, %v8266_v47 }
 0x208   :  { %v1936_v51 = vadd.f32 %v1935_v44, %v1880_v46 }
 0x209   :  { %v1973_v52 = vadd.f32 %v1972_v48, %v1881_v50 }
 0x20b   :  { %v8271_v53 = vpop.f32.mrb[16].mxu0 }
 0x20c   :  { %v1797_v54 = vadd.f32 %v1796_v45, %v8271_v53  ;;  %v1882_v55 = vmul.f32 %v8271_v53, %v8271_v53  ;;  %v8276_v56 = vpop.f32.mrb[17].mxu0 }
 0x20d   :  { %v1834_v60 = vadd.f32 %v1833_v49, %v8276_v56  ;;  %v1883_v61 = vmul.f32 %v8276_v56, %v8276_v56  ;;  %v8281_v62 = vpop.f32.mrb[18].mxu0 }
 0x20e   :  { %v1937_v0 = vadd.f32 %v1936_v51, %v1882_v55  ;;  %v1798_v1 = vadd.f32 %v1797_v54, %v8281_v62  ;;  %v1884_v2 = vmul.f32 %v8281_v62, %v8281_v62  ;;  %v8286_v3 = vpop.f32.mrb[19].mxu0 }
 0x20f   :  { %v1974_v4 = vadd.f32 %v1973_v52, %v1883_v61  ;;  %v1835_v6 = vadd.f32 %v1834_v60, %v8286_v3  ;;  %v1885_v7 = vmul.f32 %v8286_v3, %v8286_v3 }
 0x210   :  { %v1938_v9 = vadd.f32 %v1937_v0, %v1884_v2 }
 0x211   :  { %v1975_v10 = vadd.f32 %v1974_v4, %v1885_v7 }
 0x213   :  { %v8291_v12 = vpop.f32.mrb[20].mxu0 }
 0x214   :  { %v1799_v13 = vadd.f32 %v1798_v1, %v8291_v12  ;;  %v1886_v14 = vmul.f32 %v8291_v12, %v8291_v12  ;;  %v8296_v16 = vpop.f32.mrb[21].mxu0 }
 0x215   :  { %v1836_v17 = vadd.f32 %v1835_v6, %v8296_v16  ;;  %v1887_v18 = vmul.f32 %v8296_v16, %v8296_v16  ;;  %v8301_v19 = vpop.f32.mrb[22].mxu0 }
 0x216   :  { %v1939_v20 = vadd.f32 %v1938_v9, %v1886_v14  ;;  %v1800_v22 = vadd.f32 %v1799_v13, %v8301_v19  ;;  %v1888_v23 = vmul.f32 %v8301_v19, %v8301_v19  ;;  %v8306_v25 = vpop.f32.mrb[23].mxu0 }
 0x217   :  { %v1976_v26 = vadd.f32 %v1975_v10, %v1887_v18  ;;  %v1837_v28 = vadd.f32 %v1836_v17, %v8306_v25  ;;  %v1889_v29 = vmul.f32 %v8306_v25, %v8306_v25  ;;  %v7221_v10 = vld [vmem:[%s12675_s4 + $0x60] sm:$0xff]  }
 0x218   :  { %v1940_v30 = vadd.f32 %v1939_v20, %v1888_v23  ;;  %6568 = vmatprep.subr.bf16.mxu0 %v7221_v10  ;;  %6940 = vmatprep.subr.bf16.mxu1 %v7221_v10 }
 0x219   :  { %v1977_v32 = vadd.f32 %v1976_v26, %v1889_v29 }
 0x21b   :  { %v8311_v33 = vpop.f32.mrb[24].mxu0 }
 0x21c   :  { %v1801_v34 = vadd.f32 %v1800_v22, %v8311_v33  ;;  %v1890_v35 = vmul.f32 %v8311_v33, %v8311_v33  ;;  %v8316_v36 = vpop.f32.mrb[25].mxu0 }
 0x21d   :  { %v1838_v38 = vadd.f32 %v1837_v28, %v8316_v36  ;;  %v1891_v39 = vmul.f32 %v8316_v36, %v8316_v36  ;;  %v8321_v41 = vpop.f32.mrb[26].mxu0 }
 0x21e   :  { %v1941_v42 = vadd.f32 %v1940_v30, %v1890_v35  ;;  %v1802_v44 = vadd.f32 %v1801_v34, %v8321_v41  ;;  %v1892_v45 = vmul.f32 %v8321_v41, %v8321_v41  ;;  %v8326_v46 = vpop.f32.mrb[27].mxu0  ;;  %v7222_v34 = vld [vmem:[%s12675_s4 + $0x20] sm:$0xff]  }
 0x21f   :  { %v1978_v48 = vadd.f32 %v1977_v32, %v1891_v39  ;;  %v1839_v49 = vadd.f32 %v1838_v38, %v8326_v46  ;;  %v1893_v50 = vmul.f32 %v8326_v46, %v8326_v46  ;;  %6569 = vmatpush3.bf16.msra.mxu0 %v7222_v34  ;;  %6948 = vmatpush3.bf16.msra.mxu1 %v7222_v34 }
 0x220   :  { %v1942_v51 = vadd.f32 %v1941_v42, %v1892_v45 }
 0x221   :  { %v1979_v52 = vadd.f32 %v1978_v48, %v1893_v50 }
 0x223   :  { %v8331_v54 = vpop.f32.mrb[28].mxu0 }
 0x224   :  { %v1803_v55 = vadd.f32 %v1802_v44, %v8331_v54  ;;  %v1894_v60 = vmul.f32 %v8331_v54, %v8331_v54  ;;  %v8336_v61 = vpop.f32.mrb[29].mxu0 }
 0x225   :  { %v1840_v0 = vadd.f32 %v1839_v49, %v8336_v61  ;;  %v1895_v1 = vmul.f32 %v8336_v61, %v8336_v61  ;;  %v8341_v2 = vpop.f32.mrb[30].mxu0 }
 0x226   :  { %v1943_v4 = vadd.f32 %v1942_v51, %v1894_v60  ;;  %v1804_v6 = vadd.f32 %v1803_v55, %v8341_v2  ;;  %v1896_v7 = vmul.f32 %v8341_v2, %v8341_v2  ;;  %v8346_v9 = vpop.f32.mrb[31].mxu0 }
 0x227   :  { %v1980_v13 = vadd.f32 %v1979_v52, %v1895_v1  ;;  %v1841_v14 = vadd.f32 %v1840_v0, %v8346_v9  ;;  %v1897_v17 = vmul.f32 %v8346_v9, %v8346_v9 }
 0x228   :  { %v1944_v18 = vadd.f32 %v1943_v4, %v1896_v7 }
 0x229   :  { %v1981_v20 = vadd.f32 %v1980_v13, %v1897_v17 }
 0x22b   :  { %v8354_v22 = vpop.f32.mrb[32].mxu0 }
 0x22c   :  { %v1805_v23 = vadd.f32 %v1804_v6, %v8354_v22  ;;  %v1898_v26 = vmul.f32 %v8354_v22, %v8354_v22  ;;  %v8359_v28 = vpop.f32.mrb[33].mxu0 }
 0x22d   :  { %v1842_v29 = vadd.f32 %v1841_v14, %v8359_v28  ;;  %v1899_v30 = vmul.f32 %v8359_v28, %v8359_v28  ;;  %v8364_v32 = vpop.f32.mrb[34].mxu0 }
 0x22e   :  { %v1945_v35 = vadd.f32 %v1944_v18, %v1898_v26  ;;  %v1806_v38 = vadd.f32 %v1805_v23, %v8364_v32  ;;  %v1900_v39 = vmul.f32 %v8364_v32, %v8364_v32  ;;  %v8372_v42 = vpop.f32.mrb[35].mxu0 }
 0x22f   :  { %v1982_v44 = vadd.f32 %v1981_v20, %v1899_v30  ;;  %v1843_v45 = vadd.f32 %v1842_v29, %v8372_v42  ;;  %v1901_v48 = vmul.f32 %v8372_v42, %v8372_v42 }
 0x230   :  { %v1946_v49 = vadd.f32 %v1945_v35, %v1900_v39 }
 0x231   :  { %v1983_v50 = vadd.f32 %v1982_v44, %v1901_v48 }
 0x233   :  { %v8377_v51 = vpop.f32.mrb[36].mxu0 }
 0x234   :  { %12676 = vst [vmem:[#allocation9_spill] sm:$0xff] %v8377_v51  ;;  %v1807_v52 = vadd.f32 %v1806_v38, %v8377_v51  ;;  %v1902_v55 = vmul.f32 %v8377_v51, %v8377_v51  ;;  %v8382_v60 = vpop.f32.mrb[37].mxu0 }
 0x235   :  { %12677 = vst [vmem:[#allocation10_spill] sm:$0xff] %v8382_v60  ;;  %v1844_v0 = vadd.f32 %v1843_v45, %v8382_v60  ;;  %v1903_v1 = vmul.f32 %v8382_v60, %v8382_v60  ;;  %v8387_v4 = vpop.f32.mrb[38].mxu0 }
 0x236   :  { %12678 = vst [vmem:[#allocation11_spill] sm:$0xff] %v8387_v4  ;;  %v1947_v6 = vadd.f32 %v1946_v49, %v1902_v55  ;;  %v1808_v7 = vadd.f32 %v1807_v52, %v8387_v4  ;;  %v1904_v10 = vmul.f32 %v8387_v4, %v8387_v4  ;;  %v8392_v13 = vpop.f32.mrb[39].mxu0 }
 0x237   :  { %12679 = vst [vmem:[#allocation12_spill] sm:$0xff] %v8392_v13  ;;  %v1984_v14 = vadd.f32 %v1983_v50, %v1903_v1  ;;  %v1845_v17 = vadd.f32 %v1844_v0, %v8392_v13  ;;  %v1905_v18 = vmul.f32 %v8392_v13, %v8392_v13 }
 0x238   :  { %v1948_v20 = vadd.f32 %v1947_v6, %v1904_v10  ;;  %v7223_v6 = vld [vmem:[%s12675_s4 + $0x68] sm:$0xff]  }
 0x239   :  { %v1985_v23 = vadd.f32 %v1984_v14, %v1905_v18  ;;  %v7224_v10 = vld [vmem:[%s12675_s4 + $0x28] sm:$0xff]   ;;  %6570 = vmatprep.subr.bf16.mxu0 %v7223_v6  ;;  %6941 = vmatprep.subr.bf16.mxu1 %v7223_v6 }
 0x23a   :  { %6571 = vmatpush3.bf16.msra.mxu0 %v7224_v10  ;;  %6949 = vmatpush3.bf16.msra.mxu1 %v7224_v10  ;;  %v7227_v10 = vld [vmem:[%s12675_s4 + $0x78] sm:$0xff]  }
 0x23b   :  { %v8397_v26 = vpop.f32.mrb[40].mxu0 }
 0x23c   :  { %12680 = vst [vmem:[#allocation13_spill] sm:$0xff] %v8397_v26  ;;  %v1809_v29 = vadd.f32 %v1808_v7, %v8397_v26  ;;  %v1906_v30 = vmul.f32 %v8397_v26, %v8397_v26  ;;  %v8402_v34 = vpop.f32.mrb[41].mxu0 }
 0x23d   :  { %12681 = vst [vmem:[#allocation14_spill] sm:$0xff] %v8402_v34  ;;  %v1846_v35 = vadd.f32 %v1845_v17, %v8402_v34  ;;  %v1907_v38 = vmul.f32 %v8402_v34, %v8402_v34  ;;  %v8407_v39 = vpop.f32.mrb[42].mxu0 }
 0x23e   :  { %12682 = vst [vmem:[#allocation15_spill] sm:$0xff] %v8407_v39  ;;  %v1949_v44 = vadd.f32 %v1948_v20, %v1906_v30  ;;  %v1810_v45 = vadd.f32 %v1809_v29, %v8407_v39  ;;  %v1908_v48 = vmul.f32 %v8407_v39, %v8407_v39  ;;  %v8412_v49 = vpop.f32.mrb[43].mxu0 }
 0x23f   :  { %12683 = vst [vmem:[#allocation16_spill] sm:$0xff] %v8412_v49  ;;  %v1986_v50 = vadd.f32 %v1985_v23, %v1907_v38  ;;  %v1847_v52 = vadd.f32 %v1846_v35, %v8412_v49  ;;  %v1909_v55 = vmul.f32 %v8412_v49, %v8412_v49 }
 0x240   :  { %v1950_v0 = vadd.f32 %v1949_v44, %v1908_v48 }
 0x241   :  { %v1987_v1 = vadd.f32 %v1986_v50, %v1909_v55  ;;  %v7226_v55 = vld [vmem:[%s12675_s4 + $0x30] sm:$0xff]  }
 0x243   :  { %v8420_v7 = vpop.f32.mrb[44].mxu0 }
 0x244   :  { %12684 = vst [vmem:[#allocation17_spill] sm:$0xff] %v8420_v7  ;;  %v1811_v14 = vadd.f32 %v1810_v45, %v8420_v7  ;;  %v1910_v17 = vmul.f32 %v8420_v7, %v8420_v7  ;;  %v8428_v18 = vpop.f32.mrb[45].mxu0  ;;  %v7225_v45 = vld [vmem:[%s12675_s4 + $0x70] sm:$0xff]  }
 0x245   :  { %12685 = vst [vmem:[#allocation18_spill] sm:$0xff] %v8428_v18  ;;  %v1848_v20 = vadd.f32 %v1847_v52, %v8428_v18  ;;  %v1911_v23 = vmul.f32 %v8428_v18, %v8428_v18  ;;  %v8433_v29 = vpop.f32.mrb[46].mxu0  ;;  %6572 = vmatprep.subr.bf16.mxu0 %v7225_v45  ;;  %6942 = vmatprep.subr.bf16.mxu1 %v7225_v45 }
 0x246   :  { %12686 = vst [vmem:[#allocation19_spill] sm:$0xff] %v8433_v29  ;;  %v1951_v30 = vadd.f32 %v1950_v0, %v1910_v17  ;;  %v1812_v35 = vadd.f32 %v1811_v14, %v8433_v29  ;;  %v1912_v38 = vmul.f32 %v8433_v29, %v8433_v29  ;;  %v8438_v44 = vpop.f32.mrb[47].mxu0  ;;  %6573 = vmatpush3.bf16.msra.mxu0 %v7226_v55 }
 0x247   :  { %12687 = vst [vmem:[#allocation20_spill] sm:$0xff] %v8438_v44  ;;  %v1988_v48 = vadd.f32 %v1987_v1, %v1911_v23  ;;  %v1849_v50 = vadd.f32 %v1848_v20, %v8438_v44  ;;  %v1913_v52 = vmul.f32 %v8438_v44, %v8438_v44  ;;  %v7228_v1 = vld [vmem:[%s12675_s4 + $0x38] sm:$0xff]   ;;  %6950 = vmatpush3.bf16.msra.mxu1 %v7226_v55 }
 0x248   :  { %v1952_v0 = vadd.f32 %v1951_v30, %v1912_v38  ;;  %6574 = vmatprep.subr.bf16.mxu0 %v7227_v10  ;;  %6943 = vmatprep.subr.bf16.mxu1 %v7227_v10 }
 0x249   :  { %v1989_v6 = vadd.f32 %v1988_v48, %v1913_v52 }
 0x24a   :  { %6575 = vmatpush3.bf16.msra.mxu0 %v7228_v1 }
 0x24b   :  { %v8455_v14 = vpop.f32.mrb[48].mxu0  ;;  %6951 = vmatpush3.bf16.msra.mxu1 %v7228_v1 }
 0x24c   :  { %12688 = vst [vmem:[#allocation21_spill] sm:$0xff] %v8455_v14  ;;  %v1813_v17 = vadd.f32 %v1812_v35, %v8455_v14  ;;  %v1914_v20 = vmul.f32 %v8455_v14, %v8455_v14  ;;  %v8460_v23 = vpop.f32.mrb[49].mxu0 }
 0x24d   :  { %12689 = vst [vmem:[#allocation22_spill] sm:$0xff] %v8460_v23  ;;  %v1850_v30 = vadd.f32 %v1849_v50, %v8460_v23  ;;  %v1915_v38 = vmul.f32 %v8460_v23, %v8460_v23  ;;  %v8465_v45 = vpop.f32.mrb[50].mxu0 }
 0x24e   :  { %12690 = vst [vmem:[#allocation23_spill] sm:$0xff] %v8465_v45  ;;  %v1953_v48 = vadd.f32 %v1952_v0, %v1914_v20  ;;  %v1814_v52 = vadd.f32 %v1813_v17, %v8465_v45  ;;  %v1916_v35 = vmul.f32 %v8465_v45, %v8465_v45  ;;  %v8470_v55 = vpop.f32.mrb[51].mxu0 }
 0x24f   :  { %12691 = vst [vmem:[#allocation24_spill] sm:$0xff] %v8470_v55  ;;  %v1990_v10 = vadd.f32 %v1989_v6, %v1915_v38  ;;  %v1851_v14 = vadd.f32 %v1850_v30, %v8470_v55  ;;  %v1917_v50 = vmul.f32 %v8470_v55, %v8470_v55 }
 0x250   :  { %v1954_v44 = vadd.f32 %v1953_v48, %v1916_v35 }
 0x251   :  { %v1991_v23 = vadd.f32 %v1990_v10, %v1917_v50 }
 0x253   :  { %v8475_v29 = vpop.f32.mrb[52].mxu0 }
 0x254   :  { %12692 = vst [vmem:[#allocation25_spill] sm:$0xff] %v8475_v29  ;;  %v1815_v1 = vadd.f32 %v1814_v52, %v8475_v29  ;;  %v1918_v0 = vmul.f32 %v8475_v29, %v8475_v29  ;;  %v8480_v17 = vpop.f32.mrb[53].mxu0 }
 0x255   :  { %12693 = vst [vmem:[#allocation26_spill] sm:$0xff] %v8480_v17  ;;  %v1852_v20 = vadd.f32 %v1851_v14, %v8480_v17  ;;  %v1919_v6 = vmul.f32 %v8480_v17, %v8480_v17  ;;  %v8485_v30 = vpop.f32.mrb[54].mxu0 }
 0x256   :  { %12694 = vst [vmem:[#allocation27_spill] sm:$0xff] %v8485_v30  ;;  %v1955_v38 = vadd.f32 %v1954_v44, %v1918_v0  ;;  %v1816_v48 = vadd.f32 %v1815_v1, %v8485_v30  ;;  %v1920_v35 = vmul.f32 %v8485_v30, %v8485_v30  ;;  %v8490_v10 = vpop.f32.mrb[55].mxu0 }
 0x257   :  { %12695 = vst [vmem:[#allocation28_spill] sm:$0xff] %v8490_v10  ;;  %v1992_v52 = vadd.f32 %v1991_v23, %v1919_v6  ;;  %v1853_v50 = vadd.f32 %v1852_v20, %v8490_v10  ;;  %v1921_v29 = vmul.f32 %v8490_v10, %v8490_v10 }
 0x258   :  { %v1956_v14 = vadd.f32 %v1955_v38, %v1920_v35 }
 0x259   :  { %v1993_v55 = vadd.f32 %v1992_v52, %v1921_v29 }
 0x25b   :  { %v8495_v45 = vpop.f32.mrb[56].mxu0 }
 0x25c   :  { %12696 = vst [vmem:[#allocation29_spill] sm:$0xff] %v8495_v45  ;;  %v1817_v17 = vadd.f32 %v1816_v48, %v8495_v45  ;;  %v1922_v44 = vmul.f32 %v8495_v45, %v8495_v45  ;;  %v8500_v1 = vpop.f32.mrb[57].mxu0 }
 0x25d   :  { %12697 = vst [vmem:[#allocation30_spill] sm:$0xff] %v8500_v1  ;;  %v1854_v0 = vadd.f32 %v1853_v50, %v8500_v1  ;;  %v1923_v23 = vmul.f32 %v8500_v1, %v8500_v1  ;;  %v8505_v20 = vpop.f32.mrb[58].mxu0 }
 0x25e   :  { %12698 = vst [vmem:[#allocation31_spill] sm:$0xff] %v8505_v20  ;;  %v1957_v6 = vadd.f32 %v1956_v14, %v1922_v44  ;;  %v1818_v38 = vadd.f32 %v1817_v17, %v8505_v20  ;;  %v1924_v29 = vmul.f32 %v8505_v20, %v8505_v20  ;;  %v8510_v35 = vpop.f32.mrb[59].mxu0 }
 0x25f   :  { %12699 = vst [vmem:[#allocation32_spill] sm:$0xff] %v8510_v35  ;;  %v1994_v48 = vadd.f32 %v1993_v55, %v1923_v23  ;;  %v1855_v52 = vadd.f32 %v1854_v0, %v8510_v35  ;;  %v1925_v45 = vmul.f32 %v8510_v35, %v8510_v35 }
 0x260   :  { %v1958_v50 = vadd.f32 %v1957_v6, %v1924_v29 }
 0x261   :  { %v1995_v10 = vadd.f32 %v1994_v48, %v1925_v45 }
 0x263   :  { %v8515_v30 = vpop.f32.mrb[60].mxu0 }
 0x264   :  { %12700 = vst [vmem:[#allocation33_spill] sm:$0xff] %v8515_v30  ;;  %v1819_v1 = vadd.f32 %v1818_v38, %v8515_v30  ;;  %v1926_v17 = vmul.f32 %v8515_v30, %v8515_v30  ;;  %v8520_v14 = vpop.f32.mrb[61].mxu0 }
 0x265   :  { %12701 = vst [vmem:[#allocation34_spill] sm:$0xff] %v8520_v14  ;;  %v1856_v44 = vadd.f32 %v1855_v52, %v8520_v14  ;;  %v1927_v55 = vmul.f32 %v8520_v14, %v8520_v14  ;;  %v8525_v0 = vpop.f32.mrb[62].mxu0 }
 0x266   :  { %12702 = vst [vmem:[#allocation35_spill] sm:$0xff] %v8525_v0  ;;  %v1959_v23 = vadd.f32 %v1958_v50, %v1926_v17  ;;  %v1820_v6 = vadd.f32 %v1819_v1, %v8525_v0  ;;  %v1928_v45 = vmul.f32 %v8525_v0, %v8525_v0  ;;  %v8530_v29 = vpop.f32.mrb[63].mxu0 }
 0x267   :  { %v1996_v38 = vadd.f32 %v1995_v10, %v1927_v55  ;;  %v1857_v48 = vadd.f32 %v1856_v44, %v8530_v29  ;;  %v1929_v30 = vmul.f32 %v8530_v29, %v8530_v29 }
 0x268   :  { %v1821_v52 = vrot.slane %v1820_v6, 4  ;;  %v1960_v35 = vadd.f32 %v1959_v23, %v1928_v45 }
 0x269   :  { %v1858_v20 = vrot.slane %v1857_v48, 4  ;;  %v1997_v14 = vadd.f32 %v1996_v38, %v1929_v30 }
 0x26a   :  { %v1822_v18 = vadd.f32 %v1821_v52, %v1820_v6  ;;  %v1961_v7 = vrot.slane %v1960_v35, 4 }
 0x26b   :  { %v1859_v50 = vadd.f32 %v1858_v20, %v1857_v48  ;;  %v1998_v17 = vrot.slane %v1997_v14, 4 }
 0x26c   :  { %v1823_v1 = vrot.slane %v1822_v18, 2  ;;  %v1962_v49 = vadd.f32 %v1961_v7, %v1960_v35 }
 0x26d   :  { %v1860_v39 = vrot.slane %v1859_v50, 2  ;;  %v1999_v0 = vadd.f32 %v1998_v17, %v1997_v14 }
 0x26e   :  { %v1824_v34 = vadd.f32 %v1823_v1, %v1822_v18  ;;  %v1963_v26 = vrot.slane %v1962_v49, 2 }
 0x26f   :  { %v1861_v10 = vadd.f32 %v1860_v39, %v1859_v50  ;;  %v2000_v55 = vrot.slane %v1999_v0, 2 }
 0x270   :  { %v1825_v44 = vrot.slane %v1824_v34, 1  ;;  %v1964_v13 = vadd.f32 %v1963_v26, %v1962_v49 }
 0x271   :  { %v1862_v4 = vrot.slane %v1861_v10, 1  ;;  %v2001_v60 = vadd.f32 %v2000_v55, %v1999_v0 }
 0x272   :  { %v1826_v51 = vadd.f32 %v1825_v44, %v1824_v34  ;;  %v1965_v23 = vrot.slane %v1964_v13, 1  ;;  %v7319_v34 = vmov 1966171168  }
 0x273   :  { %v1863_v45 = vadd.f32 %v1862_v4, %v1861_v10  ;;  %v2002_v30 = vrot.slane %v2001_v60, 1  ;;  %v2020_v49 = vunpack.c.l.s4 %v7319_v34  ;;  %v2022_v4 = vlaneseq }
 0x274   :  { %v1864_v6 = vmul.f32 0.00390625, %v1826_v51  ;;  %v1966_v38 = vadd.f32 %v1965_v23, %v1964_v13  ;;  %v1788_v23 = vld [vmem:[%s12705_s25] sm:$0x3] }
 0x275   :  { %v1865_v20 = vmul.f32 0.00390625, %v1863_v45  ;;  %v2003_v48 = vadd.f32 %v2002_v30, %v2001_v60  ;;  %v2021_v0 = vunpack.c.0.s8 %v2020_v49  ;;  %v8535_v51 = vshrl.u32 %v2022_v4, 7 }
 0x276   :  { %v2004_v52 = vmul.f32 0.00390625, %v1966_v38  ;;  %v2006_v7 = vmul.f32 %v1864_v6, %v1864_v6 }
 0x277   :  { %v2005_v35 = vmul.f32 0.00390625, %v2003_v48  ;;  %v2007_v14 = vmul.f32 %v1865_v20, %v1865_v20  ;;  %12703 = vst [vmem:[#allocation36_spill] sm:$0xff] %v8535_v51  ;;  %v8538_v60 = vsub.s32 %v2021_v0, %v8535_v51  ;;  %v8546_v30 = vsub.s32 0, %v8535_v51 }
 0x278   :  { %v2008_v18 = vsub.f32 %v2004_v52, %v2006_v7  ;;  %v8549_v38 = vsub.s32 1, %v8535_v51  ;;  %v12733_v51 = vld [vmem:[#allocation21_spill] sm:$0xff] }
 0x279   :  { %v2009_v17 = vsub.f32 %v2005_v35, %v2007_v14  ;;  %12704 = vst [vmem:[#allocation37_spill] sm:$0xff] %v8538_v60  ;;  %12706 = vst [vmem:[#allocation38_spill] sm:$0xff] %v8546_v30 }
 0x27a   :  { %v2010_v39 = vmax.f32 %v2008_v18, 0.0  ;;  %12707 = vst [vmem:[#allocation39_spill] sm:$0xff] %v8549_v38 }
 0x27b   :  { %v2011_v50 = vmax.f32 %v2009_v17, 0.0 }
 0x27c   :  { %v2012_v1 = vadd.f32 1e-05, %v2010_v39 }
 0x27d   :  { %v2013_v26 = vadd.f32 1e-05, %v2011_v50 }
 0x27e   :  { %7277 = vrsqrt.f32 %v2012_v1 }
 0x27f   :  { %7279 = vrsqrt.f32 %v2013_v26 }
 0x288   :  { %v7278_v13 = vpop.eup %7277 }
 0x289   :  { %v7280_v10 = vpop.eup %7279 }
 0x28a   :  { %v2018_v55 = vcombine.low %v7278_v13, %v7280_v10  ;;  %v12718_v13 = vld [vmem:[#allocation10_spill] sm:$0xff] }
 0x28c   :  { %v2025_v44 = vrot.slane %v2018_v55, %v8538_v60  ;;  %v12720_v55 = vld [vmem:[#allocation11_spill] sm:$0xff] }
 0x28e   :  { %v2032_v45 = vrot.slane %v2025_v44, %v8538_v60 }
 0x290   :  { %v2034_v48 = vmul.f32 %v2032_v45, %v1788_v23 }
 0x292   :  { %v8552_v52 = vrot.slane %v2034_v48, %v8546_v30  ;;  %v8555_v7 = vrot.slane %v2034_v48, %v8549_v38  ;;  %v12725_v48 = vld [vmem:[#allocation14_spill] sm:$0xff] }
 0x294   :  { %v2046_v35 = vmul.f32 %v8552_v52, %v1864_v6  ;;  %v2047_v14 = vmul.f32 %v8555_v7, %v1865_v20  ;;  %v2130_v18 = vmul.f32 %v8555_v7, %v8530_v29  ;;  %v8563_v17 = vmul.f32 %v8552_v52, %v8191_v57 }
 0x295   :  { %v8567_v39 = vmul.f32 %v8555_v7, %v8193_v58  ;;  %v8571_v50 = vmul.f32 %v8552_v52, %v8195_v59  ;;  %v8575_v6 = vmul.f32 %v8555_v7, %v8203_v63  ;;  %v8579_v20 = vmul.f32 %v8552_v52, %v8211_v5 }
 0x296   :  { %v2050_v29 = vcombine.low %v2046_v35, %v2047_v14  ;;  %v8583_v57 = vmul.f32 %v8555_v7, %v8216_v8  ;;  %v8587_v58 = vmul.f32 %v8552_v52, %v8221_v11  ;;  %v8591_v59 = vmul.f32 %v8555_v7, %v8226_v15  ;;  %v12726_v14 = vld [vmem:[#allocation15_spill] sm:$0xff] }
 0x297   :  { %v8595_v63 = vmul.f32 %v8552_v52, %v8231_v21  ;;  %v8599_v5 = vmul.f32 %v8555_v7, %v8236_v24  ;;  %v8603_v8 = vmul.f32 %v8552_v52, %v8241_v27  ;;  %v8607_v11 = vmul.f32 %v8555_v7, %v8246_v31  ;;  %v1789_v27 = vld [vmem:[%s12708_s1] sm:$0x3] }
 0x298   :  { %v2057_v1 = vrot.slane %v2050_v29, %v8538_v60  ;;  %v8612_v15 = vmul.f32 %v8552_v52, %v8251_v37  ;;  %v8616_v21 = vmul.f32 %v8555_v7, %v8256_v40  ;;  %v8620_v24 = vmul.f32 %v8552_v52, %v8261_v43 }
 0x299   :  { %v8627_v31 = vmul.f32 %v8555_v7, %v8266_v47  ;;  %v8631_v37 = vmul.f32 %v8552_v52, %v8271_v53  ;;  %v8635_v40 = vmul.f32 %v8555_v7, %v8276_v56  ;;  %v8639_v43 = vmul.f32 %v8552_v52, %v8281_v62 }
 0x29a   :  { %v2064_v26 = vrot.slane %v2057_v1, %v8538_v60  ;;  %v8644_v34 = vmul.f32 %v8555_v7, %v8286_v3  ;;  %v8648_v47 = vmul.f32 %v8552_v52, %v8291_v12  ;;  %v8652_v53 = vmul.f32 %v8555_v7, %v8296_v16  ;;  %v12727_v1 = vld [vmem:[#allocation16_spill] sm:$0xff]  ;;  %v12735_v60 = vld [vmem:[#allocation23_spill] sm:$0xff] }
 0x29b   :  { %v8656_v56 = vmul.f32 %v8552_v52, %v8301_v19  ;;  %v8660_v62 = vmul.f32 %v8555_v7, %v8306_v25  ;;  %v8664_v3 = vmul.f32 %v8552_v52, %v8311_v33  ;;  %v8668_v12 = vmul.f32 %v8555_v7, %v8316_v36 }
 0x29c   :  { %v2066_v49 = vsub.f32 %v1789_v27, %v2064_v26  ;;  %v8672_v16 = vmul.f32 %v8552_v52, %v8321_v41  ;;  %v8676_v19 = vmul.f32 %v8555_v7, %v8326_v46  ;;  %v8680_v25 = vmul.f32 %v8552_v52, %v8331_v54  ;;  %v12728_v26 = vld [vmem:[#allocation17_spill] sm:$0xff] }
 0x29d   :  { %12709 = vst [vmem:[#allocation40_spill] sm:$0xff] %v8668_v12  ;;  %v8684_v33 = vmul.f32 %v8555_v7, %v8336_v61  ;;  %v8688_v36 = vmul.f32 %v8552_v52, %v8341_v2  ;;  %v8692_v41 = vmul.f32 %v8555_v7, %v8346_v9  ;;  %v8696_v46 = vmul.f32 %v8552_v52, %v8354_v22  ;;  %v12716_v22 = vld [vmem:[#allocation9_spill] sm:$0xff]  ;;  %v12739_v12 = vld [vmem:[#allocation27_spill] sm:$0xff] }
 0x29e   :  { %12710 = vst [vmem:[#allocation41_spill] sm:$0xff] %v8676_v19  ;;  %v8699_v4 = vrot.slane %v2066_v49, %v8546_v30  ;;  %v8702_v54 = vrot.slane %v2066_v49, %v8549_v38  ;;  %v8706_v61 = vmul.f32 %v8555_v7, %v8359_v28  ;;  %v8710_v2 = vmul.f32 %v8552_v52, %v8364_v32  ;;  %v12723_v32 = vld [vmem:[#allocation12_spill] sm:$0xff]  ;;  %v12734_v38 = vld [vmem:[#allocation22_spill] sm:$0xff] }
 0x29f   :  { %12711 = vst [vmem:[#allocation42_spill] sm:$0xff] %v8692_v41  ;;  %12712 = vst [vmem:[#allocation43_spill] sm:$0xff] %v8696_v46  ;;  %v8714_v9 = vmul.f32 %v8555_v7, %v8372_v42  ;;  %v8718_v0 = vmul.f32 %v8552_v52, %v12716_v22  ;;  %v8722_v10 = vmul.f32 %v8555_v7, %v12718_v13  ;;  %v12724_v42 = vld [vmem:[#allocation13_spill] sm:$0xff]  ;;  %v12736_v30 = vld [vmem:[#allocation24_spill] sm:$0xff] }
 0x2a0   :  { %12713 = vst [vmem:[#allocation44_spill] sm:$0xff] %v8706_v61  ;;  %12714 = vst [vmem:[#allocation45_spill] sm:$0xff] %v8710_v2  ;;  %v8726_v28 = vmul.f32 %v8552_v52, %v12720_v55  ;;  %v8729_v44 = vadd.f32 %v8702_v54, %v2130_v18  ;;  %v2106_v23 = vmul.f32 %v8555_v7, %v12723_v32  ;;  %v12729_v18 = vld [vmem:[#allocation18_spill] sm:$0xff]  ;;  %v12731_v55 = vld [vmem:[#allocation19_spill] sm:$0xff] }
 0x2a1   :  { %12715 = vst [vmem:[#allocation46_spill] sm:$0xff] %v8714_v9  ;;  %12717 = vst [vmem:[#allocation9_spill] sm:$0xff] %v8718_v0  ;;  %v2107_v45 = vmul.f32 %v8552_v52, %v12724_v42  ;;  %v2108_v35 = vmul.f32 %v8555_v7, %v12725_v48  ;;  %v2109_v29 = vmul.f32 %v8552_v52, %v12726_v14  ;;  %v12732_v42 = vld [vmem:[#allocation20_spill] sm:$0xff]  ;;  %v12738_v19 = vld [vmem:[#allocation26_spill] sm:$0xff] }
 0x2a2   :  { %12719 = vst [vmem:[#allocation10_spill] sm:$0xff] %v8722_v10  ;;  %12721 = vst [vmem:[#allocation11_spill] sm:$0xff] %v8726_v28  ;;  %v2110_v27 = vmul.f32 %v8555_v7, %v12727_v1  ;;  %v2111_v49 = vmul.f32 %v8552_v52, %v12728_v26  ;;  %v2112_v22 = vmul.f32 %v8555_v7, %v12729_v18  ;;  %v8746_v13 = vmul.f32 0.01, %v8729_v44  ;;  %v12740_v28 = vld [vmem:[#allocation28_spill] sm:$0xff]  ;;  %v12741_v10 = vld [vmem:[#allocation29_spill] sm:$0xff] }
 0x2a3   :  { %12722 = vst [vmem:[#allocation47_spill] sm:$0xff] %v8729_v44  ;;  %v2113_v32 = vmul.f32 %v8552_v52, %v12731_v55  ;;  %v2114_v48 = vmul.f32 %v8555_v7, %v12732_v42  ;;  %v2115_v14 = vmul.f32 %v8552_v52, %v12733_v51  ;;  %v2116_v1 = vmul.f32 %v8555_v7, %v12734_v38  ;;  %v12737_v44 = vld [vmem:[#allocation25_spill] sm:$0xff]  ;;  %v12742_v0 = vld [vmem:[#allocation30_spill] sm:$0xff]  ;;  %v12743_v9 = vld [vmem:[#allocation31_spill] sm:$0xff] }
 0x2a4   :  { %12730 = vst [vmem:[#allocation12_spill] sm:$0xff] %v8746_v13  ;;  %v2117_v26 = vmul.f32 %v8552_v52, %v12735_v60  ;;  %v2118_v18 = vmul.f32 %v8555_v7, %v12736_v30  ;;  %v2119_v13 = vmul.f32 %v8552_v52, %v12737_v44  ;;  %v2120_v55 = vmul.f32 %v8555_v7, %v12738_v19  ;;  %v12744_v2 = vld [vmem:[#allocation32_spill] sm:$0xff]  ;;  %v12745_v61 = vld [vmem:[#allocation33_spill] sm:$0xff]  ;;  %v12746_v46 = vld [vmem:[#allocation34_spill] sm:$0xff] }
 0x2a5   :  { %v2121_v42 = vmul.f32 %v8552_v52, %v12739_v12  ;;  %v2122_v51 = vmul.f32 %v8555_v7, %v12740_v28  ;;  %v2123_v38 = vmul.f32 %v8552_v52, %v12741_v10  ;;  %v2124_v60 = vmul.f32 %v8555_v7, %v12742_v0  ;;  %v12747_v41 = vld [vmem:[#allocation35_spill] sm:$0xff] }
 0x2a6   :  { %v2125_v30 = vmul.f32 %v8552_v52, %v12743_v9  ;;  %v2126_v44 = vmul.f32 %v8555_v7, %v12744_v2  ;;  %v2127_v19 = vmul.f32 %v8552_v52, %v12745_v61  ;;  %v2128_v12 = vmul.f32 %v8555_v7, %v12746_v46 }
 0x2a7   :  { %v2129_v28 = vmul.f32 %v8552_v52, %v12747_v41  ;;  %v8784_v10 = vadd.f32 %v8699_v4, %v8563_v17  ;;  %v8788_v0 = vadd.f32 %v8702_v54, %v8567_v39  ;;  %v8792_v2 = vadd.f32 %v8699_v4, %v8571_v50  ;;  %v12765_v41 = vld [vmem:[#allocation43_spill] sm:$0xff]  ;;  %v12767_v46 = vld [vmem:[#allocation44_spill] sm:$0xff]  ;;  %v12769_v9 = vld [vmem:[#allocation45_spill] sm:$0xff] }
 0x2a8   :  { %v8796_v61 = vadd.f32 %v8702_v54, %v8575_v6  ;;  %v8800_v7 = vadd.f32 %v8699_v4, %v8579_v20  ;;  %v8804_v52 = vadd.f32 %v8702_v54, %v8583_v57  ;;  %v8808_v17 = vadd.f32 %v8699_v4, %v8587_v58 }
 0x2a9   :  { %v8812_v39 = vadd.f32 %v8702_v54, %v8591_v59  ;;  %v8816_v50 = vadd.f32 %v8699_v4, %v8595_v63  ;;  %v8820_v6 = vadd.f32 %v8702_v54, %v8599_v5  ;;  %v8824_v20 = vadd.f32 %v8699_v4, %v8603_v8 }
 0x2aa   :  { %12748 = vst [vmem:[#allocation13_spill] sm:$0xff] %v8808_v17  ;;  %v8828_v57 = vadd.f32 %v8702_v54, %v8607_v11  ;;  %v8832_v58 = vadd.f32 %v8699_v4, %v8612_v15  ;;  %v8836_v59 = vadd.f32 %v8702_v54, %v8616_v21  ;;  %v8840_v63 = vadd.f32 %v8699_v4, %v8620_v24 }
 0x2ab   :  { %12749 = vst [vmem:[#allocation14_spill] sm:$0xff] %v8816_v50  ;;  %12750 = vst [vmem:[#allocation15_spill] sm:$0xff] %v8824_v20  ;;  %v8844_v5 = vadd.f32 %v8702_v54, %v8627_v31  ;;  %v8848_v8 = vadd.f32 %v8699_v4, %v8631_v37  ;;  %v8852_v11 = vadd.f32 %v8702_v54, %v8635_v40 }
 0x2ac   :  { %12751 = vst [vmem:[#allocation16_spill] sm:$0xff] %v8832_v58  ;;  %12752 = vst [vmem:[#allocation17_spill] sm:$0xff] %v8840_v63  ;;  %v8856_v15 = vadd.f32 %v8699_v4, %v8639_v43  ;;  %v8860_v21 = vadd.f32 %v8702_v54, %v8644_v34  ;;  %v8864_v24 = vadd.f32 %v8699_v4, %v8648_v47 }
 0x2ad   :  { %12753 = vst [vmem:[#allocation18_spill] sm:$0xff] %v8848_v8  ;;  %12754 = vst [vmem:[#allocation19_spill] sm:$0xff] %v8852_v11  ;;  %v8868_v31 = vadd.f32 %v8702_v54, %v8652_v53  ;;  %v8872_v37 = vadd.f32 %v8699_v4, %v8656_v56  ;;  %v8876_v40 = vadd.f32 %v8702_v54, %v8660_v62  ;;  %v12763_v62 = vld [vmem:[#allocation42_spill] sm:$0xff] }
 0x2ae   :  { %12755 = vst [vmem:[#allocation20_spill] sm:$0xff] %v8856_v15  ;;  %12756 = vst [vmem:[#allocation21_spill] sm:$0xff] %v8860_v21  ;;  %v8880_v43 = vadd.f32 %v8699_v4, %v8664_v3  ;;  %v8884_v34 = vadd.f32 %v8699_v4, %v8672_v16  ;;  %v8888_v47 = vadd.f32 %v8699_v4, %v8680_v25 }
 0x2af   :  { %12757 = vst [vmem:[#allocation22_spill] sm:$0xff] %v8864_v24  ;;  %12758 = vst [vmem:[#allocation23_spill] sm:$0xff] %v8868_v31  ;;  %v8892_v53 = vadd.f32 %v8702_v54, %v8684_v33  ;;  %v8896_v56 = vadd.f32 %v8699_v4, %v8688_v36  ;;  %v8900_v3 = vadd.f32 %v8702_v54, %v12763_v62 }
 0x2b0   :  { %12759 = vst [vmem:[#allocation24_spill] sm:$0xff] %v8872_v37  ;;  %12760 = vst [vmem:[#allocation25_spill] sm:$0xff] %v8876_v40  ;;  %v8904_v16 = vadd.f32 %v8699_v4, %v12765_v41  ;;  %v8908_v25 = vadd.f32 %v8702_v54, %v12767_v46  ;;  %v8912_v33 = vadd.f32 %v8699_v4, %v12769_v9 }
 0x2b1   :  { %12761 = vst [vmem:[#allocation26_spill] sm:$0xff] %v8892_v53  ;;  %12762 = vst [vmem:[#allocation27_spill] sm:$0xff] %v8896_v56  ;;  %v12770_v53 = vld [vmem:[#allocation46_spill] sm:$0xff]  ;;  %v12771_v56 = vld [vmem:[#allocation9_spill] sm:$0xff]  ;;  %v8934_v9 = vadd.f32 %v8699_v4, %v2107_v45  ;;  %v8955_v45 = vadd.f32 %v8702_v54, %v2114_v48  ;;  %v8976_v48 = vadd.f32 %v8699_v4, %v2121_v42 }
 0x2b2   :  { %12764 = vst [vmem:[#allocation28_spill] sm:$0xff] %v8900_v3  ;;  %12766 = vst [vmem:[#allocation29_spill] sm:$0xff] %v8904_v16  ;;  %v8916_v36 = vadd.f32 %v8702_v54, %v12770_v53  ;;  %v8920_v62 = vadd.f32 %v8699_v4, %v12771_v56  ;;  %v12773_v3 = vld [vmem:[#allocation10_spill] sm:$0xff]  ;;  %v12774_v16 = vld [vmem:[#allocation11_spill] sm:$0xff]  ;;  %v8937_v53 = vadd.f32 %v8702_v54, %v2108_v35 }
 0x2b3   :  { %12768 = vst [vmem:[#allocation30_spill] sm:$0xff] %v8908_v25  ;;  %v8924_v41 = vadd.f32 %v8702_v54, %v12773_v3  ;;  %v8928_v46 = vadd.f32 %v8699_v4, %v12774_v16  ;;  %v8931_v25 = vadd.f32 %v8702_v54, %v2106_v23  ;;  %12776 = vst [vmem:[#allocation33_spill] sm:$0xff] %v8934_v9 }
 0x2b4   :  { %12772 = vst [vmem:[#allocation31_spill] sm:$0xff] %v8920_v62  ;;  %v8940_v56 = vadd.f32 %v8699_v4, %v2109_v29  ;;  %v8943_v62 = vadd.f32 %v8702_v54, %v2110_v27  ;;  %v8946_v3 = vadd.f32 %v8699_v4, %v2111_v49  ;;  %v8949_v16 = vadd.f32 %v8702_v54, %v2112_v22 }
 0x2b5   :  { %12775 = vst [vmem:[#allocation32_spill] sm:$0xff] %v8928_v46  ;;  %v8952_v23 = vadd.f32 %v8699_v4, %v2113_v32  ;;  %v8958_v35 = vadd.f32 %v8699_v4, %v2115_v14  ;;  %v8961_v29 = vadd.f32 %v8702_v54, %v2116_v1  ;;  %v8964_v27 = vadd.f32 %v8699_v4, %v2117_v26 }
 0x2b6   :  { %12777 = vst [vmem:[#allocation34_spill] sm:$0xff] %v8940_v56  ;;  %12778 = vst [vmem:[#allocation35_spill] sm:$0xff] %v8946_v3  ;;  %v8967_v49 = vadd.f32 %v8702_v54, %v2118_v18  ;;  %v8970_v22 = vadd.f32 %v8699_v4, %v2119_v13  ;;  %v8973_v32 = vadd.f32 %v8702_v54, %v2120_v55 }
 0x2b7   :  { %12779 = vst [vmem:[#allocation42_spill] sm:$0xff] %v8952_v23  ;;  %12780 = vst [vmem:[#allocation43_spill] sm:$0xff] %v8958_v35  ;;  %v8979_v14 = vadd.f32 %v8702_v54, %v2122_v51  ;;  %v8982_v1 = vadd.f32 %v8699_v4, %v2123_v38  ;;  %v8985_v26 = vadd.f32 %v8702_v54, %v2124_v60  ;;  %v2206_v38 = vmul.f32 0.01, %v8784_v10 }
 0x2b8   :  { %12781 = vst [vmem:[#allocation44_spill] sm:$0xff] %v8964_v27  ;;  %12782 = vst [vmem:[#allocation45_spill] sm:$0xff] %v8970_v22  ;;  %v8988_v18 = vadd.f32 %v8699_v4, %v2125_v30  ;;  %v8991_v13 = vadd.f32 %v8702_v54, %v2126_v44  ;;  %v8994_v55 = vadd.f32 %v8699_v4, %v2127_v19  ;;  %v2207_v60 = vmul.f32 0.01, %v8788_v0 }
 0x2b9   :  { %12783 = vst [vmem:[#allocation46_spill] sm:$0xff] %v8973_v32  ;;  %12784 = vst [vmem:[#allocation9_spill] sm:$0xff] %v8976_v48  ;;  %v8997_v42 = vadd.f32 %v8702_v54, %v2128_v12  ;;  %v9000_v51 = vadd.f32 %v8699_v4, %v2129_v28  ;;  %v2209_v30 = vmul.f32 0.01, %v8796_v61  ;;  %v9011_v19 = vmul.f32 0.01, %v8800_v7 }
 0x2ba   :  { %12785 = vst [vmem:[#allocation10_spill] sm:$0xff] %v8979_v14  ;;  %12786 = vst [vmem:[#allocation11_spill] sm:$0xff] %v8982_v1  ;;  %v2211_v12 = vmul.f32 0.01, %v8804_v52  ;;  %v9015_v4 = vmul.f32 0.01, %v8808_v17  ;;  %v2270_v28 = vmax.f32 %v8784_v10, %v2206_v38  ;;  %v2271_v10 = vmax.f32 %v8788_v0, %v2207_v60 }
 0x2bb   :  { %12787 = vst [vmem:[#allocation48_spill] sm:$0xff] %v8985_v26  ;;  %12788 = vst [vmem:[#allocation49_spill] sm:$0xff] %v8988_v18  ;;  %v2208_v26 = vmul.f32 0.01, %v8792_v2  ;;  %v12793_v18 = vld [vmem:[#allocation40_spill] sm:$0xff]  ;;  %v2273_v0 = vmax.f32 %v8796_v61, %v2209_v30 }
 0x2bc   :  { %12789 = vst [vmem:[#allocation50_spill] sm:$0xff] %v8991_v13  ;;  %12790 = vst [vmem:[#allocation51_spill] sm:$0xff] %v8994_v55  ;;  %v9008_v44 = vadd.f32 %v8702_v54, %v12793_v18  ;;  %v9023_v55 = vmul.f32 0.01, %v8820_v6  ;;  %v9030_v13 = vmul.f32 0.01, %v8828_v57 }
 0x2bd   :  { %12791 = vst [vmem:[#allocation52_spill] sm:$0xff] %v8997_v42  ;;  %12792 = vst [vmem:[#allocation53_spill] sm:$0xff] %v9000_v51  ;;  %v2213_v51 = vmul.f32 0.01, %v8812_v39  ;;  %v9020_v42 = vmul.f32 0.01, %v8816_v50  ;;  %v2272_v18 = vmax.f32 %v8792_v2, %v2208_v26  ;;  %v2367_v30 = vpack.c.bf16 %v2273_v0, %v2271_v10 }
 0x2be   :  { %12794 = vst [vmem:[#allocation40_spill] sm:$0xff] %v9008_v44  ;;  %v9027_v44 = vmul.f32 0.01, %v8824_v20  ;;  %v9033_v17 = vmul.f32 0.01, %v8832_v58 }
 0x2bf   :  { %12795 = vst [vmem:[#allocation54_spill] sm:$0xff] %v9020_v42  ;;  %v9037_v38 = vmul.f32 0.01, %v8836_v59  ;;  %v9040_v50 = vmul.f32 0.01, %v8840_v63  ;;  %v2366_v2 = vpack.c.bf16 %v2272_v18, %v2270_v28  ;;  %v12804_v28 = vld [vmem:[#allocation41_spill] sm:$0xff]  ;;  %2526 = vmatprep.mubr.bf16.mxu0 %v2367_v30 }
 0x2c0   :  { %12796 = vst [vmem:[#allocation55_spill] sm:$0xff] %v9033_v17  ;;  %v9043_v42 = vmul.f32 0.01, %v8844_v5  ;;  %v9046_v26 = vmul.f32 0.01, %v8848_v8  ;;  %v9066_v18 = vadd.f32 %v8702_v54, %v12804_v28  ;;  %v12809_v28 = vld [vmem:[#allocation28_spill] sm:$0xff] }
 0x2c1   :  { %12797 = vst [vmem:[#allocation56_spill] sm:$0xff] %v9040_v50  ;;  %v9049_v20 = vmul.f32 0.01, %v8852_v11  ;;  %v9052_v58 = vmul.f32 0.01, %v8856_v15  ;;  %2527 = vmatmul.mubr.bf16.vlgmr.msra.gmra.mrb[64].mxu0 %v2366_v2 }
 0x2c2   :  { %12798 = vst [vmem:[#allocation57_spill] sm:$0xff] %v9046_v26  ;;  %v9056_v60 = vmul.f32 0.01, %v8860_v21  ;;  %v9059_v63 = vmul.f32 0.01, %v8864_v24  ;;  %v12808_v26 = vld [vmem:[#allocation27_spill] sm:$0xff] }
 0x2c3   :  { %12799 = vst [vmem:[#allocation58_spill] sm:$0xff] %v9049_v20  ;;  %12800 = vst [vmem:[#allocation59_spill] sm:$0xff] %v9052_v58  ;;  %v9062_v50 = vmul.f32 0.01, %v8868_v31  ;;  %v9069_v8 = vmul.f32 0.01, %v8872_v37 }
 0x2c4   :  { %12801 = vst [vmem:[#allocation60_spill] sm:$0xff] %v9056_v60  ;;  %12802 = vst [vmem:[#allocation61_spill] sm:$0xff] %v9059_v63  ;;  %v9072_v15 = vmul.f32 0.01, %v8876_v40  ;;  %v2230_v61 = vmul.f32 0.01, %v8880_v43 }
 0x2c5   :  { %12803 = vst [vmem:[#allocation62_spill] sm:$0xff] %v9062_v50  ;;  %12805 = vst [vmem:[#allocation41_spill] sm:$0xff] %v9069_v8  ;;  %v2232_v58 = vmul.f32 0.01, %v8884_v34  ;;  %v2234_v24 = vmul.f32 0.01, %v8888_v47  ;;  %v2275_v50 = vmax.f32 %v8804_v52, %v2211_v12 }
 0x2c6   :  { %12806 = vst [vmem:[#allocation63_spill] sm:$0xff] %v9072_v15  ;;  %v12807_v63 = vld [vmem:[#allocation26_spill] sm:$0xff]  ;;  %v2236_v54 = vmul.f32 0.01, %v12808_v26  ;;  %v2237_v21 = vmul.f32 0.01, %v12809_v28  ;;  %v2294_v40 = vmax.f32 %v8880_v43, %v2230_v61  ;;  %v2277_v43 = vmax.f32 %v8812_v39, %v2213_v51 }
 0x2c7   :  { %v2235_v31 = vmul.f32 0.01, %v12807_v63  ;;  %v12810_v37 = vld [vmem:[#allocation29_spill] sm:$0xff]  ;;  %v12811_v15 = vld [vmem:[#allocation30_spill] sm:$0xff]  ;;  %v9087_v0 = vmul.f32 0.01, %v8912_v33  ;;  %v2296_v52 = vmax.f32 %v8884_v34, %v2232_v58 }
 0x2c8   :  { %v9082_v8 = vmul.f32 0.01, %v12810_v37  ;;  %v2239_v10 = vmul.f32 0.01, %v12811_v15  ;;  %v2241_v60 = vmul.f32 0.01, %v8916_v36  ;;  %v2369_v39 = vpack.c.bf16 %v2277_v43, %v2275_v50 }
 0x2c9   :  { %v12812_v12 = vld [vmem:[#allocation31_spill] sm:$0xff]  ;;  %v9095_v20 = vmul.f32 0.01, %v8924_v41  ;;  %v9098_v30 = vmul.f32 0.01, %v8928_v46  ;;  %v2378_v58 = vpack.c.bf16 %v2296_v52, %v2294_v40  ;;  %v2299_v40 = vmax.f32 %v12807_v63, %v2235_v31 }
 0x2ca   :  { %v9092_v11 = vmul.f32 0.01, %v12812_v12  ;;  %v9102_v61 = vmul.f32 0.01, %v8931_v25  ;;  %v9105_v17 = vmul.f32 0.01, %v8934_v9  ;;  %2534 = vmatprep.mubr.bf16.mxu0 %v2369_v39  ;;  %v2301_v50 = vmax.f32 %v12809_v28, %v2237_v21 }
 0x2cb   :  { %v9108_v2 = vmul.f32 0.01, %v8937_v53  ;;  %v9111_v34 = vmul.f32 0.01, %v8940_v56  ;;  %v9114_v12 = vmul.f32 0.01, %v8943_v62  ;;  %v2274_v31 = vmax.f32 %v8800_v7, %v9011_v19 }
 0x2cc   :  { %12813 = vst [vmem:[#allocation26_spill] sm:$0xff] %v9105_v17  ;;  %v9117_v46 = vmul.f32 0.01, %v8946_v3  ;;  %v9120_v51 = vmul.f32 0.01, %v8949_v16  ;;  %v2381_v28 = vpack.c.bf16 %v2301_v50, %v2299_v40  ;;  %v12820_v39 = vld [vmem:[#allocation48_spill] sm:$0xff]  ;;  %v2298_v50 = vmax.f32 %v8888_v47, %v2234_v24 }
 0x2cd   :  { %v9123_v9 = vmul.f32 0.01, %v8952_v23  ;;  %v9126_v17 = vmul.f32 0.01, %v8955_v45  ;;  %v9130_v52 = vmul.f32 0.01, %v8958_v35 }
 0x2ce   :  { %v9133_v56 = vmul.f32 0.01, %v8961_v29  ;;  %v9136_v3 = vmul.f32 0.01, %v8964_v27  ;;  %v9140_v43 = vmul.f32 0.01, %v8967_v49 }
 0x2cf   :  { %v9143_v23 = vmul.f32 0.01, %v8970_v22  ;;  %v9146_v63 = vmul.f32 0.01, %v8973_v32  ;;  %v9151_v35 = vmul.f32 0.01, %v8976_v48 }
 0x2d0   :  { %12814 = vst [vmem:[#allocation27_spill] sm:$0xff] %v9136_v3  ;;  %v9154_v27 = vmul.f32 0.01, %v8979_v14  ;;  %v9157_v21 = vmul.f32 0.01, %v8982_v1  ;;  %v12821_v22 = vld [vmem:[#allocation49_spill] sm:$0xff] }
 0x2d1   :  { %12815 = vst [vmem:[#allocation28_spill] sm:$0xff] %v9143_v23  ;;  %12816 = vst [vmem:[#allocation29_spill] sm:$0xff] %v9146_v63  ;;  %v9160_v3 = vmul.f32 0.01, %v12820_v39  ;;  %v9163_v23 = vmul.f32 0.01, %v12821_v22 }
 0x2d2   :  { %12817 = vst [vmem:[#allocation30_spill] sm:$0xff] %v9151_v35  ;;  %12818 = vst [vmem:[#allocation64_spill] sm:$0xff] %v9154_v27  ;;  %v12823_v32 = vld [vmem:[#allocation50_spill] sm:$0xff]  ;;  %v12825_v7 = vld [vmem:[#allocation13_spill] sm:$0xff] }
 0x2d3   :  { %12819 = vst [vmem:[#allocation65_spill] sm:$0xff] %v9157_v21  ;;  %12822 = vst [vmem:[#allocation48_spill] sm:$0xff] %v9163_v23  ;;  %v9166_v63 = vmul.f32 0.01, %v12823_v32  ;;  %v2276_v19 = vmax.f32 %v12825_v7, %v9015_v4  ;;  %v12826_v48 = vld [vmem:[#allocation51_spill] sm:$0xff]  ;;  %v12828_v14 = vld [vmem:[#allocation52_spill] sm:$0xff]  ;;  %v2279_v4 = vmax.f32 %v8820_v6, %v9023_v55  ;;  %v2281_v7 = vmax.f32 %v8828_v57, %v9030_v13 }
 0x2d4   :  { %v9171_v35 = vmul.f32 0.01, %v12826_v48  ;;  %v9174_v27 = vmul.f32 0.01, %v12828_v14  ;;  %v12829_v1 = vld [vmem:[#allocation53_spill] sm:$0xff]  ;;  %v12831_v21 = vld [vmem:[#allocation40_spill] sm:$0xff]  ;;  %v2303_v48 = vmax.f32 %v12811_v15, %v2239_v10  ;;  %v2302_v57 = vmax.f32 %v12810_v37, %v9082_v8 }
 0x2d5   :  { %12824 = vst [vmem:[#allocation66_spill] sm:$0xff] %v9166_v63  ;;  %v9177_v40 = vmul.f32 0.01, %v12829_v1  ;;  %v2231_v22 = vmul.f32 0.01, %v12831_v21  ;;  %v2368_v32 = vpack.c.bf16 %v2276_v19, %v2274_v31  ;;  %v2300_v63 = vmax.f32 %v12808_v26, %v2236_v54  ;;  %v12833_v31 = vld [vmem:[#allocation14_spill] sm:$0xff] }
 0x2d6   :  { %12827 = vst [vmem:[#allocation13_spill] sm:$0xff] %v9171_v35  ;;  %v2233_v23 = vmul.f32 0.01, %v9066_v18  ;;  %v2305_v1 = vmax.f32 %v8916_v36, %v2241_v60  ;;  %v12832_v35 = vld [vmem:[#allocation54_spill] sm:$0xff]  ;;  %v2371_v26 = vpack.c.bf16 %v2281_v7, %v2279_v4  ;;  %v12834_v6 = vld [vmem:[#allocation15_spill] sm:$0xff]  ;;  %v2304_v36 = vmax.f32 %v8912_v33, %v9087_v0  ;;  %v12836_v8 = vld [vmem:[#allocation16_spill] sm:$0xff] }
 0x2d7   :  { %12830 = vst [vmem:[#allocation52_spill] sm:$0xff] %v9177_v40  ;;  %v2295_v40 = vmax.f32 %v12831_v21, %v2231_v22  ;;  %2535 = vmatmul.mubr.bf16.gmra.mrb[68].mxu0 %v2368_v32  ;;  %v2380_v47 = vpack.c.bf16 %v2300_v63, %v2298_v50  ;;  %v2278_v19 = vmax.f32 %v12833_v31, %v12832_v35  ;;  %v12843_v0 = vld [vmem:[#allocation60_spill] sm:$0xff] }
 0x2d8   :  { %v2297_v24 = vmax.f32 %v9066_v18, %v2233_v23  ;;  %v2383_v54 = vpack.c.bf16 %v2305_v1, %v2303_v48  ;;  %v2280_v55 = vmax.f32 %v12834_v6, %v9027_v44  ;;  %v2283_v23 = vmax.f32 %v8836_v59, %v9037_v38  ;;  %2542 = vmatprep.mubr.bf16.mxu0 %v2371_v26  ;;  %v12835_v1 = vld [vmem:[#allocation55_spill] sm:$0xff]  ;;  %v12837_v44 = vld [vmem:[#allocation56_spill] sm:$0xff]  ;;  %v12838_v59 = vld [vmem:[#allocation17_spill] sm:$0xff] }
 0x2d9   :  { %v2285_v22 = vmax.f32 %v8844_v5, %v9043_v42  ;;  %v2307_v32 = vmax.f32 %v8924_v41, %v9095_v20  ;;  %v2309_v48 = vmax.f32 %v8931_v25, %v9102_v61  ;;  %v2282_v37 = vmax.f32 %v12836_v8, %v12835_v1  ;;  %v12839_v5 = vld [vmem:[#allocation31_spill] sm:$0xff]  ;;  %v12840_v20 = vld [vmem:[#allocation32_spill] sm:$0xff]  ;;  %v12841_v18 = vld [vmem:[#allocation58_spill] sm:$0xff] }
 0x2da   :  { %v2379_v15 = vpack.c.bf16 %v2297_v24, %v2295_v40  ;;  %v2370_v35 = vpack.c.bf16 %v2280_v55, %v2278_v19  ;;  %v9209_v13 = vpack.c.bf16 %v2304_v36, %v2302_v57  ;;  %v2284_v38 = vmax.f32 %v12838_v59, %v12837_v44  ;;  %v12842_v25 = vld [vmem:[#allocation19_spill] sm:$0xff]  ;;  %v12844_v61 = vld [vmem:[#allocation21_spill] sm:$0xff]  ;;  %v12848_v31 = vld [vmem:[#allocation20_spill] sm:$0xff] }
 0x2db   :  { %v2373_v33 = vpack.c.bf16 %v2285_v22, %v2283_v23  ;;  %v2306_v42 = vmax.f32 %v12839_v5, %v9092_v11  ;;  %v2385_v60 = vpack.c.bf16 %v2309_v48, %v2307_v32  ;;  %v2308_v41 = vmax.f32 %v12840_v20, %v9098_v30  ;;  %v12845_v11 = vld [vmem:[#allocation57_spill] sm:$0xff]  ;;  %v12847_v30 = vld [vmem:[#allocation59_spill] sm:$0xff]  ;;  %v12849_v26 = vld [vmem:[#allocation26_spill] sm:$0xff] }
 0x2dc   :  { %2574 = vmatprep.mubr.bf16.mxu1 %v2379_v15  ;;  %v2287_v10 = vmax.f32 %v12842_v25, %v12841_v18  ;;  %v2289_v63 = vmax.f32 %v12844_v61, %v12843_v0  ;;  %v2372_v21 = vpack.c.bf16 %v2284_v38, %v2282_v37  ;;  %v2311_v40 = vmax.f32 %v8937_v53, %v9108_v2  ;;  %v12850_v6 = vld [vmem:[#allocation33_spill] sm:$0xff]  ;;  %v12851_v57 = vld [vmem:[#allocation34_spill] sm:$0xff]  ;;  %v12853_v2 = vld [vmem:[#allocation23_spill] sm:$0xff] }
 0x2dd   :  { %2575 = vmatmul.mubr.bf16.vlgmr.msra.gmra.mrb[0].mxu1 %v2378_v58  ;;  %v2313_v50 = vmax.f32 %v8943_v62, %v9114_v12  ;;  %v12846_v58 = vld [vmem:[#allocation18_spill] sm:$0xff]  ;;  %v2384_v7 = vpack.c.bf16 %v2308_v41, %v2306_v42  ;;  %v2288_v19 = vmax.f32 %v12848_v31, %v12847_v30  ;;  %v2310_v55 = vmax.f32 %v12850_v6, %v12849_v26  ;;  %v12854_v62 = vld [vmem:[#allocation63_spill] sm:$0xff]  ;;  %v12855_v12 = vld [vmem:[#allocation25_spill] sm:$0xff] }
 0x2de   :  { %2582 = vmatprep.mubr.bf16.mxu1 %v2381_v28  ;;  %v2286_v4 = vmax.f32 %v12846_v58, %v12845_v11  ;;  %v2375_v24 = vpack.c.bf16 %v2289_v63, %v2287_v10  ;;  %v2312_v15 = vmax.f32 %v12851_v57, %v9111_v34  ;;  %v12852_v53 = vld [vmem:[#allocation62_spill] sm:$0xff]  ;;  %v2293_v23 = vmax.f32 %v12855_v12, %v12854_v62  ;;  %v12856_v1 = vld [vmem:[#allocation61_spill] sm:$0xff]  ;;  %v12859_v59 = vld [vmem:[#allocation24_spill] sm:$0xff] }
 0x2df   :  { %2543 = vmatmul.mubr.bf16.gmra.mrb[72].mxu0 %v2370_v35  ;;  %v2387_v28 = vpack.c.bf16 %v2313_v50, %v2311_v40  ;;  %v2291_v36 = vmax.f32 %v12853_v2, %v12852_v53  ;;  %v2315_v32 = vmax.f32 %v8949_v16, %v9120_v51  ;;  %v2317_v48 = vmax.f32 %v8955_v45, %v9126_v17  ;;  %v12857_v35 = vld [vmem:[#allocation22_spill] sm:$0xff]  ;;  %v12858_v34 = vld [vmem:[#allocation41_spill] sm:$0xff]  ;;  %v12860_v5 = vld [vmem:[#allocation35_spill] sm:$0xff] }
 0x2e0   :  { %2550 = vmatprep.mubr.bf16.mxu0 %v2373_v33  ;;  %v2374_v22 = vpack.c.bf16 %v2288_v19, %v2286_v4  ;;  %v2290_v8 = vmax.f32 %v12857_v35, %v12856_v1  ;;  %v2386_v37 = vpack.c.bf16 %v2312_v15, %v2310_v55  ;;  %v2292_v38 = vmax.f32 %v12859_v59, %v12858_v34  ;;  %v12861_v33 = vld [vmem:[#allocation42_spill] sm:$0xff]  ;;  %v12862_v51 = vld [vmem:[#allocation43_spill] sm:$0xff]  ;;  %v12864_v10 = vld [vmem:[#allocation44_spill] sm:$0xff] }
 0x2e1   :  { %v2377_v44 = vpack.c.bf16 %v2293_v23, %v2291_v36  ;;  %v2314_v42 = vmax.f32 %v12860_v5, %v9117_v46  ;;  %v2389_v20 = vpack.c.bf16 %v2317_v48, %v2315_v32  ;;  %v2316_v41 = vmax.f32 %v12861_v33, %v9123_v9  ;;  %v12863_v25 = vld [vmem:[#allocation27_spill] sm:$0xff]  ;;  %v12865_v61 = vld [vmem:[#allocation29_spill] sm:$0xff]  ;;  %v12866_v63 = vld [vmem:[#allocation46_spill] sm:$0xff] }
 0x2e2   :  { %v2319_v16 = vmax.f32 %v8961_v29, %v9133_v56  ;;  %v2321_v17 = vmax.f32 %v8967_v49, %v9140_v43  ;;  %v2376_v45 = vpack.c.bf16 %v2292_v38, %v2290_v8  ;;  %v2318_v18 = vmax.f32 %v12862_v51, %v9130_v52  ;;  %v12867_v9 = vld [vmem:[#allocation64_spill] sm:$0xff]  ;;  %v12868_v11 = vld [vmem:[#allocation10_spill] sm:$0xff]  ;;  %v12870_v29 = vld [vmem:[#allocation45_spill] sm:$0xff] }
 0x2e3   :  { %v2320_v0 = vmax.f32 %v12864_v10, %v12863_v25  ;;  %v2323_v46 = vmax.f32 %v12866_v63, %v12865_v61  ;;  %v2388_v40 = vpack.c.bf16 %v2316_v41, %v2314_v42  ;;  %v2325_v58 = vmax.f32 %v12868_v11, %v12867_v9  ;;  %v12869_v56 = vld [vmem:[#allocation28_spill] sm:$0xff]  ;;  %v12871_v43 = vld [vmem:[#allocation30_spill] sm:$0xff]  ;;  %v12872_v30 = vld [vmem:[#allocation9_spill] sm:$0xff] }
 0x2e4   :  { %v2391_v50 = vpack.c.bf16 %v2321_v17, %v2319_v16  ;;  %v2322_v4 = vmax.f32 %v12870_v29, %v12869_v56  ;;  %v2324_v52 = vmax.f32 %v12872_v30, %v12871_v43  ;;  %v2327_v31 = vmax.f32 %v12820_v39, %v9160_v3  ;;  %v12873_v19 = vld [vmem:[#allocation66_spill] sm:$0xff]  ;;  %v12875_v55 = vld [vmem:[#allocation65_spill] sm:$0xff]  ;;  %v12876_v57 = vld [vmem:[#allocation11_spill] sm:$0xff] }
 0x2e5   :  { %2583 = vmatmul.mubr.bf16.gmra.mrb[4].mxu1 %v2380_v47  ;;  %v2390_v49 = vpack.c.bf16 %v2320_v0, %v2318_v18  ;;  %v12874_v26 = vld [vmem:[#allocation50_spill] sm:$0xff]  ;;  %v2393_v47 = vpack.c.bf16 %v2325_v58, %v2323_v46  ;;  %v2326_v15 = vmax.f32 %v12876_v57, %v12875_v55  ;;  %v12877_v53 = vld [vmem:[#allocation48_spill] sm:$0xff]  ;;  %v12878_v2 = vld [vmem:[#allocation49_spill] sm:$0xff] }
 0x2e6   :  { %2590 = vmatprep.mubr.bf16.mxu1 %v2383_v54  ;;  %v2329_v6 = vmax.f32 %v12874_v26, %v12873_v19  ;;  %v2328_v36 = vmax.f32 %v12878_v2, %v12877_v53  ;;  %v2331_v54 = vmax.f32 %v12828_v14, %v9174_v27  ;;  %v2392_v62 = vpack.c.bf16 %v2324_v52, %v2322_v4  ;;  %v12879_v23 = vld [vmem:[#allocation12_spill] sm:$0xff]  ;;  %v12880_v32 = vld [vmem:[#allocation47_spill] sm:$0xff]  ;;  %v12881_v3 = vld [vmem:[#allocation13_spill] sm:$0xff] }
 0x2e7   :  { %2551 = vmatmul.mubr.bf16.gmra.mrb[76].mxu0 %v2372_v21  ;;  %v2333_v48 = vmax.f32 %v12880_v32, %v12879_v23  ;;  %v12882_v39 = vld [vmem:[#allocation51_spill] sm:$0xff]  ;;  %v12883_v8 = vld [vmem:[#allocation52_spill] sm:$0xff]  ;;  %v12884_v34 = vld [vmem:[#allocation53_spill] sm:$0xff] }
 0x2e8   :  { %v2395_v12 = vpack.c.bf16 %v2329_v6, %v2327_v31  ;;  %v2330_v1 = vmax.f32 %v12882_v39, %v12881_v3  ;;  %2558 = vmatprep.mubr.bf16.mxu0 %v2375_v24  ;;  %v2394_v35 = vpack.c.bf16 %v2328_v36, %v2326_v15  ;;  %v2332_v59 = vmax.f32 %v12884_v34, %v12883_v8  ;;  %v7229_v27 = vld [vmem:[%s12885_s2] sm:$0xff]   ;;  %v7230_v14 = vld [vmem:[%s12885_s2 + $0x8] sm:$0xff]   ;;  %v7231_v17 = vld [vmem:[%s12885_s2 + $0x10] sm:$0xff]  }
 0x2e9   :  { %v2397_v38 = vpack.c.bf16 %v2333_v48, %v2331_v54  ;;  %6760 = vmatprep.subr.bf16.mxu1 %v7229_v27  ;;  %v7232_v11 = vld [vmem:[%s12885_s2 + $0x18] sm:$0xff]   ;;  %v7233_v31 = vld [vmem:[%s12885_s2 + $0x20] sm:$0xff]   ;;  %v7234_v19 = vld [vmem:[%s12885_s2 + $0x28] sm:$0xff]  }
 0x2ea   :  { %v2396_v5 = vpack.c.bf16 %v2332_v59, %v2330_v1  ;;  %6761 = vmatpush3.bf16.msra.mxu1 %v7229_v27  ;;  %v7235_v23 = vld [vmem:[%s12885_s2 + $0x30] sm:$0xff]   ;;  %v7236_v59 = vld [vmem:[%s12885_s2 + $0x38] sm:$0xff]  }
 0x2eb   :  { %6762 = vmatprep.subr.bf16.mxu1 %v7230_v14 }
 0x2ed   :  { %2591 = vmatmul.mubr.bf16.gmra.mrb[8].mxu1 %v9209_v13 }
 0x2ee   :  { %2598 = vmatprep.mubr.bf16.mxu1 %v2385_v60  ;;  %6763 = vmatpush3.bf16.msra.mxu1 %v7230_v14 }
 0x2ef   :  { %2559 = vmatmul.mubr.bf16.gmra.mrb[80].mxu0 %v2374_v22  ;;  %6764 = vmatprep.subr.bf16.mxu1 %v7231_v17 }
 0x2f0   :  { %2566 = vmatprep.mubr.bf16.mxu0 %v2377_v44 }
 0x2f2   :  { %6765 = vmatpush3.bf16.msra.mxu1 %v7231_v17 }
 0x2f3   :  { %6766 = vmatprep.subr.bf16.mxu1 %v7232_v11 }
 0x2f5   :  { %2599 = vmatmul.mubr.bf16.gmra.mrb[12].mxu1 %v2384_v7 }
 0x2f6   :  { %2606 = vmatprep.mubr.bf16.mxu1 %v2387_v28  ;;  %6767 = vmatpush3.bf16.msra.mxu1 %v7232_v11 }
 0x2f7   :  { %2567 = vmatmul.mubr.bf16.gmra.mrb[84].mxu0 %v2376_v45  ;;  %6768 = vmatprep.subr.bf16.mxu1 %v7233_v31 }
 0x2fa   :  { %6769 = vmatpush3.bf16.msra.mxu1 %v7233_v31 }
 0x2fb   :  { %6770 = vmatprep.subr.bf16.mxu1 %v7234_v19 }
 0x2fd   :  { %2607 = vmatmul.mubr.bf16.gmra.mrb[16].mxu1 %v2386_v37 }
 0x2fe   :  { %2614 = vmatprep.mubr.bf16.mxu1 %v2389_v20  ;;  %6771 = vmatpush3.bf16.msra.mxu1 %v7234_v19 }
 0x2ff   :  { %6772 = vmatprep.subr.bf16.mxu1 %v7235_v23 }
 0x302   :  { %6773 = vmatpush3.bf16.msra.mxu1 %v7235_v23 }
 0x303   :  { %6774 = vmatprep.subr.bf16.mxu1 %v7236_v59 }
 0x305   :  { %2615 = vmatmul.mubr.bf16.gmra.mrb[20].mxu1 %v2388_v40 }
 0x306   :  { %2622 = vmatprep.mubr.bf16.mxu1 %v2391_v50  ;;  %6775 = vmatpush3.bf16.msra.mxu1 %v7236_v59 }
 0x30d   :  { %2623 = vmatmul.mubr.bf16.gmra.mrb[24].mxu1 %v2390_v49 }
 0x30e   :  { %2630 = vmatprep.mubr.bf16.mxu1 %v2393_v47 }
 0x315   :  { %2631 = vmatmul.mubr.bf16.gmra.mrb[28].mxu1 %v2392_v62 }
 0x316   :  { %2638 = vmatprep.mubr.bf16.mxu1 %v2395_v12 }
 0x31d   :  { %2639 = vmatmul.mubr.bf16.gmra.mrb[32].mxu1 %v2394_v35 }
 0x31e   :  { %2646 = vmatprep.mubr.bf16.mxu1 %v2397_v38 }
 0x325   :  { %2647 = vmatmul.mubr.bf16.gmra.mrb[36].mxu1 %v2396_v5 }
 0x394   :  { %v6576_v13 = vpop.f32.mrb[64].mxu0 }
 0x395   :  { %v6577_v60 = vpop.f32.mrb[65].mxu0 }
 0x396   :  { %v9288_v21 = vadd.f32 %v6577_v60, %v6576_v13  ;;  %v6579_v7 = vpop.f32.mrb[66].mxu0 }
 0x397   :  { %v6580_v24 = vpop.f32.mrb[67].mxu0 }
 0x398   :  { %v9290_v28 = vadd.f32 %v6580_v24, %v6579_v7  ;;  %v2695_v63 = vmul.f32 %v9288_v21, %v9288_v21 }
 0x39a   :  { %v2696_v18 = vmul.f32 %v9290_v28, %v9290_v28  ;;  %v2657_v46 = vadd.f32 %v9290_v28, %v9288_v21 }
 0x39c   :  { %v2727_v56 = vadd.f32 %v2696_v18, %v2695_v63 }
 0x3aa   :  { %v6582_v22 = vpop.f32.mrb[68].mxu0 }
 0x3ab   :  { %v6583_v37 = vpop.f32.mrb[69].mxu0 }
 0x3ac   :  { %v9292_v44 = vadd.f32 %v6583_v37, %v6582_v22  ;;  %v6585_v42 = vpop.f32.mrb[70].mxu0 }
 0x3ad   :  { %v6586_v20 = vpop.f32.mrb[71].mxu0 }
 0x3ae   :  { %v9294_v33 = vadd.f32 %v6586_v20, %v6585_v42  ;;  %v2697_v40 = vmul.f32 %v9292_v44, %v9292_v44  ;;  %v2658_v29 = vadd.f32 %v9292_v44, %v2657_v46 }
 0x3b0   :  { %v6612_v41 = vpop.f32.mrb[0].mxu1  ;;  %v2728_v43 = vadd.f32 %v2727_v56, %v2697_v40  ;;  %v2698_v52 = vmul.f32 %v9294_v33, %v9294_v33  ;;  %v2659_v47 = vadd.f32 %v9294_v33, %v2658_v29 }
 0x3b1   :  { %v6613_v16 = vpop.f32.mrb[1].mxu1 }
 0x3b2   :  { %v9299_v45 = vadd.f32 %v6613_v16, %v6612_v41  ;;  %v6615_v51 = vpop.f32.mrb[2].mxu1  ;;  %v6588_v10 = vpop.f32.mrb[72].mxu0  ;;  %v2729_v36 = vadd.f32 %v2728_v43, %v2698_v52 }
 0x3b3   :  { %v6616_v25 = vpop.f32.mrb[3].mxu1  ;;  %v6589_v61 = vpop.f32.mrb[73].mxu0 }
 0x3b4   :  { %v9303_v0 = vadd.f32 %v6616_v25, %v6615_v51  ;;  %v9311_v50 = vadd.f32 %v6589_v61, %v6588_v10  ;;  %v6591_v9 = vpop.f32.mrb[74].mxu0  ;;  %v2707_v23 = vmul.f32 %v9299_v45, %v9299_v45 }
 0x3b5   :  { %v6592_v58 = vpop.f32.mrb[75].mxu0 }
 0x3b6   :  { %v9317_v4 = vadd.f32 %v6592_v58, %v6591_v9  ;;  %v2699_v57 = vmul.f32 %v9311_v50, %v9311_v50  ;;  %v2660_v54 = vadd.f32 %v9311_v50, %v2659_v47 }
 0x3b8   :  { %v6618_v49 = vpop.f32.mrb[4].mxu1  ;;  %v2730_v48 = vadd.f32 %v2729_v36, %v2699_v57  ;;  %v2700_v3 = vmul.f32 %v9317_v4, %v9317_v4  ;;  %v2661_v8 = vadd.f32 %v9317_v4, %v2660_v54 }
 0x3b9   :  { %v6619_v30 = vpop.f32.mrb[5].mxu1 }
 0x3ba   :  { %v9327_v26 = vadd.f32 %v6619_v30, %v6618_v49  ;;  %v6621_v6 = vpop.f32.mrb[6].mxu1  ;;  %v6594_v15 = vpop.f32.mrb[76].mxu0  ;;  %v2731_v27 = vadd.f32 %v2730_v48, %v2700_v3 }
 0x3bb   :  { %v6622_v55 = vpop.f32.mrb[7].mxu1  ;;  %v6595_v2 = vpop.f32.mrb[77].mxu0 }
 0x3bc   :  { %v9332_v53 = vadd.f32 %v6622_v55, %v6621_v6  ;;  %v9335_v62 = vadd.f32 %v6595_v2, %v6594_v15  ;;  %v6597_v12 = vpop.f32.mrb[78].mxu0  ;;  %v2709_v59 = vmul.f32 %v9327_v26, %v9327_v26 }
 0x3bd   :  { %v6598_v32 = vpop.f32.mrb[79].mxu0 }
 0x3be   :  { %v9342_v39 = vadd.f32 %v6598_v32, %v6597_v12  ;;  %v2701_v34 = vmul.f32 %v9335_v62, %v9335_v62  ;;  %v2662_v13 = vadd.f32 %v9335_v62, %v2661_v8 }
 0x3c0   :  { %v6624_v1 = vpop.f32.mrb[8].mxu1  ;;  %v2732_v22 = vadd.f32 %v2731_v27, %v2701_v34  ;;  %v2702_v37 = vmul.f32 %v9342_v39, %v9342_v39  ;;  %v2663_v16 = vadd.f32 %v9342_v39, %v2662_v13  ;;  %v2710_v13 = vmul.f32 %v9332_v53, %v9332_v53 }
 0x3c1   :  { %v6625_v35 = vpop.f32.mrb[9].mxu1 }
 0x3c2   :  { %v9350_v38 = vadd.f32 %v6625_v35, %v6624_v1  ;;  %v6627_v5 = vpop.f32.mrb[10].mxu1  ;;  %v6600_v60 = vpop.f32.mrb[80].mxu0  ;;  %v2733_v10 = vadd.f32 %v2732_v22, %v2702_v37  ;;  %v2708_v35 = vmul.f32 %v9303_v0, %v9303_v0 }
 0x3c3   :  { %v6628_v14 = vpop.f32.mrb[11].mxu1  ;;  %v6601_v24 = vpop.f32.mrb[81].mxu0 }
 0x3c4   :  { %v9353_v7 = vadd.f32 %v6628_v14, %v6627_v5  ;;  %v9357_v42 = vadd.f32 %v6601_v24, %v6600_v60  ;;  %v6603_v20 = vpop.f32.mrb[82].mxu0 }
 0x3c5   :  { %v6604_v41 = vpop.f32.mrb[83].mxu0 }
 0x3c6   :  { %v2703_v17 = vmul.f32 %v9357_v42, %v9357_v42  ;;  %v9362_v51 = vadd.f32 %v6604_v41, %v6603_v20  ;;  %v2664_v61 = vadd.f32 %v9357_v42, %v2663_v16  ;;  %v2711_v41 = vmul.f32 %v9350_v38, %v9350_v38 }
 0x3c8   :  { %v6630_v18 = vpop.f32.mrb[12].mxu1  ;;  %v2734_v9 = vadd.f32 %v2733_v10, %v2703_v17  ;;  %v2704_v11 = vmul.f32 %v9362_v51, %v9362_v51  ;;  %v2665_v49 = vadd.f32 %v9362_v51, %v2664_v61  ;;  %v2712_v10 = vmul.f32 %v9353_v7, %v9353_v7 }
 0x3c9   :  { %v6631_v25 = vpop.f32.mrb[13].mxu1 }
 0x3ca   :  { %v9365_v63 = vadd.f32 %v6631_v25, %v6630_v18  ;;  %v6633_v46 = vpop.f32.mrb[14].mxu1  ;;  %v6606_v58 = vpop.f32.mrb[84].mxu0  ;;  %v2735_v31 = vadd.f32 %v2734_v9, %v2704_v11 }
 0x3cb   :  { %v6634_v40 = vpop.f32.mrb[15].mxu1  ;;  %v6607_v29 = vpop.f32.mrb[85].mxu0 }
 0x3cc   :  { %v9369_v56 = vadd.f32 %v6634_v40, %v6633_v46  ;;  %v9372_v43 = vadd.f32 %v6607_v29, %v6606_v58  ;;  %v6609_v30 = vpop.f32.mrb[86].mxu0  ;;  %v2713_v40 = vmul.f32 %v9365_v63, %v9365_v63 }
 0x3cd   :  { %v6610_v52 = vpop.f32.mrb[87].mxu0 }
 0x3ce   :  { %v2666_v19 = vadd.f32 %v9372_v43, %v2665_v49  ;;  %v2705_v6 = vmul.f32 %v9372_v43, %v9372_v43  ;;  %v9377_v47 = vadd.f32 %v6610_v52, %v6609_v30  ;;  %v2714_v29 = vmul.f32 %v9369_v56, %v9369_v56 }
 0x3d0   :  { %v6636_v55 = vpop.f32.mrb[16].mxu1  ;;  %v2736_v15 = vadd.f32 %v2735_v31, %v2705_v6  ;;  %v2667_v2 = vadd.f32 %v9377_v47, %v2666_v19  ;;  %v2706_v36 = vmul.f32 %v9377_v47, %v9377_v47 }
 0x3d1   :  { %v6637_v57 = vpop.f32.mrb[17].mxu1 }
 0x3d2   :  { %v9382_v54 = vadd.f32 %v6637_v57, %v6636_v55  ;;  %v6639_v12 = vpop.f32.mrb[18].mxu1  ;;  %v2668_v48 = vadd.f32 %v9299_v45, %v2667_v2  ;;  %v2737_v3 = vadd.f32 %v2736_v15, %v2706_v36 }
 0x3d3   :  { %v6640_v32 = vpop.f32.mrb[19].mxu1 }
 0x3d4   :  { %v9387_v1 = vadd.f32 %v6640_v32, %v6639_v12  ;;  %v2669_v8 = vadd.f32 %v9303_v0, %v2668_v48  ;;  %v2738_v34 = vadd.f32 %v2737_v3, %v2707_v23  ;;  %v2715_v6 = vmul.f32 %v9382_v54, %v9382_v54 }
 0x3d6   :  { %v2670_v5 = vadd.f32 %v9327_v26, %v2669_v8  ;;  %v2739_v27 = vadd.f32 %v2738_v34, %v2708_v35  ;;  %v2716_v36 = vmul.f32 %v9387_v1, %v9387_v1 }
 0x3d8   :  { %v6642_v14 = vpop.f32.mrb[20].mxu1  ;;  %v2671_v24 = vadd.f32 %v9332_v53, %v2670_v5  ;;  %v2740_v22 = vadd.f32 %v2739_v27, %v2709_v59 }
 0x3d9   :  { %v6643_v60 = vpop.f32.mrb[21].mxu1 }
 0x3da   :  { %v9398_v37 = vadd.f32 %v6643_v60, %v6642_v14  ;;  %v6645_v20 = vpop.f32.mrb[22].mxu1  ;;  %v2672_v16 = vadd.f32 %v9350_v38, %v2671_v24  ;;  %v2741_v17 = vadd.f32 %v2740_v22, %v2710_v13 }
 0x3db   :  { %v6646_v18 = vpop.f32.mrb[23].mxu1 }
 0x3dc   :  { %v9403_v25 = vadd.f32 %v6646_v18, %v6645_v20  ;;  %v2742_v61 = vadd.f32 %v2741_v17, %v2711_v41  ;;  %v2673_v46 = vadd.f32 %v9353_v7, %v2672_v16  ;;  %v2717_v32 = vmul.f32 %v9398_v37, %v9398_v37 }
 0x3de   :  { %v2674_v9 = vadd.f32 %v9365_v63, %v2673_v46  ;;  %v2743_v11 = vadd.f32 %v2742_v61, %v2712_v10  ;;  %v2718_v34 = vmul.f32 %v9403_v25, %v9403_v25 }
 0x3e0   :  { %v6648_v58 = vpop.f32.mrb[24].mxu1  ;;  %v2675_v49 = vadd.f32 %v9369_v56, %v2674_v9  ;;  %v2744_v30 = vadd.f32 %v2743_v11, %v2713_v40 }
 0x3e1   :  { %v6649_v52 = vpop.f32.mrb[25].mxu1 }
 0x3e2   :  { %v9414_v31 = vadd.f32 %v6649_v52, %v6648_v58  ;;  %v6651_v19 = vpop.f32.mrb[26].mxu1  ;;  %v2676_v55 = vadd.f32 %v9382_v54, %v2675_v49  ;;  %v2745_v57 = vadd.f32 %v2744_v30, %v2714_v29 }
 0x3e3   :  { %v6652_v15 = vpop.f32.mrb[27].mxu1 }
 0x3e4   :  { %v9419_v2 = vadd.f32 %v6652_v15, %v6651_v19  ;;  %v2677_v12 = vadd.f32 %v9387_v1, %v2676_v55  ;;  %v2746_v23 = vadd.f32 %v2745_v57, %v2715_v6  ;;  %v2719_v24 = vmul.f32 %v9414_v31, %v9414_v31 }
 0x3e6   :  { %v2678_v48 = vadd.f32 %v9398_v37, %v2677_v12  ;;  %v2747_v3 = vadd.f32 %v2746_v23, %v2716_v36  ;;  %v2720_v17 = vmul.f32 %v9419_v2, %v9419_v2 }
 0x3e8   :  { %v6654_v35 = vpop.f32.mrb[28].mxu1  ;;  %v2679_v8 = vadd.f32 %v9403_v25, %v2678_v48  ;;  %v2748_v59 = vadd.f32 %v2747_v3, %v2717_v32 }
 0x3e9   :  { %v6655_v5 = vpop.f32.mrb[29].mxu1 }
 0x3ea   :  { %v9430_v27 = vadd.f32 %v6655_v5, %v6654_v35  ;;  %v6657_v14 = vpop.f32.mrb[30].mxu1  ;;  %v2749_v13 = vadd.f32 %v2748_v59, %v2718_v34  ;;  %v2680_v60 = vadd.f32 %v9414_v31, %v2679_v8 }
 0x3eb   :  { %v6658_v22 = vpop.f32.mrb[31].mxu1 }
 0x3ec   :  { %v9435_v20 = vadd.f32 %v6658_v22, %v6657_v14  ;;  %v2750_v41 = vadd.f32 %v2749_v13, %v2719_v24  ;;  %v2681_v16 = vadd.f32 %v9419_v2, %v2680_v60  ;;  %v2721_v61 = vmul.f32 %v9430_v27, %v9430_v27 }
 0x3ee   :  { %v2751_v18 = vadd.f32 %v2750_v41, %v2720_v17  ;;  %v2682_v10 = vadd.f32 %v9430_v27, %v2681_v16  ;;  %v2722_v11 = vmul.f32 %v9435_v20, %v9435_v20 }
 0x3f0   :  { %v6660_v46 = vpop.f32.mrb[32].mxu1  ;;  %v2752_v40 = vadd.f32 %v2751_v18, %v2721_v61  ;;  %v2683_v9 = vadd.f32 %v9435_v20, %v2682_v10 }
 0x3f1   :  { %v6661_v58 = vpop.f32.mrb[33].mxu1 }
 0x3f2   :  { %v9446_v29 = vadd.f32 %v6661_v58, %v6660_v46  ;;  %v6663_v49 = vpop.f32.mrb[34].mxu1  ;;  %v2753_v30 = vadd.f32 %v2752_v40, %v2722_v11 }
 0x3f3   :  { %v6664_v52 = vpop.f32.mrb[35].mxu1 }
 0x3f4   :  { %v2684_v19 = vadd.f32 %v9446_v29, %v2683_v9  ;;  %v2723_v6 = vmul.f32 %v9446_v29, %v9446_v29  ;;  %v9451_v55 = vadd.f32 %v6664_v52, %v6663_v49 }
 0x3f6   :  { %v2754_v57 = vadd.f32 %v2753_v30, %v2723_v6  ;;  %v2685_v15 = vadd.f32 %v9451_v55, %v2684_v19  ;;  %v2724_v36 = vmul.f32 %v9451_v55, %v9451_v55 }
 0x3f8   :  { %v2755_v12 = vadd.f32 %v2754_v57, %v2724_v36  ;;  %v6666_v23 = vpop.f32.mrb[36].mxu1  ;;  %v2655_v57 = vld [vmem:[%s12886_s6] sm:$0x1] }
 0x3f9   :  { %v6667_v32 = vpop.f32.mrb[37].mxu1 }
 0x3fa   :  { %v9456_v48 = vadd.f32 %v6667_v32, %v6666_v23  ;;  %v6669_v3 = vpop.f32.mrb[38].mxu1  ;;  %v12888_v32 = vld [vmem:[#allocation38_spill] sm:$0xff] }
 0x3fb   :  { %v6670_v35 = vpop.f32.mrb[39].mxu1 }
 0x3fc   :  { %v2686_v8 = vadd.f32 %v9456_v48, %v2685_v15  ;;  %v2725_v34 = vmul.f32 %v9456_v48, %v9456_v48  ;;  %v6671_v59 = vadd.f32 %v6670_v35, %v6669_v3 }
 0x3fe   :  { %v2756_v5 = vadd.f32 %v2755_v12, %v2725_v34  ;;  %v2687_v14 = vadd.f32 %v6671_v59, %v2686_v8  ;;  %v2726_v13 = vmul.f32 %v6671_v59, %v6671_v59  ;;  %v2656_v12 = vld [vmem:[%s12887_s7] sm:$0x1] }
 0x400   :  { %v2688_v60 = vrot.slane %v2687_v14, 4  ;;  %v2757_v24 = vadd.f32 %v2756_v5, %v2726_v13 }
 0x402   :  { %v2689_v22 = vadd.f32 %v2688_v60, %v2687_v14  ;;  %v2758_v41 = vrot.slane %v2757_v24, 4 }
 0x404   :  { %v2690_v16 = vrot.slane %v2689_v22, 2  ;;  %v2759_v17 = vadd.f32 %v2758_v41, %v2757_v24 }
 0x406   :  { %v2691_v18 = vadd.f32 %v2690_v16, %v2689_v22  ;;  %v2760_v10 = vrot.slane %v2759_v17, 2 }
 0x408   :  { %v2692_v61 = vrot.slane %v2691_v18, 1  ;;  %v2761_v46 = vadd.f32 %v2760_v10, %v2759_v17 }
 0x40a   :  { %v2693_v40 = vadd.f32 %v2692_v61, %v2691_v18  ;;  %v2762_v9 = vrot.slane %v2761_v46, 1 }
 0x40c   :  { %v2694_v11 = vmul.f32 0.00390625, %v2693_v40  ;;  %v2763_v58 = vadd.f32 %v2762_v9, %v2761_v46 }
 0x40e   :  { %v2764_v49 = vmul.f32 0.00390625, %v2763_v58  ;;  %v2765_v30 = vmul.f32 %v2694_v11, %v2694_v11 }
 0x410   :  { %v2766_v52 = vsub.f32 %v2764_v49, %v2765_v30 }
 0x412   :  { %v2767_v19 = vmax.f32 %v2766_v52, 0.0 }
 0x414   :  { %v2768_v6 = vadd.f32 1e-05, %v2767_v19 }
 0x416   :  { %7281 = vrsqrt.f32 %v2768_v6 }
 0x420   :  { %v7282_v15 = vpop.eup %7281 }
 0x421   :  { %v2770_v36 = vmul.f32 %v7282_v15, %v2655_v57 }
 0x423   :  { %v2771_v23 = vmul.f32 %v2770_v36, %v2694_v11  ;;  %v2777_v3 = vrot.slane %v2770_v36, %v12888_v32 }
 0x425   :  { %v2772_v35 = vsub.f32 %v2656_v12, %v2771_v23  ;;  %v2810_v8 = vmul.f32 %v6671_v59, %v2777_v3  ;;  %v2779_v34 = vmul.f32 %v9288_v21, %v2777_v3  ;;  %v2780_v5 = vmul.f32 %v9290_v28, %v2777_v3 }
 0x426   :  { %v2781_v14 = vmul.f32 %v9292_v44, %v2777_v3  ;;  %v2782_v13 = vmul.f32 %v9294_v33, %v2777_v3  ;;  %v2783_v60 = vmul.f32 %v9311_v50, %v2777_v3  ;;  %v2784_v24 = vmul.f32 %v9317_v4, %v2777_v3 }
 0x427   :  { %v2815_v22 = vrot.slane %v2772_v35, %v12888_v32  ;;  %v2785_v41 = vmul.f32 %v9335_v62, %v2777_v3  ;;  %v2786_v16 = vmul.f32 %v9342_v39, %v2777_v3  ;;  %v2787_v59 = vmul.f32 %v9357_v42, %v2777_v3 }
 0x428   :  { %v2788_v21 = vmul.f32 %v9362_v51, %v2777_v3  ;;  %v2789_v28 = vmul.f32 %v9372_v43, %v2777_v3  ;;  %v2790_v44 = vmul.f32 %v9377_v47, %v2777_v3  ;;  %v2791_v33 = vmul.f32 %v9299_v45, %v2777_v3 }
 0x429   :  { %v9482_v17 = vadd.f32 %v2815_v22, %v2810_v8  ;;  %v2792_v50 = vmul.f32 %v9303_v0, %v2777_v3  ;;  %v2793_v4 = vmul.f32 %v9327_v26, %v2777_v3  ;;  %v2794_v62 = vmul.f32 %v9332_v53, %v2777_v3 }
 0x42a   :  { %v2795_v39 = vmul.f32 %v9350_v38, %v2777_v3  ;;  %v2796_v42 = vmul.f32 %v9353_v7, %v2777_v3  ;;  %v2797_v51 = vmul.f32 %v9365_v63, %v2777_v3  ;;  %v2798_v43 = vmul.f32 %v9369_v56, %v2777_v3 }
 0x42b   :  { %v2799_v47 = vmul.f32 %v9382_v54, %v2777_v3  ;;  %v2800_v45 = vmul.f32 %v9387_v1, %v2777_v3  ;;  %v2801_v18 = vmul.f32 %v9398_v37, %v2777_v3  ;;  %v2802_v0 = vmul.f32 %v9403_v25, %v2777_v3 }
 0x42c   :  { %v2803_v26 = vmul.f32 %v9414_v31, %v2777_v3  ;;  %v2804_v53 = vmul.f32 %v9419_v2, %v2777_v3  ;;  %v2805_v38 = vmul.f32 %v9430_v27, %v2777_v3  ;;  %v2806_v7 = vmul.f32 %v9435_v20, %v2777_v3 }
 0x42d   :  { %v2807_v63 = vmul.f32 %v9446_v29, %v2777_v3  ;;  %v2808_v56 = vmul.f32 %v9451_v55, %v2777_v3  ;;  %v2809_v54 = vmul.f32 %v9456_v48, %v2777_v3  ;;  %v2817_v10 = vadd.f32 %v2815_v22, %v2779_v34 }
 0x42e   :  { %v2818_v1 = vadd.f32 %v2815_v22, %v2780_v5  ;;  %v2819_v61 = vadd.f32 %v2815_v22, %v2781_v14  ;;  %v2820_v37 = vadd.f32 %v2815_v22, %v2782_v13  ;;  %v2821_v46 = vadd.f32 %v2815_v22, %v2783_v60 }
 0x42f   :  { %v2822_v25 = vadd.f32 %v2815_v22, %v2784_v24  ;;  %v2823_v40 = vadd.f32 %v2815_v22, %v2785_v41  ;;  %v2824_v31 = vadd.f32 %v2815_v22, %v2786_v16  ;;  %v2825_v9 = vadd.f32 %v2815_v22, %v2787_v59 }
 0x430   :  { %v2826_v2 = vadd.f32 %v2815_v22, %v2788_v21  ;;  %v2827_v11 = vadd.f32 %v2815_v22, %v2789_v28  ;;  %v2828_v27 = vadd.f32 %v2815_v22, %v2790_v44  ;;  %v9502_v58 = vadd.f32 %v2815_v22, %v2791_v33 }
 0x431   :  { %v9504_v20 = vadd.f32 %v2815_v22, %v2792_v50  ;;  %v9506_v29 = vadd.f32 %v2815_v22, %v2793_v4  ;;  %v9508_v55 = vadd.f32 %v2815_v22, %v2794_v62  ;;  %v9510_v48 = vadd.f32 %v2815_v22, %v2795_v39 }
 0x432   :  { %v9512_v49 = vadd.f32 %v2815_v22, %v2796_v42  ;;  %v9514_v30 = vadd.f32 %v2815_v22, %v2797_v51  ;;  %v9516_v52 = vadd.f32 %v2815_v22, %v2798_v43  ;;  %v9518_v19 = vadd.f32 %v2815_v22, %v2799_v47 }
 0x433   :  { %v9520_v6 = vadd.f32 %v2815_v22, %v2800_v45  ;;  %v9522_v57 = vadd.f32 %v2815_v22, %v2801_v18  ;;  %v9524_v15 = vadd.f32 %v2815_v22, %v2802_v0  ;;  %v9526_v36 = vadd.f32 %v2815_v22, %v2803_v26 }
 0x434   :  { %v9528_v12 = vadd.f32 %v2815_v22, %v2804_v53  ;;  %v9530_v23 = vadd.f32 %v2815_v22, %v2805_v38  ;;  %v9532_v3 = vadd.f32 %v2815_v22, %v2806_v7  ;;  %v9534_v35 = vadd.f32 %v2815_v22, %v2807_v63 }
 0x435   :  { %v9536_v8 = vadd.f32 %v2815_v22, %v2808_v56  ;;  %v9538_v34 = vadd.f32 %v2815_v22, %v2809_v54  ;;  %v2851_v5 = vmul.f32 0.01, %v2819_v61  ;;  %v2852_v14 = vmul.f32 0.01, %v2820_v37 }
 0x436   :  { %v2849_v13 = vmul.f32 0.01, %v2817_v10  ;;  %v2850_v60 = vmul.f32 0.01, %v2818_v1  ;;  %v2853_v24 = vmul.f32 0.01, %v2821_v46 }
 0x437   :  { %v2883_v41 = vmax.f32 %v2819_v61, %v2851_v5  ;;  %v2884_v16 = vmax.f32 %v2820_v37, %v2852_v14  ;;  %v2854_v59 = vmul.f32 0.01, %v2822_v25  ;;  %v2855_v21 = vmul.f32 0.01, %v2823_v40 }
 0x438   :  { %v2881_v28 = vmax.f32 %v2817_v10, %v2849_v13  ;;  %v2882_v44 = vmax.f32 %v2818_v1, %v2850_v60  ;;  %v2885_v33 = vmax.f32 %v2821_v46, %v2853_v24  ;;  %v2856_v50 = vmul.f32 0.01, %v2824_v31 }
 0x439   :  { %v2930_v4 = vpack.c.bf16 %v2884_v16, %v2883_v41  ;;  %v2886_v62 = vmax.f32 %v2822_v25, %v2854_v59  ;;  %v2887_v39 = vmax.f32 %v2823_v40, %v2855_v21  ;;  %v2857_v42 = vmul.f32 0.01, %v2825_v9 }
 0x43a   :  { %v2929_v51 = vpack.c.bf16 %v2882_v44, %v2881_v28  ;;  %v2888_v22 = vmax.f32 %v2824_v31, %v2856_v50  ;;  %v2858_v43 = vmul.f32 0.01, %v2826_v2  ;;  %v2859_v47 = vmul.f32 0.01, %v2827_v11 }
 0x43b   :  { %v2931_v45 = vpack.c.bf16 %v2886_v62, %v2885_v33  ;;  %v2889_v18 = vmax.f32 %v2825_v9, %v2857_v42  ;;  %v2860_v0 = vmul.f32 0.01, %v2828_v27  ;;  %v2861_v26 = vmul.f32 0.01, %v9502_v58 }
 0x43c   :  { %6776 = vmatprep.mubr.bf16.mxu1 %v2929_v51  ;;  %v2932_v53 = vpack.c.bf16 %v2888_v22, %v2887_v39  ;;  %v2890_v38 = vmax.f32 %v2826_v2, %v2858_v43  ;;  %v2891_v7 = vmax.f32 %v2827_v11, %v2859_v47  ;;  %v2862_v63 = vmul.f32 0.01, %v9504_v20 }
 0x43d   :  { %6777 = vmatmul.mubr.bf16.vlgmr.msra.gmra.mrb[40].mxu1 %v2930_v4  ;;  %v2892_v56 = vmax.f32 %v2828_v27, %v2860_v0  ;;  %v2893_v54 = vmax.f32 %v9502_v58, %v2861_v26  ;;  %v2863_v10 = vmul.f32 0.01, %v9506_v29  ;;  %v2864_v1 = vmul.f32 0.01, %v9508_v55  ;;  %v7239_v26 = vld [vmem:[%s12414_s10 + $0x10] sm:$0xff]  }
 0x43e   :  { %6780 = vmatprep.mubr.bf16.mxu1 %v2931_v45  ;;  %v2933_v61 = vpack.c.bf16 %v2890_v38, %v2889_v18  ;;  %v2894_v37 = vmax.f32 %v9504_v20, %v2862_v63  ;;  %v2865_v46 = vmul.f32 0.01, %v9510_v48  ;;  %v2866_v25 = vmul.f32 0.01, %v9512_v49 }
 0x43f   :  { %v2934_v40 = vpack.c.bf16 %v2892_v56, %v2891_v7  ;;  %v2895_v31 = vmax.f32 %v9506_v29, %v2863_v10  ;;  %v2896_v9 = vmax.f32 %v9508_v55, %v2864_v1  ;;  %v2867_v2 = vmul.f32 0.01, %v9514_v30 }
 0x440   :  { %v2935_v11 = vpack.c.bf16 %v2894_v37, %v2893_v54  ;;  %v2897_v27 = vmax.f32 %v9510_v48, %v2865_v46  ;;  %v2898_v58 = vmax.f32 %v9512_v49, %v2866_v25  ;;  %v2868_v5 = vmul.f32 0.01, %v9516_v52  ;;  %v7240_v25 = vld [vmem:[%s12414_s10 + $0x18] sm:$0xff]  }
 0x441   :  { %v2936_v14 = vpack.c.bf16 %v2896_v9, %v2895_v31  ;;  %v2899_v20 = vmax.f32 %v9514_v30, %v2867_v2  ;;  %v2869_v13 = vmul.f32 0.01, %v9518_v19  ;;  %v2870_v60 = vmul.f32 0.01, %v9520_v6 }
 0x442   :  { %v2937_v24 = vpack.c.bf16 %v2898_v58, %v2897_v27  ;;  %v2900_v29 = vmax.f32 %v9516_v52, %v2868_v5  ;;  %v2871_v55 = vmul.f32 0.01, %v9522_v57  ;;  %v2872_v41 = vmul.f32 0.01, %v9524_v15 }
 0x443   :  { %v2901_v48 = vmax.f32 %v9518_v19, %v2869_v13  ;;  %v2902_v49 = vmax.f32 %v9520_v6, %v2870_v60  ;;  %v2873_v16 = vmul.f32 0.01, %v9526_v36  ;;  %v2874_v59 = vmul.f32 0.01, %v9528_v12 }
 0x444   :  { %v2938_v30 = vpack.c.bf16 %v2900_v29, %v2899_v20  ;;  %v2903_v21 = vmax.f32 %v9522_v57, %v2871_v55  ;;  %v2904_v28 = vmax.f32 %v9524_v15, %v2872_v41  ;;  %v2875_v44 = vmul.f32 0.01, %v9530_v23 }
 0x445   :  { %6781 = vmatmul.mubr.bf16.gmra.mrb[44].mxu1 %v2932_v53  ;;  %v2939_v52 = vpack.c.bf16 %v2902_v49, %v2901_v48  ;;  %v2905_v33 = vmax.f32 %v9526_v36, %v2873_v16  ;;  %v2906_v50 = vmax.f32 %v9528_v12, %v2874_v59  ;;  %v2876_v19 = vmul.f32 0.01, %v9532_v3 }
 0x446   :  { %6784 = vmatprep.mubr.bf16.mxu1 %v2933_v61  ;;  %v2940_v6 = vpack.c.bf16 %v2904_v28, %v2903_v21  ;;  %v2907_v4 = vmax.f32 %v9530_v23, %v2875_v44  ;;  %v2877_v62 = vmul.f32 0.01, %v9534_v35  ;;  %v2878_v57 = vmul.f32 0.01, %v9536_v8 }
 0x447   :  { %v2941_v39 = vpack.c.bf16 %v2906_v50, %v2905_v33  ;;  %v2908_v15 = vmax.f32 %v9532_v3, %v2876_v19  ;;  %v2879_v42 = vmul.f32 0.01, %v9538_v34  ;;  %v2880_v51 = vmul.f32 0.01, %v9482_v17  ;;  %v7237_v3 = vld [vmem:[%s12414_s10] sm:$0xff]  }
 0x448   :  { %v2909_v36 = vmax.f32 %v9534_v35, %v2877_v62  ;;  %v2910_v12 = vmax.f32 %v9536_v8, %v2878_v57  ;;  %6808 = vmatprep.subr.bf16.mxu1 %v7237_v3 }
 0x449   :  { %v2942_v22 = vpack.c.bf16 %v2908_v15, %v2907_v4  ;;  %v2911_v43 = vmax.f32 %v9538_v34, %v2879_v42  ;;  %v2912_v23 = vmax.f32 %v9482_v17, %v2880_v51  ;;  %6809 = vmatpush3.bf16.msra.mxu1 %v7237_v3  ;;  %v7238_v17 = vld [vmem:[%s12414_s10 + $0x8] sm:$0xff]  }
 0x44a   :  { %v2943_v47 = vpack.c.bf16 %v2910_v12, %v2909_v36  ;;  %6810 = vmatprep.subr.bf16.mxu1 %v7238_v17 }
 0x44b   :  { %v2944_v45 = vpack.c.bf16 %v2912_v23, %v2911_v43 }
 0x44d   :  { %6785 = vmatmul.mubr.bf16.gmra.mrb[48].mxu1 %v2934_v40 }
 0x44e   :  { %6788 = vmatprep.mubr.bf16.mxu1 %v2935_v11  ;;  %6811 = vmatpush3.bf16.msra.mxu1 %v7238_v17 }
 0x44f   :  { %6812 = vmatprep.subr.bf16.mxu1 %v7239_v26 }
 0x452   :  { %6813 = vmatpush3.bf16.msra.mxu1 %v7239_v26 }
 0x453   :  { %6814 = vmatprep.subr.bf16.mxu1 %v7240_v25 }
 0x455   :  { %6789 = vmatmul.mubr.bf16.gmra.mrb[52].mxu1 %v2936_v14 }
 0x456   :  { %6792 = vmatprep.mubr.bf16.mxu1 %v2937_v24  ;;  %6815 = vmatpush3.bf16.msra.mxu1 %v7240_v25 }
 0x45d   :  { %6793 = vmatmul.mubr.bf16.gmra.mrb[56].mxu1 %v2938_v30 }
 0x45e   :  { %6796 = vmatprep.mubr.bf16.mxu1 %v2939_v52 }
 0x465   :  { %6797 = vmatmul.mubr.bf16.gmra.mrb[60].mxu1 %v2940_v6 }
 0x466   :  { %6800 = vmatprep.mubr.bf16.mxu1 %v2941_v39 }
 0x46d   :  { %6801 = vmatmul.mubr.bf16.gmra.mrb[64].mxu1 %v2942_v22 }
 0x46e   :  { %6804 = vmatprep.mubr.bf16.mxu1 %v2943_v47 }
 0x475   :  { %6805 = vmatmul.mubr.bf16.gmra.mrb[68].mxu1 %v2944_v45 }
 0x510   :  { %v9586_v35 = vpop.f32.mrb[40].mxu1 }
 0x511   :  { %v9588_v8 = vpop.f32.mrb[41].mxu1  ;;  %v3229_v53 = vmul.f32 %v9586_v35, %v9586_v35  ;;  %v3160_v54 = vsel %vm3156_vm0, %v9586_v35, 0.0 }
 0x512   :  { %v3227_v34 = vmul.f32 %v9588_v8, %v9588_v8  ;;  %v9592_v18 = vpop.f32.mrb[42].mxu1  ;;  %v3157_v38 = vsel %vm3156_vm0, %v9588_v8, 0.0 }
 0x513   :  { %v9594_v0 = vpop.f32.mrb[43].mxu1  ;;  %v3230_v1 = vmul.f32 %v9592_v18, %v9592_v18  ;;  %v3262_v40 = vsel %vm3156_vm0, %v3229_v53, 0.0  ;;  %v3162_v31 = vsel %vm3156_vm0, %v9592_v18, 0.0 }
 0x514   :  { %v3158_v7 = vsel %vm3156_vm0, %v9594_v0, 0.0  ;;  %v3228_v63 = vmul.f32 %v9594_v0, %v9594_v0  ;;  %v3259_v10 = vsel %vm3156_vm0, %v3227_v34, 0.0 }
 0x515   :  { %v3159_v56 = vadd.f32 %v3158_v7, %v3157_v38  ;;  %v3264_v58 = vsel %vm3156_vm0, %v3230_v1, 0.0 }
 0x516   :  { %v3260_v61 = vsel %vm3156_vm0, %v3228_v63, 0.0 }
 0x517   :  { %v3161_v37 = vadd.f32 %v3160_v54, %v3159_v56  ;;  %v3261_v46 = vadd.f32 %v3260_v61, %v3259_v10 }
 0x518   :  { %v9619_v9 = vpop.f32.mrb[44].mxu1 }
 0x519   :  { %v3263_v2 = vadd.f32 %v3262_v40, %v3261_v46  ;;  %v9621_v11 = vpop.f32.mrb[45].mxu1  ;;  %v3163_v27 = vadd.f32 %v3162_v31, %v3161_v37  ;;  %v3233_v29 = vmul.f32 %v9619_v9, %v9619_v9  ;;  %v3168_v59 = vsel %vm3156_vm0, %v9619_v9, 0.0 }
 0x51a   :  { %v3164_v5 = vsel %vm3156_vm0, %v9621_v11, 0.0  ;;  %v3231_v14 = vmul.f32 %v9621_v11, %v9621_v11  ;;  %v9628_v20 = vpop.f32.mrb[46].mxu1 }
 0x51b   :  { %v3165_v13 = vadd.f32 %v3164_v5, %v3163_v27  ;;  %v3265_v60 = vadd.f32 %v3264_v58, %v3263_v2  ;;  %v9630_v24 = vpop.f32.mrb[47].mxu1  ;;  %v3234_v30 = vmul.f32 %v9628_v20, %v9628_v20  ;;  %v3270_v52 = vsel %vm3156_vm0, %v3233_v29, 0.0 }
 0x51c   :  { %v3266_v55 = vsel %vm3156_vm0, %v3231_v14, 0.0  ;;  %v3166_v41 = vsel %vm3156_vm0, %v9630_v24, 0.0  ;;  %v3232_v48 = vmul.f32 %v9630_v24, %v9630_v24  ;;  %v3170_v33 = vsel %vm3156_vm0, %v9628_v20, 0.0 }
 0x51d   :  { %v3267_v49 = vadd.f32 %v3266_v55, %v3265_v60  ;;  %v3167_v16 = vadd.f32 %v3166_v41, %v3165_v13  ;;  %v3272_v62 = vsel %vm3156_vm0, %v3234_v30, 0.0 }
 0x51e   :  { %v3268_v21 = vsel %vm3156_vm0, %v3232_v48, 0.0 }
 0x51f   :  { %v3169_v28 = vadd.f32 %v3168_v59, %v3167_v16  ;;  %v3269_v44 = vadd.f32 %v3268_v21, %v3267_v49 }
 0x520   :  { %v9647_v50 = vpop.f32.mrb[48].mxu1 }
 0x521   :  { %v3271_v19 = vadd.f32 %v3270_v52, %v3269_v44  ;;  %v9649_v6 = vpop.f32.mrb[49].mxu1  ;;  %v3171_v4 = vadd.f32 %v3170_v33, %v3169_v28  ;;  %v3237_v12 = vmul.f32 %v9647_v50, %v9647_v50  ;;  %v3176_v3 = vsel %vm3156_vm0, %v9647_v50, 0.0 }
 0x522   :  { %v3172_v57 = vsel %vm3156_vm0, %v9649_v6, 0.0  ;;  %v3235_v39 = vmul.f32 %v9649_v6, %v9649_v6  ;;  %v9656_v15 = vpop.f32.mrb[50].mxu1 }
 0x523   :  { %v3173_v42 = vadd.f32 %v3172_v57, %v3171_v4  ;;  %v3273_v51 = vadd.f32 %v3272_v62, %v3271_v19  ;;  %v9658_v36 = vpop.f32.mrb[51].mxu1  ;;  %v3238_v17 = vmul.f32 %v9656_v15, %v9656_v15  ;;  %v3278_v38 = vsel %vm3156_vm0, %v3237_v12, 0.0 }
 0x524   :  { %v3274_v22 = vsel %vm3156_vm0, %v3235_v39, 0.0  ;;  %v3174_v43 = vsel %vm3156_vm0, %v9658_v36, 0.0  ;;  %v3236_v23 = vmul.f32 %v9658_v36, %v9658_v36  ;;  %v3178_v7 = vsel %vm3156_vm0, %v9656_v15, 0.0 }
 0x525   :  { %v3275_v47 = vadd.f32 %v3274_v22, %v3273_v51  ;;  %v3175_v45 = vadd.f32 %v3174_v43, %v3173_v42  ;;  %v3280_v1 = vsel %vm3156_vm0, %v3238_v17, 0.0 }
 0x526   :  { %v3276_v34 = vsel %vm3156_vm0, %v3236_v23, 0.0 }
 0x527   :  { %v3177_v26 = vadd.f32 %v3176_v3, %v3175_v45  ;;  %v3277_v53 = vadd.f32 %v3276_v34, %v3275_v47 }
 0x528   :  { %v9675_v63 = vpop.f32.mrb[52].mxu1 }
 0x529   :  { %v3279_v56 = vadd.f32 %v3278_v38, %v3277_v53  ;;  %v9677_v54 = vpop.f32.mrb[53].mxu1  ;;  %v3179_v10 = vadd.f32 %v3178_v7, %v3177_v26  ;;  %v3241_v2 = vmul.f32 %v9675_v63, %v9675_v63  ;;  %v3184_v60 = vsel %vm3156_vm0, %v9675_v63, 0.0 }
 0x52a   :  { %v3180_v61 = vsel %vm3156_vm0, %v9677_v54, 0.0  ;;  %v3239_v37 = vmul.f32 %v9677_v54, %v9677_v54  ;;  %v9684_v46 = vpop.f32.mrb[54].mxu1 }
 0x52b   :  { %v3181_v25 = vadd.f32 %v3180_v61, %v3179_v10  ;;  %v3281_v40 = vadd.f32 %v3280_v1, %v3279_v56  ;;  %v9686_v31 = vpop.f32.mrb[55].mxu1  ;;  %v3242_v29 = vmul.f32 %v9684_v46, %v9684_v46  ;;  %v3286_v49 = vsel %vm3156_vm0, %v3241_v2, 0.0 }
 0x52c   :  { %v3282_v27 = vsel %vm3156_vm0, %v3239_v37, 0.0  ;;  %v3182_v58 = vsel %vm3156_vm0, %v9686_v31, 0.0  ;;  %v3240_v5 = vmul.f32 %v9686_v31, %v9686_v31  ;;  %v3186_v16 = vsel %vm3156_vm0, %v9684_v46, 0.0 }
 0x52d   :  { %v3283_v14 = vadd.f32 %v3282_v27, %v3281_v40  ;;  %v3183_v13 = vadd.f32 %v3182_v58, %v3181_v25  ;;  %v3288_v44 = vsel %vm3156_vm0, %v3242_v29, 0.0 }
 0x52e   :  { %v3284_v55 = vsel %vm3156_vm0, %v3240_v5, 0.0 }
 0x52f   :  { %v3185_v41 = vadd.f32 %v3184_v60, %v3183_v13  ;;  %v3285_v48 = vadd.f32 %v3284_v55, %v3283_v14 }
 0x530   :  { %v9703_v59 = vpop.f32.mrb[56].mxu1 }
 0x531   :  { %v3287_v30 = vadd.f32 %v3286_v49, %v3285_v48  ;;  %v9705_v21 = vpop.f32.mrb[57].mxu1  ;;  %v3187_v28 = vadd.f32 %v3186_v16, %v3185_v41  ;;  %v3245_v39 = vmul.f32 %v9703_v59, %v9703_v59  ;;  %v3192_v23 = vsel %vm3156_vm0, %v9703_v59, 0.0 }
 0x532   :  { %v3188_v52 = vsel %vm3156_vm0, %v9705_v21, 0.0  ;;  %v3243_v33 = vmul.f32 %v9705_v21, %v9705_v21  ;;  %v9712_v19 = vpop.f32.mrb[58].mxu1 }
 0x533   :  { %v3189_v4 = vadd.f32 %v3188_v52, %v3187_v28  ;;  %v3289_v62 = vadd.f32 %v3288_v44, %v3287_v30  ;;  %v9714_v57 = vpop.f32.mrb[59].mxu1  ;;  %v3246_v47 = vmul.f32 %v9712_v19, %v9712_v19  ;;  %v3294_v34 = vsel %vm3156_vm0, %v3245_v39, 0.0 }
 0x534   :  { %v3290_v42 = vsel %vm3156_vm0, %v3243_v33, 0.0  ;;  %v3190_v51 = vsel %vm3156_vm0, %v9714_v57, 0.0  ;;  %v3244_v12 = vmul.f32 %v9714_v57, %v9714_v57  ;;  %v3194_v26 = vsel %vm3156_vm0, %v9712_v19, 0.0 }
 0x535   :  { %v3291_v22 = vadd.f32 %v3290_v42, %v3289_v62  ;;  %v3191_v43 = vadd.f32 %v3190_v51, %v3189_v4  ;;  %v3296_v10 = vsel %vm3156_vm0, %v3246_v47, 0.0 }
 0x536   :  { %v3292_v45 = vsel %vm3156_vm0, %v3244_v12, 0.0 }
 0x537   :  { %v3193_v3 = vadd.f32 %v3192_v23, %v3191_v43  ;;  %v3293_v17 = vadd.f32 %v3292_v45, %v3291_v22 }
 0x538   :  { %v9731_v53 = vpop.f32.mrb[60].mxu1 }
 0x539   :  { %v3295_v38 = vadd.f32 %v3294_v34, %v3293_v17  ;;  %v9733_v7 = vpop.f32.mrb[61].mxu1  ;;  %v3195_v56 = vadd.f32 %v3194_v26, %v3193_v3  ;;  %v3249_v27 = vmul.f32 %v9731_v53, %v9731_v53  ;;  %v3200_v29 = vsel %vm3156_vm0, %v9731_v53, 0.0 }
 0x53a   :  { %v3196_v1 = vsel %vm3156_vm0, %v9733_v7, 0.0  ;;  %v3247_v61 = vmul.f32 %v9733_v7, %v9733_v7  ;;  %v9740_v37 = vpop.f32.mrb[62].mxu1 }
 0x53b   :  { %v3197_v25 = vadd.f32 %v3196_v1, %v3195_v56  ;;  %v3297_v40 = vadd.f32 %v3296_v10, %v3295_v38  ;;  %v9742_v2 = vpop.f32.mrb[63].mxu1  ;;  %v3250_v55 = vmul.f32 %v9740_v37, %v9740_v37  ;;  %v3302_v16 = vsel %vm3156_vm0, %v3249_v27, 0.0 }
 0x53c   :  { %v3298_v58 = vsel %vm3156_vm0, %v3247_v61, 0.0  ;;  %v3198_v5 = vsel %vm3156_vm0, %v9742_v2, 0.0  ;;  %v3248_v14 = vmul.f32 %v9742_v2, %v9742_v2  ;;  %v3202_v30 = vsel %vm3156_vm0, %v9740_v37, 0.0 }
 0x53d   :  { %v3299_v13 = vadd.f32 %v3298_v58, %v3297_v40  ;;  %v3199_v60 = vadd.f32 %v3198_v5, %v3197_v25  ;;  %v3304_v4 = vsel %vm3156_vm0, %v3250_v55, 0.0 }
 0x53e   :  { %v3300_v41 = vsel %vm3156_vm0, %v3248_v14, 0.0 }
 0x53f   :  { %v3201_v48 = vadd.f32 %v3200_v29, %v3199_v60  ;;  %v3301_v49 = vadd.f32 %v3300_v41, %v3299_v13 }
 0x540   :  { %v9759_v28 = vpop.f32.mrb[64].mxu1 }
 0x541   :  { %v3303_v44 = vadd.f32 %v3302_v16, %v3301_v49  ;;  %v9761_v52 = vpop.f32.mrb[65].mxu1  ;;  %v3203_v33 = vadd.f32 %v3202_v30, %v3201_v48  ;;  %v3253_v43 = vmul.f32 %v9759_v28, %v9759_v28  ;;  %v3208_v34 = vsel %vm3156_vm0, %v9759_v28, 0.0 }
 0x542   :  { %v3204_v62 = vsel %vm3156_vm0, %v9761_v52, 0.0  ;;  %v3251_v39 = vmul.f32 %v9761_v52, %v9761_v52  ;;  %v9768_v42 = vpop.f32.mrb[66].mxu1 }
 0x543   :  { %v3205_v51 = vadd.f32 %v3204_v62, %v3203_v33  ;;  %v3305_v12 = vadd.f32 %v3304_v4, %v3303_v44  ;;  %v9770_v22 = vpop.f32.mrb[67].mxu1  ;;  %v3254_v26 = vmul.f32 %v9768_v42, %v9768_v42  ;;  %v3310_v1 = vsel %vm3156_vm0, %v3253_v43, 0.0 }
 0x544   :  { %v3306_v23 = vsel %vm3156_vm0, %v3251_v39, 0.0  ;;  %v3206_v47 = vsel %vm3156_vm0, %v9770_v22, 0.0  ;;  %v3252_v45 = vmul.f32 %v9770_v22, %v9770_v22  ;;  %v3210_v61 = vsel %vm3156_vm0, %v9768_v42, 0.0 }
 0x545   :  { %v3307_v3 = vadd.f32 %v3306_v23, %v3305_v12  ;;  %v3207_v17 = vadd.f32 %v3206_v47, %v3205_v51  ;;  %v3312_v5 = vsel %vm3156_vm0, %v3254_v26, 0.0  ;;  %v9814_v26 = vld [vmem:[%s12416_s12] sm:$0xff]  }
 0x546   :  { %v3308_v38 = vsel %vm3156_vm0, %v3252_v45, 0.0  ;;  %12889 = vst [vmem:[#allocation40_spill] sm:$0xff] %v9814_v26  ;;  %6848 = vmatprep.subr.bf16.mxu1 %v9814_v26 }
 0x547   :  { %v3209_v56 = vadd.f32 %v3208_v34, %v3207_v17  ;;  %v3309_v10 = vadd.f32 %v3308_v38, %v3307_v3 }
 0x548   :  { %v9787_v25 = vpop.f32.mrb[68].mxu1 }
 0x549   :  { %v3311_v40 = vadd.f32 %v3310_v1, %v3309_v10  ;;  %v9789_v27 = vpop.f32.mrb[69].mxu1  ;;  %v3211_v58 = vadd.f32 %v3210_v61, %v3209_v56  ;;  %v3257_v48 = vmul.f32 %v9787_v25, %v9787_v25  ;;  %v3216_v4 = vsel %vm3156_vm0, %v9787_v25, 0.0 }
 0x54a   :  { %v3212_v14 = vsel %vm3156_vm0, %v9789_v27, 0.0  ;;  %v3255_v13 = vmul.f32 %v9789_v27, %v9789_v27  ;;  %v9796_v60 = vpop.f32.mrb[70].mxu1 }
 0x54b   :  { %v3213_v29 = vadd.f32 %v3212_v14, %v3211_v58  ;;  %v3313_v55 = vadd.f32 %v3312_v5, %v3311_v40  ;;  %v3142_v41 = vpop.f32.mrb[71].mxu1  ;;  %v3258_v62 = vmul.f32 %v9796_v60, %v9796_v60  ;;  %v3318_v43 = vsel %vm3156_vm0, %v3257_v48, 0.0 }
 0x54c   :  { %v3314_v49 = vsel %vm3156_vm0, %v3255_v13, 0.0  ;;  %v3214_v16 = vsel %vm3156_vm0, %v3142_v41, 0.0  ;;  %v3256_v30 = vmul.f32 %v3142_v41, %v3142_v41  ;;  %v3218_v23 = vsel %vm3156_vm0, %v9796_v60, 0.0 }
 0x54d   :  { %v3315_v44 = vadd.f32 %v3314_v49, %v3313_v55  ;;  %v3215_v33 = vadd.f32 %v3214_v16, %v3213_v29  ;;  %v3320_v3 = vsel %vm3156_vm0, %v3258_v62, 0.0 }
 0x54e   :  { %v3316_v39 = vsel %vm3156_vm0, %v3256_v30, 0.0 }
 0x54f   :  { %v3217_v51 = vadd.f32 %v3216_v4, %v3215_v33  ;;  %v3317_v12 = vadd.f32 %v3316_v39, %v3315_v44  ;;  %v3154_v33 = vld [vmem:[%s12412_s8] sm:$0x1] }
 0x550   :  { %v3155_v39 = vld [vmem:[%s12413_s9] sm:$0x1] }
 0x551   :  { %v3219_v47 = vadd.f32 %v3218_v23, %v3217_v51  ;;  %v3319_v45 = vadd.f32 %v3318_v43, %v3317_v12 }
 0x553   :  { %v3220_v17 = vrot.slane %v3219_v47, 4  ;;  %v3321_v34 = vadd.f32 %v3320_v3, %v3319_v45 }
 0x555   :  { %v3221_v38 = vadd.f32 %v3220_v17, %v3219_v47  ;;  %v3322_v56 = vrot.slane %v3321_v34, 4 }
 0x557   :  { %v3222_v10 = vrot.slane %v3221_v38, 2  ;;  %v3323_v1 = vadd.f32 %v3322_v56, %v3321_v34 }
 0x559   :  { %v3223_v61 = vadd.f32 %v3222_v10, %v3221_v38  ;;  %v3324_v40 = vrot.slane %v3323_v1, 2 }
 0x55b   :  { %v3224_v58 = vrot.slane %v3223_v61, 1  ;;  %v3325_v5 = vadd.f32 %v3324_v40, %v3323_v1 }
 0x55d   :  { %v3225_v14 = vadd.f32 %v3224_v58, %v3223_v61  ;;  %v3326_v13 = vrot.slane %v3325_v5, 1 }
 0x55f   :  { %v3226_v29 = vmul.f32 0.00390625, %v3225_v14  ;;  %v3327_v55 = vadd.f32 %v3326_v13, %v3325_v5 }
 0x561   :  { %v3328_v48 = vmul.f32 0.00390625, %v3327_v55  ;;  %v3329_v49 = vmul.f32 %v3226_v29, %v3226_v29 }
 0x563   :  { %v3330_v16 = vsub.f32 %v3328_v48, %v3329_v49 }
 0x565   :  { %v3331_v30 = vmax.f32 %v3330_v16, 0.0 }
 0x567   :  { %v3332_v44 = vadd.f32 1e-05, %v3331_v30 }
 0x569   :  { %7283 = vrsqrt.f32 %v3332_v44 }
 0x573   :  { %v7284_v4 = vpop.eup %7283 }
 0x574   :  { %v3334_v62 = vmul.f32 %v7284_v4, %v3154_v33 }
 0x576   :  { %v3335_v51 = vmul.f32 %v3334_v62, %v3226_v29  ;;  %v3341_v12 = vrot.slane %v3334_v62, %v12888_v32 }
 0x578   :  { %v3336_v43 = vsub.f32 %v3155_v39, %v3335_v51  ;;  %v3372_v23 = vmul.f32 %v3341_v12, %v3142_v41  ;;  %v3343_v47 = vmul.f32 %v3341_v12, %v9588_v8  ;;  %v3344_v45 = vmul.f32 %v3341_v12, %v9594_v0 }
 0x579   :  { %v3345_v3 = vmul.f32 %v9586_v35, %v3341_v12  ;;  %v3346_v17 = vmul.f32 %v9592_v18, %v3341_v12  ;;  %v3347_v34 = vmul.f32 %v3341_v12, %v9621_v11  ;;  %v3348_v38 = vmul.f32 %v3341_v12, %v9630_v24 }
 0x57a   :  { %v3379_v56 = vrot.slane %v3336_v43, %v12888_v32  ;;  %v3349_v10 = vmul.f32 %v9619_v9, %v3341_v12  ;;  %v3350_v1 = vmul.f32 %v9628_v20, %v3341_v12  ;;  %v3351_v41 = vmul.f32 %v3341_v12, %v9649_v6 }
 0x57b   :  { %v3352_v8 = vmul.f32 %v3341_v12, %v9658_v36  ;;  %v3353_v0 = vmul.f32 %v9647_v50, %v3341_v12  ;;  %v3354_v35 = vmul.f32 %v9656_v15, %v3341_v12  ;;  %v3355_v18 = vmul.f32 %v3341_v12, %v9677_v54 }
 0x57c   :  { %v9838_v61 = vadd.f32 %v3379_v56, %v3372_v23  ;;  %v3356_v11 = vmul.f32 %v3341_v12, %v9686_v31  ;;  %v3357_v24 = vmul.f32 %v9675_v63, %v3341_v12  ;;  %v3358_v9 = vmul.f32 %v9684_v46, %v3341_v12 }
 0x57d   :  { %v3359_v20 = vmul.f32 %v3341_v12, %v9705_v21  ;;  %v3360_v6 = vmul.f32 %v3341_v12, %v9714_v57  ;;  %v3361_v36 = vmul.f32 %v9703_v59, %v3341_v12  ;;  %v3362_v50 = vmul.f32 %v9712_v19, %v3341_v12 }
 0x57e   :  { %12890 = vst [vmem:[#allocation54_spill] sm:$0xff] %v9838_v61  ;;  %v3363_v15 = vmul.f32 %v3341_v12, %v9733_v7  ;;  %v3364_v54 = vmul.f32 %v3341_v12, %v9742_v2  ;;  %v3365_v40 = vmul.f32 %v9731_v53, %v3341_v12  ;;  %v3366_v31 = vmul.f32 %v9740_v37, %v3341_v12 }
 0x57f   :  { %v3367_v63 = vmul.f32 %v3341_v12, %v9761_v52  ;;  %v3368_v46 = vmul.f32 %v3341_v12, %v9770_v22  ;;  %v3369_v21 = vmul.f32 %v9759_v28, %v3341_v12  ;;  %v9855_v57 = vmul.f32 0.01, %v9838_v61 }
 0x580   :  { %v3370_v59 = vmul.f32 %v9768_v42, %v3341_v12  ;;  %v3371_v19 = vmul.f32 %v3341_v12, %v9789_v27  ;;  %v3373_v7 = vmul.f32 %v9787_v25, %v3341_v12  ;;  %v3374_v2 = vmul.f32 %v9796_v60, %v3341_v12 }
 0x581   :  { %12891 = vst [vmem:[#allocation14_spill] sm:$0xff] %v9855_v57  ;;  %v9861_v53 = vadd.f32 %v3379_v56, %v3343_v47  ;;  %v9863_v37 = vadd.f32 %v3379_v56, %v3344_v45  ;;  %v9865_v52 = vadd.f32 %v3379_v56, %v3345_v3  ;;  %v9867_v22 = vadd.f32 %v3379_v56, %v3346_v17 }
 0x582   :  { %v9869_v28 = vadd.f32 %v3379_v56, %v3347_v34  ;;  %v9871_v58 = vadd.f32 %v3379_v56, %v3348_v38  ;;  %v9873_v5 = vadd.f32 %v3379_v56, %v3349_v10  ;;  %v9875_v42 = vadd.f32 %v3379_v56, %v3350_v1 }
 0x583   :  { %v9877_v27 = vadd.f32 %v3379_v56, %v3351_v41  ;;  %v9879_v25 = vadd.f32 %v3379_v56, %v3352_v8  ;;  %v9881_v60 = vadd.f32 %v3379_v56, %v3353_v0  ;;  %v9883_v14 = vadd.f32 %v3379_v56, %v3354_v35 }
 0x584   :  { %v9885_v13 = vadd.f32 %v3379_v56, %v3355_v18  ;;  %v9887_v29 = vadd.f32 %v3379_v56, %v3356_v11  ;;  %v9889_v55 = vadd.f32 %v3379_v56, %v3357_v24  ;;  %v9891_v48 = vadd.f32 %v3379_v56, %v3358_v9 }
 0x585   :  { %v9893_v49 = vadd.f32 %v3379_v56, %v3359_v20  ;;  %v9895_v16 = vadd.f32 %v3379_v56, %v3360_v6  ;;  %v9897_v30 = vadd.f32 %v3379_v56, %v3361_v36  ;;  %v9899_v44 = vadd.f32 %v3379_v56, %v3362_v50 }
 0x586   :  { %v9901_v33 = vadd.f32 %v3379_v56, %v3363_v15  ;;  %v9903_v4 = vadd.f32 %v3379_v56, %v3364_v54  ;;  %v9905_v62 = vadd.f32 %v3379_v56, %v3365_v40  ;;  %v9907_v39 = vadd.f32 %v3379_v56, %v3366_v31 }
 0x587   :  { %v9909_v51 = vadd.f32 %v3379_v56, %v3367_v63  ;;  %v9911_v12 = vadd.f32 %v3379_v56, %v3368_v46  ;;  %v9913_v43 = vadd.f32 %v3379_v56, %v3369_v21  ;;  %v9915_v23 = vadd.f32 %v3379_v56, %v3370_v59 }
 0x588   :  { %v9917_v47 = vadd.f32 %v3379_v56, %v3371_v19  ;;  %v9919_v45 = vadd.f32 %v3379_v56, %v3373_v7  ;;  %v9921_v3 = vadd.f32 %v3379_v56, %v3374_v2  ;;  %v9924_v17 = vmul.f32 0.01, %v9861_v53 }
 0x589   :  { %v9927_v34 = vmul.f32 0.01, %v9863_v37  ;;  %v3415_v38 = vmul.f32 0.01, %v9865_v52  ;;  %v3416_v1 = vmul.f32 0.01, %v9867_v22 }
 0x58a   :  { %v3417_v41 = vmul.f32 0.01, %v9869_v28  ;;  %v3418_v8 = vmul.f32 0.01, %v9871_v58  ;;  %v3419_v56 = vmul.f32 0.01, %v9873_v5  ;;  %v3445_v18 = vmax.f32 %v9861_v53, %v9924_v17 }
 0x58b   :  { %v3420_v0 = vmul.f32 0.01, %v9875_v42  ;;  %v3421_v35 = vmul.f32 0.01, %v9877_v27  ;;  %v3422_v11 = vmul.f32 0.01, %v9879_v25  ;;  %v3446_v20 = vmax.f32 %v9863_v37, %v9927_v34 }
 0x58c   :  { %v3423_v24 = vmul.f32 0.01, %v9881_v60  ;;  %v3424_v9 = vmul.f32 0.01, %v9883_v14  ;;  %v3425_v6 = vmul.f32 0.01, %v9885_v13  ;;  %v3447_v15 = vmax.f32 %v9865_v52, %v3415_v38 }
 0x58d   :  { %v3426_v36 = vmul.f32 0.01, %v9887_v29  ;;  %v3427_v50 = vmul.f32 0.01, %v9889_v55  ;;  %v3428_v54 = vmul.f32 0.01, %v9891_v48  ;;  %v3448_v63 = vmax.f32 %v9867_v22, %v3416_v1 }
 0x58e   :  { %v3429_v40 = vmul.f32 0.01, %v9893_v49  ;;  %v3430_v31 = vmul.f32 0.01, %v9895_v16  ;;  %v3431_v46 = vmul.f32 0.01, %v9897_v30  ;;  %v3449_v19 = vmax.f32 %v9869_v28, %v3417_v41 }
 0x58f   :  { %v3432_v21 = vmul.f32 0.01, %v9899_v44  ;;  %v3433_v59 = vmul.f32 0.01, %v9901_v33  ;;  %v3434_v7 = vmul.f32 0.01, %v9903_v4  ;;  %v3450_v37 = vmax.f32 %v9871_v58, %v3418_v8 }
 0x590   :  { %v3435_v2 = vmul.f32 0.01, %v9905_v62  ;;  %v3436_v53 = vmul.f32 0.01, %v9907_v39  ;;  %v3437_v52 = vmul.f32 0.01, %v9909_v51  ;;  %v3451_v34 = vmax.f32 %v9873_v5, %v3419_v56 }
 0x591   :  { %v3438_v22 = vmul.f32 0.01, %v9911_v12  ;;  %v3439_v17 = vmul.f32 0.01, %v9913_v43  ;;  %v3440_v38 = vmul.f32 0.01, %v9915_v23  ;;  %v3452_v41 = vmax.f32 %v9875_v42, %v3420_v0 }
 0x592   :  { %v3441_v28 = vmul.f32 0.01, %v9917_v47  ;;  %v3443_v1 = vmul.f32 0.01, %v9919_v45  ;;  %v3444_v10 = vmul.f32 0.01, %v9921_v3  ;;  %v3453_v58 = vmax.f32 %v9877_v27, %v3421_v35 }
 0x593   :  { %v3454_v8 = vmax.f32 %v9879_v25, %v3422_v11  ;;  %v3455_v32 = vmax.f32 %v9881_v60, %v3423_v24  ;;  %v3456_v26 = vmax.f32 %v9883_v14, %v3424_v9  ;;  %v3457_v5 = vmax.f32 %v9885_v13, %v3425_v6 }
 0x594   :  { %v3458_v56 = vmax.f32 %v9887_v29, %v3426_v36  ;;  %v3459_v57 = vmax.f32 %v9889_v55, %v3427_v50  ;;  %v3460_v61 = vmax.f32 %v9891_v48, %v3428_v54  ;;  %v3461_v42 = vmax.f32 %v9893_v49, %v3429_v40  ;;  %v7244_v36 = vld [vmem:[%s12416_s12 + $0x18] sm:$0xff]   ;;  %v7245_v50 = vld [vmem:[%s12416_s12 + $0x20] sm:$0xff]   ;;  %v7247_v54 = vld [vmem:[%s12416_s12 + $0x30] sm:$0xff]  }
 0x595   :  { %v3462_v0 = vmax.f32 %v9895_v16, %v3430_v31  ;;  %v3463_v27 = vmax.f32 %v9897_v30, %v3431_v46  ;;  %v3464_v25 = vmax.f32 %v9899_v44, %v3432_v21  ;;  %v3465_v60 = vmax.f32 %v9901_v33, %v3433_v59  ;;  %v7248_v40 = vld [vmem:[%s12416_s12 + $0x38] sm:$0xff]  }
 0x596   :  { %v3466_v14 = vmax.f32 %v9903_v4, %v3434_v7  ;;  %v3467_v13 = vmax.f32 %v9905_v62, %v3435_v2  ;;  %v3468_v29 = vmax.f32 %v9907_v39, %v3436_v53  ;;  %v3469_v55 = vmax.f32 %v9909_v51, %v3437_v52 }
 0x597   :  { %v3470_v48 = vmax.f32 %v9911_v12, %v3438_v22  ;;  %v3471_v49 = vmax.f32 %v9913_v43, %v3439_v17  ;;  %v3472_v16 = vmax.f32 %v9915_v23, %v3440_v38  ;;  %v3473_v30 = vmax.f32 %v9917_v47, %v3441_v28  ;;  %v7242_v12 = vld [vmem:[%s12416_s12 + $0x8] sm:$0xff]  }
 0x598   :  { %v3475_v44 = vmax.f32 %v9919_v45, %v3443_v1  ;;  %v3476_v33 = vmax.f32 %v9921_v3, %v3444_v10  ;;  %v3486_v35 = vpack.c.bf16 %v3448_v63, %v3447_v15  ;;  %v3485_v4 = vpack.c.bf16 %v3446_v20, %v3445_v18  ;;  %v12892_v18 = vld [vmem:[#allocation54_spill] sm:$0xff]  ;;  %v10037_v63 = vld [vmem:[%s12415_s11] ss:$0 sm:$0xff] }
 0x599   :  { %v3487_v11 = vpack.c.bf16 %v3450_v37, %v3449_v19  ;;  %v3488_v62 = vpack.c.bf16 %v3452_v41, %v3451_v34  ;;  %v3489_v24 = vpack.c.bf16 %v3454_v8, %v3453_v58  ;;  %v3490_v39 = vpack.c.bf16 %v3456_v26, %v3455_v32  ;;  %v12893_v20 = vld [vmem:[#allocation14_spill] sm:$0xff] }
 0x59a   :  { %v3491_v9 = vpack.c.bf16 %v3458_v56, %v3457_v5  ;;  %v3492_v51 = vpack.c.bf16 %v3460_v61, %v3459_v57  ;;  %6816 = vmatprep.mubr.msk.bf16.mxu1 %vm3156_vm0, %v3485_v4  ;;  %v3493_v43 = vpack.c.bf16 %v3462_v0, %v3461_v42  ;;  %v3494_v23 = vpack.c.bf16 %v3464_v25, %v3463_v27  ;;  %v12895_v61 = vld [vmem:[#allocation40_spill] sm:$0xff]  ;;  %v7243_v57 = vld [vmem:[%s12416_s12 + $0x10] sm:$0xff]   ;;  %v7246_v15 = vld [vmem:[%s12416_s12 + $0x28] sm:$0xff]  }
 0x59b   :  { %v3495_v47 = vpack.c.bf16 %v3466_v14, %v3465_v60  ;;  %v3496_v45 = vpack.c.bf16 %v3468_v29, %v3467_v13  ;;  %6817 = vmatmul.mubr.msk.bf16.vlgmr.msra.gmra.mrb[72].mxu1 %vm3156_vm0, %v3486_v35  ;;  %v3497_v3 = vpack.c.bf16 %v3470_v48, %v3469_v55  ;;  %v3498_v10 = vpack.c.bf16 %v3472_v16, %v3471_v49 }
 0x59c   :  { %v12894_v6 = vmax.f32 %v12892_v18, %v12893_v20  ;;  %v3500_v26 = vpack.c.bf16 %v3476_v33, %v3475_v44  ;;  %6820 = vmatprep.mubr.msk.bf16.mxu1 %vm3156_vm0, %v3487_v11  ;;  %6849 = vmatpush3.bf16.msra.mxu1 %v12895_v61 }
 0x59d   :  { %6850 = vmatprep.subr.bf16.mxu1 %v7242_v12 }
 0x59e   :  { %v3499_v32 = vpack.c.bf16 %v12894_v6, %v3473_v30 }
 0x5a0   :  { %6851 = vmatpush3.bf16.msra.mxu1 %v7242_v12 }
 0x5a1   :  { %6852 = vmatprep.subr.bf16.mxu1 %v7243_v57 }
 0x5a3   :  { %6821 = vmatmul.mubr.msk.bf16.gmra.mrb[76].mxu1 %vm3156_vm0, %v3488_v62 }
 0x5a4   :  { %6824 = vmatprep.mubr.msk.bf16.mxu1 %vm3156_vm0, %v3489_v24  ;;  %6853 = vmatpush3.bf16.msra.mxu1 %v7243_v57 }
 0x5a5   :  { %6854 = vmatprep.subr.bf16.mxu1 %v7244_v36 }
 0x5a8   :  { %6855 = vmatpush3.bf16.msra.mxu1 %v7244_v36 }
 0x5a9   :  { %6856 = vmatprep.subr.bf16.mxu1 %v7245_v50 }
 0x5ab   :  { %6825 = vmatmul.mubr.msk.bf16.gmra.mrb[80].mxu1 %vm3156_vm0, %v3490_v39 }
 0x5ac   :  { %6828 = vmatprep.mubr.msk.bf16.mxu1 %vm3156_vm0, %v3491_v9  ;;  %6857 = vmatpush3.bf16.msra.mxu1 %v7245_v50 }
 0x5ad   :  { %6858 = vmatprep.subr.bf16.mxu1 %v7246_v15 }
 0x5b0   :  { %6859 = vmatpush3.bf16.msra.mxu1 %v7246_v15 }
 0x5b1   :  { %6860 = vmatprep.subr.bf16.mxu1 %v7247_v54 }
 0x5b3   :  { %6829 = vmatmul.mubr.msk.bf16.gmra.mrb[84].mxu1 %vm3156_vm0, %v3492_v51 }
 0x5b4   :  { %6832 = vmatprep.mubr.msk.bf16.mxu1 %vm3156_vm0, %v3493_v43  ;;  %6861 = vmatpush3.bf16.msra.mxu1 %v7247_v54 }
 0x5b5   :  { %6862 = vmatprep.subr.bf16.mxu1 %v7248_v40 }
 0x5b8   :  { %6863 = vmatpush3.bf16.msra.mxu1 %v7248_v40 }
 0x5bb   :  { %6833 = vmatmul.mubr.msk.bf16.gmra.mrb[88].mxu1 %vm3156_vm0, %v3494_v23 }
 0x5bc   :  { %6836 = vmatprep.mubr.msk.bf16.mxu1 %vm3156_vm0, %v3495_v47 }
 0x5c3   :  { %6837 = vmatmul.mubr.msk.bf16.gmra.mrb[92].mxu1 %vm3156_vm0, %v3496_v45 }
 0x5c4   :  { %6840 = vmatprep.mubr.msk.bf16.mxu1 %vm3156_vm0, %v3497_v3 }
 0x5cb   :  { %6841 = vmatmul.mubr.msk.bf16.gmra.mrb[96].mxu1 %vm3156_vm0, %v3498_v10 }
 0x5cc   :  { %6844 = vmatprep.mubr.msk.bf16.mxu1 %vm3156_vm0, %v3499_v32 }
 0x5d3   :  { %6845 = vmatmul.mubr.msk.bf16.gmra.mrb[100].mxu1 %vm3156_vm0, %v3500_v26 }
 0x66e   :  { %v6818_v31 = vpop.f32.mrb[72].mxu1 }
 0x66f   :  { %v3614_v46 = vpop.f32.mrb[73].mxu1  ;;  %v3623_v59 = vadd.f32 %v6818_v31, %v10037_v63 }
 0x670   :  { %v6819_v21 = vpop.f32.mrb[74].mxu1  ;;  %v3615_v2 = vadd.f32 %v10037_v63, %v3614_v46 }
 0x671   :  { %v3626_v19 = vadd.f32 %v6819_v21, %v10037_v63  ;;  %v3617_v7 = vpop.f32.mrb[75].mxu1 }
 0x672   :  { %v3618_v53 = vadd.f32 %v10037_v63, %v3617_v7 }
 0x673   :  { %v3758_v37 = vpack.c.bf16 %v3626_v19, %v3623_v59 }
 0x674   :  { %v3757_v52 = vpack.c.bf16 %v3618_v53, %v3615_v2 }
 0x676   :  { %v6822_v22 = vpop.f32.mrb[76].mxu1  ;;  %6864 = vmatprep.mubr.bf16.mxu1 %v3757_v52 }
 0x677   :  { %v3630_v17 = vpop.f32.mrb[77].mxu1  ;;  %6865 = vmatmul.mubr.bf16.vlgmr.msra.gmra.mrb[104].mxu1 %v3758_v37  ;;  %v3639_v38 = vadd.f32 %v6822_v22, %v10037_v63 }
 0x678   :  { %v6823_v34 = vpop.f32.mrb[78].mxu1  ;;  %v3631_v41 = vadd.f32 %v10037_v63, %v3630_v17 }
 0x679   :  { %v3642_v28 = vadd.f32 %v6823_v34, %v10037_v63  ;;  %v3633_v1 = vpop.f32.mrb[79].mxu1 }
 0x67a   :  { %v3634_v58 = vadd.f32 %v10037_v63, %v3633_v1 }
 0x67b   :  { %v3760_v8 = vpack.c.bf16 %v3642_v28, %v3639_v38 }
 0x67c   :  { %v3759_v5 = vpack.c.bf16 %v3634_v58, %v3631_v41  ;;  %v7249_v58 = vld [vmem:[%s12419_s15] sm:$0xff]  }
 0x67d   :  { %6896 = vmatprep.subr.bf16.mxu0 %v7249_v58 }
 0x67e   :  { %v6826_v56 = vpop.f32.mrb[80].mxu1  ;;  %6868 = vmatprep.mubr.bf16.mxu1 %v3759_v5  ;;  %6897 = vmatpush3.bf16.msra.mxu0 %v7249_v58 }
 0x67f   :  { %v3646_v42 = vpop.f32.mrb[81].mxu1  ;;  %6869 = vmatmul.mubr.bf16.gmra.mrb[108].mxu1 %v3760_v8  ;;  %v3655_v27 = vadd.f32 %v6826_v56, %v10037_v63  ;;  %v7250_v8 = vld [vmem:[%s12419_s15 + $0x8] sm:$0xff]  }
 0x680   :  { %v6827_v0 = vpop.f32.mrb[82].mxu1  ;;  %v3647_v14 = vadd.f32 %v10037_v63, %v3646_v42  ;;  %6898 = vmatprep.subr.bf16.mxu0 %v7250_v8 }
 0x681   :  { %v3658_v25 = vadd.f32 %v6827_v0, %v10037_v63  ;;  %v3649_v60 = vpop.f32.mrb[83].mxu1 }
 0x682   :  { %v3650_v13 = vadd.f32 %v10037_v63, %v3649_v60  ;;  %6899 = vmatpush3.bf16.msra.mxu0 %v7250_v8 }
 0x683   :  { %v3762_v29 = vpack.c.bf16 %v3658_v25, %v3655_v27  ;;  %v7251_v27 = vld [vmem:[%s12419_s15 + $0x10] sm:$0xff]  }
 0x684   :  { %v3761_v55 = vpack.c.bf16 %v3650_v13, %v3647_v14  ;;  %6900 = vmatprep.subr.bf16.mxu0 %v7251_v27 }
 0x686   :  { %v6830_v48 = vpop.f32.mrb[84].mxu1  ;;  %6872 = vmatprep.mubr.bf16.mxu1 %v3761_v55  ;;  %6901 = vmatpush3.bf16.msra.mxu0 %v7251_v27 }
 0x687   :  { %v3662_v49 = vpop.f32.mrb[85].mxu1  ;;  %6873 = vmatmul.mubr.bf16.gmra.mrb[112].mxu1 %v3762_v29  ;;  %v3671_v30 = vadd.f32 %v6830_v48, %v10037_v63 }
 0x688   :  { %v6831_v16 = vpop.f32.mrb[86].mxu1  ;;  %v3663_v35 = vadd.f32 %v10037_v63, %v3662_v49 }
 0x689   :  { %v3674_v44 = vadd.f32 %v6831_v16, %v10037_v63  ;;  %v3665_v33 = vpop.f32.mrb[87].mxu1 }
 0x68a   :  { %v3666_v4 = vadd.f32 %v10037_v63, %v3665_v33  ;;  %v7252_v33 = vld [vmem:[%s12419_s15 + $0x18] sm:$0xff]  }
 0x68b   :  { %v3764_v11 = vpack.c.bf16 %v3674_v44, %v3671_v30  ;;  %6902 = vmatprep.subr.bf16.mxu0 %v7252_v33 }
 0x68c   :  { %v3763_v62 = vpack.c.bf16 %v3666_v4, %v3663_v35  ;;  %6903 = vmatpush3.bf16.msra.mxu0 %v7252_v33 }
 0x68e   :  { %v6834_v24 = vpop.f32.mrb[88].mxu1  ;;  %6876 = vmatprep.mubr.bf16.mxu1 %v3763_v62 }
 0x68f   :  { %v3678_v39 = vpop.f32.mrb[89].mxu1  ;;  %6877 = vmatmul.mubr.bf16.gmra.mrb[116].mxu1 %v3764_v11  ;;  %v3687_v51 = vadd.f32 %v6834_v24, %v10037_v63 }
 0x690   :  { %v6835_v9 = vpop.f32.mrb[90].mxu1  ;;  %v3679_v23 = vadd.f32 %v10037_v63, %v3678_v39 }
 0x691   :  { %v3690_v12 = vadd.f32 %v6835_v9, %v10037_v63  ;;  %v3681_v43 = vpop.f32.mrb[91].mxu1 }
 0x692   :  { %v3682_v47 = vadd.f32 %v10037_v63, %v3681_v43 }
 0x693   :  { %v3766_v45 = vpack.c.bf16 %v3690_v12, %v3687_v51 }
 0x694   :  { %v3765_v3 = vpack.c.bf16 %v3682_v47, %v3679_v23 }
 0x696   :  { %v6838_v10 = vpop.f32.mrb[92].mxu1  ;;  %6880 = vmatprep.mubr.bf16.mxu1 %v3765_v3 }
 0x697   :  { %v3694_v18 = vpop.f32.mrb[93].mxu1  ;;  %6881 = vmatmul.mubr.bf16.gmra.mrb[120].mxu1 %v3766_v45  ;;  %v3703_v6 = vadd.f32 %v6838_v10, %v10037_v63 }
 0x698   :  { %v6839_v20 = vpop.f32.mrb[94].mxu1  ;;  %v3695_v61 = vadd.f32 %v10037_v63, %v3694_v18 }
 0x699   :  { %v3706_v32 = vadd.f32 %v6839_v20, %v10037_v63  ;;  %v3697_v26 = vpop.f32.mrb[95].mxu1 }
 0x69a   :  { %v3698_v57 = vadd.f32 %v10037_v63, %v3697_v26 }
 0x69b   :  { %v3768_v36 = vpack.c.bf16 %v3706_v32, %v3703_v6 }
 0x69c   :  { %v3767_v50 = vpack.c.bf16 %v3698_v57, %v3695_v61 }
 0x69e   :  { %v6842_v15 = vpop.f32.mrb[96].mxu1  ;;  %6884 = vmatprep.mubr.bf16.mxu1 %v3767_v50 }
 0x69f   :  { %v3710_v54 = vpop.f32.mrb[97].mxu1  ;;  %6885 = vmatmul.mubr.bf16.gmra.mrb[124].mxu1 %v3768_v36  ;;  %v3719_v31 = vadd.f32 %v6842_v15, %v10037_v63 }
 0x6a0   :  { %v6843_v40 = vpop.f32.mrb[98].mxu1  ;;  %v3711_v59 = vadd.f32 %v10037_v63, %v3710_v54 }
 0x6a1   :  { %v3722_v46 = vadd.f32 %v6843_v40, %v10037_v63  ;;  %v3713_v21 = vpop.f32.mrb[99].mxu1 }
 0x6a2   :  { %v3714_v19 = vadd.f32 %v10037_v63, %v3713_v21 }
 0x6a3   :  { %v3770_v7 = vpack.c.bf16 %v3722_v46, %v3719_v31 }
 0x6a4   :  { %v3769_v2 = vpack.c.bf16 %v3714_v19, %v3711_v59 }
 0x6a6   :  { %v6846_v53 = vpop.f32.mrb[100].mxu1  ;;  %6888 = vmatprep.mubr.bf16.mxu1 %v3769_v2 }
 0x6a7   :  { %v3726_v37 = vpop.f32.mrb[101].mxu1  ;;  %6889 = vmatmul.mubr.bf16.gmra.mrb[128].mxu1 %v3770_v7  ;;  %v3735_v22 = vadd.f32 %v6846_v53, %v10037_v63 }
 0x6a8   :  { %v6847_v52 = vpop.f32.mrb[102].mxu1  ;;  %v3727_v38 = vadd.f32 %v10037_v63, %v3726_v37 }
 0x6a9   :  { %v3738_v17 = vadd.f32 %v6847_v52, %v10037_v63  ;;  %v3729_v34 = vpop.f32.mrb[103].mxu1 }
 0x6aa   :  { %v3730_v28 = vadd.f32 %v10037_v63, %v3729_v34 }
 0x6ab   :  { %v3772_v1 = vpack.c.bf16 %v3738_v17, %v3735_v22 }
 0x6ac   :  { %v3771_v41 = vpack.c.bf16 %v3730_v28, %v3727_v38 }
 0x6ae   :  { %6892 = vmatprep.mubr.bf16.mxu1 %v3771_v41 }
 0x6af   :  { %6893 = vmatmul.mubr.bf16.gmra.mrb[132].mxu1 %v3772_v1 }
 0x74a   :  { %v10077_v5 = vpop.f32.mrb[104].mxu1 }
 0x74b   :  { %v10079_v56 = vpop.f32.mrb[105].mxu1  ;;  %v4056_v25 = vmul.f32 %v10077_v5, %v10077_v5  ;;  %v3987_v55 = vsel %vm3156_vm0, %v10077_v5, 0.0 }
 0x74c   :  { %v4054_v63 = vmul.f32 %v10079_v56, %v10079_v56  ;;  %v10083_v42 = vpop.f32.mrb[106].mxu1  ;;  %v3984_v60 = vsel %vm3156_vm0, %v10079_v56, 0.0 }
 0x74d   :  { %v10085_v0 = vpop.f32.mrb[107].mxu1  ;;  %v4057_v49 = vmul.f32 %v10083_v42, %v10083_v42  ;;  %v4089_v35 = vsel %vm3156_vm0, %v4056_v25, 0.0  ;;  %v3989_v4 = vsel %vm3156_vm0, %v10083_v42, 0.0 }
 0x74e   :  { %v3985_v14 = vsel %vm3156_vm0, %v10085_v0, 0.0  ;;  %v4055_v13 = vmul.f32 %v10085_v0, %v10085_v0  ;;  %v4086_v48 = vsel %vm3156_vm0, %v4054_v63, 0.0 }
 0x74f   :  { %v3986_v29 = vadd.f32 %v3985_v14, %v3984_v60  ;;  %v4091_v9 = vsel %vm3156_vm0, %v4057_v49, 0.0 }
 0x750   :  { %v4087_v16 = vsel %vm3156_vm0, %v4055_v13, 0.0 }
 0x751   :  { %v3988_v30 = vadd.f32 %v3987_v55, %v3986_v29  ;;  %v4088_v44 = vadd.f32 %v4087_v16, %v4086_v48 }
 0x752   :  { %v10110_v11 = vpop.f32.mrb[108].mxu1 }
 0x753   :  { %v4090_v62 = vadd.f32 %v4089_v35, %v4088_v44  ;;  %v10112_v24 = vpop.f32.mrb[109].mxu1  ;;  %v3990_v39 = vadd.f32 %v3989_v4, %v3988_v30  ;;  %v4060_v3 = vmul.f32 %v10110_v11, %v10110_v11  ;;  %v3995_v26 = vsel %vm3156_vm0, %v10110_v11, 0.0 }
 0x754   :  { %v3991_v51 = vsel %vm3156_vm0, %v10112_v24, 0.0  ;;  %v4058_v12 = vmul.f32 %v10112_v24, %v10112_v24  ;;  %v10119_v43 = vpop.f32.mrb[110].mxu1 }
 0x755   :  { %v3992_v23 = vadd.f32 %v3991_v51, %v3990_v39  ;;  %v4092_v47 = vadd.f32 %v4091_v9, %v4090_v62  ;;  %v10121_v45 = vpop.f32.mrb[111].mxu1  ;;  %v4061_v61 = vmul.f32 %v10119_v43, %v10119_v43  ;;  %v4097_v15 = vsel %vm3156_vm0, %v4060_v3, 0.0 }
 0x756   :  { %v4093_v10 = vsel %vm3156_vm0, %v4058_v12, 0.0  ;;  %v3993_v18 = vsel %vm3156_vm0, %v10121_v45, 0.0  ;;  %v4059_v20 = vmul.f32 %v10121_v45, %v10121_v45  ;;  %v3997_v54 = vsel %vm3156_vm0, %v10119_v43, 0.0 }
 0x757   :  { %v4094_v6 = vadd.f32 %v4093_v10, %v4092_v47  ;;  %v3994_v32 = vadd.f32 %v3993_v18, %v3992_v23  ;;  %v4099_v59 = vsel %vm3156_vm0, %v4061_v61, 0.0 }
 0x758   :  { %v4095_v57 = vsel %vm3156_vm0, %v4059_v20, 0.0 }
 0x759   :  { %v3996_v36 = vadd.f32 %v3995_v26, %v3994_v32  ;;  %v4096_v50 = vadd.f32 %v4095_v57, %v4094_v6 }
 0x75a   :  { %v10138_v40 = vpop.f32.mrb[112].mxu1 }
 0x75b   :  { %v4098_v31 = vadd.f32 %v4097_v15, %v4096_v50  ;;  %v10140_v46 = vpop.f32.mrb[113].mxu1  ;;  %v3998_v21 = vadd.f32 %v3997_v54, %v3996_v36  ;;  %v4064_v22 = vmul.f32 %v10138_v40, %v10138_v40  ;;  %v4003_v41 = vsel %vm3156_vm0, %v10138_v40, 0.0 }
 0x75c   :  { %v3999_v19 = vsel %vm3156_vm0, %v10140_v46, 0.0  ;;  %v4062_v7 = vmul.f32 %v10140_v46, %v10140_v46  ;;  %v10147_v2 = vpop.f32.mrb[114].mxu1 }
 0x75d   :  { %v4000_v53 = vadd.f32 %v3999_v19, %v3998_v21  ;;  %v4100_v37 = vadd.f32 %v4099_v59, %v4098_v31  ;;  %v10149_v52 = vpop.f32.mrb[115].mxu1  ;;  %v4065_v58 = vmul.f32 %v10147_v2, %v10147_v2  ;;  %v4105_v25 = vsel %vm3156_vm0, %v4064_v22, 0.0 }
 0x75e   :  { %v4101_v17 = vsel %vm3156_vm0, %v4062_v7, 0.0  ;;  %v4001_v34 = vsel %vm3156_vm0, %v10149_v52, 0.0  ;;  %v4063_v38 = vmul.f32 %v10149_v52, %v10149_v52  ;;  %v4005_v60 = vsel %vm3156_vm0, %v10147_v2, 0.0 }
 0x75f   :  { %v4102_v28 = vadd.f32 %v4101_v17, %v4100_v37  ;;  %v4002_v1 = vadd.f32 %v4001_v34, %v4000_v53  ;;  %v4107_v48 = vsel %vm3156_vm0, %v4065_v58, 0.0 }
 0x760   :  { %v4103_v8 = vsel %vm3156_vm0, %v4063_v38, 0.0 }
 0x761   :  { %v4004_v63 = vadd.f32 %v4003_v41, %v4002_v1  ;;  %v4104_v27 = vadd.f32 %v4103_v8, %v4102_v28 }
 0x762   :  { %v10166_v14 = vpop.f32.mrb[116].mxu1 }
 0x763   :  { %v4106_v13 = vadd.f32 %v4105_v25, %v4104_v27  ;;  %v10168_v29 = vpop.f32.mrb[117].mxu1  ;;  %v4006_v55 = vadd.f32 %v4005_v60, %v4004_v63  ;;  %v4068_v4 = vmul.f32 %v10166_v14, %v10166_v14  ;;  %v4011_v23 = vsel %vm3156_vm0, %v10166_v14, 0.0 }
 0x764   :  { %v4007_v49 = vsel %vm3156_vm0, %v10168_v29, 0.0  ;;  %v4066_v16 = vmul.f32 %v10168_v29, %v10168_v29  ;;  %v10175_v30 = vpop.f32.mrb[118].mxu1 }
 0x765   :  { %v4008_v44 = vadd.f32 %v4007_v49, %v4006_v55  ;;  %v4108_v33 = vadd.f32 %v4107_v48, %v4106_v13  ;;  %v10177_v35 = vpop.f32.mrb[119].mxu1  ;;  %v4069_v47 = vmul.f32 %v10175_v30, %v10175_v30  ;;  %v4113_v20 = vsel %vm3156_vm0, %v4068_v4, 0.0 }
 0x766   :  { %v4109_v62 = vsel %vm3156_vm0, %v4066_v16, 0.0  ;;  %v4009_v39 = vsel %vm3156_vm0, %v10177_v35, 0.0  ;;  %v4067_v9 = vmul.f32 %v10177_v35, %v10177_v35  ;;  %v4013_v6 = vsel %vm3156_vm0, %v10175_v30, 0.0 }
 0x767   :  { %v4110_v51 = vadd.f32 %v4109_v62, %v4108_v33  ;;  %v4010_v12 = vadd.f32 %v4009_v39, %v4008_v44  ;;  %v4115_v36 = vsel %vm3156_vm0, %v4069_v47, 0.0 }
 0x768   :  { %v4111_v3 = vsel %vm3156_vm0, %v4067_v9, 0.0 }
 0x769   :  { %v4012_v10 = vadd.f32 %v4011_v23, %v4010_v12  ;;  %v4112_v18 = vadd.f32 %v4111_v3, %v4110_v51 }
 0x76a   :  { %v10194_v32 = vpop.f32.mrb[120].mxu1 }
 0x76b   :  { %v4114_v26 = vadd.f32 %v4113_v20, %v4112_v18  ;;  %v10196_v61 = vpop.f32.mrb[121].mxu1  ;;  %v4014_v57 = vadd.f32 %v4013_v6, %v4012_v10  ;;  %v4072_v19 = vmul.f32 %v10194_v32, %v10194_v32  ;;  %v4019_v34 = vsel %vm3156_vm0, %v10194_v32, 0.0 }
 0x76c   :  { %v4015_v50 = vsel %vm3156_vm0, %v10196_v61, 0.0  ;;  %v4070_v15 = vmul.f32 %v10196_v61, %v10196_v61  ;;  %v10203_v54 = vpop.f32.mrb[122].mxu1 }
 0x76d   :  { %v4016_v31 = vadd.f32 %v4015_v50, %v4014_v57  ;;  %v4116_v21 = vadd.f32 %v4115_v36, %v4114_v26  ;;  %v10205_v59 = vpop.f32.mrb[123].mxu1  ;;  %v4073_v38 = vmul.f32 %v10203_v54, %v10203_v54  ;;  %v4121_v58 = vsel %vm3156_vm0, %v4072_v19, 0.0 }
 0x76e   :  { %v4117_v7 = vsel %vm3156_vm0, %v4070_v15, 0.0  ;;  %v4017_v53 = vsel %vm3156_vm0, %v10205_v59, 0.0  ;;  %v4071_v37 = vmul.f32 %v10205_v59, %v10205_v59  ;;  %v4021_v8 = vsel %vm3156_vm0, %v10203_v54, 0.0 }
 0x76f   :  { %v4118_v22 = vadd.f32 %v4117_v7, %v4116_v21  ;;  %v4018_v17 = vadd.f32 %v4017_v53, %v4016_v31  ;;  %v4123_v13 = vsel %vm3156_vm0, %v4073_v38, 0.0 }
 0x770   :  { %v4119_v28 = vsel %vm3156_vm0, %v4071_v37, 0.0 }
 0x771   :  { %v4020_v1 = vadd.f32 %v4019_v34, %v4018_v17  ;;  %v4120_v41 = vadd.f32 %v4119_v28, %v4118_v22 }
 0x772   :  { %v10222_v63 = vpop.f32.mrb[124].mxu1 }
 0x773   :  { %v4122_v27 = vadd.f32 %v4121_v58, %v4120_v41  ;;  %v10224_v25 = vpop.f32.mrb[125].mxu1  ;;  %v4022_v60 = vadd.f32 %v4021_v8, %v4020_v1  ;;  %v4076_v4 = vmul.f32 %v10222_v63, %v10222_v63  ;;  %v4027_v23 = vsel %vm3156_vm0, %v10222_v63, 0.0 }
 0x774   :  { %v4023_v55 = vsel %vm3156_vm0, %v10224_v25, 0.0  ;;  %v4074_v48 = vmul.f32 %v10224_v25, %v10224_v25  ;;  %v10231_v49 = vpop.f32.mrb[126].mxu1 }
 0x775   :  { %v4024_v16 = vadd.f32 %v4023_v55, %v4022_v60  ;;  %v4124_v44 = vadd.f32 %v4123_v13, %v4122_v27  ;;  %v10233_v33 = vpop.f32.mrb[127].mxu1  ;;  %v4077_v47 = vmul.f32 %v10231_v49, %v10231_v49  ;;  %v4129_v20 = vsel %vm3156_vm0, %v4076_v4, 0.0 }
 0x776   :  { %v4125_v62 = vsel %vm3156_vm0, %v4074_v48, 0.0  ;;  %v4025_v39 = vsel %vm3156_vm0, %v10233_v33, 0.0  ;;  %v4075_v9 = vmul.f32 %v10233_v33, %v10233_v33  ;;  %v4029_v6 = vsel %vm3156_vm0, %v10231_v49, 0.0 }
 0x777   :  { %v4126_v51 = vadd.f32 %v4125_v62, %v4124_v44  ;;  %v4026_v12 = vadd.f32 %v4025_v39, %v4024_v16  ;;  %v4131_v15 = vsel %vm3156_vm0, %v4077_v47, 0.0 }
 0x778   :  { %v4127_v3 = vsel %vm3156_vm0, %v4075_v9, 0.0 }
 0x779   :  { %v4028_v10 = vadd.f32 %v4027_v23, %v4026_v12  ;;  %v4128_v18 = vadd.f32 %v4127_v3, %v4126_v51 }
 0x77a   :  { %v10250_v26 = vpop.f32.mrb[128].mxu1 }
 0x77b   :  { %v4130_v57 = vadd.f32 %v4129_v20, %v4128_v18  ;;  %v10252_v36 = vpop.f32.mrb[129].mxu1  ;;  %v4030_v50 = vadd.f32 %v4029_v6, %v4028_v10  ;;  %v4080_v22 = vmul.f32 %v10250_v26, %v10250_v26  ;;  %v4035_v41 = vsel %vm3156_vm0, %v10250_v26, 0.0 }
 0x77c   :  { %v4031_v31 = vsel %vm3156_vm0, %v10252_v36, 0.0  ;;  %v4078_v21 = vmul.f32 %v10252_v36, %v10252_v36  ;;  %v10259_v19 = vpop.f32.mrb[130].mxu1 }
 0x77d   :  { %v4032_v7 = vadd.f32 %v4031_v31, %v4030_v50  ;;  %v4132_v53 = vadd.f32 %v4131_v15, %v4130_v57  ;;  %v10261_v37 = vpop.f32.mrb[131].mxu1  ;;  %v4081_v58 = vmul.f32 %v10259_v19, %v10259_v19  ;;  %v4137_v13 = vsel %vm3156_vm0, %v4080_v22, 0.0 }
 0x77e   :  { %v4133_v17 = vsel %vm3156_vm0, %v4078_v21, 0.0  ;;  %v4033_v34 = vsel %vm3156_vm0, %v10261_v37, 0.0  ;;  %v4079_v38 = vmul.f32 %v10261_v37, %v10261_v37  ;;  %v4037_v55 = vsel %vm3156_vm0, %v10259_v19, 0.0 }
 0x77f   :  { %v4134_v28 = vadd.f32 %v4133_v17, %v4132_v53  ;;  %v4034_v1 = vadd.f32 %v4033_v34, %v4032_v7  ;;  %v4139_v62 = vsel %vm3156_vm0, %v4081_v58, 0.0 }
 0x780   :  { %v4135_v8 = vsel %vm3156_vm0, %v4079_v38, 0.0 }
 0x781   :  { %v4036_v27 = vadd.f32 %v4035_v41, %v4034_v1  ;;  %v4136_v60 = vadd.f32 %v4135_v8, %v4134_v28 }
 0x782   :  { %v10278_v48 = vpop.f32.mrb[132].mxu1 }
 0x783   :  { %v4138_v16 = vadd.f32 %v4137_v13, %v4136_v60  ;;  %v10280_v44 = vpop.f32.mrb[133].mxu1  ;;  %v4038_v4 = vadd.f32 %v4037_v55, %v4036_v27  ;;  %v4084_v3 = vmul.f32 %v10278_v48, %v10278_v48  ;;  %v4043_v50 = vsel %vm3156_vm0, %v10278_v48, 0.0 }
 0x784   :  { %v4039_v39 = vsel %vm3156_vm0, %v10280_v44, 0.0  ;;  %v4082_v9 = vmul.f32 %v10280_v44, %v10280_v44  ;;  %v10287_v51 = vpop.f32.mrb[134].mxu1 }
 0x785   :  { %v4040_v12 = vadd.f32 %v4039_v39, %v4038_v4  ;;  %v4140_v23 = vadd.f32 %v4139_v62, %v4138_v16  ;;  %v3970_v47 = vpop.f32.mrb[135].mxu1  ;;  %v4085_v15 = vmul.f32 %v10287_v51, %v10287_v51  ;;  %v4145_v53 = vsel %vm3156_vm0, %v4084_v3, 0.0 }
 0x786   :  { %v4141_v10 = vsel %vm3156_vm0, %v4082_v9, 0.0  ;;  %v4041_v18 = vsel %vm3156_vm0, %v3970_v47, 0.0  ;;  %v4083_v20 = vmul.f32 %v3970_v47, %v3970_v47  ;;  %v4045_v22 = vsel %vm3156_vm0, %v10287_v51, 0.0 }
 0x787   :  { %v4142_v6 = vadd.f32 %v4141_v10, %v4140_v23  ;;  %v4042_v57 = vadd.f32 %v4041_v18, %v4040_v12  ;;  %v4147_v38 = vsel %vm3156_vm0, %v4085_v15, 0.0 }
 0x788   :  { %v4143_v31 = vsel %vm3156_vm0, %v4083_v20, 0.0  ;;  %v3982_v20 = vld [vmem:[%s12417_s13] sm:$0x1] }
 0x789   :  { %v4044_v21 = vadd.f32 %v4043_v50, %v4042_v57  ;;  %v4144_v7 = vadd.f32 %v4143_v31, %v4142_v6  ;;  %v3983_v50 = vld [vmem:[%s12418_s14] sm:$0x1]  ;;  %v12896_v31 = vld [vmem:[#allocation38_spill] sm:$0xff] }
 0x78b   :  { %v4046_v17 = vadd.f32 %v4045_v22, %v4044_v21  ;;  %v4146_v34 = vadd.f32 %v4145_v53, %v4144_v7 }
 0x78d   :  { %v4047_v28 = vrot.slane %v4046_v17, 4  ;;  %v4148_v1 = vadd.f32 %v4147_v38, %v4146_v34 }
 0x78f   :  { %v4048_v41 = vadd.f32 %v4047_v28, %v4046_v17  ;;  %v4149_v58 = vrot.slane %v4148_v1, 4 }
 0x791   :  { %v4049_v8 = vrot.slane %v4048_v41, 2  ;;  %v4150_v27 = vadd.f32 %v4149_v58, %v4148_v1 }
 0x793   :  { %v4050_v60 = vadd.f32 %v4049_v8, %v4048_v41  ;;  %v4151_v13 = vrot.slane %v4150_v27, 2 }
 0x795   :  { %v4051_v55 = vrot.slane %v4050_v60, 1  ;;  %v4152_v16 = vadd.f32 %v4151_v13, %v4150_v27 }
 0x797   :  { %v4052_v4 = vadd.f32 %v4051_v55, %v4050_v60  ;;  %v4153_v62 = vrot.slane %v4152_v16, 1 }
 0x799   :  { %v4053_v39 = vmul.f32 0.00390625, %v4052_v4  ;;  %v4154_v9 = vadd.f32 %v4153_v62, %v4152_v16 }
 0x79b   :  { %v4155_v12 = vmul.f32 0.00390625, %v4154_v9  ;;  %v4156_v23 = vmul.f32 %v4053_v39, %v4053_v39 }
 0x79d   :  { %v4157_v3 = vsub.f32 %v4155_v12, %v4156_v23 }
 0x79f   :  { %v4158_v10 = vmax.f32 %v4157_v3, 0.0 }
 0x7a1   :  { %v4159_v18 = vadd.f32 1e-05, %v4158_v10 }
 0x7a3   :  { %7285 = vrsqrt.f32 %v4159_v18 }
 0x7ad   :  { %v7286_v6 = vpop.eup %7285 }
 0x7ae   :  { %v4161_v57 = vmul.f32 %v7286_v6, %v3982_v20 }
 0x7b0   :  { %v4162_v15 = vmul.f32 %v4161_v57, %v4053_v39  ;;  %v4168_v21 = vrot.slane %v4161_v57, %v12896_v31 }
 0x7b2   :  { %v4163_v7 = vsub.f32 %v3983_v50, %v4162_v15  ;;  %v4199_v53 = vmul.f32 %v4168_v21, %v3970_v47  ;;  %v4170_v22 = vmul.f32 %v4168_v21, %v10079_v56  ;;  %v4171_v17 = vmul.f32 %v4168_v21, %v10085_v0 }
 0x7b3   :  { %v4172_v34 = vmul.f32 %v10077_v5, %v4168_v21  ;;  %v4173_v38 = vmul.f32 %v10083_v42, %v4168_v21  ;;  %v4174_v28 = vmul.f32 %v4168_v21, %v10112_v24  ;;  %v4175_v1 = vmul.f32 %v4168_v21, %v10121_v45 }
 0x7b4   :  { %v4206_v41 = vrot.slane %v4163_v7, %v12896_v31  ;;  %v4176_v58 = vmul.f32 %v10110_v11, %v4168_v21  ;;  %v4177_v8 = vmul.f32 %v10119_v43, %v4168_v21  ;;  %v4178_v47 = vmul.f32 %v4168_v21, %v10140_v46 }
 0x7b5   :  { %v4179_v56 = vmul.f32 %v4168_v21, %v10149_v52  ;;  %v4180_v0 = vmul.f32 %v10138_v40, %v4168_v21  ;;  %v4181_v5 = vmul.f32 %v10147_v2, %v4168_v21  ;;  %v4182_v42 = vmul.f32 %v4168_v21, %v10168_v29 }
 0x7b6   :  { %v10323_v27 = vadd.f32 %v4206_v41, %v4199_v53  ;;  %v4183_v24 = vmul.f32 %v4168_v21, %v10177_v35  ;;  %v4184_v45 = vmul.f32 %v10166_v14, %v4168_v21  ;;  %v4185_v11 = vmul.f32 %v10175_v30, %v4168_v21 }
 0x7b7   :  { %v4186_v43 = vmul.f32 %v4168_v21, %v10196_v61  ;;  %v4187_v46 = vmul.f32 %v4168_v21, %v10205_v59  ;;  %v4188_v52 = vmul.f32 %v10194_v32, %v4168_v21  ;;  %v4189_v40 = vmul.f32 %v10203_v54, %v4168_v21 }
 0x7b8   :  { %12897 = vst [vmem:[#allocation15_spill] sm:$0xff] %v10323_v27  ;;  %v4190_v2 = vmul.f32 %v4168_v21, %v10224_v25  ;;  %v4191_v29 = vmul.f32 %v4168_v21, %v10233_v33  ;;  %v4192_v60 = vmul.f32 %v10222_v63, %v4168_v21  ;;  %v4193_v35 = vmul.f32 %v10231_v49, %v4168_v21 }
 0x7b9   :  { %v4194_v14 = vmul.f32 %v4168_v21, %v10252_v36  ;;  %v4195_v30 = vmul.f32 %v4168_v21, %v10261_v37  ;;  %v4196_v61 = vmul.f32 %v10250_v26, %v4168_v21  ;;  %v10340_v59 = vmul.f32 0.01, %v10323_v27 }
 0x7ba   :  { %v4197_v32 = vmul.f32 %v10259_v19, %v4168_v21  ;;  %v4198_v54 = vmul.f32 %v4168_v21, %v10280_v44  ;;  %v4200_v25 = vmul.f32 %v10278_v48, %v4168_v21  ;;  %v4201_v33 = vmul.f32 %v10287_v51, %v4168_v21 }
 0x7bb   :  { %12898 = vst [vmem:[#allocation55_spill] sm:$0xff] %v10340_v59  ;;  %v10346_v63 = vadd.f32 %v4206_v41, %v4170_v22  ;;  %v10348_v49 = vadd.f32 %v4206_v41, %v4171_v17  ;;  %v10350_v36 = vadd.f32 %v4206_v41, %v4172_v34  ;;  %v10352_v37 = vadd.f32 %v4206_v41, %v4173_v38 }
 0x7bc   :  { %v10354_v26 = vadd.f32 %v4206_v41, %v4174_v28  ;;  %v10356_v13 = vadd.f32 %v4206_v41, %v4175_v1  ;;  %v10358_v55 = vadd.f32 %v4206_v41, %v4176_v58  ;;  %v10360_v19 = vadd.f32 %v4206_v41, %v4177_v8 }
 0x7bd   :  { %v10362_v44 = vadd.f32 %v4206_v41, %v4178_v47  ;;  %v10364_v48 = vadd.f32 %v4206_v41, %v4179_v56  ;;  %v10366_v51 = vadd.f32 %v4206_v41, %v4180_v0  ;;  %v10368_v16 = vadd.f32 %v4206_v41, %v4181_v5 }
 0x7be   :  { %v10370_v4 = vadd.f32 %v4206_v41, %v4182_v42  ;;  %v10372_v62 = vadd.f32 %v4206_v41, %v4183_v24  ;;  %v10374_v39 = vadd.f32 %v4206_v41, %v4184_v45  ;;  %v10376_v9 = vadd.f32 %v4206_v41, %v4185_v11 }
 0x7bf   :  { %v10378_v12 = vadd.f32 %v4206_v41, %v4186_v43  ;;  %v10380_v23 = vadd.f32 %v4206_v41, %v4187_v46  ;;  %v10382_v3 = vadd.f32 %v4206_v41, %v4188_v52  ;;  %v10384_v10 = vadd.f32 %v4206_v41, %v4189_v40 }
 0x7c0   :  { %v10386_v18 = vadd.f32 %v4206_v41, %v4190_v2  ;;  %v10388_v20 = vadd.f32 %v4206_v41, %v4191_v29  ;;  %v10390_v6 = vadd.f32 %v4206_v41, %v4192_v60  ;;  %v10392_v57 = vadd.f32 %v4206_v41, %v4193_v35 }
 0x7c1   :  { %v10394_v50 = vadd.f32 %v4206_v41, %v4194_v14  ;;  %v10396_v15 = vadd.f32 %v4206_v41, %v4195_v30  ;;  %v10398_v21 = vadd.f32 %v4206_v41, %v4196_v61  ;;  %v10400_v7 = vadd.f32 %v4206_v41, %v4197_v32 }
 0x7c2   :  { %v10402_v53 = vadd.f32 %v4206_v41, %v4198_v54  ;;  %v10404_v22 = vadd.f32 %v4206_v41, %v4200_v25  ;;  %v10406_v17 = vadd.f32 %v4206_v41, %v4201_v33  ;;  %v10409_v34 = vmul.f32 0.01, %v10346_v63 }
 0x7c3   :  { %v10412_v38 = vmul.f32 0.01, %v10348_v49  ;;  %v4242_v28 = vmul.f32 0.01, %v10350_v36  ;;  %v4243_v58 = vmul.f32 0.01, %v10352_v37 }
 0x7c4   :  { %v4244_v8 = vmul.f32 0.01, %v10354_v26  ;;  %v4245_v47 = vmul.f32 0.01, %v10356_v13  ;;  %v4246_v41 = vmul.f32 0.01, %v10358_v55  ;;  %v4272_v5 = vmax.f32 %v10346_v63, %v10409_v34 }
 0x7c5   :  { %v4247_v56 = vmul.f32 0.01, %v10360_v19  ;;  %v4248_v0 = vmul.f32 0.01, %v10362_v44  ;;  %v4249_v42 = vmul.f32 0.01, %v10364_v48  ;;  %v4273_v11 = vmax.f32 %v10348_v49, %v10412_v38 }
 0x7c6   :  { %v4250_v24 = vmul.f32 0.01, %v10366_v51  ;;  %v4251_v45 = vmul.f32 0.01, %v10368_v16  ;;  %v4252_v43 = vmul.f32 0.01, %v10370_v4  ;;  %v4274_v40 = vmax.f32 %v10350_v36, %v4242_v28 }
 0x7c7   :  { %v4253_v46 = vmul.f32 0.01, %v10372_v62  ;;  %v4254_v52 = vmul.f32 0.01, %v10374_v39  ;;  %v4255_v2 = vmul.f32 0.01, %v10376_v9  ;;  %v4275_v35 = vmax.f32 %v10352_v37, %v4243_v58 }
 0x7c8   :  { %v4256_v29 = vmul.f32 0.01, %v10378_v12  ;;  %v4257_v60 = vmul.f32 0.01, %v10380_v23  ;;  %v4258_v14 = vmul.f32 0.01, %v10382_v3  ;;  %v4276_v32 = vmax.f32 %v10354_v26, %v4244_v8 }
 0x7c9   :  { %v4259_v30 = vmul.f32 0.01, %v10384_v10  ;;  %v4260_v61 = vmul.f32 0.01, %v10386_v18  ;;  %v4261_v54 = vmul.f32 0.01, %v10388_v20  ;;  %v4277_v63 = vmax.f32 %v10356_v13, %v4245_v47 }
 0x7ca   :  { %v4262_v25 = vmul.f32 0.01, %v10390_v6  ;;  %v4263_v33 = vmul.f32 0.01, %v10392_v57  ;;  %v4264_v49 = vmul.f32 0.01, %v10394_v50  ;;  %v4278_v34 = vmax.f32 %v10358_v55, %v4246_v41 }
 0x7cb   :  { %v4265_v36 = vmul.f32 0.01, %v10396_v15  ;;  %v4266_v37 = vmul.f32 0.01, %v10398_v21  ;;  %v4267_v38 = vmul.f32 0.01, %v10400_v7  ;;  %v4279_v58 = vmax.f32 %v10360_v19, %v4247_v56 }
 0x7cc   :  { %v4268_v26 = vmul.f32 0.01, %v10402_v53  ;;  %v4270_v28 = vmul.f32 0.01, %v10404_v22  ;;  %v4271_v8 = vmul.f32 0.01, %v10406_v17  ;;  %v4280_v13 = vmax.f32 %v10362_v44, %v4248_v0 }
 0x7cd   :  { %v4281_v47 = vmax.f32 %v10364_v48, %v4249_v42  ;;  %v4282_v1 = vmax.f32 %v10366_v51, %v4250_v24  ;;  %v4283_v31 = vmax.f32 %v10368_v16, %v4251_v45  ;;  %v4284_v55 = vmax.f32 %v10370_v4, %v4252_v43 }
 0x7ce   :  { %v4285_v41 = vmax.f32 %v10372_v62, %v4253_v46  ;;  %v4286_v59 = vmax.f32 %v10374_v39, %v4254_v52  ;;  %v4287_v27 = vmax.f32 %v10376_v9, %v4255_v2  ;;  %v4288_v19 = vmax.f32 %v10378_v12, %v4256_v29  ;;  %v12899_v46 = vld [vmem:[#allocation15_spill] sm:$0xff]  ;;  %v7259_v2 = vld [vmem:[%s12422_s18 + $0x20] ss:$8 sps:$4 sm:$0xff]  }
 0x7cf   :  { %v4289_v56 = vmax.f32 %v10380_v23, %v4257_v60  ;;  %v4290_v44 = vmax.f32 %v10382_v3, %v4258_v14  ;;  %v4291_v48 = vmax.f32 %v10384_v10, %v4259_v30  ;;  %v4292_v51 = vmax.f32 %v10386_v18, %v4260_v61  ;;  %v7264_v29 = vld [vmem:[%s12422_s18 + $0x34] ss:$8 sps:$4 sm:$0xff]   ;;  %v7262_v60 = vld [vmem:[%s12422_s18 + $0x30] ss:$8 sps:$4 sm:$0xff]   ;;  %v7265_v14 = vld [vmem:[%s12422_s18 + $0x40] ss:$8 sps:$4 sm:$0xff]  }
 0x7d0   :  { %v4293_v16 = vmax.f32 %v10388_v20, %v4261_v54  ;;  %v4294_v4 = vmax.f32 %v10390_v6, %v4262_v25  ;;  %v4295_v62 = vmax.f32 %v10392_v57, %v4263_v33  ;;  %v4296_v39 = vmax.f32 %v10394_v50, %v4264_v49  ;;  %v7270_v30 = vld [vmem:[%s12422_s18 + $0x54] ss:$8 sps:$4 sm:$0xff]   ;;  %v7268_v61 = vld [vmem:[%s12422_s18 + $0x50] ss:$8 sps:$4 sm:$0xff]   ;;  %v7271_v54 = vld [vmem:[%s12422_s18 + $0x60] ss:$8 sps:$4 sm:$0xff]  }
 0x7d1   :  { %v4297_v9 = vmax.f32 %v10396_v15, %v4265_v36  ;;  %v4298_v12 = vmax.f32 %v10398_v21, %v4266_v37  ;;  %v4299_v23 = vmax.f32 %v10400_v7, %v4267_v38  ;;  %v4300_v3 = vmax.f32 %v10402_v53, %v4268_v26  ;;  %v7274_v49 = vld [vmem:[%s12422_s18 + $0x70] ss:$8 sps:$4 sm:$0xff]   ;;  %v7276_v36 = vld [vmem:[%s12422_s18 + $0x74] ss:$8 sps:$4 sm:$0xff]  }
 0x7d2   :  { %v4302_v10 = vmax.f32 %v10404_v22, %v4270_v28  ;;  %v4303_v18 = vmax.f32 %v10406_v17, %v4271_v8  ;;  %v4313_v0 = vpack.c.bf16 %v4275_v35, %v4274_v40  ;;  %v4312_v20 = vpack.c.bf16 %v4273_v11, %v4272_v5  ;;  %v12900_v17 = vld [vmem:[#allocation55_spill] sm:$0xff]  ;;  %v7261_v40 = vld [vmem:[%s12422_s18 + $0x24] ss:$8 sps:$4 sm:$0xff]  }
 0x7d3   :  { %v4314_v42 = vpack.c.bf16 %v4277_v63, %v4276_v32  ;;  %v4315_v6 = vpack.c.bf16 %v4279_v58, %v4278_v34  ;;  %v4316_v24 = vpack.c.bf16 %v4281_v47, %v4280_v13  ;;  %v4317_v57 = vpack.c.bf16 %v4283_v31, %v4282_v1  ;;  %v7253_v31 = vld [vmem:[%s12422_s18] ss:$8 sps:$4 sm:$0xff]   ;;  %v7256_v1 = vld [vmem:[%s12422_s18 + $0x10] ss:$8 sps:$4 sm:$0xff]   ;;  %v7267_v35 = vld [vmem:[%s12422_s18 + $0x44] ss:$8 sps:$4 sm:$0xff]  }
 0x7d4   :  { %v4318_v45 = vpack.c.bf16 %v4285_v41, %v4284_v55  ;;  %v4319_v50 = vpack.c.bf16 %v4287_v27, %v4286_v59  ;;  %6904 = vmatprep.mubr.msk.bf16.mxu0 %vm3156_vm0, %v4312_v20  ;;  %v4320_v15 = vpack.c.bf16 %v4289_v56, %v4288_v19  ;;  %v4321_v21 = vpack.c.bf16 %v4291_v48, %v4290_v44  ;;  %v7255_v27 = vld [vmem:[%s12422_s18 + $0x4] ss:$8 sps:$4 sm:$0xff]   ;;  %v7258_v59 = vld [vmem:[%s12422_s18 + $0x14] ss:$8 sps:$4 sm:$0xff]  }
 0x7d5   :  { %v4322_v43 = vpack.c.bf16 %v4293_v16, %v4292_v51  ;;  %v4323_v7 = vpack.c.bf16 %v4295_v62, %v4294_v4  ;;  %6905 = vmatmul.mubr.msk.bf16.vlgmr.msra.gmra.mrb[88].mxu0 %vm3156_vm0, %v4313_v0  ;;  %v4324_v53 = vpack.c.bf16 %v4297_v9, %v4296_v39  ;;  %v4325_v22 = vpack.c.bf16 %v4299_v23, %v4298_v12  ;;  %v7273_v32 = vld [vmem:[%s12422_s18 + $0x64] ss:$8 sps:$4 sm:$0xff]  }
 0x7d6   :  { %v12901_v52 = vmax.f32 %v12899_v46, %v12900_v17  ;;  %v4327_v11 = vpack.c.bf16 %v4303_v18, %v4302_v10  ;;  %6908 = vmatprep.mubr.msk.bf16.mxu0 %vm3156_vm0, %v4314_v42  ;;  %4931 = vmatprep.subr.bf16.mxu1 %v7255_v27  ;;  %v12514_v34 = vmov 0  }
 0x7d7   :  { %4932 = vmatpush1.bf16.msra.mxu1 %v7253_v31  ;;  %4963 = vmatprep.mubr.bf16.mxu1 %v12514_v34 }
 0x7d8   :  { %v4326_v5 = vpack.c.bf16 %v12901_v52, %v4300_v3  ;;  %4933 = vmatprep.subr.bf16.mxu1 %v7258_v59 }
 0x7db   :  { %4934 = vmatpush1.bf16.msra.mxu1 %v7256_v1 }
 0x7dc   :  { %4935 = vmatprep.subr.bf16.mxu1 %v7261_v40 }
 0x7dd   :  { %6909 = vmatmul.mubr.msk.bf16.gmra.mrb[92].mxu0 %vm3156_vm0, %v4315_v6 }
 0x7de   :  { %6912 = vmatprep.mubr.msk.bf16.mxu0 %vm3156_vm0, %v4316_v24 }
 0x7df   :  { %4936 = vmatpush1.bf16.msra.mxu1 %v7259_v2 }
 0x7e0   :  { %4937 = vmatprep.subr.bf16.mxu1 %v7264_v29 }
 0x7e3   :  { %4938 = vmatpush1.bf16.msra.mxu1 %v7262_v60 }
 0x7e4   :  { %4939 = vmatprep.subr.bf16.mxu1 %v7267_v35 }
 0x7e5   :  { %6913 = vmatmul.mubr.msk.bf16.gmra.mrb[96].mxu0 %vm3156_vm0, %v4317_v57 }
 0x7e6   :  { %6916 = vmatprep.mubr.msk.bf16.mxu0 %vm3156_vm0, %v4318_v45 }
 0x7e7   :  { %4940 = vmatpush1.bf16.msra.mxu1 %v7265_v14 }
 0x7e8   :  { %4941 = vmatprep.subr.bf16.mxu1 %v7270_v30 }
 0x7eb   :  { %4942 = vmatpush1.bf16.msra.mxu1 %v7268_v61 }
 0x7ec   :  { %4943 = vmatprep.subr.bf16.mxu1 %v7273_v32 }
 0x7ed   :  { %6917 = vmatmul.mubr.msk.bf16.gmra.mrb[100].mxu0 %vm3156_vm0, %v4319_v50 }
 0x7ee   :  { %6920 = vmatprep.mubr.msk.bf16.mxu0 %vm3156_vm0, %v4320_v15 }
 0x7ef   :  { %4944 = vmatpush1.bf16.msra.mxu1 %v7271_v54 }
 0x7f0   :  { %4945 = vmatprep.subr.bf16.mxu1 %v7276_v36 }
 0x7f3   :  { %4946 = vmatpush1.bf16.msra.mxu1 %v7274_v49 }
 0x7f5   :  { %6921 = vmatmul.mubr.msk.bf16.gmra.mrb[104].mxu0 %vm3156_vm0, %v4321_v21 }
 0x7f6   :  { %6924 = vmatprep.mubr.msk.bf16.mxu0 %vm3156_vm0, %v4322_v43 }
 0x7fd   :  { %6925 = vmatmul.mubr.msk.bf16.gmra.mrb[108].mxu0 %vm3156_vm0, %v4323_v7 }
 0x7fe   :  { %6928 = vmatprep.mubr.msk.bf16.mxu0 %vm3156_vm0, %v4324_v53 }
 0x805   :  { %6929 = vmatmul.mubr.msk.bf16.gmra.mrb[112].mxu0 %vm3156_vm0, %v4325_v22 }
 0x806   :  { %6932 = vmatprep.mubr.msk.bf16.mxu0 %vm3156_vm0, %v4326_v5 }
 0x80d   :  { %6933 = vmatmul.mubr.msk.bf16.gmra.mrb[116].mxu0 %vm3156_vm0, %v4327_v11 }
 0x8a8   :  { %v10539_v25 = vpop.f32.mrb[88].mxu0 }
 0x8a9   :  { %v10541_v33 = vpop.f32.mrb[89].mxu0  ;;  %v4603_v58 = vmul.f32 %v10539_v25, %v10539_v25 }
 0x8aa   :  { %v10543_v63 = vpop.f32.mrb[90].mxu0  ;;  %v4601_v38 = vmul.f32 %v10541_v33, %v10541_v33 }
 0x8ab   :  { %v10551_v37 = vpop.f32.mrb[91].mxu0  ;;  %v4604_v47 = vmul.f32 %v10543_v63, %v10543_v63 }
 0x8ac   :  { %v4563_v26 = vadd.f32 %v10551_v37, %v10541_v33  ;;  %v4602_v28 = vmul.f32 %v10551_v37, %v10551_v37 }
 0x8ae   :  { %v4564_v8 = vadd.f32 %v10539_v25, %v4563_v26  ;;  %v4633_v13 = vadd.f32 %v4602_v28, %v4601_v38 }
 0x8b0   :  { %v4634_v55 = vadd.f32 %v4633_v13, %v4603_v58  ;;  %v10565_v41 = vpop.f32.mrb[92].mxu0  ;;  %v4565_v19 = vadd.f32 %v10543_v63, %v4564_v8 }
 0x8b1   :  { %v10568_v56 = vpop.f32.mrb[93].mxu0  ;;  %v4607_v12 = vmul.f32 %v10565_v41, %v10565_v41 }
 0x8b2   :  { %v4566_v44 = vadd.f32 %v4565_v19, %v10568_v56  ;;  %v4605_v48 = vmul.f32 %v10568_v56, %v10568_v56  ;;  %v4635_v51 = vadd.f32 %v4634_v55, %v4604_v47  ;;  %v10573_v16 = vpop.f32.mrb[94].mxu0 }
 0x8b3   :  { %v10575_v4 = vpop.f32.mrb[95].mxu0  ;;  %v4608_v10 = vmul.f32 %v10573_v16, %v10573_v16 }
 0x8b4   :  { %v4636_v62 = vadd.f32 %v4635_v51, %v4605_v48  ;;  %v4567_v39 = vadd.f32 %v4566_v44, %v10575_v4  ;;  %v4606_v9 = vmul.f32 %v10575_v4, %v10575_v4 }
 0x8b6   :  { %v4568_v23 = vadd.f32 %v10565_v41, %v4567_v39  ;;  %v4637_v3 = vadd.f32 %v4636_v62, %v4606_v9 }
 0x8b8   :  { %v4638_v18 = vadd.f32 %v4637_v3, %v4607_v12  ;;  %v10585_v0 = vpop.f32.mrb[96].mxu0  ;;  %v4569_v20 = vadd.f32 %v10573_v16, %v4568_v23 }
 0x8b9   :  { %v10588_v42 = vpop.f32.mrb[97].mxu0  ;;  %v4611_v7 = vmul.f32 %v10585_v0, %v10585_v0 }
 0x8ba   :  { %v4570_v6 = vadd.f32 %v4569_v20, %v10588_v42  ;;  %v4609_v24 = vmul.f32 %v10588_v42, %v10588_v42  ;;  %v4639_v57 = vadd.f32 %v4638_v18, %v4608_v10  ;;  %v10593_v45 = vpop.f32.mrb[98].mxu0 }
 0x8bb   :  { %v10595_v50 = vpop.f32.mrb[99].mxu0  ;;  %v4612_v46 = vmul.f32 %v10593_v45, %v10593_v45 }
 0x8bc   :  { %v4640_v15 = vadd.f32 %v4639_v57, %v4609_v24  ;;  %v4571_v21 = vadd.f32 %v4570_v6, %v10595_v50  ;;  %v4610_v43 = vmul.f32 %v10595_v50, %v10595_v50 }
 0x8be   :  { %v4572_v53 = vadd.f32 %v10585_v0, %v4571_v21  ;;  %v4641_v22 = vadd.f32 %v4640_v15, %v4610_v43 }
 0x8c0   :  { %v4642_v17 = vadd.f32 %v4641_v22, %v4611_v7  ;;  %v10605_v52 = vpop.f32.mrb[100].mxu0  ;;  %v4573_v5 = vadd.f32 %v10593_v45, %v4572_v53 }
 0x8c1   :  { %v10608_v11 = vpop.f32.mrb[101].mxu0  ;;  %v4615_v35 = vmul.f32 %v10605_v52, %v10605_v52 }
 0x8c2   :  { %v4574_v31 = vadd.f32 %v4573_v5, %v10608_v11  ;;  %v4613_v27 = vmul.f32 %v10608_v11, %v10608_v11  ;;  %v4643_v59 = vadd.f32 %v4642_v17, %v4612_v46  ;;  %v10613_v1 = vpop.f32.mrb[102].mxu0 }
 0x8c3   :  { %v10615_v40 = vpop.f32.mrb[103].mxu0  ;;  %v4616_v61 = vmul.f32 %v10613_v1, %v10613_v1 }
 0x8c4   :  { %v4644_v2 = vadd.f32 %v4643_v59, %v4613_v27  ;;  %v4575_v29 = vadd.f32 %v4574_v31, %v10615_v40  ;;  %v4614_v60 = vmul.f32 %v10615_v40, %v10615_v40 }
 0x8c6   :  { %v4576_v14 = vadd.f32 %v10605_v52, %v4575_v29  ;;  %v4645_v30 = vadd.f32 %v4644_v2, %v4614_v60 }
 0x8c8   :  { %v4646_v32 = vadd.f32 %v4645_v30, %v4615_v35  ;;  %v10625_v54 = vpop.f32.mrb[104].mxu0  ;;  %v4577_v49 = vadd.f32 %v10613_v1, %v4576_v14 }
 0x8c9   :  { %v10628_v36 = vpop.f32.mrb[105].mxu0  ;;  %v4619_v19 = vmul.f32 %v10625_v54, %v10625_v54 }
 0x8ca   :  { %v4578_v38 = vadd.f32 %v4577_v49, %v10628_v36  ;;  %v4617_v26 = vmul.f32 %v10628_v36, %v10628_v36  ;;  %v4647_v28 = vadd.f32 %v4646_v32, %v4616_v61  ;;  %v10633_v58 = vpop.f32.mrb[106].mxu0 }
 0x8cb   :  { %v10635_v8 = vpop.f32.mrb[107].mxu0  ;;  %v4620_v51 = vmul.f32 %v10633_v58, %v10633_v58 }
 0x8cc   :  { %v4648_v13 = vadd.f32 %v4647_v28, %v4617_v26  ;;  %v4579_v47 = vadd.f32 %v4578_v38, %v10635_v8  ;;  %v4618_v55 = vmul.f32 %v10635_v8, %v10635_v8 }
 0x8ce   :  { %v4580_v44 = vadd.f32 %v10625_v54, %v4579_v47  ;;  %v4649_v48 = vadd.f32 %v4648_v13, %v4618_v55 }
 0x8d0   :  { %v4650_v62 = vadd.f32 %v4649_v48, %v4619_v19  ;;  %v10645_v39 = vpop.f32.mrb[108].mxu0  ;;  %v4581_v9 = vadd.f32 %v10633_v58, %v4580_v44 }
 0x8d1   :  { %v10648_v12 = vpop.f32.mrb[109].mxu0  ;;  %v4623_v15 = vmul.f32 %v10645_v39, %v10645_v39 }
 0x8d2   :  { %v4582_v23 = vadd.f32 %v4581_v9, %v10648_v12  ;;  %v4621_v3 = vmul.f32 %v10648_v12, %v10648_v12  ;;  %v4651_v10 = vadd.f32 %v4650_v62, %v4620_v51  ;;  %v10653_v18 = vpop.f32.mrb[110].mxu0 }
 0x8d3   :  { %v10655_v20 = vpop.f32.mrb[111].mxu0  ;;  %v4624_v7 = vmul.f32 %v10653_v18, %v10653_v18 }
 0x8d4   :  { %v4652_v6 = vadd.f32 %v4651_v10, %v4621_v3  ;;  %v4583_v24 = vadd.f32 %v4582_v23, %v10655_v20  ;;  %v4622_v57 = vmul.f32 %v10655_v20, %v10655_v20 }
 0x8d6   :  { %v4584_v21 = vadd.f32 %v10645_v39, %v4583_v24  ;;  %v4653_v43 = vadd.f32 %v4652_v6, %v4622_v57 }
 0x8d8   :  { %v4654_v53 = vadd.f32 %v4653_v43, %v4623_v15  ;;  %v10665_v22 = vpop.f32.mrb[112].mxu0  ;;  %v4585_v46 = vadd.f32 %v10653_v18, %v4584_v21 }
 0x8d9   :  { %v10668_v17 = vpop.f32.mrb[113].mxu0  ;;  %v4627_v14 = vmul.f32 %v10665_v22, %v10665_v22 }
 0x8da   :  { %v4586_v5 = vadd.f32 %v4585_v46, %v10668_v17  ;;  %v4625_v31 = vmul.f32 %v10668_v17, %v10668_v17  ;;  %v4655_v27 = vadd.f32 %v4654_v53, %v4624_v7  ;;  %v10673_v59 = vpop.f32.mrb[114].mxu0 }
 0x8db   :  { %v10675_v2 = vpop.f32.mrb[115].mxu0  ;;  %v4628_v32 = vmul.f32 %v10673_v59, %v10673_v59 }
 0x8dc   :  { %v4656_v29 = vadd.f32 %v4655_v27, %v4625_v31  ;;  %v4587_v60 = vadd.f32 %v4586_v5, %v10675_v2  ;;  %v4626_v35 = vmul.f32 %v10675_v2, %v10675_v2 }
 0x8de   :  { %v4588_v30 = vadd.f32 %v10665_v22, %v4587_v60  ;;  %v4657_v61 = vadd.f32 %v4656_v29, %v4626_v35 }
 0x8e0   :  { %v4658_v49 = vadd.f32 %v4657_v61, %v4627_v14  ;;  %v10685_v38 = vpop.f32.mrb[116].mxu0  ;;  %v4589_v26 = vadd.f32 %v10673_v59, %v4588_v30 }
 0x8e1   :  { %v10688_v28 = vpop.f32.mrb[117].mxu0  ;;  %v4631_v9 = vmul.f32 %v10685_v38, %v10685_v38 }
 0x8e2   :  { %v4590_v13 = vadd.f32 %v4589_v26, %v10688_v28  ;;  %v4629_v47 = vmul.f32 %v10688_v28, %v10688_v28  ;;  %v4659_v55 = vadd.f32 %v4658_v49, %v4628_v32  ;;  %v10693_v19 = vpop.f32.mrb[118].mxu0 }
 0x8e3   :  { %v4549_v44 = vpop.f32.mrb[119].mxu0  ;;  %v4632_v10 = vmul.f32 %v10693_v19, %v10693_v19 }
 0x8e4   :  { %v4660_v48 = vadd.f32 %v4659_v55, %v4629_v47  ;;  %v4591_v51 = vadd.f32 %v4590_v13, %v4549_v44  ;;  %v4630_v62 = vmul.f32 %v4549_v44, %v4549_v44  ;;  %v4561_v13 = vld [vmem:[%s12420_s16] sm:$0x1] }
 0x8e6   :  { %v4592_v23 = vadd.f32 %v10685_v38, %v4591_v51  ;;  %v4661_v3 = vadd.f32 %v4660_v48, %v4630_v62  ;;  %v4562_v48 = vld [vmem:[%s12421_s17] sm:$0x1]  ;;  %v12902_v62 = vld [vmem:[#allocation38_spill] sm:$0xff] }
 0x8e8   :  { %v4593_v6 = vadd.f32 %v10693_v19, %v4592_v23  ;;  %v4662_v24 = vadd.f32 %v4661_v3, %v4631_v9 }
 0x8ea   :  { %v4594_v57 = vrot.slane %v4593_v6, 4  ;;  %v4663_v15 = vadd.f32 %v4662_v24, %v4632_v10 }
 0x8ec   :  { %v4595_v21 = vadd.f32 %v4594_v57, %v4593_v6  ;;  %v4664_v43 = vrot.slane %v4663_v15, 4 }
 0x8ee   :  { %v4596_v7 = vrot.slane %v4595_v21, 2  ;;  %v4665_v53 = vadd.f32 %v4664_v43, %v4663_v15 }
 0x8f0   :  { %v4597_v46 = vadd.f32 %v4596_v7, %v4595_v21  ;;  %v4666_v5 = vrot.slane %v4665_v53, 2 }
 0x8f2   :  { %v4598_v31 = vrot.slane %v4597_v46, 1  ;;  %v4667_v27 = vadd.f32 %v4666_v5, %v4665_v53 }
 0x8f4   :  { %v4599_v29 = vadd.f32 %v4598_v31, %v4597_v46  ;;  %v4668_v60 = vrot.slane %v4667_v27, 1 }
 0x8f6   :  { %v4600_v35 = vmul.f32 0.00390625, %v4599_v29  ;;  %v4669_v14 = vadd.f32 %v4668_v60, %v4667_v27 }
 0x8f8   :  { %v4670_v30 = vmul.f32 0.00390625, %v4669_v14  ;;  %v4671_v61 = vmul.f32 %v4600_v35, %v4600_v35 }
 0x8fa   :  { %v4672_v32 = vsub.f32 %v4670_v30, %v4671_v61 }
 0x8fc   :  { %v4673_v49 = vmax.f32 %v4672_v32, 0.0 }
 0x8fe   :  { %v4674_v26 = vadd.f32 1e-05, %v4673_v49 }
 0x900   :  { %7287 = vrsqrt.f32 %v4674_v26 }
 0x90a   :  { %v7288_v47 = vpop.eup %7287 }
 0x90b   :  { %v4676_v55 = vmul.f32 %v7288_v47, %v4561_v13 }
 0x90d   :  { %v4677_v51 = vmul.f32 %v4676_v55, %v4600_v35  ;;  %v4683_v9 = vrot.slane %v4676_v55, %v12902_v62 }
 0x90f   :  { %v4678_v23 = vsub.f32 %v4562_v48, %v4677_v51  ;;  %v4714_v3 = vmul.f32 %v4683_v9, %v4549_v44  ;;  %v4685_v10 = vmul.f32 %v4683_v9, %v10541_v33  ;;  %v4686_v6 = vmul.f32 %v4683_v9, %v10551_v37 }
 0x910   :  { %v4687_v24 = vmul.f32 %v10539_v25, %v4683_v9  ;;  %v4688_v57 = vmul.f32 %v10543_v63, %v4683_v9  ;;  %v4689_v15 = vmul.f32 %v4683_v9, %v10568_v56  ;;  %v4690_v21 = vmul.f32 %v4683_v9, %v10575_v4 }
 0x911   :  { %v4721_v43 = vrot.slane %v4678_v23, %v12902_v62  ;;  %v4691_v7 = vmul.f32 %v10565_v41, %v4683_v9  ;;  %v4692_v53 = vmul.f32 %v10573_v16, %v4683_v9  ;;  %v4693_v44 = vmul.f32 %v4683_v9, %v10588_v42 }
 0x912   :  { %v4694_v33 = vmul.f32 %v4683_v9, %v10595_v50  ;;  %v4695_v37 = vmul.f32 %v10585_v0, %v4683_v9  ;;  %v4696_v25 = vmul.f32 %v10593_v45, %v4683_v9  ;;  %v4697_v63 = vmul.f32 %v4683_v9, %v10608_v11 }
 0x913   :  { %v10722_v46 = vadd.f32 %v4721_v43, %v4714_v3  ;;  %v4698_v56 = vmul.f32 %v4683_v9, %v10615_v40  ;;  %v4699_v4 = vmul.f32 %v10605_v52, %v4683_v9  ;;  %v4700_v41 = vmul.f32 %v10613_v1, %v4683_v9 }
 0x914   :  { %v4701_v16 = vmul.f32 %v4683_v9, %v10628_v36  ;;  %v4702_v42 = vmul.f32 %v4683_v9, %v10635_v8  ;;  %v4703_v50 = vmul.f32 %v10625_v54, %v4683_v9  ;;  %v4704_v0 = vmul.f32 %v10633_v58, %v4683_v9 }
 0x915   :  { %12903 = vst [vmem:[#allocation16_spill] sm:$0xff] %v10722_v46  ;;  %v4705_v45 = vmul.f32 %v4683_v9, %v10648_v12  ;;  %v4706_v11 = vmul.f32 %v4683_v9, %v10655_v20  ;;  %v4707_v5 = vmul.f32 %v10645_v39, %v4683_v9  ;;  %v4708_v40 = vmul.f32 %v10653_v18, %v4683_v9 }
 0x916   :  { %v4709_v52 = vmul.f32 %v4683_v9, %v10668_v17  ;;  %v4710_v1 = vmul.f32 %v4683_v9, %v10675_v2  ;;  %v4711_v36 = vmul.f32 %v10665_v22, %v4683_v9  ;;  %v10739_v8 = vmul.f32 0.01, %v10722_v46 }
 0x917   :  { %v4712_v54 = vmul.f32 %v10673_v59, %v4683_v9  ;;  %v4713_v58 = vmul.f32 %v4683_v9, %v10688_v28  ;;  %v4715_v12 = vmul.f32 %v10685_v38, %v4683_v9  ;;  %v4716_v20 = vmul.f32 %v10693_v19, %v4683_v9 }
 0x918   :  { %12904 = vst [vmem:[#allocation56_spill] sm:$0xff] %v10739_v8  ;;  %v4723_v39 = vadd.f32 %v4721_v43, %v4685_v10  ;;  %v4724_v31 = vadd.f32 %v4721_v43, %v4686_v6  ;;  %v10745_v18 = vadd.f32 %v4721_v43, %v4687_v24  ;;  %v10747_v17 = vadd.f32 %v4721_v43, %v4688_v57 }
 0x919   :  { %v10749_v2 = vadd.f32 %v4721_v43, %v4689_v15  ;;  %v10751_v22 = vadd.f32 %v4721_v43, %v4690_v21  ;;  %v10753_v27 = vadd.f32 %v4721_v43, %v4691_v7  ;;  %v10755_v29 = vadd.f32 %v4721_v43, %v4692_v53 }
 0x91a   :  { %v10757_v59 = vadd.f32 %v4721_v43, %v4693_v44  ;;  %v10759_v28 = vadd.f32 %v4721_v43, %v4694_v33  ;;  %v10761_v38 = vadd.f32 %v4721_v43, %v4695_v37  ;;  %v10763_v19 = vadd.f32 %v4721_v43, %v4696_v25 }
 0x91b   :  { %v10765_v60 = vadd.f32 %v4721_v43, %v4697_v63  ;;  %v10767_v35 = vadd.f32 %v4721_v43, %v4698_v56  ;;  %v10769_v14 = vadd.f32 %v4721_v43, %v4699_v4  ;;  %v10771_v30 = vadd.f32 %v4721_v43, %v4700_v41 }
 0x91c   :  { %v10773_v61 = vadd.f32 %v4721_v43, %v4701_v16  ;;  %v10775_v32 = vadd.f32 %v4721_v43, %v4702_v42  ;;  %v10777_v49 = vadd.f32 %v4721_v43, %v4703_v50  ;;  %v10779_v26 = vadd.f32 %v4721_v43, %v4704_v0 }
 0x91d   :  { %v10781_v13 = vadd.f32 %v4721_v43, %v4705_v45  ;;  %v10783_v47 = vadd.f32 %v4721_v43, %v4706_v11  ;;  %v10785_v55 = vadd.f32 %v4721_v43, %v4707_v5  ;;  %v10787_v48 = vadd.f32 %v4721_v43, %v4708_v40 }
 0x91e   :  { %v10789_v51 = vadd.f32 %v4721_v43, %v4709_v52  ;;  %v10791_v9 = vadd.f32 %v4721_v43, %v4710_v1  ;;  %v10793_v23 = vadd.f32 %v4721_v43, %v4711_v36  ;;  %v10795_v3 = vadd.f32 %v4721_v43, %v4712_v54 }
 0x91f   :  { %v10797_v10 = vadd.f32 %v4721_v43, %v4713_v58  ;;  %v10799_v6 = vadd.f32 %v4721_v43, %v4715_v12  ;;  %v10801_v24 = vadd.f32 %v4721_v43, %v4716_v20  ;;  %v4755_v57 = vmul.f32 0.01, %v4723_v39 }
 0x920   :  { %v4756_v15 = vmul.f32 0.01, %v4724_v31  ;;  %v4757_v21 = vmul.f32 0.01, %v10745_v18  ;;  %v4758_v53 = vmul.f32 0.01, %v10747_v17 }
 0x921   :  { %12905 = vst [vmem:[#allocation17_spill] sm:$0xff] %v10801_v24  ;;  %v4759_v44 = vmul.f32 0.01, %v10749_v2  ;;  %v4760_v33 = vmul.f32 0.01, %v10751_v22  ;;  %v4787_v63 = vmax.f32 %v4723_v39, %v4755_v57 }
 0x922   :  { %v4761_v37 = vmul.f32 0.01, %v10753_v27  ;;  %v4762_v25 = vmul.f32 0.01, %v10755_v29  ;;  %v4763_v43 = vmul.f32 0.01, %v10757_v59  ;;  %v4788_v16 = vmax.f32 %v4724_v31, %v4756_v15 }
 0x923   :  { %v4764_v56 = vmul.f32 0.01, %v10759_v28  ;;  %v4765_v4 = vmul.f32 0.01, %v10761_v38  ;;  %v4766_v41 = vmul.f32 0.01, %v10763_v19  ;;  %v4789_v45 = vmax.f32 %v10745_v18, %v4757_v21 }
 0x924   :  { %v4767_v42 = vmul.f32 0.01, %v10765_v60  ;;  %v4768_v50 = vmul.f32 0.01, %v10767_v35  ;;  %v4769_v0 = vmul.f32 0.01, %v10769_v14  ;;  %v4835_v52 = vpack.c.bf16 %v4788_v16, %v4787_v63 }
 0x925   :  { %v4770_v11 = vmul.f32 0.01, %v10771_v30  ;;  %v4771_v5 = vmul.f32 0.01, %v10773_v61  ;;  %v4772_v40 = vmul.f32 0.01, %v10775_v32  ;;  %v4790_v58 = vmax.f32 %v10747_v17, %v4758_v53 }
 0x926   :  { %v4773_v1 = vmul.f32 0.01, %v10777_v49  ;;  %v4774_v36 = vmul.f32 0.01, %v10779_v26  ;;  %v4775_v54 = vmul.f32 0.01, %v10781_v13  ;;  %4964 = vmatmul.mubr.bf16.vlgmr.msra.gmra.mrb[136].mxu1 %v4835_v52  ;;  %v4791_v31 = vmax.f32 %v10749_v2, %v4759_v44 }
 0x927   :  { %v4776_v12 = vmul.f32 0.01, %v10783_v47  ;;  %v4777_v20 = vmul.f32 0.01, %v10785_v55  ;;  %v4778_v39 = vmul.f32 0.01, %v10787_v48  ;;  %4973 = vmatprep.mubr.bf16.mxu1 %v12514_v34  ;;  %v4836_v21 = vpack.c.bf16 %v4790_v58, %v4789_v45 }
 0x928   :  { %v4779_v18 = vmul.f32 0.01, %v10789_v51  ;;  %v4780_v57 = vmul.f32 0.01, %v10791_v9  ;;  %v4781_v15 = vmul.f32 0.01, %v10793_v23  ;;  %v4792_v16 = vmax.f32 %v10751_v22, %v4760_v33 }
 0x929   :  { %v4782_v17 = vmul.f32 0.01, %v10795_v3  ;;  %v4783_v53 = vmul.f32 0.01, %v10797_v10  ;;  %v4785_v63 = vmul.f32 0.01, %v10799_v6  ;;  %v4793_v2 = vmax.f32 %v10753_v27, %v4761_v37 }
 0x92a   :  { %v4786_v52 = vmul.f32 0.01, %v10801_v24  ;;  %v4794_v44 = vmax.f32 %v10755_v29, %v4762_v25  ;;  %v4795_v7 = vmax.f32 %v10757_v59, %v4763_v43  ;;  %v4837_v62 = vpack.c.bf16 %v4792_v16, %v4791_v31 }
 0x92b   :  { %v4796_v34 = vmax.f32 %v10759_v28, %v4764_v56  ;;  %v4797_v45 = vmax.f32 %v10761_v38, %v4765_v4  ;;  %v4798_v58 = vmax.f32 %v10763_v19, %v4766_v41  ;;  %v4799_v46 = vmax.f32 %v10765_v60, %v4767_v42  ;;  %v12907_v56 = vld [vmem:[#allocation17_spill] sm:$0xff] }
 0x92c   :  { %v4838_v8 = vpack.c.bf16 %v4794_v44, %v4793_v2  ;;  %v4800_v22 = vmax.f32 %v10767_v35, %v4768_v50  ;;  %v4801_v33 = vmax.f32 %v10769_v14, %v4769_v0  ;;  %v4802_v29 = vmax.f32 %v10771_v30, %v4770_v11  ;;  %v12908_v50 = vld [vmem:[#allocation16_spill] sm:$0xff] }
 0x92d   :  { %v4839_v24 = vpack.c.bf16 %v4796_v34, %v4795_v7  ;;  %v4840_v27 = vpack.c.bf16 %v4798_v58, %v4797_v45  ;;  %v4803_v59 = vmax.f32 %v10773_v61, %v4771_v5  ;;  %v4804_v28 = vmax.f32 %v10775_v32, %v4772_v40 }
 0x92e   :  { %v4841_v37 = vpack.c.bf16 %v4800_v22, %v4799_v46  ;;  %v4805_v38 = vmax.f32 %v10777_v49, %v4773_v1  ;;  %v4806_v19 = vmax.f32 %v10779_v26, %v4774_v36  ;;  %4974 = vmatmul.mubr.bf16.gmra.mrb[140].mxu1 %v4836_v21  ;;  %v4842_v25 = vpack.c.bf16 %v4802_v29, %v4801_v33 }
 0x92f   :  { %v4807_v60 = vmax.f32 %v10781_v13, %v4775_v54  ;;  %v4808_v35 = vmax.f32 %v10783_v47, %v4776_v12  ;;  %v4809_v34 = vmax.f32 %v10785_v55, %v4777_v20  ;;  %v12906_v14 = vmov 0  }
 0x930   :  { %4983 = vmatprep.mubr.bf16.mxu1 %v12906_v14  ;;  %v4843_v30 = vpack.c.bf16 %v4804_v28, %v4803_v59  ;;  %v4844_v7 = vpack.c.bf16 %v4806_v19, %v4805_v38  ;;  %v4810_v46 = vmax.f32 %v10787_v48, %v4778_v39  ;;  %v4811_v61 = vmax.f32 %v10789_v51, %v4779_v18  ;;  %v12909_v48 = vld [vmem:[#allocation56_spill] sm:$0xff] }
 0x931   :  { %v4845_v32 = vpack.c.bf16 %v4808_v35, %v4807_v60  ;;  %v4812_v49 = vmax.f32 %v10791_v9, %v4780_v57  ;;  %v4813_v26 = vmax.f32 %v10793_v23, %v4781_v15  ;;  %v4814_v43 = vmax.f32 %v10795_v3, %v4782_v17 }
 0x932   :  { %v4846_v13 = vpack.c.bf16 %v4810_v46, %v4809_v34  ;;  %v4815_v47 = vmax.f32 %v10797_v10, %v4783_v53  ;;  %v4817_v55 = vmax.f32 %v10799_v6, %v4785_v63  ;;  %v4818_v4 = vmax.f32 %v12907_v56, %v4786_v52 }
 0x933   :  { %v4847_v41 = vpack.c.bf16 %v4812_v49, %v4811_v61  ;;  %v4848_v42 = vpack.c.bf16 %v4814_v43, %v4813_v26  ;;  %v12910_v0 = vmax.f32 %v12908_v50, %v12909_v48 }
 0x934   :  { %v4850_v11 = vpack.c.bf16 %v4818_v4, %v4817_v55 }
 0x935   :  { %v4849_v51 = vpack.c.bf16 %v12910_v0, %v4815_v47 }
 0x936   :  { %4984 = vmatmul.mubr.bf16.gmra.mrb[144].mxu1 %v4837_v62 }
 0x937   :  { %4993 = vmatprep.mubr.bf16.mxu1 %v12906_v14 }
 0x93e   :  { %4994 = vmatmul.mubr.bf16.gmra.mrb[148].mxu1 %v4838_v8 }
 0x93f   :  { %5003 = vmatprep.mubr.bf16.mxu1 %v12906_v14 }
 0x946   :  { %5004 = vmatmul.mubr.bf16.gmra.mrb[152].mxu1 %v4839_v24 }
 0x947   :  { %5013 = vmatprep.mubr.bf16.mxu1 %v12906_v14 }
 0x94e   :  { %5014 = vmatmul.mubr.bf16.gmra.mrb[156].mxu1 %v4840_v27 }
 0x94f   :  { %5023 = vmatprep.mubr.bf16.mxu1 %v12906_v14 }
 0x956   :  { %5024 = vmatmul.mubr.bf16.gmra.mrb[160].mxu1 %v4841_v37 }
 0x957   :  { %5033 = vmatprep.mubr.bf16.mxu1 %v12906_v14 }
 0x95e   :  { %5034 = vmatmul.mubr.bf16.gmra.mrb[164].mxu1 %v4842_v25 }
 0x95f   :  { %5043 = vmatprep.mubr.bf16.mxu1 %v12906_v14 }
 0x966   :  { %5044 = vmatmul.mubr.bf16.gmra.mrb[168].mxu1 %v4843_v30 }
 0x967   :  { %5053 = vmatprep.mubr.bf16.mxu1 %v12906_v14 }
 0x96e   :  { %5054 = vmatmul.mubr.bf16.gmra.mrb[172].mxu1 %v4844_v7 }
 0x96f   :  { %5063 = vmatprep.mubr.bf16.mxu1 %v12906_v14 }
 0x976   :  { %5064 = vmatmul.mubr.bf16.gmra.mrb[176].mxu1 %v4845_v32 }
 0x977   :  { %5073 = vmatprep.mubr.bf16.mxu1 %v12906_v14 }
 0x97e   :  { %5074 = vmatmul.mubr.bf16.gmra.mrb[180].mxu1 %v4846_v13 }
 0x97f   :  { %5083 = vmatprep.mubr.bf16.mxu1 %v12906_v14 }
 0x986   :  { %5084 = vmatmul.mubr.bf16.gmra.mrb[184].mxu1 %v4847_v41 }
 0x987   :  { %5093 = vmatprep.mubr.bf16.mxu1 %v12906_v14 }
 0x98e   :  { %5094 = vmatmul.mubr.bf16.gmra.mrb[188].mxu1 %v4848_v42 }
 0x98f   :  { %5103 = vmatprep.mubr.bf16.mxu1 %v12906_v14 }
 0x996   :  { %5104 = vmatmul.mubr.bf16.gmra.mrb[192].mxu1 %v4849_v51 }
 0x997   :  { %5113 = vmatprep.mubr.bf16.mxu1 %v12906_v14 }
 0x99e   :  { %5114 = vmatmul.mubr.bf16.gmra.mrb[196].mxu1 %v4850_v11 }
 0x9f9   :  { %v10881_v62 = vpop.f32.mrb[136].mxu1 }
 0x9fa   :  { %v10883_v8 = vpop.f32.mrb[137].mxu1  ;;  %v5202_v23 = vmul.f32 %v10881_v62, %v10881_v62 }
 0x9fb   :  { %v10885_v9 = vpop.f32.mrb[138].mxu1  ;;  %v5203_v24 = vmul.f32 %v10883_v8, %v10883_v8 }
 0x9fc   :  { %v5126_v3 = vadd.f32 %v10885_v9, %v10881_v62  ;;  %v5204_v10 = vmul.f32 %v10885_v9, %v10885_v9  ;;  %v10893_v6 = vpop.f32.mrb[139].mxu1 }
 0x9fd   :  { %v5163_v5 = vadd.f32 %v10893_v6, %v10883_v8  ;;  %v5205_v40 = vmul.f32 %v10893_v6, %v10893_v6 }
 0x9fe   :  { %v5266_v1 = vadd.f32 %v5204_v10, %v5202_v23 }
 0x9ff   :  { %v5303_v36 = vadd.f32 %v5205_v40, %v5203_v24 }
 0xa01   :  { %v10901_v54 = vpop.f32.mrb[140].mxu1 }
 0xa02   :  { %v5127_v12 = vadd.f32 %v5126_v3, %v10901_v54  ;;  %v5206_v20 = vmul.f32 %v10901_v54, %v10901_v54  ;;  %v10906_v39 = vpop.f32.mrb[141].mxu1 }
 0xa03   :  { %v5164_v31 = vadd.f32 %v5163_v5, %v10906_v39  ;;  %v5207_v18 = vmul.f32 %v10906_v39, %v10906_v39  ;;  %v10911_v57 = vpop.f32.mrb[142].mxu1 }
 0xa04   :  { %v5267_v15 = vadd.f32 %v5266_v1, %v5206_v20  ;;  %v5128_v21 = vadd.f32 %v5127_v12, %v10911_v57  ;;  %v5208_v17 = vmul.f32 %v10911_v57, %v10911_v57  ;;  %v10916_v53 = vpop.f32.mrb[143].mxu1 }
 0xa05   :  { %v5304_v63 = vadd.f32 %v5303_v36, %v5207_v18  ;;  %v5165_v16 = vadd.f32 %v5164_v31, %v10916_v53  ;;  %v5209_v52 = vmul.f32 %v10916_v53, %v10916_v53 }
 0xa06   :  { %v5268_v2 = vadd.f32 %v5267_v15, %v5208_v17 }
 0xa07   :  { %v5305_v44 = vadd.f32 %v5304_v63, %v5209_v52 }
 0xa09   :  { %v10921_v45 = vpop.f32.mrb[144].mxu1 }
 0xa0a   :  { %v5129_v58 = vadd.f32 %v5128_v21, %v10921_v45  ;;  %v5210_v22 = vmul.f32 %v10921_v45, %v10921_v45  ;;  %v10926_v33 = vpop.f32.mrb[145].mxu1 }
 0xa0b   :  { %v5166_v27 = vadd.f32 %v5165_v16, %v10926_v33  ;;  %v5211_v29 = vmul.f32 %v10926_v33, %v10926_v33  ;;  %v10931_v59 = vpop.f32.mrb[146].mxu1 }
 0xa0c   :  { %v5269_v37 = vadd.f32 %v5268_v2, %v5210_v22  ;;  %v5130_v28 = vadd.f32 %v5129_v58, %v10931_v59  ;;  %v5212_v38 = vmul.f32 %v10931_v59, %v10931_v59  ;;  %v10936_v19 = vpop.f32.mrb[147].mxu1 }
 0xa0d   :  { %v5306_v25 = vadd.f32 %v5305_v44, %v5211_v29  ;;  %v5167_v60 = vadd.f32 %v5166_v27, %v10936_v19  ;;  %v5213_v35 = vmul.f32 %v10936_v19, %v10936_v19 }
 0xa0e   :  { %v5270_v34 = vadd.f32 %v5269_v37, %v5212_v38 }
 0xa0f   :  { %v5307_v14 = vadd.f32 %v5306_v25, %v5213_v35 }
 0xa11   :  { %v10941_v30 = vpop.f32.mrb[148].mxu1 }
 0xa12   :  { %v5131_v7 = vadd.f32 %v5130_v28, %v10941_v30  ;;  %v5214_v46 = vmul.f32 %v10941_v30, %v10941_v30  ;;  %v10946_v61 = vpop.f32.mrb[149].mxu1 }
 0xa13   :  { %v5168_v32 = vadd.f32 %v5167_v60, %v10946_v61  ;;  %v5215_v49 = vmul.f32 %v10946_v61, %v10946_v61  ;;  %v10951_v26 = vpop.f32.mrb[150].mxu1 }
 0xa14   :  { %v5271_v43 = vadd.f32 %v5270_v34, %v5214_v46  ;;  %v5132_v13 = vadd.f32 %v5131_v7, %v10951_v26  ;;  %v5216_v47 = vmul.f32 %v10951_v26, %v10951_v26  ;;  %v10956_v55 = vpop.f32.mrb[151].mxu1 }
 0xa15   :  { %v5308_v56 = vadd.f32 %v5307_v14, %v5215_v49  ;;  %v5169_v4 = vadd.f32 %v5168_v32, %v10956_v55  ;;  %v5217_v41 = vmul.f32 %v10956_v55, %v10956_v55 }
 0xa16   :  { %v5272_v42 = vadd.f32 %v5271_v43, %v5216_v47 }
 0xa17   :  { %v5309_v50 = vadd.f32 %v5308_v56, %v5217_v41 }
 0xa19   :  { %v10961_v48 = vpop.f32.mrb[152].mxu1 }
 0xa1a   :  { %v5133_v0 = vadd.f32 %v5132_v13, %v10961_v48  ;;  %v5218_v51 = vmul.f32 %v10961_v48, %v10961_v48  ;;  %v10966_v11 = vpop.f32.mrb[153].mxu1 }
 0xa1b   :  { %v5170_v23 = vadd.f32 %v5169_v4, %v10966_v11  ;;  %v5219_v3 = vmul.f32 %v10966_v11, %v10966_v11  ;;  %v10971_v10 = vpop.f32.mrb[154].mxu1 }
 0xa1c   :  { %v5273_v24 = vadd.f32 %v5272_v42, %v5218_v51  ;;  %v5134_v5 = vadd.f32 %v5133_v0, %v10971_v10  ;;  %v5220_v40 = vmul.f32 %v10971_v10, %v10971_v10  ;;  %v10976_v1 = vpop.f32.mrb[155].mxu1 }
 0xa1d   :  { %v5310_v36 = vadd.f32 %v5309_v50, %v5219_v3  ;;  %v5171_v12 = vadd.f32 %v5170_v23, %v10976_v1  ;;  %v5221_v20 = vmul.f32 %v10976_v1, %v10976_v1 }
 0xa1e   :  { %v5274_v31 = vadd.f32 %v5273_v24, %v5220_v40 }
 0xa1f   :  { %v5311_v18 = vadd.f32 %v5310_v36, %v5221_v20 }
 0xa21   :  { %v10981_v15 = vpop.f32.mrb[156].mxu1 }
 0xa22   :  { %v5135_v21 = vadd.f32 %v5134_v5, %v10981_v15  ;;  %v5222_v17 = vmul.f32 %v10981_v15, %v10981_v15  ;;  %v10986_v63 = vpop.f32.mrb[157].mxu1 }
 0xa23   :  { %v5172_v16 = vadd.f32 %v5171_v12, %v10986_v63  ;;  %v5223_v52 = vmul.f32 %v10986_v63, %v10986_v63  ;;  %v10991_v2 = vpop.f32.mrb[158].mxu1 }
 0xa24   :  { %v5275_v44 = vadd.f32 %v5274_v31, %v5222_v17  ;;  %v5136_v58 = vadd.f32 %v5135_v21, %v10991_v2  ;;  %v5224_v22 = vmul.f32 %v10991_v2, %v10991_v2  ;;  %v10996_v27 = vpop.f32.mrb[159].mxu1 }
 0xa25   :  { %v5312_v29 = vadd.f32 %v5311_v18, %v5223_v52  ;;  %v5173_v37 = vadd.f32 %v5172_v16, %v10996_v27  ;;  %v5225_v28 = vmul.f32 %v10996_v27, %v10996_v27 }
 0xa26   :  { %v5276_v38 = vadd.f32 %v5275_v44, %v5224_v22 }
 0xa27   :  { %v5313_v25 = vadd.f32 %v5312_v29, %v5225_v28 }
 0xa29   :  { %v11001_v60 = vpop.f32.mrb[160].mxu1 }
 0xa2a   :  { %v5137_v35 = vadd.f32 %v5136_v58, %v11001_v60  ;;  %v5226_v34 = vmul.f32 %v11001_v60, %v11001_v60  ;;  %v11006_v14 = vpop.f32.mrb[161].mxu1 }
 0xa2b   :  { %v5174_v7 = vadd.f32 %v5173_v37, %v11006_v14  ;;  %v5227_v46 = vmul.f32 %v11006_v14, %v11006_v14  ;;  %v11011_v32 = vpop.f32.mrb[162].mxu1 }
 0xa2c   :  { %v5277_v49 = vadd.f32 %v5276_v38, %v5226_v34  ;;  %v5138_v43 = vadd.f32 %v5137_v35, %v11011_v32  ;;  %v5228_v13 = vmul.f32 %v11011_v32, %v11011_v32  ;;  %v11016_v47 = vpop.f32.mrb[163].mxu1 }
 0xa2d   :  { %v5314_v56 = vadd.f32 %v5313_v25, %v5227_v46  ;;  %v5175_v4 = vadd.f32 %v5174_v7, %v11016_v47  ;;  %v5229_v41 = vmul.f32 %v11016_v47, %v11016_v47 }
 0xa2e   :  { %v5278_v42 = vadd.f32 %v5277_v49, %v5228_v13 }
 0xa2f   :  { %v5315_v50 = vadd.f32 %v5314_v56, %v5229_v41 }
 0xa31   :  { %v11021_v0 = vpop.f32.mrb[164].mxu1 }
 0xa32   :  { %v5139_v51 = vadd.f32 %v5138_v43, %v11021_v0  ;;  %v5230_v23 = vmul.f32 %v11021_v0, %v11021_v0  ;;  %v11026_v3 = vpop.f32.mrb[165].mxu1 }
 0xa33   :  { %v5176_v24 = vadd.f32 %v5175_v4, %v11026_v3  ;;  %v5231_v5 = vmul.f32 %v11026_v3, %v11026_v3  ;;  %v11031_v40 = vpop.f32.mrb[166].mxu1 }
 0xa34   :  { %v5279_v36 = vadd.f32 %v5278_v42, %v5230_v23  ;;  %v5140_v12 = vadd.f32 %v5139_v51, %v11031_v40  ;;  %v5232_v20 = vmul.f32 %v11031_v40, %v11031_v40  ;;  %v11036_v31 = vpop.f32.mrb[167].mxu1 }
 0xa35   :  { %v5316_v18 = vadd.f32 %v5315_v50, %v5231_v5  ;;  %v5177_v21 = vadd.f32 %v5176_v24, %v11036_v31  ;;  %v5233_v17 = vmul.f32 %v11036_v31, %v11036_v31 }
 0xa36   :  { %v5280_v16 = vadd.f32 %v5279_v36, %v5232_v20 }
 0xa37   :  { %v5317_v52 = vadd.f32 %v5316_v18, %v5233_v17 }
 0xa39   :  { %v11041_v44 = vpop.f32.mrb[168].mxu1 }
 0xa3a   :  { %v5141_v58 = vadd.f32 %v5140_v12, %v11041_v44  ;;  %v5234_v22 = vmul.f32 %v11041_v44, %v11041_v44  ;;  %v11046_v29 = vpop.f32.mrb[169].mxu1 }
 0xa3b   :  { %v5178_v37 = vadd.f32 %v5177_v21, %v11046_v29  ;;  %v5235_v28 = vmul.f32 %v11046_v29, %v11046_v29  ;;  %v11051_v38 = vpop.f32.mrb[170].mxu1 }
 0xa3c   :  { %v5281_v25 = vadd.f32 %v5280_v16, %v5234_v22  ;;  %v5142_v35 = vadd.f32 %v5141_v58, %v11051_v38  ;;  %v5236_v34 = vmul.f32 %v11051_v38, %v11051_v38  ;;  %v11056_v7 = vpop.f32.mrb[171].mxu1 }
 0xa3d   :  { %v5318_v46 = vadd.f32 %v5317_v52, %v5235_v28  ;;  %v5179_v49 = vadd.f32 %v5178_v37, %v11056_v7  ;;  %v5237_v43 = vmul.f32 %v11056_v7, %v11056_v7 }
 0xa3e   :  { %v5282_v13 = vadd.f32 %v5281_v25, %v5236_v34 }
 0xa3f   :  { %v5319_v56 = vadd.f32 %v5318_v46, %v5237_v43 }
 0xa41   :  { %v11061_v4 = vpop.f32.mrb[172].mxu1 }
 0xa42   :  { %v5143_v41 = vadd.f32 %v5142_v35, %v11061_v4  ;;  %v5238_v42 = vmul.f32 %v11061_v4, %v11061_v4  ;;  %v11066_v50 = vpop.f32.mrb[173].mxu1 }
 0xa43   :  { %12911 = vst [vmem:[#allocation31_spill] sm:$0xff] %v11066_v50  ;;  %v5180_v51 = vadd.f32 %v5179_v49, %v11066_v50  ;;  %v5239_v23 = vmul.f32 %v11066_v50, %v11066_v50  ;;  %v11071_v24 = vpop.f32.mrb[174].mxu1 }
 0xa44   :  { %12912 = vst [vmem:[#allocation32_spill] sm:$0xff] %v11071_v24  ;;  %v5283_v5 = vadd.f32 %v5282_v13, %v5238_v42  ;;  %v5144_v36 = vadd.f32 %v5143_v41, %v11071_v24  ;;  %v5240_v12 = vmul.f32 %v11071_v24, %v11071_v24  ;;  %v11076_v20 = vpop.f32.mrb[175].mxu1 }
 0xa45   :  { %12913 = vst [vmem:[#allocation58_spill] sm:$0xff] %v11076_v20  ;;  %v5320_v18 = vadd.f32 %v5319_v56, %v5239_v23  ;;  %v5181_v21 = vadd.f32 %v5180_v51, %v11076_v20  ;;  %v5241_v17 = vmul.f32 %v11076_v20, %v11076_v20 }
 0xa46   :  { %v5284_v16 = vadd.f32 %v5283_v5, %v5240_v12 }
 0xa47   :  { %v5321_v52 = vadd.f32 %v5320_v18, %v5241_v17 }
 0xa49   :  { %v11081_v58 = vpop.f32.mrb[176].mxu1 }
 0xa4a   :  { %12914 = vst [vmem:[#allocation19_spill] sm:$0xff] %v11081_v58  ;;  %v5145_v22 = vadd.f32 %v5144_v36, %v11081_v58  ;;  %v5242_v37 = vmul.f32 %v11081_v58, %v11081_v58  ;;  %v11086_v28 = vpop.f32.mrb[177].mxu1 }
 0xa4b   :  { %12915 = vst [vmem:[#allocation60_spill] sm:$0xff] %v11086_v28  ;;  %v5182_v25 = vadd.f32 %v5181_v21, %v11086_v28  ;;  %v5243_v35 = vmul.f32 %v11086_v28, %v11086_v28  ;;  %v11091_v34 = vpop.f32.mrb[178].mxu1 }
 0xa4c   :  { %12916 = vst [vmem:[#allocation21_spill] sm:$0xff] %v11091_v34  ;;  %v5285_v46 = vadd.f32 %v5284_v16, %v5242_v37  ;;  %v5146_v49 = vadd.f32 %v5145_v22, %v11091_v34  ;;  %v5244_v43 = vmul.f32 %v11091_v34, %v11091_v34  ;;  %v11096_v13 = vpop.f32.mrb[179].mxu1 }
 0xa4d   :  { %12917 = vst [vmem:[#allocation57_spill] sm:$0xff] %v11096_v13  ;;  %v5322_v56 = vadd.f32 %v5321_v52, %v5243_v35  ;;  %v5183_v41 = vadd.f32 %v5182_v25, %v11096_v13  ;;  %v5245_v42 = vmul.f32 %v11096_v13, %v11096_v13 }
 0xa4e   :  { %v5286_v51 = vadd.f32 %v5285_v46, %v5244_v43 }
 0xa4f   :  { %v5323_v23 = vadd.f32 %v5322_v56, %v5245_v42 }
 0xa51   :  { %v11101_v5 = vpop.f32.mrb[180].mxu1 }
 0xa52   :  { %12918 = vst [vmem:[#allocation18_spill] sm:$0xff] %v11101_v5  ;;  %v5147_v36 = vadd.f32 %v5146_v49, %v11101_v5  ;;  %v5246_v12 = vmul.f32 %v11101_v5, %v11101_v5  ;;  %v11106_v18 = vpop.f32.mrb[181].mxu1 }
 0xa53   :  { %12919 = vst [vmem:[#allocation59_spill] sm:$0xff] %v11106_v18  ;;  %v5184_v21 = vadd.f32 %v5183_v41, %v11106_v18  ;;  %v5247_v17 = vmul.f32 %v11106_v18, %v11106_v18  ;;  %v11111_v16 = vpop.f32.mrb[182].mxu1 }
 0xa54   :  { %12920 = vst [vmem:[#allocation20_spill] sm:$0xff] %v11111_v16  ;;  %v5287_v52 = vadd.f32 %v5286_v51, %v5246_v12  ;;  %v5148_v22 = vadd.f32 %v5147_v36, %v11111_v16  ;;  %v5248_v37 = vmul.f32 %v11111_v16, %v11111_v16  ;;  %v11116_v25 = vpop.f32.mrb[183].mxu1 }
 0xa55   :  { %12921 = vst [vmem:[#allocation26_spill] sm:$0xff] %v11116_v25  ;;  %v5324_v35 = vadd.f32 %v5323_v23, %v5247_v17  ;;  %v5185_v46 = vadd.f32 %v5184_v21, %v11116_v25  ;;  %v5249_v49 = vmul.f32 %v11116_v25, %v11116_v25 }
 0xa56   :  { %v5288_v43 = vadd.f32 %v5287_v52, %v5248_v37 }
 0xa57   :  { %v5325_v56 = vadd.f32 %v5324_v35, %v5249_v49 }
 0xa59   :  { %v11121_v41 = vpop.f32.mrb[184].mxu1 }
 0xa5a   :  { %12922 = vst [vmem:[#allocation33_spill] sm:$0xff] %v11121_v41  ;;  %v5149_v42 = vadd.f32 %v5148_v22, %v11121_v41  ;;  %v5250_v51 = vmul.f32 %v11121_v41, %v11121_v41  ;;  %v11126_v36 = vpop.f32.mrb[185].mxu1 }
 0xa5b   :  { %12923 = vst [vmem:[#allocation34_spill] sm:$0xff] %v11126_v36  ;;  %v5186_v12 = vadd.f32 %v5185_v46, %v11126_v36  ;;  %v5251_v23 = vmul.f32 %v11126_v36, %v11126_v36  ;;  %v11131_v21 = vpop.f32.mrb[186].mxu1 }
 0xa5c   :  { %12924 = vst [vmem:[#allocation62_spill] sm:$0xff] %v11131_v21  ;;  %v5289_v17 = vadd.f32 %v5288_v43, %v5250_v51  ;;  %v5150_v52 = vadd.f32 %v5149_v42, %v11131_v21  ;;  %v5252_v37 = vmul.f32 %v11131_v21, %v11131_v21  ;;  %v11136_v35 = vpop.f32.mrb[187].mxu1 }
 0xa5d   :  { %12925 = vst [vmem:[#allocation23_spill] sm:$0xff] %v11136_v35  ;;  %v5326_v22 = vadd.f32 %v5325_v56, %v5251_v23  ;;  %v5187_v49 = vadd.f32 %v5186_v12, %v11136_v35  ;;  %v5253_v41 = vmul.f32 %v11136_v35, %v11136_v35 }
 0xa5e   :  { %v5290_v46 = vadd.f32 %v5289_v17, %v5252_v37 }
 0xa5f   :  { %v5327_v25 = vadd.f32 %v5326_v22, %v5253_v41 }
 0xa61   :  { %v11141_v16 = vpop.f32.mrb[188].mxu1 }
 0xa62   :  { %12926 = vst [vmem:[#allocation63_spill] sm:$0xff] %v11141_v16  ;;  %v5151_v36 = vadd.f32 %v5150_v52, %v11141_v16  ;;  %v5254_v43 = vmul.f32 %v11141_v16, %v11141_v16  ;;  %v11146_v42 = vpop.f32.mrb[189].mxu1 }
 0xa63   :  { %12927 = vst [vmem:[#allocation25_spill] sm:$0xff] %v11146_v42  ;;  %v5188_v51 = vadd.f32 %v5187_v49, %v11146_v42  ;;  %v5255_v56 = vmul.f32 %v11146_v42, %v11146_v42  ;;  %v11151_v12 = vpop.f32.mrb[190].mxu1 }
 0xa64   :  { %12928 = vst [vmem:[#allocation61_spill] sm:$0xff] %v11151_v12  ;;  %v5291_v23 = vadd.f32 %v5290_v46, %v5254_v43  ;;  %v5152_v17 = vadd.f32 %v5151_v36, %v11151_v12  ;;  %v5256_v41 = vmul.f32 %v11151_v12, %v11151_v12  ;;  %v11156_v37 = vpop.f32.mrb[191].mxu1 }
 0xa65   :  { %12929 = vst [vmem:[#allocation22_spill] sm:$0xff] %v11156_v37  ;;  %v5328_v52 = vadd.f32 %v5327_v25, %v5255_v56  ;;  %v5189_v22 = vadd.f32 %v5188_v51, %v11156_v37  ;;  %v5257_v16 = vmul.f32 %v11156_v37, %v11156_v37 }
 0xa66   :  { %v5292_v49 = vadd.f32 %v5291_v23, %v5256_v41 }
 0xa67   :  { %v5329_v35 = vadd.f32 %v5328_v52, %v5257_v16 }
 0xa69   :  { %v11161_v21 = vpop.f32.mrb[192].mxu1 }
 0xa6a   :  { %12930 = vst [vmem:[#allocation41_spill] sm:$0xff] %v11161_v21  ;;  %v5153_v42 = vadd.f32 %v5152_v17, %v11161_v21  ;;  %v5258_v36 = vmul.f32 %v11161_v21, %v11161_v21  ;;  %v11166_v46 = vpop.f32.mrb[193].mxu1 }
 0xa6b   :  { %12931 = vst [vmem:[#allocation24_spill] sm:$0xff] %v11166_v46  ;;  %v5190_v43 = vadd.f32 %v5189_v22, %v11166_v46  ;;  %v5259_v25 = vmul.f32 %v11166_v46, %v11166_v46  ;;  %v11171_v51 = vpop.f32.mrb[194].mxu1 }
 0xa6c   :  { %12932 = vst [vmem:[#allocation35_spill] sm:$0xff] %v11171_v51  ;;  %v5293_v56 = vadd.f32 %v5292_v49, %v5258_v36  ;;  %v5154_v23 = vadd.f32 %v5153_v42, %v11171_v51  ;;  %v5260_v16 = vmul.f32 %v11171_v51, %v11171_v51  ;;  %v11176_v41 = vpop.f32.mrb[195].mxu1 }
 0xa6d   :  { %12933 = vst [vmem:[#allocation42_spill] sm:$0xff] %v11176_v41  ;;  %v5330_v17 = vadd.f32 %v5329_v35, %v5259_v25  ;;  %v5191_v52 = vadd.f32 %v5190_v43, %v11176_v41  ;;  %v5261_v21 = vmul.f32 %v11176_v41, %v11176_v41 }
 0xa6e   :  { %v5294_v22 = vadd.f32 %v5293_v56, %v5260_v16 }
 0xa6f   :  { %v5331_v37 = vadd.f32 %v5330_v17, %v5261_v21 }
 0xa71   :  { %v11181_v12 = vpop.f32.mrb[196].mxu1 }
 0xa72   :  { %12934 = vst [vmem:[#allocation43_spill] sm:$0xff] %v11181_v12  ;;  %v5155_v46 = vadd.f32 %v5154_v23, %v11181_v12  ;;  %v5262_v42 = vmul.f32 %v11181_v12, %v11181_v12  ;;  %v11186_v49 = vpop.f32.mrb[197].mxu1 }
 0xa73   :  { %12935 = vst [vmem:[#allocation27_spill] sm:$0xff] %v11186_v49  ;;  %v5192_v36 = vadd.f32 %v5191_v52, %v11186_v49  ;;  %v5263_v35 = vmul.f32 %v11186_v49, %v11186_v49  ;;  %v11191_v43 = vpop.f32.mrb[198].mxu1 }
 0xa74   :  { %12936 = vst [vmem:[#allocation44_spill] sm:$0xff] %v11191_v43  ;;  %v5295_v25 = vadd.f32 %v5294_v22, %v5262_v42  ;;  %v5156_v56 = vadd.f32 %v5155_v46, %v11191_v43  ;;  %v5264_v21 = vmul.f32 %v11191_v43, %v11191_v43  ;;  %v11196_v16 = vpop.f32.mrb[199].mxu1 }
 0xa75   :  { %12937 = vst [vmem:[#allocation29_spill] sm:$0xff] %v11196_v16  ;;  %v5332_v23 = vadd.f32 %v5331_v37, %v5263_v35  ;;  %v5193_v17 = vadd.f32 %v5192_v36, %v11196_v16  ;;  %v5265_v12 = vmul.f32 %v11196_v16, %v11196_v16 }
 0xa76   :  { %v5157_v52 = vrot.slane %v5156_v56, 4  ;;  %v5296_v41 = vadd.f32 %v5295_v25, %v5264_v21 }
 0xa77   :  { %v5194_v51 = vrot.slane %v5193_v17, 4  ;;  %v5333_v49 = vadd.f32 %v5332_v23, %v5265_v12 }
 0xa78   :  { %v5158_v18 = vadd.f32 %v5157_v52, %v5156_v56  ;;  %v5297_v5 = vrot.slane %v5296_v41, 4 }
 0xa79   :  { %v5195_v22 = vadd.f32 %v5194_v51, %v5193_v17  ;;  %v5334_v42 = vrot.slane %v5333_v49, 4 }
 0xa7a   :  { %v5159_v46 = vrot.slane %v5158_v18, 2  ;;  %v5298_v13 = vadd.f32 %v5297_v5, %v5296_v41 }
 0xa7b   :  { %v5196_v34 = vrot.slane %v5195_v22, 2  ;;  %v5335_v43 = vadd.f32 %v5334_v42, %v5333_v49 }
 0xa7c   :  { %v5160_v28 = vadd.f32 %v5159_v46, %v5158_v18  ;;  %v5299_v58 = vrot.slane %v5298_v13, 2 }
 0xa7d   :  { %v5197_v37 = vadd.f32 %v5196_v34, %v5195_v22  ;;  %v5336_v35 = vrot.slane %v5335_v43, 2 }
 0xa7e   :  { %v5161_v36 = vrot.slane %v5160_v28, 1  ;;  %v5300_v20 = vadd.f32 %v5299_v58, %v5298_v13 }
 0xa7f   :  { %v5198_v24 = vrot.slane %v5197_v37, 1  ;;  %v5337_v16 = vadd.f32 %v5336_v35, %v5335_v43  ;;  %v12938_v43 = vld [vmem:[#allocation37_spill] sm:$0xff]  ;;  %v12939_v35 = vld [vmem:[#allocation38_spill] sm:$0xff] }
 0xa80   :  { %v5162_v50 = vadd.f32 %v5161_v36, %v5160_v28  ;;  %v5301_v25 = vrot.slane %v5300_v20, 1 }
 0xa81   :  { %v5199_v21 = vadd.f32 %v5198_v24, %v5197_v37  ;;  %v5338_v12 = vrot.slane %v5337_v16, 1 }
 0xa82   :  { %v5200_v56 = vmul.f32 0.00390625, %v5162_v50  ;;  %v5302_v23 = vadd.f32 %v5301_v25, %v5300_v20  ;;  %v5124_v20 = vld [vmem:[%s12423_s19] sm:$0x3]  ;;  %v12940_v25 = vld [vmem:[#allocation39_spill] sm:$0xff] }
 0xa83   :  { %v5201_v51 = vmul.f32 0.00390625, %v5199_v21  ;;  %v5339_v17 = vadd.f32 %v5338_v12, %v5337_v16 }
 0xa84   :  { %v5340_v52 = vmul.f32 0.00390625, %v5302_v23  ;;  %v5342_v5 = vmul.f32 %v5200_v56, %v5200_v56 }
 0xa85   :  { %v5341_v41 = vmul.f32 0.00390625, %v5339_v17  ;;  %v5343_v49 = vmul.f32 %v5201_v51, %v5201_v51 }
 0xa86   :  { %v5344_v18 = vsub.f32 %v5340_v52, %v5342_v5 }
 0xa87   :  { %v5345_v42 = vsub.f32 %v5341_v41, %v5343_v49 }
 0xa88   :  { %v5346_v34 = vmax.f32 %v5344_v18, 0.0 }
 0xa89   :  { %v5347_v22 = vmax.f32 %v5345_v42, 0.0 }
 0xa8a   :  { %v5348_v46 = vadd.f32 1e-05, %v5346_v34 }
 0xa8b   :  { %v5349_v58 = vadd.f32 1e-05, %v5347_v22  ;;  %v12941_v22 = vld [vmem:[#allocation31_spill] sm:$0xff] }
 0xa8c   :  { %7289 = vrsqrt.f32 %v5348_v46  ;;  %v12942_v46 = vld [vmem:[#allocation32_spill] sm:$0xff] }
 0xa8d   :  { %7291 = vrsqrt.f32 %v5349_v58  ;;  %v12943_v58 = vld [vmem:[#allocation58_spill] sm:$0xff] }
 0xa96   :  { %v7290_v28 = vpop.eup %7289 }
 0xa97   :  { %v7292_v13 = vpop.eup %7291 }
 0xa98   :  { %v5354_v24 = vcombine.low %v7290_v28, %v7292_v13  ;;  %v12944_v28 = vld [vmem:[#allocation19_spill] sm:$0xff]  ;;  %v12945_v13 = vld [vmem:[#allocation60_spill] sm:$0xff] }
 0xa9a   :  { %v5361_v50 = vrot.slane %v5354_v24, %v12938_v43  ;;  %v12946_v24 = vld [vmem:[#allocation21_spill] sm:$0xff] }
 0xa9c   :  { %v5368_v16 = vrot.slane %v5361_v50, %v12938_v43  ;;  %v12947_v50 = vld [vmem:[#allocation57_spill] sm:$0xff] }
 0xa9e   :  { %v5370_v37 = vmul.f32 %v5368_v16, %v5124_v20  ;;  %v12948_v16 = vld [vmem:[#allocation18_spill] sm:$0xff] }
 0xaa0   :  { %v11207_v36 = vrot.slane %v5370_v37, %v12939_v35  ;;  %v11210_v21 = vrot.slane %v5370_v37, %v12940_v25 }
 0xaa2   :  { %v5382_v12 = vmul.f32 %v11207_v36, %v5200_v56  ;;  %v5383_v23 = vmul.f32 %v11210_v21, %v5201_v51  ;;  %v11216_v17 = vmul.f32 %v11207_v36, %v10881_v62  ;;  %v11220_v52 = vmul.f32 %v11210_v21, %v10883_v8 }
 0xaa3   :  { %v11224_v5 = vmul.f32 %v11207_v36, %v10885_v9  ;;  %v11228_v41 = vmul.f32 %v11210_v21, %v10893_v6  ;;  %v11232_v56 = vmul.f32 %v11207_v36, %v10901_v54  ;;  %v11236_v62 = vmul.f32 %v11210_v21, %v10906_v39 }
 0xaa4   :  { %v5386_v51 = vcombine.low %v5382_v12, %v5383_v23  ;;  %v11240_v8 = vmul.f32 %v11207_v36, %v10911_v57  ;;  %v11244_v9 = vmul.f32 %v11210_v21, %v10916_v53  ;;  %v11248_v6 = vmul.f32 %v11207_v36, %v10921_v45  ;;  %v12949_v12 = vld [vmem:[#allocation59_spill] sm:$0xff] }
 0xaa5   :  { %v11252_v54 = vmul.f32 %v11210_v21, %v10926_v33  ;;  %v11256_v39 = vmul.f32 %v11207_v36, %v10931_v59  ;;  %v11260_v57 = vmul.f32 %v11210_v21, %v10936_v19  ;;  %v11264_v53 = vmul.f32 %v11207_v36, %v10941_v30  ;;  %v5125_v19 = vld [vmem:[%s12424_s20] sm:$0x3] }
 0xaa6   :  { %v5393_v49 = vrot.slane %v5386_v51, %v12938_v43  ;;  %v11269_v45 = vmul.f32 %v11210_v21, %v10946_v61  ;;  %v11273_v33 = vmul.f32 %v11207_v36, %v10951_v26  ;;  %v11277_v59 = vmul.f32 %v11210_v21, %v10956_v55  ;;  %v12950_v51 = vld [vmem:[#allocation20_spill] sm:$0xff] }
 0xaa7   :  { %v11284_v30 = vmul.f32 %v11207_v36, %v10961_v48  ;;  %v11288_v61 = vmul.f32 %v11210_v21, %v10966_v11  ;;  %v11292_v26 = vmul.f32 %v11207_v36, %v10971_v10  ;;  %v11296_v55 = vmul.f32 %v11210_v21, %v10976_v1 }
 0xaa8   :  { %v5400_v18 = vrot.slane %v5393_v49, %v12938_v43  ;;  %v11301_v42 = vmul.f32 %v11207_v36, %v10981_v15  ;;  %v11305_v48 = vmul.f32 %v11210_v21, %v10986_v63  ;;  %v11309_v11 = vmul.f32 %v11207_v36, %v10991_v2 }
 0xaa9   :  { %v11313_v10 = vmul.f32 %v11210_v21, %v10996_v27  ;;  %v11317_v1 = vmul.f32 %v11207_v36, %v11001_v60  ;;  %v11321_v15 = vmul.f32 %v11210_v21, %v11006_v14  ;;  %v11325_v63 = vmul.f32 %v11207_v36, %v11011_v32 }
 0xaaa   :  { %v5402_v34 = vsub.f32 %v5125_v19, %v5400_v18  ;;  %v11329_v2 = vmul.f32 %v11210_v21, %v11016_v47  ;;  %v11333_v27 = vmul.f32 %v11207_v36, %v11021_v0  ;;  %v11337_v60 = vmul.f32 %v11210_v21, %v11026_v3  ;;  %v12951_v19 = vld [vmem:[#allocation26_spill] sm:$0xff] }
 0xaab   :  { %v11341_v14 = vmul.f32 %v11207_v36, %v11031_v40  ;;  %v11345_v32 = vmul.f32 %v11210_v21, %v11036_v31  ;;  %v11349_v47 = vmul.f32 %v11207_v36, %v11041_v44  ;;  %v11353_v0 = vmul.f32 %v11210_v21, %v11046_v29 }
 0xaac   :  { %v11357_v3 = vmul.f32 %v11207_v36, %v11051_v38  ;;  %v11361_v40 = vmul.f32 %v11210_v21, %v11056_v7  ;;  %v11365_v31 = vmul.f32 %v11207_v36, %v11061_v4  ;;  %v11369_v44 = vmul.f32 %v11210_v21, %v12941_v22  ;;  %v12952_v22 = vld [vmem:[#allocation33_spill] sm:$0xff] }
 0xaad   :  { %v11373_v29 = vmul.f32 %v11207_v36, %v12942_v46  ;;  %v11377_v38 = vmul.f32 %v11210_v21, %v12943_v58  ;;  %v11381_v7 = vmul.f32 %v11207_v36, %v12944_v28  ;;  %v11385_v4 = vmul.f32 %v11210_v21, %v12945_v13  ;;  %v12954_v58 = vld [vmem:[#allocation34_spill] sm:$0xff] }
 0xaae   :  { %v11389_v43 = vmul.f32 %v11207_v36, %v12946_v24  ;;  %v11393_v20 = vmul.f32 %v11210_v21, %v12947_v50  ;;  %v11397_v37 = vmul.f32 %v11207_v36, %v12948_v16  ;;  %v11401_v23 = vmul.f32 %v11210_v21, %v12949_v12  ;;  %v12956_v13 = vld [vmem:[#allocation62_spill] sm:$0xff]  ;;  %v12958_v50 = vld [vmem:[#allocation23_spill] sm:$0xff] }
 0xaaf   :  { %v11405_v49 = vmul.f32 %v11207_v36, %v12950_v51  ;;  %v11409_v18 = vmul.f32 %v11210_v21, %v12951_v19  ;;  %v11413_v46 = vmul.f32 %v11207_v36, %v12952_v22  ;;  %v11417_v28 = vmul.f32 %v11210_v21, %v12954_v58  ;;  %v12960_v12 = vld [vmem:[#allocation63_spill] sm:$0xff]  ;;  %v12962_v19 = vld [vmem:[#allocation25_spill] sm:$0xff] }
 0xab0   :  { %v11421_v24 = vmul.f32 %v11207_v36, %v12956_v13  ;;  %v11425_v16 = vmul.f32 %v11210_v21, %v12958_v50  ;;  %v11429_v51 = vmul.f32 %v11207_v36, %v12960_v12  ;;  %v11433_v22 = vmul.f32 %v11210_v21, %v12962_v19 }
 0xab1   :  { %12953 = vst [vmem:[#allocation46_spill] sm:$0xff] %v11413_v46  ;;  %12955 = vst [vmem:[#allocation64_spill] sm:$0xff] %v11417_v28  ;;  %v12964_v46 = vld [vmem:[#allocation61_spill] sm:$0xff]  ;;  %v12966_v28 = vld [vmem:[#allocation22_spill] sm:$0xff] }
 0xab2   :  { %12957 = vst [vmem:[#allocation10_spill] sm:$0xff] %v11421_v24  ;;  %12959 = vst [vmem:[#allocation28_spill] sm:$0xff] %v11425_v16  ;;  %v11437_v58 = vmul.f32 %v11207_v36, %v12964_v46  ;;  %v11441_v13 = vmul.f32 %v11210_v21, %v12966_v28  ;;  %v12968_v24 = vld [vmem:[#allocation41_spill] sm:$0xff]  ;;  %v12970_v16 = vld [vmem:[#allocation24_spill] sm:$0xff] }
 0xab3   :  { %12961 = vst [vmem:[#allocation45_spill] sm:$0xff] %v11429_v51  ;;  %12963 = vst [vmem:[#allocation30_spill] sm:$0xff] %v11433_v22  ;;  %v11445_v50 = vmul.f32 %v11207_v36, %v12968_v24  ;;  %v11449_v12 = vmul.f32 %v11210_v21, %v12970_v16  ;;  %v12972_v51 = vld [vmem:[#allocation35_spill] sm:$0xff]  ;;  %v12974_v22 = vld [vmem:[#allocation42_spill] sm:$0xff] }
 0xab4   :  { %12965 = vst [vmem:[#allocation9_spill] sm:$0xff] %v11437_v58  ;;  %12967 = vst [vmem:[#allocation66_spill] sm:$0xff] %v11441_v13  ;;  %v11453_v19 = vmul.f32 %v11207_v36, %v12972_v51  ;;  %v11457_v46 = vmul.f32 %v11210_v21, %v12974_v22  ;;  %v12975_v58 = vld [vmem:[#allocation43_spill] sm:$0xff]  ;;  %v11479_v22 = vrot.slane %v5402_v34, %v12940_v25 }
 0xab5   :  { %12969 = vst [vmem:[#allocation50_spill] sm:$0xff] %v11445_v50  ;;  %12971 = vst [vmem:[#allocation65_spill] sm:$0xff] %v11449_v12  ;;  %v11461_v28 = vmul.f32 %v11207_v36, %v12975_v58  ;;  %v12976_v13 = vld [vmem:[#allocation27_spill] sm:$0xff]  ;;  %v12977_v50 = vld [vmem:[#allocation44_spill] sm:$0xff] }
 0xab6   :  { %12973 = vst [vmem:[#allocation11_spill] sm:$0xff] %v11453_v19  ;;  %v11465_v24 = vmul.f32 %v11210_v21, %v12976_v13  ;;  %v11469_v16 = vmul.f32 %v11207_v36, %v12977_v50  ;;  %v12978_v12 = vld [vmem:[#allocation29_spill] sm:$0xff]  ;;  %v11476_v19 = vrot.slane %v5402_v34, %v12939_v35  ;;  %v11487_v13 = vadd.f32 %v11479_v22, %v11220_v52 }
 0xab7   :  { %v11473_v51 = vmul.f32 %v11210_v21, %v12978_v12  ;;  %v11495_v21 = vadd.f32 %v11479_v22, %v11228_v41 }
 0xab8   :  { %v11483_v58 = vadd.f32 %v11476_v19, %v11216_v17  ;;  %12980 = vst [vmem:[#allocation49_spill] sm:$0xff] %v11487_v13  ;;  %v11491_v36 = vadd.f32 %v11476_v19, %v11224_v5  ;;  %v11499_v34 = vadd.f32 %v11476_v19, %v11232_v56  ;;  %v11503_v17 = vadd.f32 %v11479_v22, %v11236_v62  ;;  %v13014_v50 = vld [vmem:[#allocation46_spill] sm:$0xff]  ;;  %v13016_v12 = vld [vmem:[#allocation64_spill] sm:$0xff] }
 0xab9   :  { %12982 = vst [vmem:[#allocation47_spill] sm:$0xff] %v11495_v21  ;;  %v11507_v52 = vadd.f32 %v11476_v19, %v11240_v8  ;;  %v11511_v5 = vadd.f32 %v11479_v22, %v11244_v9  ;;  %v11515_v41 = vadd.f32 %v11476_v19, %v11248_v6  ;;  %v11519_v56 = vadd.f32 %v11479_v22, %v11252_v54  ;;  %v13018_v25 = vld [vmem:[#allocation10_spill] sm:$0xff]  ;;  %v13020_v35 = vld [vmem:[#allocation28_spill] sm:$0xff] }
 0xaba   :  { %12979 = vst [vmem:[#allocation48_spill] sm:$0xff] %v11483_v58  ;;  %12981 = vst [vmem:[#allocation12_spill] sm:$0xff] %v11491_v36  ;;  %v11523_v62 = vadd.f32 %v11476_v19, %v11256_v39  ;;  %v11527_v8 = vadd.f32 %v11479_v22, %v11260_v57  ;;  %v11531_v9 = vadd.f32 %v11476_v19, %v11264_v53 }
 0xabb   :  { %12983 = vst [vmem:[#allocation13_spill] sm:$0xff] %v11499_v34  ;;  %12984 = vst [vmem:[#allocation51_spill] sm:$0xff] %v11503_v17  ;;  %v11535_v6 = vadd.f32 %v11479_v22, %v11269_v45  ;;  %v11539_v54 = vadd.f32 %v11476_v19, %v11273_v33  ;;  %v11543_v39 = vadd.f32 %v11479_v22, %v11277_v59 }
 0xabc   :  { %12985 = vst [vmem:[#allocation52_spill] sm:$0xff] %v11507_v52  ;;  %12986 = vst [vmem:[#allocation53_spill] sm:$0xff] %v11511_v5  ;;  %v11547_v57 = vadd.f32 %v11476_v19, %v11284_v30  ;;  %v11551_v53 = vadd.f32 %v11479_v22, %v11288_v61  ;;  %v11555_v45 = vadd.f32 %v11476_v19, %v11292_v26 }
 0xabd   :  { %12987 = vst [vmem:[#allocation54_spill] sm:$0xff] %v11515_v41  ;;  %12988 = vst [vmem:[#allocation14_spill] sm:$0xff] %v11519_v56  ;;  %v11559_v33 = vadd.f32 %v11479_v22, %v11296_v55  ;;  %v11563_v59 = vadd.f32 %v11476_v19, %v11301_v42  ;;  %v11567_v30 = vadd.f32 %v11479_v22, %v11305_v48 }
 0xabe   :  { %12989 = vst [vmem:[#allocation40_spill] sm:$0xff] %v11523_v62  ;;  %12990 = vst [vmem:[#allocation15_spill] sm:$0xff] %v11527_v8  ;;  %v11571_v61 = vadd.f32 %v11476_v19, %v11309_v11  ;;  %v11575_v26 = vadd.f32 %v11479_v22, %v11313_v10  ;;  %v11579_v55 = vadd.f32 %v11476_v19, %v11317_v1 }
 0xabf   :  { %12991 = vst [vmem:[#allocation55_spill] sm:$0xff] %v11531_v9  ;;  %12992 = vst [vmem:[#allocation17_spill] sm:$0xff] %v11535_v6  ;;  %v11583_v42 = vadd.f32 %v11479_v22, %v11321_v15  ;;  %v11587_v48 = vadd.f32 %v11476_v19, %v11325_v63  ;;  %v11591_v11 = vadd.f32 %v11479_v22, %v11329_v2 }
 0xac0   :  { %12993 = vst [vmem:[#allocation16_spill] sm:$0xff] %v11539_v54  ;;  %12994 = vst [vmem:[#allocation56_spill] sm:$0xff] %v11543_v39  ;;  %v11595_v10 = vadd.f32 %v11476_v19, %v11333_v27  ;;  %v11599_v1 = vadd.f32 %v11479_v22, %v11337_v60  ;;  %v11603_v15 = vadd.f32 %v11476_v19, %v11341_v14 }
 0xac1   :  { %12995 = vst [vmem:[#allocation37_spill] sm:$0xff] %v11547_v57  ;;  %12996 = vst [vmem:[#allocation31_spill] sm:$0xff] %v11551_v53  ;;  %v11607_v63 = vadd.f32 %v11479_v22, %v11345_v32  ;;  %v11611_v2 = vadd.f32 %v11476_v19, %v11349_v47  ;;  %v11615_v27 = vadd.f32 %v11479_v22, %v11353_v0 }
 0xac2   :  { %12997 = vst [vmem:[#allocation32_spill] sm:$0xff] %v11555_v45  ;;  %12998 = vst [vmem:[#allocation58_spill] sm:$0xff] %v11563_v59  ;;  %v11619_v60 = vadd.f32 %v11476_v19, %v11357_v3  ;;  %v11623_v14 = vadd.f32 %v11479_v22, %v11361_v40  ;;  %v11627_v32 = vadd.f32 %v11476_v19, %v11365_v31 }
 0xac3   :  { %12999 = vst [vmem:[#allocation19_spill] sm:$0xff] %v11575_v26  ;;  %13000 = vst [vmem:[#allocation60_spill] sm:$0xff] %v11587_v48  ;;  %v11631_v47 = vadd.f32 %v11479_v22, %v11369_v44  ;;  %v11635_v0 = vadd.f32 %v11476_v19, %v11373_v29  ;;  %v11639_v3 = vadd.f32 %v11479_v22, %v11377_v38 }
 0xac4   :  { %13001 = vst [vmem:[#allocation21_spill] sm:$0xff] %v11599_v1  ;;  %13002 = vst [vmem:[#allocation57_spill] sm:$0xff] %v11611_v2  ;;  %v11643_v40 = vadd.f32 %v11476_v19, %v11381_v7  ;;  %v11647_v31 = vadd.f32 %v11479_v22, %v11385_v4  ;;  %v11651_v44 = vadd.f32 %v11476_v19, %v11389_v43 }
 0xac5   :  { %13003 = vst [vmem:[#allocation18_spill] sm:$0xff] %v11619_v60  ;;  %13004 = vst [vmem:[#allocation59_spill] sm:$0xff] %v11623_v14  ;;  %v11655_v29 = vadd.f32 %v11479_v22, %v11393_v20  ;;  %v11659_v38 = vadd.f32 %v11476_v19, %v11397_v37  ;;  %v11663_v7 = vadd.f32 %v11479_v22, %v11401_v23 }
 0xac6   :  { %13005 = vst [vmem:[#allocation20_spill] sm:$0xff] %v11627_v32  ;;  %13006 = vst [vmem:[#allocation26_spill] sm:$0xff] %v11635_v0  ;;  %v11667_v4 = vadd.f32 %v11476_v19, %v11405_v49  ;;  %v11671_v43 = vadd.f32 %v11479_v22, %v11409_v18  ;;  %v11675_v20 = vadd.f32 %v11476_v19, %v13014_v50 }
 0xac7   :  { %13007 = vst [vmem:[#allocation33_spill] sm:$0xff] %v11643_v40  ;;  %13008 = vst [vmem:[#allocation34_spill] sm:$0xff] %v11647_v31  ;;  %v11679_v37 = vadd.f32 %v11479_v22, %v13016_v12  ;;  %v11683_v23 = vadd.f32 %v11476_v19, %v13018_v25  ;;  %v11687_v49 = vadd.f32 %v11479_v22, %v13020_v35 }
 0xac8   :  { %13009 = vst [vmem:[#allocation62_spill] sm:$0xff] %v11651_v44  ;;  %13010 = vst [vmem:[#allocation23_spill] sm:$0xff] %v11655_v29 }
 0xac9   :  { %13011 = vst [vmem:[#allocation63_spill] sm:$0xff] %v11659_v38  ;;  %13012 = vst [vmem:[#allocation25_spill] sm:$0xff] %v11667_v4  ;;  %v13022_v4 = vld [vmem:[#allocation45_spill] sm:$0xff] }
 0xaca   :  { %13013 = vst [vmem:[#allocation61_spill] sm:$0xff] %v11671_v43  ;;  %13015 = vst [vmem:[#allocation22_spill] sm:$0xff] %v11675_v20  ;;  %v11691_v18 = vadd.f32 %v11476_v19, %v13022_v4  ;;  %v13024_v43 = vld [vmem:[#allocation30_spill] sm:$0xff]  ;;  %v13026_v20 = vld [vmem:[#allocation9_spill] sm:$0xff] }
 0xacb   :  { %13017 = vst [vmem:[#allocation41_spill] sm:$0xff] %v11679_v37  ;;  %13019 = vst [vmem:[#allocation24_spill] sm:$0xff] %v11683_v23  ;;  %v11695_v50 = vadd.f32 %v11479_v22, %v13024_v43  ;;  %v11699_v12 = vadd.f32 %v11476_v19, %v13026_v20  ;;  %v13028_v37 = vld [vmem:[#allocation66_spill] sm:$0xff]  ;;  %v11719_v20 = vadd.f32 %v11479_v22, %v11457_v46  ;;  %v11741_v46 = vmul.f32 0.01, %v11487_v13 }
 0xacc   :  { %13021 = vst [vmem:[#allocation35_spill] sm:$0xff] %v11687_v49  ;;  %13023 = vst [vmem:[#allocation42_spill] sm:$0xff] %v11691_v18  ;;  %v11703_v25 = vadd.f32 %v11479_v22, %v13028_v37  ;;  %v13030_v23 = vld [vmem:[#allocation50_spill] sm:$0xff]  ;;  %v13032_v49 = vld [vmem:[#allocation65_spill] sm:$0xff]  ;;  %v11723_v37 = vadd.f32 %v11476_v19, %v11461_v28  ;;  %v11744_v28 = vmul.f32 0.01, %v11491_v36 }
 0xacd   :  { %13025 = vst [vmem:[#allocation43_spill] sm:$0xff] %v11695_v50  ;;  %13027 = vst [vmem:[#allocation27_spill] sm:$0xff] %v11699_v12  ;;  %v11707_v35 = vadd.f32 %v11476_v19, %v13030_v23  ;;  %v11711_v4 = vadd.f32 %v11479_v22, %v13032_v49  ;;  %v13034_v18 = vld [vmem:[#allocation11_spill] sm:$0xff]  ;;  %v11727_v23 = vadd.f32 %v11479_v22, %v11465_v24  ;;  %v11747_v24 = vmul.f32 0.01, %v11495_v21 }
 0xace   :  { %13029 = vst [vmem:[#allocation44_spill] sm:$0xff] %v11703_v25  ;;  %v11715_v43 = vadd.f32 %v11476_v19, %v13034_v18  ;;  %13036 = vst [vmem:[#allocation10_spill] sm:$0xff] %v11719_v20  ;;  %v11731_v49 = vadd.f32 %v11476_v19, %v11469_v16  ;;  %v11735_v18 = vadd.f32 %v11479_v22, %v11473_v51  ;;  %v11753_v19 = vmul.f32 0.01, %v11503_v17 }
 0xacf   :  { %13031 = vst [vmem:[#allocation29_spill] sm:$0xff] %v11707_v35  ;;  %13033 = vst [vmem:[#allocation46_spill] sm:$0xff] %v11711_v4  ;;  %v11756_v16 = vmul.f32 0.01, %v11507_v52  ;;  %v11759_v51 = vmul.f32 0.01, %v11511_v5 }
 0xad0   :  { %13035 = vst [vmem:[#allocation64_spill] sm:$0xff] %v11715_v43  ;;  %13037 = vst [vmem:[#allocation28_spill] sm:$0xff] %v11723_v37  ;;  %v11738_v43 = vmul.f32 0.01, %v11483_v58  ;;  %v11762_v22 = vmul.f32 0.01, %v11515_v41 }
 0xad1   :  { %13038 = vst [vmem:[#allocation45_spill] sm:$0xff] %v11727_v23  ;;  %13039 = vst [vmem:[#allocation30_spill] sm:$0xff] %v11731_v49  ;;  %v11750_v23 = vmul.f32 0.01, %v11499_v34  ;;  %v11767_v49 = vmul.f32 0.01, %v11519_v56 }
 0xad2   :  { %13040 = vst [vmem:[#allocation9_spill] sm:$0xff] %v11735_v18  ;;  %13041 = vst [vmem:[#allocation66_spill] sm:$0xff] %v11738_v43  ;;  %v11770_v37 = vmul.f32 0.01, %v11523_v62  ;;  %v11773_v20 = vmul.f32 0.01, %v11527_v8 }
 0xad3   :  { %13042 = vst [vmem:[#allocation50_spill] sm:$0xff] %v11741_v46  ;;  %13043 = vst [vmem:[#allocation65_spill] sm:$0xff] %v11744_v28  ;;  %v11778_v35 = vmul.f32 0.01, %v11531_v9  ;;  %v11781_v25 = vmul.f32 0.01, %v11535_v6 }
 0xad4   :  { %13044 = vst [vmem:[#allocation11_spill] sm:$0xff] %v11747_v24  ;;  %13045 = vst [vmem:[#allocation67_spill] sm:$0xff] %v11750_v23  ;;  %v11784_v18 = vmul.f32 0.01, %v11539_v54  ;;  %v11789_v58 = vmul.f32 0.01, %v11543_v39 }
 0xad5   :  { %13046 = vst [vmem:[#allocation68_spill] sm:$0xff] %v11753_v19  ;;  %13047 = vst [vmem:[#allocation69_spill] sm:$0xff] %v11756_v16  ;;  %v11792_v12 = vmul.f32 0.01, %v11547_v57  ;;  %v11795_v4 = vmul.f32 0.01, %v11551_v53 }
 0xad6   :  { %13048 = vst [vmem:[#allocation70_spill] sm:$0xff] %v11759_v51  ;;  %13049 = vst [vmem:[#allocation71_spill] sm:$0xff] %v11762_v22  ;;  %v11800_v13 = vmul.f32 0.01, %v11555_v45  ;;  %v11803_v50 = vmul.f32 0.01, %v11559_v33 }
 0xad7   :  { %13050 = vst [vmem:[#allocation72_spill] sm:$0xff] %v11767_v49  ;;  %13051 = vst [vmem:[#allocation73_spill] sm:$0xff] %v11770_v37  ;;  %v11806_v43 = vmul.f32 0.01, %v11563_v59  ;;  %v11811_v36 = vmul.f32 0.01, %v11567_v30 }
 0xad8   :  { %13052 = vst [vmem:[#allocation74_spill] sm:$0xff] %v11773_v20  ;;  %13053 = vst [vmem:[#allocation75_spill] sm:$0xff] %v11778_v35  ;;  %v11814_v53 = vmul.f32 0.01, %v11571_v61  ;;  %v11817_v46 = vmul.f32 0.01, %v11575_v26 }
 0xad9   :  { %13054 = vst [vmem:[#allocation76_spill] sm:$0xff] %v11781_v25  ;;  %13055 = vst [vmem:[#allocation77_spill] sm:$0xff] %v11784_v18  ;;  %v11822_v21 = vmul.f32 0.01, %v11579_v55  ;;  %v11825_v59 = vmul.f32 0.01, %v11583_v42 }
 0xada   :  { %13056 = vst [vmem:[#allocation78_spill] sm:$0xff] %v11789_v58  ;;  %13057 = vst [vmem:[#allocation79_spill] sm:$0xff] %v11792_v12  ;;  %v11828_v28 = vmul.f32 0.01, %v11587_v48  ;;  %v11833_v34 = vmul.f32 0.01, %v11591_v11 }
 0xadb   :  { %13058 = vst [vmem:[#allocation80_spill] sm:$0xff] %v11795_v4  ;;  %13059 = vst [vmem:[#allocation81_spill] sm:$0xff] %v11800_v13  ;;  %v11836_v26 = vmul.f32 0.01, %v11595_v10  ;;  %v11839_v24 = vmul.f32 0.01, %v11599_v1 }
 0xadc   :  { %13060 = vst [vmem:[#allocation82_spill] sm:$0xff] %v11814_v53  ;;  %13061 = vst [vmem:[#allocation83_spill] sm:$0xff] %v11822_v21  ;;  %v11844_v17 = vmul.f32 0.01, %v11603_v15  ;;  %v11847_v48 = vmul.f32 0.01, %v11607_v63 }
 0xadd   :  { %13062 = vst [vmem:[#allocation84_spill] sm:$0xff] %v11836_v26  ;;  %v11850_v23 = vmul.f32 0.01, %v11611_v2  ;;  %v11855_v52 = vmul.f32 0.01, %v11615_v27  ;;  %v13080_v8 = vld [vmem:[#allocation22_spill] sm:$0xff] }
 0xade   :  { %13063 = vst [vmem:[#allocation85_spill] sm:$0xff] %v11844_v17  ;;  %v11858_v1 = vmul.f32 0.01, %v11619_v60  ;;  %v11861_v19 = vmul.f32 0.01, %v11623_v14  ;;  %v13086_v9 = vld [vmem:[#allocation35_spill] sm:$0xff] }
 0xadf   :  { %13064 = vst [vmem:[#allocation86_spill] sm:$0xff] %v11850_v23  ;;  %v11866_v5 = vmul.f32 0.01, %v11627_v32  ;;  %v11869_v2 = vmul.f32 0.01, %v11631_v47  ;;  %v13091_v6 = vld [vmem:[#allocation27_spill] sm:$0xff] }
 0xae0   :  { %13065 = vst [vmem:[#allocation87_spill] sm:$0xff] %v11858_v1  ;;  %v11872_v16 = vmul.f32 0.01, %v11635_v0  ;;  %v11877_v41 = vmul.f32 0.01, %v11639_v3  ;;  %v13097_v54 = vld [vmem:[#allocation46_spill] sm:$0xff] }
 0xae1   :  { %13066 = vst [vmem:[#allocation88_spill] sm:$0xff] %v11866_v5  ;;  %13067 = vst [vmem:[#allocation89_spill] sm:$0xff] %v11869_v2  ;;  %v11880_v14 = vmul.f32 0.01, %v11643_v40  ;;  %v11883_v51 = vmul.f32 0.01, %v11647_v31 }
 0xae2   :  { %13068 = vst [vmem:[#allocation90_spill] sm:$0xff] %v11872_v16  ;;  %13069 = vst [vmem:[#allocation91_spill] sm:$0xff] %v11877_v41  ;;  %v11888_v56 = vmul.f32 0.01, %v11651_v44  ;;  %v11891_v0 = vmul.f32 0.01, %v11655_v29 }
 0xae3   :  { %13070 = vst [vmem:[#allocation92_spill] sm:$0xff] %v11880_v14  ;;  %13071 = vst [vmem:[#allocation93_spill] sm:$0xff] %v11883_v51  ;;  %v11894_v22 = vmul.f32 0.01, %v11659_v38  ;;  %v11899_v62 = vmul.f32 0.01, %v11663_v7 }
 0xae4   :  { %13072 = vst [vmem:[#allocation94_spill] sm:$0xff] %v11888_v56  ;;  %13073 = vst [vmem:[#allocation95_spill] sm:$0xff] %v11891_v0  ;;  %v13076_v31 = vld [vmem:[#allocation25_spill] sm:$0xff]  ;;  %v11910_v29 = vmul.f32 0.01, %v13080_v8  ;;  %v13084_v0 = vld [vmem:[#allocation24_spill] sm:$0xff] }
 0xae5   :  { %13074 = vst [vmem:[#allocation96_spill] sm:$0xff] %v11894_v22  ;;  %13075 = vst [vmem:[#allocation97_spill] sm:$0xff] %v11899_v62  ;;  %v11902_v51 = vmul.f32 0.01, %v13076_v31  ;;  %v13078_v40 = vld [vmem:[#allocation61_spill] sm:$0xff]  ;;  %v13111_v39 = vld [vmem:[#allocation58_spill] sm:$0xff] }
 0xae6   :  { %v11905_v49 = vmul.f32 0.01, %v13078_v40  ;;  %13081 = vst [vmem:[#allocation100_spill] sm:$0xff] %v11910_v29  ;;  %v13082_v38 = vld [vmem:[#allocation41_spill] sm:$0xff]  ;;  %v11916_v37 = vmul.f32 0.01, %v13084_v0 }
 0xae7   :  { %13077 = vst [vmem:[#allocation98_spill] sm:$0xff] %v11902_v51  ;;  %v11913_v22 = vmul.f32 0.01, %v13082_v38  ;;  %v11921_v31 = vmul.f32 0.01, %v13086_v9  ;;  %v13087_v40 = vld [vmem:[#allocation42_spill] sm:$0xff] }
 0xae8   :  { %13079 = vst [vmem:[#allocation99_spill] sm:$0xff] %v11905_v49  ;;  %13085 = vst [vmem:[#allocation102_spill] sm:$0xff] %v11916_v37  ;;  %v11924_v49 = vmul.f32 0.01, %v13087_v40  ;;  %v13089_v51 = vld [vmem:[#allocation43_spill] sm:$0xff]  ;;  %v13093_v0 = vld [vmem:[#allocation44_spill] sm:$0xff] }
 0xae9   :  { %13083 = vst [vmem:[#allocation101_spill] sm:$0xff] %v11913_v22  ;;  %v11927_v20 = vmul.f32 0.01, %v13089_v51  ;;  %v11932_v38 = vmul.f32 0.01, %v13091_v6  ;;  %v13095_v22 = vld [vmem:[#allocation29_spill] sm:$0xff] }
 0xaea   :  { %13088 = vst [vmem:[#allocation35_spill] sm:$0xff] %v11924_v49  ;;  %v11935_v37 = vmul.f32 0.01, %v13093_v0  ;;  %v11938_v35 = vmul.f32 0.01, %v13095_v22  ;;  %v13098_v51 = vld [vmem:[#allocation64_spill] sm:$0xff] }
 0xaeb   :  { %13090 = vst [vmem:[#allocation103_spill] sm:$0xff] %v11927_v20  ;;  %13092 = vst [vmem:[#allocation104_spill] sm:$0xff] %v11932_v38  ;;  %v11943_v40 = vmul.f32 0.01, %v13097_v54  ;;  %v11946_v20 = vmul.f32 0.01, %v13098_v51 }
 0xaec   :  { %13094 = vst [vmem:[#allocation105_spill] sm:$0xff] %v11935_v37  ;;  %13096 = vst [vmem:[#allocation106_spill] sm:$0xff] %v11938_v35  ;;  %v13100_v49 = vld [vmem:[#allocation10_spill] sm:$0xff]  ;;  %v13103_v0 = vld [vmem:[#allocation28_spill] sm:$0xff] }
 0xaed   :  { %13099 = vst [vmem:[#allocation46_spill] sm:$0xff] %v11946_v20  ;;  %v11949_v25 = vmul.f32 0.01, %v13100_v49  ;;  %v11954_v37 = vmul.f32 0.01, %v13103_v0  ;;  %v13105_v22 = vld [vmem:[#allocation45_spill] sm:$0xff] }
 0xaee   :  { %v11957_v35 = vmul.f32 0.01, %v13105_v22  ;;  %v13107_v6 = vld [vmem:[#allocation30_spill] sm:$0xff]  ;;  %v13109_v57 = vld [vmem:[#allocation9_spill] sm:$0xff]  ;;  %v13113_v49 = vld [vmem:[#allocation60_spill] sm:$0xff] }
 0xaef   :  { %13101 = vst [vmem:[#allocation107_spill] sm:$0xff] %v11949_v25  ;;  %13104 = vst [vmem:[#allocation108_spill] sm:$0xff] %v11954_v37  ;;  %v11960_v18 = vmul.f32 0.01, %v13107_v6  ;;  %v11965_v51 = vmul.f32 0.01, %v13109_v57 }
 0xaf0   :  { %13106 = vst [vmem:[#allocation109_spill] sm:$0xff] %v11957_v35  ;;  %v13112_v6 = vld [vmem:[#allocation19_spill] sm:$0xff]  ;;  %v13114_v22 = vld [vmem:[#allocation21_spill] sm:$0xff]  ;;  %v13120_v4 = vld [vmem:[#allocation34_spill] sm:$0xff] }
 0xaf1   :  { %13108 = vst [vmem:[#allocation110_spill] sm:$0xff] %v11960_v18  ;;  %13110 = vst [vmem:[#allocation111_spill] sm:$0xff] %v11965_v51  ;;  %v13116_v58 = vld [vmem:[#allocation59_spill] sm:$0xff]  ;;  %v13119_v13 = vld [vmem:[#allocation93_spill] sm:$0xff] }
 0xaf2   :  { %v13122_v53 = vld [vmem:[#allocation23_spill] sm:$0xff]  ;;  %v13128_v23 = vld [vmem:[#allocation61_spill] sm:$0xff]  ;;  %v13132_v5 = vld [vmem:[#allocation24_spill] sm:$0xff] }
 0xaf3   :  { %v13130_v26 = vld [vmem:[#allocation41_spill] sm:$0xff]  ;;  %v13135_v62 = vld [vmem:[#allocation103_spill] sm:$0xff]  ;;  %v13139_v1 = vld [vmem:[#allocation44_spill] sm:$0xff] }
 0xaf4   :  { %v13136_v12 = vld [vmem:[#allocation43_spill] sm:$0xff]  ;;  %v13138_v41 = vld [vmem:[#allocation105_spill] sm:$0xff]  ;;  %v13143_v18 = vld [vmem:[#allocation10_spill] sm:$0xff] }
 0xaf5   :  { %7315 = dma.done.wait [#allocation3], 8192 }
 0xaf6   :  { %7316 = vsyncadd [#allocation3], 4294959104  ;;  %v13147_v60 = vld [vmem:[#allocation49_spill] sm:$0xff]  ;;  %v13148_v8 = vld [vmem:[#allocation50_spill] sm:$0xff] }
 0xaf7   :  { %v13149_v44 = vmax.f32 %v13147_v60, %v13148_v8  ;;  %v13150_v20 = vld [vmem:[#allocation47_spill] sm:$0xff]  ;;  %v5707_v16 = vld [vmem:[#allocation2 + $0x8] sm:$0xff]  ;;  %v5709_v37 = vld [vmem:[#allocation2 + $0x18] sm:$0xff] }
 0xaf8   :  { %v13151_v2 = vld [vmem:[#allocation11_spill] sm:$0xff]  ;;  %v5706_v38 = vld [vmem:[#allocation2] sm:$0xff]  ;;  %5792 = vmatprep.subr.bf16.mxu0 %v5707_v16  ;;  %5985 = vmatprep.subr.bf16.mxu1 %v5709_v37  ;;  %v5711_v14 = vld [vmem:[#allocation2 + $0x28] sm:$0xff] }
 0xaf9   :  { %v13152_v32 = vmax.f32 %v13150_v20, %v13151_v2  ;;  %v5708_v17 = vld [vmem:[#allocation2 + $0x10] sm:$0xff]  ;;  %v5713_v29 = vld [vmem:[#allocation2 + $0x38] sm:$0xff]  ;;  %5793 = vmatpush1.bf16.msra.mxu0 %v5706_v38  ;;  %v5710_v45 = vld [vmem:[#allocation2 + $0x20] sm:$0xff] }
 0xafa   :  { %5986 = vmatpush1.bf16.msra.mxu1 %v5708_v17  ;;  %5794 = vmatprep.subr.bf16.mxu0 %v5711_v14  ;;  %v5712_v8 = vld [vmem:[#allocation2 + $0x30] sm:$0xff]  ;;  %v5715_v60 = vld [vmem:[#allocation2 + $0x48] sm:$0xff]  ;;  %v5717_v0 = vld [vmem:[#allocation2 + $0x58] sm:$0xff] }
 0xafb   :  { %v5675_v56 = vpack.c.bf16 %v13152_v32, %v13149_v44  ;;  %5987 = vmatprep.subr.bf16.mxu1 %v5713_v29  ;;  %v5716_v2 = vld [vmem:[#allocation2 + $0x50] sm:$0xff]  ;;  %v5719_v32 = vld [vmem:[#allocation2 + $0x68] sm:$0xff]  ;;  %v5721_v44 = vld [vmem:[#allocation2 + $0x78] sm:$0xff] }
 0xafc   :  { %v5718_v38 = vld [vmem:[#allocation2 + $0x60] sm:$0xff]  ;;  %v5720_v17 = vld [vmem:[#allocation2 + $0x70] sm:$0xff]  ;;  %v5723_v14 = vld [vmem:[#allocation2 + $0x88] sm:$0xff] }
 0xafd   :  { %5824 = vmatprep.mubr.bf16.mxu0 %v5675_v56  ;;  %6017 = vmatprep.mubr.bf16.mxu1 %v5675_v56  ;;  %v5714_v56 = vld [vmem:[#allocation2 + $0x40] sm:$0xff]  ;;  %v5725_v29 = vld [vmem:[#allocation2 + $0x98] sm:$0xff]  ;;  %v5724_v20 = vld [vmem:[#allocation2 + $0x90] sm:$0xff] }
 0xafe   :  { %5795 = vmatpush1.bf16.msra.mxu0 %v5710_v45  ;;  %5988 = vmatpush1.bf16.msra.mxu1 %v5712_v8  ;;  %v5722_v45 = vld [vmem:[#allocation2 + $0x80] sm:$0xff]  ;;  %v5727_v37 = vld [vmem:[#allocation2 + $0xa8] sm:$0xff]  ;;  %v5728_v8 = vld [vmem:[#allocation2 + $0xb0] sm:$0xff] }
 0xaff   :  { %5796 = vmatprep.subr.bf16.mxu0 %v5715_v60  ;;  %5989 = vmatprep.subr.bf16.mxu1 %v5717_v0  ;;  %v5729_v0 = vld [vmem:[#allocation2 + $0xb8] sm:$0xff]  ;;  %v5726_v16 = vld [vmem:[#allocation2 + $0xa0] sm:$0xff]  ;;  %v5731_v60 = vld [vmem:[#allocation2 + $0xc8] sm:$0xff] }
 0xb00   :  { %v13162_v57 = vld [vmem:[#allocation53_spill] sm:$0xff]  ;;  %v13163_v35 = vld [vmem:[#allocation70_spill] sm:$0xff] }
 0xb01   :  { %v13169_v21 = vld [vmem:[#allocation69_spill] sm:$0xff] }
 0xb02   :  { %5797 = vmatpush1.bf16.msra.mxu0 %v5714_v56  ;;  %5990 = vmatpush1.bf16.msra.mxu1 %v5716_v2  ;;  %v5733_v56 = vld [vmem:[#allocation2 + $0xd8] sm:$0xff]  ;;  %v5730_v2 = vld [vmem:[#allocation2 + $0xc0] sm:$0xff] }
 0xb03   :  { %5798 = vmatprep.subr.bf16.mxu0 %v5719_v32  ;;  %5991 = vmatprep.subr.bf16.mxu1 %v5721_v44  ;;  %v5732_v32 = vld [vmem:[#allocation2 + $0xd0] sm:$0xff]  ;;  %v5735_v44 = vld [vmem:[#allocation2 + $0xe8] sm:$0xff] }
 0xb06   :  { %5799 = vmatpush1.bf16.msra.mxu0 %v5718_v38  ;;  %5992 = vmatpush1.bf16.msra.mxu1 %v5720_v17  ;;  %v5737_v38 = vld [vmem:[#allocation2 + $0xf8] sm:$0xff]  ;;  %v5734_v17 = vld [vmem:[#allocation2 + $0xe0] sm:$0xff] }
 0xb07   :  { %5800 = vmatprep.subr.bf16.mxu0 %v5723_v14  ;;  %5993 = vmatprep.subr.bf16.mxu1 %v5725_v29  ;;  %v5736_v14 = vld [vmem:[#allocation2 + $0xf0] sm:$0xff]  ;;  %v5739_v29 = vld [vmem:[#allocation2 + $0x108] sm:$0xff] }
 0xb0a   :  { %5801 = vmatpush1.bf16.msra.mxu0 %v5722_v45  ;;  %5994 = vmatpush1.bf16.msra.mxu1 %v5724_v20  ;;  %v5741_v45 = vld [vmem:[#allocation2 + $0x118] sm:$0xff]  ;;  %v5738_v20 = vld [vmem:[#allocation2 + $0x100] sm:$0xff] }
 0xb0b   :  { %5802 = vmatprep.subr.bf16.mxu0 %v5727_v37  ;;  %5995 = vmatprep.subr.bf16.mxu1 %v5729_v0  ;;  %v5740_v37 = vld [vmem:[#allocation2 + $0x110] sm:$0xff]  ;;  %v5743_v0 = vld [vmem:[#allocation2 + $0x128] sm:$0xff] }
 0xb0e   :  { %5803 = vmatpush1.bf16.msra.mxu0 %v5726_v16  ;;  %5996 = vmatpush1.bf16.msra.mxu1 %v5728_v8  ;;  %v5745_v16 = vld [vmem:[#allocation2 + $0x138] sm:$0xff]  ;;  %v5742_v8 = vld [vmem:[#allocation2 + $0x120] sm:$0xff] }
 0xb0f   :  { %5804 = vmatprep.subr.bf16.mxu0 %v5731_v60  ;;  %5997 = vmatprep.subr.bf16.mxu1 %v5733_v56  ;;  %v5744_v60 = vld [vmem:[#allocation2 + $0x130] sm:$0xff]  ;;  %v5747_v56 = vld [vmem:[#allocation2 + $0x148] sm:$0xff] }
 0xb12   :  { %5805 = vmatpush1.bf16.msra.mxu0 %v5730_v2  ;;  %5998 = vmatpush1.bf16.msra.mxu1 %v5732_v32  ;;  %v5749_v2 = vld [vmem:[#allocation2 + $0x158] sm:$0xff]  ;;  %v5746_v32 = vld [vmem:[#allocation2 + $0x140] sm:$0xff] }
 0xb13   :  { %5806 = vmatprep.subr.bf16.mxu0 %v5735_v44  ;;  %5999 = vmatprep.subr.bf16.mxu1 %v5737_v38  ;;  %v5748_v44 = vld [vmem:[#allocation2 + $0x150] sm:$0xff]  ;;  %v5751_v38 = vld [vmem:[#allocation2 + $0x168] sm:$0xff] }
 0xb16   :  { %5807 = vmatpush1.bf16.msra.mxu0 %v5734_v17  ;;  %6000 = vmatpush1.bf16.msra.mxu1 %v5736_v14  ;;  %v5753_v17 = vld [vmem:[#allocation2 + $0x178] sm:$0xff]  ;;  %v5750_v14 = vld [vmem:[#allocation2 + $0x160] sm:$0xff] }
 0xb17   :  { %5808 = vmatprep.subr.bf16.mxu0 %v5739_v29  ;;  %6001 = vmatprep.subr.bf16.mxu1 %v5741_v45  ;;  %v5752_v29 = vld [vmem:[#allocation2 + $0x170] sm:$0xff]  ;;  %v5755_v45 = vld [vmem:[#allocation2 + $0x188] sm:$0xff] }
 0xb1a   :  { %5809 = vmatpush1.bf16.msra.mxu0 %v5738_v20  ;;  %6002 = vmatpush1.bf16.msra.mxu1 %v5740_v37  ;;  %v5757_v20 = vld [vmem:[#allocation2 + $0x198] sm:$0xff]  ;;  %v5754_v37 = vld [vmem:[#allocation2 + $0x180] sm:$0xff] }
 0xb1b   :  { %5810 = vmatprep.subr.bf16.mxu0 %v5743_v0  ;;  %6003 = vmatprep.subr.bf16.mxu1 %v5745_v16  ;;  %v5756_v0 = vld [vmem:[#allocation2 + $0x190] sm:$0xff]  ;;  %v5759_v16 = vld [vmem:[#allocation2 + $0x1a8] sm:$0xff] }
 0xb1e   :  { %5811 = vmatpush1.bf16.msra.mxu0 %v5742_v8  ;;  %6004 = vmatpush1.bf16.msra.mxu1 %v5744_v60  ;;  %v5761_v8 = vld [vmem:[#allocation2 + $0x1b8] sm:$0xff]  ;;  %v5758_v60 = vld [vmem:[#allocation2 + $0x1a0] sm:$0xff] }
 0xb1f   :  { %5812 = vmatprep.subr.bf16.mxu0 %v5747_v56  ;;  %6005 = vmatprep.subr.bf16.mxu1 %v5749_v2  ;;  %v5760_v56 = vld [vmem:[#allocation2 + $0x1b0] sm:$0xff]  ;;  %v5763_v2 = vld [vmem:[#allocation2 + $0x1c8] sm:$0xff] }
 0xb22   :  { %5813 = vmatpush1.bf16.msra.mxu0 %v5746_v32  ;;  %6006 = vmatpush1.bf16.msra.mxu1 %v5748_v44  ;;  %v5765_v32 = vld [vmem:[#allocation2 + $0x1d8] sm:$0xff]  ;;  %v5762_v44 = vld [vmem:[#allocation2 + $0x1c0] sm:$0xff] }
 0xb23   :  { %5814 = vmatprep.subr.bf16.mxu0 %v5751_v38  ;;  %6007 = vmatprep.subr.bf16.mxu1 %v5753_v17  ;;  %v5764_v38 = vld [vmem:[#allocation2 + $0x1d0] sm:$0xff]  ;;  %v5767_v17 = vld [vmem:[#allocation2 + $0x1e8] sm:$0xff] }
 0xb26   :  { %5815 = vmatpush1.bf16.msra.mxu0 %v5750_v14  ;;  %6008 = vmatpush1.bf16.msra.mxu1 %v5752_v29  ;;  %v5769_v14 = vld [vmem:[#allocation2 + $0x1f8] sm:$0xff]  ;;  %v5766_v29 = vld [vmem:[#allocation2 + $0x1e0] sm:$0xff] }
 0xb27   :  { %5816 = vmatprep.subr.bf16.mxu0 %v5755_v45  ;;  %6009 = vmatprep.subr.bf16.mxu1 %v5757_v20  ;;  %v5768_v45 = vld [vmem:[#allocation2 + $0x1f0] sm:$0xff]  ;;  %v13153_v20 = vld [vmem:[#allocation48_spill] sm:$0xff] }
 0xb2a   :  { %5817 = vmatpush1.bf16.msra.mxu0 %v5754_v37  ;;  %6010 = vmatpush1.bf16.msra.mxu1 %v5756_v0  ;;  %v13154_v37 = vld [vmem:[#allocation66_spill] sm:$0xff] }
 0xb2b   :  { %5818 = vmatprep.subr.bf16.mxu0 %v5759_v16  ;;  %6011 = vmatprep.subr.bf16.mxu1 %v5761_v8  ;;  %v13155_v0 = vmax.f32 %v13153_v20, %v13154_v37  ;;  %v13156_v16 = vld [vmem:[#allocation12_spill] sm:$0xff]  ;;  %v13157_v8 = vld [vmem:[#allocation65_spill] sm:$0xff] }
 0xb2c   :  { %v13158_v51 = vmax.f32 %v13156_v16, %v13157_v8  ;;  %v13168_v37 = vld [vmem:[#allocation52_spill] sm:$0xff]  ;;  %v13174_v8 = vld [vmem:[#allocation15_spill] sm:$0xff] }
 0xb2d   :  { %v13170_v16 = vmax.f32 %v13168_v37, %v13169_v21  ;;  %v13183_v21 = vld [vmem:[#allocation17_spill] sm:$0xff]  ;;  %v13186_v37 = vld [vmem:[#allocation56_spill] sm:$0xff] }
 0xb2e   :  { %5819 = vmatpush1.bf16.msra.mxu0 %v5758_v60  ;;  %6012 = vmatpush1.bf16.msra.mxu1 %v5760_v56  ;;  %v5674_v60 = vpack.c.bf16 %v13158_v51, %v13155_v0  ;;  %v13159_v56 = vld [vmem:[#allocation51_spill] sm:$0xff] }
 0xb2f   :  { %5820 = vmatprep.subr.bf16.mxu0 %v5763_v2  ;;  %6013 = vmatprep.subr.bf16.mxu1 %v5765_v32  ;;  %v13160_v2 = vld [vmem:[#allocation68_spill] sm:$0xff] }
 0xb30   :  { %v13161_v32 = vmax.f32 %v13159_v56, %v13160_v2  ;;  %v13175_v56 = vld [vmem:[#allocation74_spill] sm:$0xff] }
 0xb31   :  { %v13176_v2 = vmax.f32 %v13174_v8, %v13175_v56  ;;  %v13192_v8 = vld [vmem:[#allocation16_spill] sm:$0xff]  ;;  %v13193_v56 = vld [vmem:[#allocation77_spill] sm:$0xff] }
 0xb32   :  { %5821 = vmatpush1.bf16.msra.mxu0 %v5762_v44  ;;  %6014 = vmatpush1.bf16.msra.mxu1 %v5764_v38  ;;  %v13164_v44 = vmax.f32 %v13162_v57, %v13163_v35  ;;  %v13177_v57 = vld [vmem:[#allocation54_spill] sm:$0xff]  ;;  %v13178_v35 = vld [vmem:[#allocation71_spill] sm:$0xff] }
 0xb33   :  { %5822 = vmatprep.subr.bf16.mxu0 %v5767_v17  ;;  %6015 = vmatprep.subr.bf16.mxu1 %v5769_v14  ;;  %v13165_v17 = vld [vmem:[#allocation13_spill] sm:$0xff]  ;;  %v13166_v14 = vld [vmem:[#allocation67_spill] sm:$0xff] }
 0xb34   :  { %v5677_v38 = vpack.c.bf16 %v13164_v44, %v13161_v32  ;;  %v13167_v20 = vmax.f32 %v13165_v17, %v13166_v14  ;;  %v13180_v32 = vld [vmem:[#allocation40_spill] sm:$0xff]  ;;  %v13181_v44 = vld [vmem:[#allocation73_spill] sm:$0xff] }
 0xb35   :  { %v13184_v14 = vld [vmem:[#allocation76_spill] sm:$0xff] }
 0xb36   :  { %5823 = vmatpush1.bf16.msra.mxu0 %v5766_v29  ;;  %6016 = vmatpush1.bf16.msra.mxu1 %v5768_v45  ;;  %v5676_v51 = vpack.c.bf16 %v13170_v16, %v13167_v20  ;;  %v13171_v29 = vld [vmem:[#allocation14_spill] sm:$0xff]  ;;  %v13172_v45 = vld [vmem:[#allocation72_spill] sm:$0xff]  ;;  %v13185_v20 = vmax.f32 %v13183_v21, %v13184_v14  ;;  %v13200_v21 = vld [vmem:[#allocation79_spill] sm:$0xff] }
 0xb37   :  { %v13173_v0 = vmax.f32 %v13171_v29, %v13172_v45  ;;  %v13187_v16 = vld [vmem:[#allocation78_spill] sm:$0xff] }
 0xb38   :  { %v13188_v29 = vmax.f32 %v13186_v37, %v13187_v16  ;;  %v13203_v37 = vld [vmem:[#allocation81_spill] sm:$0xff] }
 0xb39   :  { %5825 = vmatmul.mubr.bf16.vlgmr.msra.gmra.mrb[120].mxu0 %v5674_v60  ;;  %6018 = vmatmul.mubr.bf16.vlgmr.msra.gmra.mrb[200].mxu1 %v5674_v60  ;;  %v5679_v25 = vpack.c.bf16 %v13176_v2, %v13173_v0  ;;  %v13179_v60 = vmax.f32 %v13177_v57, %v13178_v35  ;;  %v13194_v2 = vmax.f32 %v13192_v8, %v13193_v56  ;;  %v13195_v35 = vld [vmem:[#allocation31_spill] sm:$0xff] }
 0xb3a   :  { %5834 = vmatprep.mubr.bf16.mxu0 %v5677_v38  ;;  %6027 = vmatprep.mubr.bf16.mxu1 %v5677_v38  ;;  %v13182_v38 = vmax.f32 %v13180_v32, %v13181_v44  ;;  %v5681_v45 = vpack.c.bf16 %v13188_v29, %v13185_v20  ;;  %v13198_v44 = vmax.f32 %v11559_v33, %v11803_v50  ;;  %v13202_v20 = vld [vmem:[#allocation32_spill] sm:$0xff]  ;;  %v13208_v50 = vld [vmem:[#allocation82_spill] sm:$0xff] }
 0xb3b   :  { %v13204_v16 = vmax.f32 %v13202_v20, %v13203_v37  ;;  %v13207_v33 = vmax.f32 %v13111_v39, %v11806_v43  ;;  %v13210_v56 = vmax.f32 %v11583_v42, %v11825_v59  ;;  %v13214_v39 = vmax.f32 %v13113_v49, %v11828_v28 }
 0xb3c   :  { %v5678_v17 = vpack.c.bf16 %v13182_v38, %v13179_v60  ;;  %v13196_v60 = vld [vmem:[#allocation80_spill] sm:$0xff]  ;;  %v13216_v59 = vmax.f32 %v11607_v63, %v11847_v48  ;;  %v13221_v49 = vmax.f32 %v11615_v27, %v11855_v52  ;;  %v13222_v28 = vmax.f32 %v13116_v58, %v11861_v19  ;;  %v13223_v48 = vld [vmem:[#allocation57_spill] sm:$0xff]  ;;  %v13224_v63 = vld [vmem:[#allocation86_spill] sm:$0xff] }
 0xb3d   :  { %v13197_v32 = vmax.f32 %v13195_v35, %v13196_v60  ;;  %v13226_v35 = vld [vmem:[#allocation18_spill] sm:$0xff]  ;;  %v13231_v52 = vld [vmem:[#allocation91_spill] sm:$0xff]  ;;  %v13233_v58 = vld [vmem:[#allocation20_spill] sm:$0xff] }
 0xb3e   :  { %v13232_v27 = vmax.f32 %v11639_v3, %v13231_v52  ;;  %v13234_v19 = vld [vmem:[#allocation88_spill] sm:$0xff]  ;;  %v13242_v3 = vld [vmem:[#allocation33_spill] sm:$0xff]  ;;  %v13281_v52 = vld [vmem:[#allocation46_spill] sm:$0xff] }
 0xb3f   :  { %v5683_v38 = vpack.c.bf16 %v13198_v44, %v13197_v32 }
 0xb41   :  { %5835 = vmatmul.mubr.bf16.gmra.mrb[124].mxu0 %v5676_v51  ;;  %6028 = vmatmul.mubr.bf16.gmra.mrb[204].mxu1 %v5676_v51  ;;  %v13189_v51 = vld [vmem:[#allocation55_spill] sm:$0xff] }
 0xb42   :  { %5844 = vmatprep.mubr.bf16.mxu0 %v5679_v25  ;;  %6037 = vmatprep.mubr.bf16.mxu1 %v5679_v25  ;;  %v13190_v25 = vld [vmem:[#allocation75_spill] sm:$0xff] }
 0xb43   :  { %v13191_v0 = vmax.f32 %v13189_v51, %v13190_v25  ;;  %v13206_v51 = vmax.f32 %v13112_v6, %v11817_v46  ;;  %v13212_v6 = vld [vmem:[#allocation83_spill] sm:$0xff] }
 0xb44   :  { %v13213_v46 = vmax.f32 %v11579_v55, %v13212_v6  ;;  %v13219_v55 = vld [vmem:[#allocation85_spill] sm:$0xff]  ;;  %v13253_v6 = vld [vmem:[#allocation96_spill] sm:$0xff] }
 0xb45   :  { %v5680_v57 = vpack.c.bf16 %v13194_v2, %v13191_v0  ;;  %v13209_v0 = vmax.f32 %v11571_v61, %v13208_v50  ;;  %v13215_v61 = vmax.f32 %v13114_v22, %v11839_v24  ;;  %v13220_v2 = vmax.f32 %v11603_v15, %v13219_v55  ;;  %v13229_v15 = vld [vmem:[#allocation89_spill] sm:$0xff]  ;;  %v13246_v50 = vld [vmem:[#allocation94_spill] sm:$0xff]  ;;  %v13262_v55 = vld [vmem:[#allocation100_spill] sm:$0xff] }
 0xb46   :  { %v5686_v43 = vpack.c.bf16 %v13214_v39, %v13213_v46  ;;  %v5691_v24 = vpack.c.bf16 %v13222_v28, %v13221_v49  ;;  %v13225_v22 = vmax.f32 %v13223_v48, %v13224_v63  ;;  %v13230_v44 = vmax.f32 %v11631_v47, %v13229_v15  ;;  %v13240_v47 = vld [vmem:[#allocation95_spill] sm:$0xff]  ;;  %v13255_v39 = vld [vmem:[#allocation25_spill] sm:$0xff] }
 0xb47   :  { %v5684_v8 = vpack.c.bf16 %v13209_v0, %v13207_v33  ;;  %v5689_v42 = vpack.c.bf16 %v13216_v59, %v13215_v61  ;;  %v13245_v33 = vld [vmem:[#allocation62_spill] sm:$0xff] }
 0xb48   :  { %v13247_v0 = vmax.f32 %v13245_v33, %v13246_v50  ;;  %v13296_v50 = vld [vmem:[#allocation38_spill] sm:$0xff] }
 0xb49   :  { %5845 = vmatmul.mubr.bf16.gmra.mrb[128].mxu0 %v5678_v17  ;;  %6038 = vmatmul.mubr.bf16.gmra.mrb[208].mxu1 %v5678_v17  ;;  %v13199_v17 = vld [vmem:[#allocation37_spill] sm:$0xff] }
 0xb4a   :  { %5854 = vmatprep.mubr.bf16.mxu0 %v5681_v45  ;;  %6047 = vmatprep.mubr.bf16.mxu1 %v5681_v45  ;;  %v13201_v14 = vmax.f32 %v13199_v17, %v13200_v21  ;;  %v13205_v45 = vmax.f32 %v11567_v30, %v11811_v36  ;;  %v13211_v36 = vmax.f32 %v11591_v11, %v11833_v34  ;;  %v13217_v34 = vld [vmem:[#allocation84_spill] sm:$0xff]  ;;  %v13236_v21 = vld [vmem:[#allocation26_spill] sm:$0xff] }
 0xb4b   :  { %v13218_v11 = vmax.f32 %v11595_v10, %v13217_v34  ;;  %v13227_v10 = vld [vmem:[#allocation87_spill] sm:$0xff]  ;;  %v13235_v17 = vmax.f32 %v13233_v58, %v13234_v19  ;;  %v13283_v58 = vld [vmem:[#allocation45_spill] sm:$0xff] }
 0xb4c   :  { %v5682_v29 = vpack.c.bf16 %v13204_v16, %v13201_v14  ;;  %v5685_v25 = vpack.c.bf16 %v13206_v51, %v13205_v45  ;;  %v5687_v30 = vpack.c.bf16 %v13211_v36, %v13210_v56  ;;  %v13228_v60 = vmax.f32 %v13226_v35, %v13227_v10  ;;  %v13237_v14 = vld [vmem:[#allocation90_spill] sm:$0xff]  ;;  %v13243_v51 = vld [vmem:[#allocation92_spill] sm:$0xff]  ;;  %v13248_v56 = vld [vmem:[#allocation97_spill] sm:$0xff] }
 0xb4d   :  { %v13238_v20 = vmax.f32 %v13236_v21, %v13237_v14  ;;  %v13239_v16 = vmax.f32 %v13120_v4, %v13119_v13  ;;  %v13249_v36 = vmax.f32 %v11663_v7, %v13248_v56  ;;  %v13250_v13 = vld [vmem:[#allocation99_spill] sm:$0xff]  ;;  %v13260_v7 = vmax.f32 %v13086_v9, %v11921_v31  ;;  %v13268_v9 = vld [vmem:[#allocation42_spill] sm:$0xff]  ;;  %v13272_v35 = vld [vmem:[#allocation104_spill] sm:$0xff] }
 0xb4e   :  { %v5690_v32 = vpack.c.bf16 %v13228_v60, %v13225_v22  ;;  %v13251_v4 = vmax.f32 %v13128_v23, %v13250_v13  ;;  %v13261_v23 = vld [vmem:[#allocation22_spill] sm:$0xff]  ;;  %v13269_v31 = vld [vmem:[#allocation35_spill] sm:$0xff]  ;;  %v13284_v19 = vld [vmem:[#allocation109_spill] sm:$0xff] }
 0xb4f   :  { %v5692_v37 = vpack.c.bf16 %v13238_v20, %v13235_v17  ;;  %v13270_v63 = vmax.f32 %v13268_v9, %v13269_v31  ;;  %v13271_v22 = vld [vmem:[#allocation27_spill] sm:$0xff]  ;;  %v13285_v17 = vmax.f32 %v13283_v58, %v13284_v19  ;;  %v13286_v21 = vld [vmem:[#allocation9_spill] sm:$0xff]  ;;  %v13290_v20 = vld [vmem:[#allocation108_spill] sm:$0xff] }
 0xb50   :  { %v13273_v10 = vmax.f32 %v13271_v22, %v13272_v35  ;;  %v13297_v56 = vld [vmem:[#allocation39_spill] sm:$0xff] }
 0xb51   :  { %5855 = vmatmul.mubr.bf16.gmra.mrb[132].mxu0 %v5680_v57  ;;  %6048 = vmatmul.mubr.bf16.gmra.mrb[212].mxu1 %v5680_v57  ;;  %v5688_v57 = vpack.c.bf16 %v13220_v2, %v13218_v11  ;;  %v13263_v2 = vmax.f32 %v13261_v23, %v13262_v55 }
 0xb52   :  { %5864 = vmatprep.mubr.bf16.mxu0 %v5683_v38  ;;  %6057 = vmatprep.mubr.bf16.mxu1 %v5683_v38  ;;  %v5693_v38 = vpack.c.bf16 %v13232_v27, %v13230_v44  ;;  %v5700_v60 = vpack.c.bf16 %v13273_v10, %v13270_v63  ;;  %v13280_v44 = vld [vmem:[#allocation64_spill] sm:$0xff] }
 0xb53   :  { %v13282_v27 = vmax.f32 %v13280_v44, %v13281_v52 }
 0xb59   :  { %5865 = vmatmul.mubr.bf16.gmra.mrb[136].mxu0 %v5682_v29  ;;  %6058 = vmatmul.mubr.bf16.gmra.mrb[216].mxu1 %v5682_v29  ;;  %v13241_v29 = vmax.f32 %v13122_v53, %v13240_v47  ;;  %v13252_v53 = vld [vmem:[#allocation63_spill] sm:$0xff]  ;;  %v13293_v47 = vld [vmem:[#allocation110_spill] sm:$0xff] }
 0xb5a   :  { %5874 = vmatprep.mubr.bf16.mxu0 %v5685_v25  ;;  %6067 = vmatprep.mubr.bf16.mxu1 %v5685_v25  ;;  %v13244_v25 = vmax.f32 %v13242_v3, %v13243_v51  ;;  %v13254_v46 = vmax.f32 %v13252_v53, %v13253_v6  ;;  %v13295_v3 = vld [vmem:[#allocation36_spill] sm:$0xff] }
 0xb5b   :  { %v5695_v45 = vpack.c.bf16 %v13241_v29, %v13239_v16  ;;  %v13292_v16 = vld [vmem:[#allocation30_spill] sm:$0xff]  ;;  %v5782_v51 = vsub.s32 2, %v13295_v3  ;;  %v5786_v33 = vsub.s32 3, %v13295_v3 }
 0xb5c   :  { %v13294_v29 = vmax.f32 %v13292_v16, %v13293_v47 }
 0xb61   :  { %5875 = vmatmul.mubr.bf16.gmra.mrb[140].mxu0 %v5684_v8  ;;  %6068 = vmatmul.mubr.bf16.gmra.mrb[220].mxu1 %v5684_v8  ;;  %v5694_v8 = vpack.c.bf16 %v13247_v0, %v13244_v25  ;;  %v5770_v25 = vld [vmem:[%s12426_s22] sm:$0xf]  ;;  %s7321_s22 = smov [#allocation4]  }
 0xb62   :  { %5884 = vmatprep.mubr.bf16.mxu0 %v5687_v30  ;;  %6077 = vmatprep.mubr.bf16.mxu1 %v5687_v30  ;;  %v5697_v30 = vpack.c.bf16 %v13251_v4, %v13249_v36  ;;  %v12255_v0 = vrot.slane %v5770_v25, %v13296_v50  ;;  %v12260_v36 = vrot.slane %v5770_v25, %v13297_v56  ;;  %s6311_s12 = sshll.u32 %s7321_s22, 4  ;;  %s6312_s12 = int_to_ptr.vmem [resolvable:$true] %s6311_s12 }
 0xb63   :  { %v12262_v13 = vrot.slane %v5770_v25, %v5786_v33  ;;  %s7293_s0 = scalar_lea.vmem %s6312_s12, 16384  ;;  %p7298_p1 = scmp.lt.s32.totalorder %s6312_s12, %s6312_s12 }
 0xb64   :  { %p7294_p0 = scmp.ne.s32.totalorder %s6312_s12, %s7293_s0  ;;  %p7299_p2 = scmp.lt.s32.totalorder %s7293_s0, %s7293_s0 }
 0xb66   :  { %p7300_p3 = por %p7299_p2, %p7298_p1 }
 0xb68   :  { %p7301_p4 = pnand %p7300_p3, %p7294_p0 }
 0xb69   :  { %5885 = vmatmul.mubr.bf16.gmra.mrb[144].mxu0 %v5686_v43  ;;  %6078 = vmatmul.mubr.bf16.gmra.mrb[224].mxu1 %v5686_v43  ;;  %v13256_v43 = vld [vmem:[#allocation98_spill] sm:$0xff] }
 0xb6a   :  { %5894 = vmatprep.mubr.bf16.mxu0 %v5689_v42  ;;  %6087 = vmatprep.mubr.bf16.mxu1 %v5689_v42  ;;  %v13257_v61 = vmax.f32 %v13255_v39, %v13256_v43  ;;  %v13258_v42 = vld [vmem:[#allocation101_spill] sm:$0xff] }
 0xb6b   :  { %v13259_v34 = vmax.f32 %v13130_v26, %v13258_v42  ;;  %v13267_v26 = vmax.f32 %v13139_v1, %v13138_v41  ;;  %v13277_v41 = vld [vmem:[#allocation29_spill] sm:$0xff]  ;;  %v13278_v1 = vld [vmem:[#allocation106_spill] sm:$0xff] }
 0xb6c   :  { %v5696_v59 = vpack.c.bf16 %v13257_v61, %v13254_v46  ;;  %v13279_v15 = vmax.f32 %v13277_v41, %v13278_v1 }
 0xb6d   :  { %v5699_v11 = vpack.c.bf16 %v13260_v7, %v13259_v34 }
 0xb71   :  { %5895 = vmatmul.mubr.bf16.gmra.mrb[148].mxu0 %v5688_v57  ;;  %6088 = vmatmul.mubr.bf16.gmra.mrb[228].mxu1 %v5688_v57  ;;  %v13264_v57 = vld [vmem:[#allocation102_spill] sm:$0xff] }
 0xb72   :  { %5904 = vmatprep.mubr.bf16.mxu0 %v5691_v24  ;;  %6097 = vmatprep.mubr.bf16.mxu1 %v5691_v24  ;;  %v13265_v49 = vmax.f32 %v13132_v5, %v13264_v57  ;;  %v13266_v24 = vmax.f32 %v13136_v12, %v13135_v62  ;;  %v13274_v5 = vmax.f32 %v13097_v54, %v11943_v40  ;;  %v13275_v62 = vld [vmem:[#allocation107_spill] sm:$0xff] }
 0xb73   :  { %v13276_v12 = vmax.f32 %v13143_v18, %v13275_v62  ;;  %v13287_v54 = vld [vmem:[#allocation111_spill] sm:$0xff]  ;;  %v13289_v18 = vld [vmem:[#allocation28_spill] sm:$0xff] }
 0xb74   :  { %v5698_v28 = vpack.c.bf16 %v13265_v49, %v13263_v2  ;;  %v5701_v48 = vpack.c.bf16 %v13267_v26, %v13266_v24  ;;  %v13288_v40 = vmax.f32 %v13286_v21, %v13287_v54 }
 0xb76   :  { %v5705_v14 = vpack.c.bf16 %v13288_v40, %v13285_v17 }
 0xb79   :  { %5905 = vmatmul.mubr.bf16.gmra.mrb[152].mxu0 %v5690_v32  ;;  %6098 = vmatmul.mubr.bf16.gmra.mrb[232].mxu1 %v5690_v32  ;;  %v5703_v32 = vpack.c.bf16 %v13276_v12, %v13274_v5 }
 0xb7a   :  { %5914 = vmatprep.mubr.bf16.mxu0 %v5693_v38  ;;  %6107 = vmatprep.mubr.bf16.mxu1 %v5693_v38  ;;  %v5702_v38 = vpack.c.bf16 %v13282_v27, %v13279_v15 }
 0xb81   :  { %5915 = vmatmul.mubr.bf16.gmra.mrb[156].mxu0 %v5692_v37  ;;  %6108 = vmatmul.mubr.bf16.gmra.mrb[236].mxu1 %v5692_v37  ;;  %v13291_v37 = vmax.f32 %v13289_v18, %v13290_v20 }
 0xb82   :  { %5924 = vmatprep.mubr.bf16.mxu0 %v5695_v45  ;;  %6117 = vmatprep.mubr.bf16.mxu1 %v5695_v45 }
 0xb83   :  { %v5704_v45 = vpack.c.bf16 %v13294_v29, %v13291_v37 }
 0xb89   :  { %5925 = vmatmul.mubr.bf16.gmra.mrb[160].mxu0 %v5694_v8  ;;  %6118 = vmatmul.mubr.bf16.gmra.mrb[240].mxu1 %v5694_v8  ;;  %v12257_v8 = vrot.slane %v5770_v25, %v5782_v51 }
 0xb8a   :  { %5934 = vmatprep.mubr.bf16.mxu0 %v5697_v30  ;;  %6127 = vmatprep.mubr.bf16.mxu1 %v5697_v30 }
 0xb91   :  { %5935 = vmatmul.mubr.bf16.gmra.mrb[164].mxu0 %v5696_v59  ;;  %6128 = vmatmul.mubr.bf16.gmra.mrb[244].mxu1 %v5696_v59 }
 0xb92   :  { %5944 = vmatprep.mubr.bf16.mxu0 %v5699_v11  ;;  %6137 = vmatprep.mubr.bf16.mxu1 %v5699_v11 }
 0xb99   :  { %5945 = vmatmul.mubr.bf16.gmra.mrb[168].mxu0 %v5698_v28  ;;  %6138 = vmatmul.mubr.bf16.gmra.mrb[248].mxu1 %v5698_v28 }
 0xb9a   :  { %5954 = vmatprep.mubr.bf16.mxu0 %v5701_v48  ;;  %6147 = vmatprep.mubr.bf16.mxu1 %v5701_v48 }
 0xba1   :  { %5955 = vmatmul.mubr.bf16.gmra.mrb[172].mxu0 %v5700_v60  ;;  %6148 = vmatmul.mubr.bf16.gmra.mrb[252].mxu1 %v5700_v60 }
 0xba2   :  { %5964 = vmatprep.mubr.bf16.mxu0 %v5703_v32  ;;  %6157 = vmatprep.mubr.bf16.mxu1 %v5703_v32 }
 0xba9   :  { %5965 = vmatmul.mubr.bf16.gmra.mrb[176].mxu0 %v5702_v38  ;;  %6158 = vmatmul.mubr.bf16.gmra.mrb[0].mxu1 %v5702_v38 }
 0xbaa   :  { %5974 = vmatprep.mubr.bf16.mxu0 %v5705_v14  ;;  %6167 = vmatprep.mubr.bf16.mxu1 %v5705_v14 }
 0xbb1   :  { %5975 = vmatmul.mubr.bf16.gmra.mrb[180].mxu0 %v5704_v45  ;;  %6168 = vmatmul.mubr.bf16.gmra.mrb[4].mxu1 %v5704_v45 }
 0xc0c   :  { %v5826_v4 = vpop.f32.mrb[120].mxu0  ;;  %v6019_v30 = vpop.f32.mrb[200].mxu1 }
 0xc0d   :  { %v5827_v53 = vadd.f32 %v5826_v4, %v12255_v0  ;;  %v6020_v6 = vadd.f32 %v6019_v30, %v12257_v8  ;;  %v5828_v46 = vpop.f32.mrb[121].mxu0  ;;  %v6021_v39 = vpop.f32.mrb[201].mxu1 }
 0xc0e   :  { %v5829_v43 = vadd.f32 %v5828_v46, %v12260_v36  ;;  %v6022_v61 = vadd.f32 %v6021_v39, %v12262_v13  ;;  %v5830_v59 = vpop.f32.mrb[122].mxu0  ;;  %v6023_v42 = vpop.f32.mrb[202].mxu1 }
 0xc0f   :  { %6178 = vst [vmem:[#allocation4] sm:$0xff] %v5827_v53  ;;  %6180 = vst [vmem:[#allocation4 + $0x10] sm:$0xff] %v6020_v6  ;;  %v5831_v34 = vadd.f32 %v5830_v59, %v12255_v0  ;;  %v6024_v7 = vadd.f32 %v6023_v42, %v12257_v8  ;;  %v5832_v11 = vpop.f32.mrb[123].mxu0  ;;  %v6025_v23 = vpop.f32.mrb[203].mxu1 }
 0xc10   :  { %6179 = vst [vmem:[#allocation4 + $0x8] sm:$0xff] %v5829_v43  ;;  %6181 = vst [vmem:[#allocation4 + $0x18] sm:$0xff] %v6022_v61  ;;  %v5833_v55 = vadd.f32 %v5832_v11, %v12260_v36  ;;  %v6026_v2 = vadd.f32 %v6025_v23, %v12262_v13 }
 0xc11   :  { %6182 = vst [vmem:[#allocation4 + $0x20] sm:$0xff] %v5831_v34  ;;  %6184 = vst [vmem:[#allocation4 + $0x30] sm:$0xff] %v6024_v7 }
 0xc12   :  { %6183 = vst [vmem:[#allocation4 + $0x28] sm:$0xff] %v5833_v55  ;;  %6185 = vst [vmem:[#allocation4 + $0x38] sm:$0xff] %v6026_v2 }
 0xc14   :  { %v5836_v57 = vpop.f32.mrb[124].mxu0  ;;  %v6029_v49 = vpop.f32.mrb[204].mxu1 }
 0xc15   :  { %v5837_v28 = vadd.f32 %v5836_v57, %v12255_v0  ;;  %v6030_v24 = vadd.f32 %v6029_v49, %v12257_v8  ;;  %v5838_v26 = vpop.f32.mrb[125].mxu0  ;;  %v6031_v48 = vpop.f32.mrb[205].mxu1 }
 0xc16   :  { %v5839_v9 = vadd.f32 %v5838_v26, %v12260_v36  ;;  %v6032_v31 = vadd.f32 %v6031_v48, %v12262_v13  ;;  %v5840_v63 = vpop.f32.mrb[126].mxu0  ;;  %v6033_v22 = vpop.f32.mrb[206].mxu1 }
 0xc17   :  { %6186 = vst [vmem:[#allocation4 + $0x40] sm:$0xff] %v5837_v28  ;;  %6188 = vst [vmem:[#allocation4 + $0x50] sm:$0xff] %v6030_v24  ;;  %v5841_v35 = vadd.f32 %v5840_v63, %v12255_v0  ;;  %v6034_v10 = vadd.f32 %v6033_v22, %v12257_v8  ;;  %v5842_v60 = vpop.f32.mrb[127].mxu0  ;;  %v6035_v5 = vpop.f32.mrb[207].mxu1 }
 0xc18   :  { %6187 = vst [vmem:[#allocation4 + $0x48] sm:$0xff] %v5839_v9  ;;  %6189 = vst [vmem:[#allocation4 + $0x58] sm:$0xff] %v6032_v31  ;;  %v5843_v62 = vadd.f32 %v5842_v60, %v12260_v36  ;;  %v6036_v12 = vadd.f32 %v6035_v5, %v12262_v13 }
 0xc19   :  { %6190 = vst [vmem:[#allocation4 + $0x60] sm:$0xff] %v5841_v35  ;;  %6192 = vst [vmem:[#allocation4 + $0x70] sm:$0xff] %v6034_v10 }
 0xc1a   :  { %6191 = vst [vmem:[#allocation4 + $0x68] sm:$0xff] %v5843_v62  ;;  %6193 = vst [vmem:[#allocation4 + $0x78] sm:$0xff] %v6036_v12 }
 0xc1c   :  { %v5846_v32 = vpop.f32.mrb[128].mxu0  ;;  %v6039_v41 = vpop.f32.mrb[208].mxu1 }
 0xc1d   :  { %v5847_v1 = vadd.f32 %v5846_v32, %v12255_v0  ;;  %v6040_v15 = vadd.f32 %v6039_v41, %v12257_v8  ;;  %v5848_v44 = vpop.f32.mrb[129].mxu0  ;;  %v6041_v52 = vpop.f32.mrb[209].mxu1 }
 0xc1e   :  { %v5849_v27 = vadd.f32 %v5848_v44, %v12260_v36  ;;  %v6042_v38 = vadd.f32 %v6041_v52, %v12262_v13  ;;  %v5850_v58 = vpop.f32.mrb[130].mxu0  ;;  %v6043_v19 = vpop.f32.mrb[210].mxu1 }
 0xc1f   :  { %6194 = vst [vmem:[#allocation4 + $0x80] sm:$0xff] %v5847_v1  ;;  %6196 = vst [vmem:[#allocation4 + $0x90] sm:$0xff] %v6040_v15  ;;  %v5851_v17 = vadd.f32 %v5850_v58, %v12255_v0  ;;  %v6044_v21 = vadd.f32 %v6043_v19, %v12257_v8  ;;  %v5852_v54 = vpop.f32.mrb[131].mxu0  ;;  %v6045_v40 = vpop.f32.mrb[211].mxu1 }
 0xc20   :  { %6195 = vst [vmem:[#allocation4 + $0x88] sm:$0xff] %v5849_v27  ;;  %6197 = vst [vmem:[#allocation4 + $0x98] sm:$0xff] %v6042_v38  ;;  %v5853_v14 = vadd.f32 %v5852_v54, %v12260_v36  ;;  %v6046_v18 = vadd.f32 %v6045_v40, %v12262_v13 }
 0xc21   :  { %6198 = vst [vmem:[#allocation4 + $0xa0] sm:$0xff] %v5851_v17  ;;  %6200 = vst [vmem:[#allocation4 + $0xb0] sm:$0xff] %v6044_v21 }
 0xc22   :  { %6199 = vst [vmem:[#allocation4 + $0xa8] sm:$0xff] %v5853_v14  ;;  %6201 = vst [vmem:[#allocation4 + $0xb8] sm:$0xff] %v6046_v18 }
 0xc24   :  { %v5856_v20 = vpop.f32.mrb[132].mxu0  ;;  %v6049_v37 = vpop.f32.mrb[212].mxu1 }
 0xc25   :  { %v5857_v16 = vadd.f32 %v5856_v20, %v12255_v0  ;;  %v6050_v47 = vadd.f32 %v6049_v37, %v12257_v8  ;;  %v5858_v29 = vpop.f32.mrb[133].mxu0  ;;  %v6051_v45 = vpop.f32.mrb[213].mxu1 }
 0xc26   :  { %v5859_v3 = vadd.f32 %v5858_v29, %v12260_v36  ;;  %v6052_v51 = vadd.f32 %v6051_v45, %v12262_v13  ;;  %v5860_v25 = vpop.f32.mrb[134].mxu0  ;;  %v6053_v33 = vpop.f32.mrb[214].mxu1 }
 0xc27   :  { %6202 = vst [vmem:[#allocation4 + $0xc0] sm:$0xff] %v5857_v16  ;;  %6204 = vst [vmem:[#allocation4 + $0xd0] sm:$0xff] %v6050_v47  ;;  %v5861_v50 = vadd.f32 %v5860_v25, %v12255_v0  ;;  %v6054_v56 = vadd.f32 %v6053_v33, %v12257_v8  ;;  %v5862_v4 = vpop.f32.mrb[135].mxu0  ;;  %v6055_v30 = vpop.f32.mrb[215].mxu1 }
 0xc28   :  { %6203 = vst [vmem:[#allocation4 + $0xc8] sm:$0xff] %v5859_v3  ;;  %6205 = vst [vmem:[#allocation4 + $0xd8] sm:$0xff] %v6052_v51  ;;  %v5863_v53 = vadd.f32 %v5862_v4, %v12260_v36  ;;  %v6056_v6 = vadd.f32 %v6055_v30, %v12262_v13 }
 0xc29   :  { %6206 = vst [vmem:[#allocation4 + $0xe0] sm:$0xff] %v5861_v50  ;;  %6208 = vst [vmem:[#allocation4 + $0xf0] sm:$0xff] %v6054_v56 }
 0xc2a   :  { %6207 = vst [vmem:[#allocation4 + $0xe8] sm:$0xff] %v5863_v53  ;;  %6209 = vst [vmem:[#allocation4 + $0xf8] sm:$0xff] %v6056_v6 }
 0xc2c   :  { %v5866_v46 = vpop.f32.mrb[136].mxu0  ;;  %v6059_v39 = vpop.f32.mrb[216].mxu1 }
 0xc2d   :  { %v5867_v43 = vadd.f32 %v5866_v46, %v12255_v0  ;;  %v6060_v61 = vadd.f32 %v6059_v39, %v12257_v8  ;;  %v5868_v59 = vpop.f32.mrb[137].mxu0  ;;  %v6061_v42 = vpop.f32.mrb[217].mxu1 }
 0xc2e   :  { %v5869_v34 = vadd.f32 %v5868_v59, %v12260_v36  ;;  %v6062_v7 = vadd.f32 %v6061_v42, %v12262_v13  ;;  %v5870_v11 = vpop.f32.mrb[138].mxu0  ;;  %v6063_v23 = vpop.f32.mrb[218].mxu1 }
 0xc2f   :  { %6210 = vst [vmem:[#allocation4 + $0x100] sm:$0xff] %v5867_v43  ;;  %6212 = vst [vmem:[#allocation4 + $0x110] sm:$0xff] %v6060_v61  ;;  %v5871_v55 = vadd.f32 %v5870_v11, %v12255_v0  ;;  %v6064_v2 = vadd.f32 %v6063_v23, %v12257_v8  ;;  %v5872_v57 = vpop.f32.mrb[139].mxu0  ;;  %v6065_v49 = vpop.f32.mrb[219].mxu1 }
 0xc30   :  { %6211 = vst [vmem:[#allocation4 + $0x108] sm:$0xff] %v5869_v34  ;;  %6213 = vst [vmem:[#allocation4 + $0x118] sm:$0xff] %v6062_v7  ;;  %v5873_v28 = vadd.f32 %v5872_v57, %v12260_v36  ;;  %v6066_v24 = vadd.f32 %v6065_v49, %v12262_v13 }
 0xc31   :  { %6214 = vst [vmem:[#allocation4 + $0x120] sm:$0xff] %v5871_v55  ;;  %6216 = vst [vmem:[#allocation4 + $0x130] sm:$0xff] %v6064_v2 }
 0xc32   :  { %6215 = vst [vmem:[#allocation4 + $0x128] sm:$0xff] %v5873_v28  ;;  %6217 = vst [vmem:[#allocation4 + $0x138] sm:$0xff] %v6066_v24 }
 0xc34   :  { %v5876_v26 = vpop.f32.mrb[140].mxu0  ;;  %v6069_v48 = vpop.f32.mrb[220].mxu1 }
 0xc35   :  { %v5877_v9 = vadd.f32 %v5876_v26, %v12255_v0  ;;  %v6070_v31 = vadd.f32 %v6069_v48, %v12257_v8  ;;  %v5878_v63 = vpop.f32.mrb[141].mxu0  ;;  %v6071_v22 = vpop.f32.mrb[221].mxu1 }
 0xc36   :  { %v5879_v35 = vadd.f32 %v5878_v63, %v12260_v36  ;;  %v6072_v10 = vadd.f32 %v6071_v22, %v12262_v13  ;;  %v5880_v60 = vpop.f32.mrb[142].mxu0  ;;  %v6073_v5 = vpop.f32.mrb[222].mxu1 }
 0xc37   :  { %6218 = vst [vmem:[#allocation4 + $0x140] sm:$0xff] %v5877_v9  ;;  %6220 = vst [vmem:[#allocation4 + $0x150] sm:$0xff] %v6070_v31  ;;  %v5881_v62 = vadd.f32 %v5880_v60, %v12255_v0  ;;  %v6074_v12 = vadd.f32 %v6073_v5, %v12257_v8  ;;  %v5882_v32 = vpop.f32.mrb[143].mxu0  ;;  %v6075_v41 = vpop.f32.mrb[223].mxu1 }
 0xc38   :  { %6219 = vst [vmem:[#allocation4 + $0x148] sm:$0xff] %v5879_v35  ;;  %6221 = vst [vmem:[#allocation4 + $0x158] sm:$0xff] %v6072_v10  ;;  %v5883_v1 = vadd.f32 %v5882_v32, %v12260_v36  ;;  %v6076_v15 = vadd.f32 %v6075_v41, %v12262_v13 }
 0xc39   :  { %6222 = vst [vmem:[#allocation4 + $0x160] sm:$0xff] %v5881_v62  ;;  %6224 = vst [vmem:[#allocation4 + $0x170] sm:$0xff] %v6074_v12 }
 0xc3a   :  { %6223 = vst [vmem:[#allocation4 + $0x168] sm:$0xff] %v5883_v1  ;;  %6225 = vst [vmem:[#allocation4 + $0x178] sm:$0xff] %v6076_v15 }
 0xc3c   :  { %v5886_v44 = vpop.f32.mrb[144].mxu0  ;;  %v6079_v52 = vpop.f32.mrb[224].mxu1 }
 0xc3d   :  { %v5887_v27 = vadd.f32 %v5886_v44, %v12255_v0  ;;  %v6080_v38 = vadd.f32 %v6079_v52, %v12257_v8  ;;  %v5888_v58 = vpop.f32.mrb[145].mxu0  ;;  %v6081_v19 = vpop.f32.mrb[225].mxu1 }
 0xc3e   :  { %v5889_v17 = vadd.f32 %v5888_v58, %v12260_v36  ;;  %v6082_v21 = vadd.f32 %v6081_v19, %v12262_v13  ;;  %v5890_v54 = vpop.f32.mrb[146].mxu0  ;;  %v6083_v40 = vpop.f32.mrb[226].mxu1 }
 0xc3f   :  { %6226 = vst [vmem:[#allocation4 + $0x180] sm:$0xff] %v5887_v27  ;;  %6228 = vst [vmem:[#allocation4 + $0x190] sm:$0xff] %v6080_v38  ;;  %v5891_v14 = vadd.f32 %v5890_v54, %v12255_v0  ;;  %v6084_v18 = vadd.f32 %v6083_v40, %v12257_v8  ;;  %v5892_v20 = vpop.f32.mrb[147].mxu0  ;;  %v6085_v37 = vpop.f32.mrb[227].mxu1 }
 0xc40   :  { %6227 = vst [vmem:[#allocation4 + $0x188] sm:$0xff] %v5889_v17  ;;  %6229 = vst [vmem:[#allocation4 + $0x198] sm:$0xff] %v6082_v21  ;;  %v5893_v16 = vadd.f32 %v5892_v20, %v12260_v36  ;;  %v6086_v47 = vadd.f32 %v6085_v37, %v12262_v13 }
 0xc41   :  { %6230 = vst [vmem:[#allocation4 + $0x1a0] sm:$0xff] %v5891_v14  ;;  %6232 = vst [vmem:[#allocation4 + $0x1b0] sm:$0xff] %v6084_v18 }
 0xc42   :  { %6231 = vst [vmem:[#allocation4 + $0x1a8] sm:$0xff] %v5893_v16  ;;  %6233 = vst [vmem:[#allocation4 + $0x1b8] sm:$0xff] %v6086_v47 }
 0xc44   :  { %v5896_v29 = vpop.f32.mrb[148].mxu0  ;;  %v6089_v45 = vpop.f32.mrb[228].mxu1 }
 0xc45   :  { %v5897_v3 = vadd.f32 %v5896_v29, %v12255_v0  ;;  %v6090_v51 = vadd.f32 %v6089_v45, %v12257_v8  ;;  %v5898_v25 = vpop.f32.mrb[149].mxu0  ;;  %v6091_v33 = vpop.f32.mrb[229].mxu1 }
 0xc46   :  { %v5899_v50 = vadd.f32 %v5898_v25, %v12260_v36  ;;  %v6092_v56 = vadd.f32 %v6091_v33, %v12262_v13  ;;  %v5900_v4 = vpop.f32.mrb[150].mxu0  ;;  %v6093_v30 = vpop.f32.mrb[230].mxu1 }
 0xc47   :  { %6234 = vst [vmem:[#allocation4 + $0x1c0] sm:$0xff] %v5897_v3  ;;  %6236 = vst [vmem:[#allocation4 + $0x1d0] sm:$0xff] %v6090_v51  ;;  %v5901_v53 = vadd.f32 %v5900_v4, %v12255_v0  ;;  %v6094_v6 = vadd.f32 %v6093_v30, %v12257_v8  ;;  %v5902_v46 = vpop.f32.mrb[151].mxu0  ;;  %v6095_v39 = vpop.f32.mrb[231].mxu1 }
 0xc48   :  { %6235 = vst [vmem:[#allocation4 + $0x1c8] sm:$0xff] %v5899_v50  ;;  %6237 = vst [vmem:[#allocation4 + $0x1d8] sm:$0xff] %v6092_v56  ;;  %v5903_v43 = vadd.f32 %v5902_v46, %v12260_v36  ;;  %v6096_v61 = vadd.f32 %v6095_v39, %v12262_v13 }
 0xc49   :  { %6238 = vst [vmem:[#allocation4 + $0x1e0] sm:$0xff] %v5901_v53  ;;  %6240 = vst [vmem:[#allocation4 + $0x1f0] sm:$0xff] %v6094_v6 }
 0xc4a   :  { %6239 = vst [vmem:[#allocation4 + $0x1e8] sm:$0xff] %v5903_v43  ;;  %6241 = vst [vmem:[#allocation4 + $0x1f8] sm:$0xff] %v6096_v61 }
 0xc4c   :  { %v5906_v59 = vpop.f32.mrb[152].mxu0  ;;  %v6099_v42 = vpop.f32.mrb[232].mxu1 }
 0xc4d   :  { %v5907_v34 = vadd.f32 %v5906_v59, %v12255_v0  ;;  %v6100_v7 = vadd.f32 %v6099_v42, %v12257_v8  ;;  %v5908_v11 = vpop.f32.mrb[153].mxu0  ;;  %v6101_v23 = vpop.f32.mrb[233].mxu1 }
 0xc4e   :  { %v5909_v55 = vadd.f32 %v5908_v11, %v12260_v36  ;;  %v6102_v2 = vadd.f32 %v6101_v23, %v12262_v13  ;;  %v5910_v57 = vpop.f32.mrb[154].mxu0  ;;  %v6103_v49 = vpop.f32.mrb[234].mxu1 }
 0xc4f   :  { %6242 = vst [vmem:[#allocation4 + $0x200] sm:$0xff] %v5907_v34  ;;  %6244 = vst [vmem:[#allocation4 + $0x210] sm:$0xff] %v6100_v7  ;;  %v5911_v28 = vadd.f32 %v5910_v57, %v12255_v0  ;;  %v6104_v24 = vadd.f32 %v6103_v49, %v12257_v8  ;;  %v5912_v26 = vpop.f32.mrb[155].mxu0  ;;  %v6105_v48 = vpop.f32.mrb[235].mxu1 }
 0xc50   :  { %6243 = vst [vmem:[#allocation4 + $0x208] sm:$0xff] %v5909_v55  ;;  %6245 = vst [vmem:[#allocation4 + $0x218] sm:$0xff] %v6102_v2  ;;  %v5913_v9 = vadd.f32 %v5912_v26, %v12260_v36  ;;  %v6106_v31 = vadd.f32 %v6105_v48, %v12262_v13 }
 0xc51   :  { %6246 = vst [vmem:[#allocation4 + $0x220] sm:$0xff] %v5911_v28  ;;  %6248 = vst [vmem:[#allocation4 + $0x230] sm:$0xff] %v6104_v24 }
 0xc52   :  { %6247 = vst [vmem:[#allocation4 + $0x228] sm:$0xff] %v5913_v9  ;;  %6249 = vst [vmem:[#allocation4 + $0x238] sm:$0xff] %v6106_v31 }
 0xc54   :  { %v5916_v63 = vpop.f32.mrb[156].mxu0  ;;  %v6109_v22 = vpop.f32.mrb[236].mxu1 }
 0xc55   :  { %v5917_v35 = vadd.f32 %v5916_v63, %v12255_v0  ;;  %v6110_v10 = vadd.f32 %v6109_v22, %v12257_v8  ;;  %v5918_v60 = vpop.f32.mrb[157].mxu0  ;;  %v6111_v5 = vpop.f32.mrb[237].mxu1 }
 0xc56   :  { %v5919_v62 = vadd.f32 %v5918_v60, %v12260_v36  ;;  %v6112_v12 = vadd.f32 %v6111_v5, %v12262_v13  ;;  %v5920_v32 = vpop.f32.mrb[158].mxu0  ;;  %v6113_v41 = vpop.f32.mrb[238].mxu1 }
 0xc57   :  { %6250 = vst [vmem:[#allocation4 + $0x240] sm:$0xff] %v5917_v35  ;;  %6252 = vst [vmem:[#allocation4 + $0x250] sm:$0xff] %v6110_v10  ;;  %v5921_v1 = vadd.f32 %v5920_v32, %v12255_v0  ;;  %v6114_v15 = vadd.f32 %v6113_v41, %v12257_v8  ;;  %v5922_v44 = vpop.f32.mrb[159].mxu0  ;;  %v6115_v52 = vpop.f32.mrb[239].mxu1 }
 0xc58   :  { %6251 = vst [vmem:[#allocation4 + $0x248] sm:$0xff] %v5919_v62  ;;  %6253 = vst [vmem:[#allocation4 + $0x258] sm:$0xff] %v6112_v12  ;;  %v5923_v27 = vadd.f32 %v5922_v44, %v12260_v36  ;;  %v6116_v38 = vadd.f32 %v6115_v52, %v12262_v13 }
 0xc59   :  { %6254 = vst [vmem:[#allocation4 + $0x260] sm:$0xff] %v5921_v1  ;;  %6256 = vst [vmem:[#allocation4 + $0x270] sm:$0xff] %v6114_v15 }
 0xc5a   :  { %6255 = vst [vmem:[#allocation4 + $0x268] sm:$0xff] %v5923_v27  ;;  %6257 = vst [vmem:[#allocation4 + $0x278] sm:$0xff] %v6116_v38 }
 0xc5c   :  { %v5926_v58 = vpop.f32.mrb[160].mxu0  ;;  %v6119_v19 = vpop.f32.mrb[240].mxu1 }
 0xc5d   :  { %v5927_v17 = vadd.f32 %v5926_v58, %v12255_v0  ;;  %v6120_v21 = vadd.f32 %v6119_v19, %v12257_v8  ;;  %v5928_v54 = vpop.f32.mrb[161].mxu0  ;;  %v6121_v40 = vpop.f32.mrb[241].mxu1 }
 0xc5e   :  { %v5929_v14 = vadd.f32 %v5928_v54, %v12260_v36  ;;  %v6122_v18 = vadd.f32 %v6121_v40, %v12262_v13  ;;  %v5930_v20 = vpop.f32.mrb[162].mxu0  ;;  %v6123_v37 = vpop.f32.mrb[242].mxu1 }
 0xc5f   :  { %6258 = vst [vmem:[#allocation4 + $0x280] sm:$0xff] %v5927_v17  ;;  %6260 = vst [vmem:[#allocation4 + $0x290] sm:$0xff] %v6120_v21  ;;  %v5931_v16 = vadd.f32 %v5930_v20, %v12255_v0  ;;  %v6124_v47 = vadd.f32 %v6123_v37, %v12257_v8  ;;  %v5932_v29 = vpop.f32.mrb[163].mxu0  ;;  %v6125_v45 = vpop.f32.mrb[243].mxu1 }
 0xc60   :  { %6259 = vst [vmem:[#allocation4 + $0x288] sm:$0xff] %v5929_v14  ;;  %6261 = vst [vmem:[#allocation4 + $0x298] sm:$0xff] %v6122_v18  ;;  %v5933_v3 = vadd.f32 %v5932_v29, %v12260_v36  ;;  %v6126_v51 = vadd.f32 %v6125_v45, %v12262_v13 }
 0xc61   :  { %6262 = vst [vmem:[#allocation4 + $0x2a0] sm:$0xff] %v5931_v16  ;;  %6264 = vst [vmem:[#allocation4 + $0x2b0] sm:$0xff] %v6124_v47 }
 0xc62   :  { %6263 = vst [vmem:[#allocation4 + $0x2a8] sm:$0xff] %v5933_v3  ;;  %6265 = vst [vmem:[#allocation4 + $0x2b8] sm:$0xff] %v6126_v51 }
 0xc64   :  { %v5936_v25 = vpop.f32.mrb[164].mxu0  ;;  %v6129_v33 = vpop.f32.mrb[244].mxu1 }
 0xc65   :  { %v5937_v50 = vadd.f32 %v5936_v25, %v12255_v0  ;;  %v6130_v56 = vadd.f32 %v6129_v33, %v12257_v8  ;;  %v5938_v4 = vpop.f32.mrb[165].mxu0  ;;  %v6131_v30 = vpop.f32.mrb[245].mxu1 }
 0xc66   :  { %v5939_v53 = vadd.f32 %v5938_v4, %v12260_v36  ;;  %v6132_v6 = vadd.f32 %v6131_v30, %v12262_v13  ;;  %v5940_v46 = vpop.f32.mrb[166].mxu0  ;;  %v6133_v39 = vpop.f32.mrb[246].mxu1 }
 0xc67   :  { %6266 = vst [vmem:[#allocation4 + $0x2c0] sm:$0xff] %v5937_v50  ;;  %6268 = vst [vmem:[#allocation4 + $0x2d0] sm:$0xff] %v6130_v56  ;;  %v5941_v43 = vadd.f32 %v5940_v46, %v12255_v0  ;;  %v6134_v61 = vadd.f32 %v6133_v39, %v12257_v8  ;;  %v5942_v59 = vpop.f32.mrb[167].mxu0  ;;  %v6135_v42 = vpop.f32.mrb[247].mxu1 }
 0xc68   :  { %6267 = vst [vmem:[#allocation4 + $0x2c8] sm:$0xff] %v5939_v53  ;;  %6269 = vst [vmem:[#allocation4 + $0x2d8] sm:$0xff] %v6132_v6  ;;  %v5943_v34 = vadd.f32 %v5942_v59, %v12260_v36  ;;  %v6136_v7 = vadd.f32 %v6135_v42, %v12262_v13 }
 0xc69   :  { %6270 = vst [vmem:[#allocation4 + $0x2e0] sm:$0xff] %v5941_v43  ;;  %6272 = vst [vmem:[#allocation4 + $0x2f0] sm:$0xff] %v6134_v61 }
 0xc6a   :  { %6271 = vst [vmem:[#allocation4 + $0x2e8] sm:$0xff] %v5943_v34  ;;  %6273 = vst [vmem:[#allocation4 + $0x2f8] sm:$0xff] %v6136_v7 }
 0xc6c   :  { %v5946_v11 = vpop.f32.mrb[168].mxu0  ;;  %v6139_v23 = vpop.f32.mrb[248].mxu1 }
 0xc6d   :  { %v5947_v55 = vadd.f32 %v5946_v11, %v12255_v0  ;;  %v6140_v2 = vadd.f32 %v6139_v23, %v12257_v8  ;;  %v5948_v57 = vpop.f32.mrb[169].mxu0  ;;  %v6141_v49 = vpop.f32.mrb[249].mxu1 }
 0xc6e   :  { %v5949_v28 = vadd.f32 %v5948_v57, %v12260_v36  ;;  %v6142_v24 = vadd.f32 %v6141_v49, %v12262_v13  ;;  %v5950_v26 = vpop.f32.mrb[170].mxu0  ;;  %v6143_v48 = vpop.f32.mrb[250].mxu1 }
 0xc6f   :  { %6274 = vst [vmem:[#allocation4 + $0x300] sm:$0xff] %v5947_v55  ;;  %6276 = vst [vmem:[#allocation4 + $0x310] sm:$0xff] %v6140_v2  ;;  %v5951_v9 = vadd.f32 %v5950_v26, %v12255_v0  ;;  %v6144_v31 = vadd.f32 %v6143_v48, %v12257_v8  ;;  %v5952_v63 = vpop.f32.mrb[171].mxu0  ;;  %v6145_v22 = vpop.f32.mrb[251].mxu1 }
 0xc70   :  { %6275 = vst [vmem:[#allocation4 + $0x308] sm:$0xff] %v5949_v28  ;;  %6277 = vst [vmem:[#allocation4 + $0x318] sm:$0xff] %v6142_v24  ;;  %v5953_v35 = vadd.f32 %v5952_v63, %v12260_v36  ;;  %v6146_v10 = vadd.f32 %v6145_v22, %v12262_v13 }
 0xc71   :  { %6278 = vst [vmem:[#allocation4 + $0x320] sm:$0xff] %v5951_v9  ;;  %6280 = vst [vmem:[#allocation4 + $0x330] sm:$0xff] %v6144_v31 }
 0xc72   :  { %6279 = vst [vmem:[#allocation4 + $0x328] sm:$0xff] %v5953_v35  ;;  %6281 = vst [vmem:[#allocation4 + $0x338] sm:$0xff] %v6146_v10 }
 0xc74   :  { %v5956_v60 = vpop.f32.mrb[172].mxu0  ;;  %v6149_v5 = vpop.f32.mrb[252].mxu1 }
 0xc75   :  { %v5957_v62 = vadd.f32 %v5956_v60, %v12255_v0  ;;  %v6150_v12 = vadd.f32 %v6149_v5, %v12257_v8  ;;  %v5958_v32 = vpop.f32.mrb[173].mxu0  ;;  %v6151_v41 = vpop.f32.mrb[253].mxu1 }
 0xc76   :  { %v5959_v1 = vadd.f32 %v5958_v32, %v12260_v36  ;;  %v6152_v15 = vadd.f32 %v6151_v41, %v12262_v13  ;;  %v5960_v44 = vpop.f32.mrb[174].mxu0  ;;  %v6153_v52 = vpop.f32.mrb[254].mxu1 }
 0xc77   :  { %6282 = vst [vmem:[#allocation4 + $0x340] sm:$0xff] %v5957_v62  ;;  %6284 = vst [vmem:[#allocation4 + $0x350] sm:$0xff] %v6150_v12  ;;  %v5961_v27 = vadd.f32 %v5960_v44, %v12255_v0  ;;  %v6154_v38 = vadd.f32 %v6153_v52, %v12257_v8  ;;  %v5962_v58 = vpop.f32.mrb[175].mxu0  ;;  %v6155_v19 = vpop.f32.mrb[255].mxu1 }
 0xc78   :  { %6283 = vst [vmem:[#allocation4 + $0x348] sm:$0xff] %v5959_v1  ;;  %6285 = vst [vmem:[#allocation4 + $0x358] sm:$0xff] %v6152_v15  ;;  %v5963_v17 = vadd.f32 %v5962_v58, %v12260_v36  ;;  %v6156_v21 = vadd.f32 %v6155_v19, %v12262_v13 }
 0xc79   :  { %6286 = vst [vmem:[#allocation4 + $0x360] sm:$0xff] %v5961_v27  ;;  %6288 = vst [vmem:[#allocation4 + $0x370] sm:$0xff] %v6154_v38 }
 0xc7a   :  { %6287 = vst [vmem:[#allocation4 + $0x368] sm:$0xff] %v5963_v17  ;;  %6289 = vst [vmem:[#allocation4 + $0x378] sm:$0xff] %v6156_v21 }
 0xc7c   :  { %v5966_v54 = vpop.f32.mrb[176].mxu0  ;;  %v6159_v40 = vpop.f32.mrb[0].mxu1 }
 0xc7d   :  { %v5967_v14 = vadd.f32 %v5966_v54, %v12255_v0  ;;  %v6160_v18 = vadd.f32 %v6159_v40, %v12257_v8  ;;  %v5968_v20 = vpop.f32.mrb[177].mxu0  ;;  %v6161_v37 = vpop.f32.mrb[1].mxu1 }
 0xc7e   :  { %v5969_v16 = vadd.f32 %v5968_v20, %v12260_v36  ;;  %v6162_v47 = vadd.f32 %v6161_v37, %v12262_v13  ;;  %v5970_v29 = vpop.f32.mrb[178].mxu0  ;;  %v6163_v45 = vpop.f32.mrb[2].mxu1 }
 0xc7f   :  { %6290 = vst [vmem:[#allocation4 + $0x380] sm:$0xff] %v5967_v14  ;;  %6292 = vst [vmem:[#allocation4 + $0x390] sm:$0xff] %v6160_v18  ;;  %v5971_v3 = vadd.f32 %v5970_v29, %v12255_v0  ;;  %v6164_v51 = vadd.f32 %v6163_v45, %v12257_v8  ;;  %v5972_v25 = vpop.f32.mrb[179].mxu0  ;;  %v6165_v33 = vpop.f32.mrb[3].mxu1 }
 0xc80   :  { %6291 = vst [vmem:[#allocation4 + $0x388] sm:$0xff] %v5969_v16  ;;  %6293 = vst [vmem:[#allocation4 + $0x398] sm:$0xff] %v6162_v47  ;;  %v5973_v50 = vadd.f32 %v5972_v25, %v12260_v36  ;;  %v6166_v56 = vadd.f32 %v6165_v33, %v12262_v13 }
 0xc81   :  { %6294 = vst [vmem:[#allocation4 + $0x3a0] sm:$0xff] %v5971_v3  ;;  %6296 = vst [vmem:[#allocation4 + $0x3b0] sm:$0xff] %v6164_v51 }
 0xc82   :  { %6295 = vst [vmem:[#allocation4 + $0x3a8] sm:$0xff] %v5973_v50  ;;  %6297 = vst [vmem:[#allocation4 + $0x3b8] sm:$0xff] %v6166_v56 }
 0xc84   :  { %v5976_v4 = vpop.f32.mrb[180].mxu0  ;;  %v6169_v30 = vpop.f32.mrb[4].mxu1 }
 0xc85   :  { %v5977_v53 = vadd.f32 %v5976_v4, %v12255_v0  ;;  %v6170_v6 = vadd.f32 %v6169_v30, %v12257_v8  ;;  %v5978_v46 = vpop.f32.mrb[181].mxu0  ;;  %v6171_v39 = vpop.f32.mrb[5].mxu1 }
 0xc86   :  { %v5979_v43 = vadd.f32 %v5978_v46, %v12260_v36  ;;  %v6172_v61 = vadd.f32 %v6171_v39, %v12262_v13  ;;  %v5980_v59 = vpop.f32.mrb[182].mxu0  ;;  %v6173_v42 = vpop.f32.mrb[6].mxu1 }
 0xc87   :  { %6298 = vst [vmem:[#allocation4 + $0x3c0] sm:$0xff] %v5977_v53  ;;  %6300 = vst [vmem:[#allocation4 + $0x3d0] sm:$0xff] %v6170_v6  ;;  %v5981_v34 = vadd.f32 %v5980_v59, %v12255_v0  ;;  %v6174_v7 = vadd.f32 %v6173_v42, %v12257_v8  ;;  %v5982_v11 = vpop.f32.mrb[183].mxu0  ;;  %v6175_v23 = vpop.f32.mrb[7].mxu1 }
 0xc88   :  { %6299 = vst [vmem:[#allocation4 + $0x3c8] sm:$0xff] %v5979_v43  ;;  %6301 = vst [vmem:[#allocation4 + $0x3d8] sm:$0xff] %v6172_v61  ;;  %v5983_v55 = vadd.f32 %v5982_v11, %v12260_v36  ;;  %v6176_v2 = vadd.f32 %v6175_v23, %v12262_v13 }
 0xc89   :  { %6302 = vst [vmem:[#allocation4 + $0x3e0] sm:$0xff] %v5981_v34  ;;  %6304 = vst [vmem:[#allocation4 + $0x3f0] sm:$0xff] %v6174_v7 }
 0xc8a   :  { %6303 = vst [vmem:[#allocation4 + $0x3e8] sm:$0xff] %v5983_v55  ;;  %6305 = vst [vmem:[#allocation4 + $0x3f8] sm:$0xff] %v6176_v2 }
 0xc8b   :  { %7304 = shalt.err (!%p7301_p4)
}
 0xc8c   :  { %s7305_s8 = scalar_lea.hbm %s12427_s23, 16384 }
 0xc8d   :  { %p7306_p5 = scmp.ne.s32.totalorder %s12427_s23, %s7305_s8  ;;  %p7309_p6 = scmp.lt.u32.totalorder %s7305_s8, %s12427_s23 }
 0xc8f   :  { %p7311_p7 = pnand %p7309_p6, %p7306_p5 }
 0xc91   :  { %7314 = shalt.err (!%p7311_p7)
}
 0xc92   :  { %s7322_s7 = smov 512   ;;  %s7323_s28 = smov 32  }
 0xc93   :  { %6317 = dma.vmem_to_hbm [thread:$0]  %s6312_s12, 16384, %s12427_s23, [#allocation5], %s7322_s7, %s7322_s7, %s7323_s28  }
 0xc94   :  { %7317 = dma.done.wait [#allocation5], 16384  }
 0xc95   :  { %7318 = vsyncadd [#allocation5], 4294950912 }
 0xc96   :  { %6321 = vsyncpa [#allocation5], 1 }
 0xc97   :  { %6322 = vsyncmov [#allocation3] }
 0xc9a   :  { %s6323_s29 = vpop.sfrf %6322 }
 0xc9b   :  { %p6559_p8 = scmp.ne.s32.totalorder %s6323_s29, 0 }
 0xc9d   :  { %6327 = shalt.err (%p6559_p8)  }

</bundles_post_ra>
